<compile_context>
chip_gen: v5e
topology: v5e:2x2
jax: 0.10.0
libtpu: 0.0.40
codegen_flags: <defaults>
</compile_context>

<pallas_src>
import jax
import jax.numpy as jnp
from jax.experimental import pallas as pl

# ----------------------------- config (small) -----------------------------
B = 2                      # batch
SQ = 8                     # question length
SO = 8                     # number of image objects
WORD_EMBED_SIZE = 32
HIDDEN_SIZE = 32
MULTI_HEAD = 4
HIDDEN_SIZE_HEAD = HIDDEN_SIZE // MULTI_HEAD
FF_SIZE = 64
LAYER = 2
FLAT_MLP_SIZE = 64
FLAT_GLIMPSES = 1
FLAT_OUT_SIZE = 64
IMG_FEAT_SIZE = 48
TOKEN_SIZE = 20
ANSWER_SIZE = 10
LN_EPS = 1e-6
NEG_INF = -1e9

# bf16 operands at MXU dot sites (fp32 accumulation).  v6e/v7x MXU peak is
# bf16; set to jnp.float32 for exact fp32 parity with the PyTorch reference.
MXU_DTYPE = jnp.bfloat16


# ----------------------- in-kernel building blocks -------------------------
def _mm(a, b):
    """Dense matmul: bf16 operands, fp32 accumulation (MXU-friendly)."""
    return jnp.dot(a.astype(MXU_DTYPE), b.astype(MXU_DTYPE),
                   preferred_element_type=jnp.float32)


def _sigmoid_approx(x):
    # EUP exp + EUP approx reciprocal; keeps the VALU free (LSTM gates only).
    return pl.reciprocal(1.0 + jnp.exp(-x), approx=True)


def _dense(x2d, dp, activation=None):
    y = _mm(x2d, dp["w"][...]) + dp["b"][...]
    if activation == "relu":
        y = jnp.maximum(y, 0.0)
    return y


def _layernorm(x, np_, eps=LN_EPS):
    # MCAN custom LayerNorm: a*(x-mean)/(std+eps)+b, unbiased std (ddof=1).
    n = x.shape[-1]
    mean = jnp.sum(x, axis=-1, keepdims=True) * (1.0 / float(n))
    d = x - mean
    var = jnp.sum(d * d, axis=-1, keepdims=True) * (1.0 / float(n - 1))
    inv = pl.reciprocal(jnp.sqrt(var) + eps, approx=True)
    return np_["g"][...] * (d * inv) + np_["b"][...]


def _lstm(lp, emb_tm):
    # emb_tm: (SQ, B, E) time-major.  One lane-dense (.,32)@(32,128) matmul per
    # step; gates i/f/g/o are static lane slices of the 128-wide result.
    S, Bx, E = emb_tm.shape
    H = HIDDEN_SIZE
    w_ih = lp["w_ih"][...]                         # (E, 4H)
    w_hh = lp["w_hh"][...].astype(MXU_DTYPE)       # (H, 4H), cast once, reused
    b = lp["b"][...]                               # (1, 4H) = b_ih + b_hh
    xg = (_mm(emb_tm.reshape(S * Bx, E), w_ih) + b).reshape(S, Bx, 4 * H)
    h = jnp.zeros((Bx, H), jnp.float32)
    c = jnp.zeros((Bx, H), jnp.float32)
    hs = []
    for t in range(S):
        pre = xg[t] + jnp.dot(h.astype(MXU_DTYPE), w_hh,
                              preferred_element_type=jnp.float32)    # (B, 4H)
        i_t = _sigmoid_approx(pre[:, 0 * H:1 * H])
        f_t = _sigmoid_approx(pre[:, 1 * H:2 * H])
        g_t = jnp.tanh(pre[:, 2 * H:3 * H])
        o_t = _sigmoid_approx(pre[:, 3 * H:4 * H])
        c = f_t * c + i_t * g_t
        h = o_t * jnp.tanh(c)
        hs.append(h)
    return jnp.stack(hs, axis=1)                   # (B, SQ, H) batch-major


def _mha(mp, kv_in, q_in, key_mask_bool, *, self_att):
    # kv_in: (B,Sk,H)  q_in: (B,Sq,H)  key_mask_bool: (B,1,Sk), True == pad.
    Bx, Sq, H = q_in.shape
    Sk = kv_in.shape[1]
    NH, DH = MULTI_HEAD, HIDDEN_SIZE_HEAD
    w_vkq = mp["w_vkq"][...]                       # (H, 3H) = [Wv | Wk | Wq]
    b_vkq = mp["b_vkq"][...]                       # (1, 3H)
    if self_att:
        vkq = _mm(q_in.reshape(Bx * Sq, H), w_vkq) + b_vkq          # 1 matmul
        v = vkq[:, 0 * H:1 * H].reshape(Bx, Sk, H)
        k = vkq[:, 1 * H:2 * H].reshape(Bx, Sk, H)
        q = vkq[:, 2 * H:3 * H].reshape(Bx, Sq, H)
    else:
        vk = _mm(kv_in.reshape(Bx * Sk, H), w_vkq[:, :2 * H]) + b_vkq[:, :2 * H]
        v = vk[:, :H].reshape(Bx, Sk, H)
        k = vk[:, H:].reshape(Bx, Sk, H)
        q = (_mm(q_in.reshape(Bx * Sq, H), w_vkq[:, 2 * H:])
             + b_vkq[:, 2 * H:]).reshape(Bx, Sq, H)

    scale = 1.0 / (DH ** 0.5)
    # Per-head scores stacked along the query (sublane) axis -> a single mask
    # select + a single softmax (max / exp / sum / reciprocal) for all heads.
    parts = []
    for h_idx in range(NH):
        sl = slice(h_idx * DH, (h_idx + 1) * DH)
        parts.append(jnp.einsum("bqd,bkd->bqk", q[:, :, sl], k[:, :, sl],
                                preferred_element_type=jnp.float32))
    scores = jnp.concatenate(parts, axis=1) * scale                  # (B,NH*Sq,Sk)
    scores = jnp.where(key_mask_bool, NEG_INF, scores)               # one select
    scores = scores - jnp.max(scores, axis=-1, keepdims=True)
    e = jnp.exp(scores)
    att = e * pl.reciprocal(jnp.sum(e, axis=-1, keepdims=True), approx=True)
    ctx_parts = []
    for h_idx in range(NH):
        att_h = att[:, h_idx * Sq:(h_idx + 1) * Sq, :]
        vh = v[:, :, h_idx * DH:(h_idx + 1) * DH]
        ctx_parts.append(jnp.einsum("bqk,bkd->bqd", att_h, vh,
                                    preferred_element_type=jnp.float32))
    ctx = jnp.concatenate(ctx_parts, axis=-1)      # (B,Sq,H), head-major order
    atted = (_mm(ctx.reshape(Bx * Sq, H), mp["w_merge"][...])
             + mp["b_merge"][...])                                   # one merge
    return atted.reshape(Bx, Sq, H)


def _ffn(fp, x):
    Bx, S, H = x.shape
    h = _dense(x.reshape(Bx * S, H), fp["fc"], activation="relu")
    return _dense(h, fp["out"]).reshape(Bx, S, H)


def _sa(lp, x, x_key_mask):
    x = _layernorm(x + _mha(lp["mhatt"], x, x, x_key_mask, self_att=True),
                   lp["norm1"])
    x = _layernorm(x + _ffn(lp["ffn"], x), lp["norm2"])
    return x


def _sga(lp, x, y, x_key_mask, y_key_mask):
    x = _layernorm(x + _mha(lp["mhatt1"], x, x, x_key_mask, self_att=True),
                   lp["norm1"])
    x = _layernorm(x + _mha(lp["mhatt2"], y, x, y_key_mask, self_att=False),
                   lp["norm2"])
    x = _layernorm(x + _ffn(lp["ffn"], x), lp["norm3"])
    return x


def _attflat(ap, x, seq_mask_bool):
    # x: (B,S,H)   seq_mask_bool: (B,S,1), True == pad
    Bx, S, H = x.shape
    a = _dense(x.reshape(Bx * S, H), ap["mlp_fc"], activation="relu")
    if FLAT_GLIMPSES == 1:
        # (FLAT_MLP -> 1) projection as a VPU multiply + cross-lane sum
        # instead of a 1-output-column MXU matmul.
        logit = (jnp.sum(a * ap["mlp_out_w"][...], axis=-1, keepdims=True)
                 + ap["mlp_out_b"][...])
    else:
        logit = _dense(a, ap["mlp_out"])
    att = logit.reshape(Bx, S, FLAT_GLIMPSES)
    att = jnp.where(seq_mask_bool, NEG_INF, att)
    att = att - jnp.max(att, axis=1, keepdims=True)
    e = jnp.exp(att)
    att = e * pl.reciprocal(jnp.sum(e, axis=1, keepdims=True), approx=True)
    glimpses = [jnp.sum(att[:, :, g:g + 1] * x, axis=1)              # (B, H)
                for g in range(FLAT_GLIMPSES)]
    pooled = glimpses[0] if FLAT_GLIMPSES == 1 else jnp.concatenate(glimpses, -1)
    return _dense(pooled, ap["linear_merge"])                        # (B, FLAT_OUT)


# --------------------- weight packing (one-time, host) ----------------------
def _restructure(params):
    """Host-side weight fusion: keep the LSTM gate matrices whole (lane-dense
    128-wide) and fold b_ih+b_hh, concatenate [Wv|Wk|Wq] per MHA, and turn the
    AttFlat (64->1) projection into a broadcastable (1,64) row."""
    lstm = params["lstm"]

    def fuse_mha(mp):
        return {
            "w_vkq": jnp.concatenate([mp["linear_v"]["w"], mp["linear_k"]["w"],
                                      mp["linear_q"]["w"]], axis=1),
            "b_vkq": jnp.concatenate([mp["linear_v"]["b"], mp["linear_k"]["b"],
                                      mp["linear_q"]["b"]], axis=1),
            "w_merge": mp["linear_merge"]["w"],
            "b_merge": mp["linear_merge"]["b"],
        }

    def fuse_attflat(ap):
        out = {"mlp_fc": ap["mlp_fc"], "linear_merge": ap["linear_merge"]}
        if FLAT_GLIMPSES == 1:
            out["mlp_out_w"] = ap["mlp_out"]["w"].T            # (1, FLAT_MLP)
            out["mlp_out_b"] = ap["mlp_out"]["b"]              # (1, 1)
        else:
            out["mlp_out"] = ap["mlp_out"]
        return out

    def sa_p(lp):
        return {"mhatt": fuse_mha(lp["mhatt"]), "ffn": lp["ffn"],
                "norm1": lp["norm1"], "norm2": lp["norm2"]}

    def sga_p(lp):
        return {"mhatt1": fuse_mha(lp["mhatt1"]),
                "mhatt2": fuse_mha(lp["mhatt2"]), "ffn": lp["ffn"],
                "norm1": lp["norm1"], "norm2": lp["norm2"], "norm3": lp["norm3"]}

    return {
        "lstm": {"w_ih": lstm["w_ih_t"], "w_hh": lstm["w_hh_t"],
                 "b": lstm["b_ih"] + lstm["b_hh"]},
        "img_feat_linear": params["img_feat_linear"],
        "enc": [sa_p(lp) for lp in params["enc"]],
        "dec": [sga_p(lp) for lp in params["dec"]],
        "attflat_lang": fuse_attflat(params["attflat_lang"]),
        "attflat_img": fuse_attflat(params["attflat_img"]),
        "proj_norm": params["proj_norm"],
        "proj": params["proj"],
    }


def prepare_params(params):
    """One-time host-side packing: stack all (2-D) weight leaves by shape so
    the fused kernel receives ~a dozen VMEM-resident stacks (one DMA each)."""
    prep = _restructure(params)
    leaves, treedef = jax.tree_util.tree_flatten(prep)
    groups = {}
    handles = []
    for leaf in leaves:
        leaf = jnp.asarray(leaf, jnp.float32)
        key = tuple(leaf.shape)
        bucket = groups.setdefault(key, [])
        handles.append((key, len(bucket)))
        bucket.append(leaf)
    keys = tuple(sorted(groups.keys()))
    packed = {k: jnp.stack(groups[k], axis=0) for k in keys}
    meta = {"treedef": treedef, "handles": tuple(handles), "keys": keys}
    return packed, meta


# ----------------------------- fused forward --------------------------------
def make_forward(meta):
    treedef = meta["treedef"]
    handles = meta["handles"]
    keys = meta["keys"]
    n_groups = len(keys)

    def kernel(*refs):
        (lang_emb_tm_ref, img_feat_ref,
         lang_key_mask_ref, img_key_mask_ref,
         lang_seq_mask_ref, img_seq_mask_ref) = refs[:6]
        group_refs = dict(zip(keys, refs[6:6 + n_groups]))
        out_ref = refs[6 + n_groups]

        # Rebuild the weight pytree LAZILY: every leaf is a zero-cost Ref view
        # (.at[i]) into a packed VMEM stack.  The actual VMEM->vreg load
        # happens at each leaf's point of use inside the helpers, bounding
        # live ranges (no eager materialization of ~270 KB of weights).
        views = [group_refs[k].at[i] for (k, i) in handles]
        p = jax.tree_util.tree_unflatten(treedef, views)

        lang_emb_tm = lang_emb_tm_ref[...]        # (SQ, B, E) time-major
        img_feat = img_feat_ref[...]              # (B, SO, IMG_FEAT_SIZE)
        # Mask compares done ONCE per forward; everything downstream is bool.
        lang_key_mask = lang_key_mask_ref[...] > 0.0    # (B, 1, SQ)
        img_key_mask = img_key_mask_ref[...] > 0.0      # (B, 1, SO)
        lang_seq_mask = lang_seq_mask_ref[...] > 0.0    # (B, SQ, 1)
        img_seq_mask = img_seq_mask_ref[...] > 0.0      # (B, SO, 1)
        Bx = img_feat.shape[0]

        # LSTM over the question (unrolled in-kernel).
        lang = _lstm(p["lstm"], lang_emb_tm)                          # (B,SQ,H)

        # Image feature projection.
        img = _dense(img_feat.reshape(Bx * SO, IMG_FEAT_SIZE),
                     p["img_feat_linear"]).reshape(Bx, SO, HIDDEN_SIZE)

        # MCA_ED backbone: SA stack on language, then SGA stack on image.
        for lp in p["enc"]:
            lang = _sa(lp, lang, lang_key_mask)
        for lp in p["dec"]:
            img = _sga(lp, img, lang, img_key_mask, lang_key_mask)

        # Attention-flatten both modalities, fuse, project, sigmoid.
        lang_flat = _attflat(p["attflat_lang"], lang, lang_seq_mask)
        img_flat = _attflat(p["attflat_img"], img, img_seq_mask)
        proj = _layernorm(lang_flat + img_flat, p["proj_norm"])
        logits = _dense(proj, p["proj"])
        # Exact sigmoid for the final output (keeps the [0,1] range bit-safe).
        out_ref[...] = 1.0 / (1.0 + jnp.exp(-logits))

    def forward(packed, embedding, img_feat, ques_ix):
        Bx = ques_ix.shape[0]
        # XLA glue: embedding gather + pad-mask construction (tiny).
        lang_emb_tm = jnp.take(embedding, ques_ix.T, axis=0)          # (SQ,B,E)
        lang_pad = (ques_ix == 0).astype(jnp.float32)                 # (B,SQ)
        img_pad = (jnp.sum(jnp.abs(img_feat), axis=-1) == 0).astype(jnp.float32)
        inputs = (lang_emb_tm, img_feat,
                  lang_pad[:, None, :], img_pad[:, None, :],
                  lang_pad[:, :, None], img_pad[:, :, None])
        group_args = tuple(packed[k] for k in keys)
        # Single grid-less invocation: every operand is a whole-array VMEM
        # block; weights stay resident for the entire forward pass and the
        # only HBM traffic is inputs-in / (B, answer)-out.
        return pl.pallas_call(
            kernel,
            out_shape=jax.ShapeDtypeStruct((Bx, ANSWER_SIZE), jnp.float32),
        )(*inputs, *group_args)

    return forward


# ------------------------------- parameters --------------------------------
def init_params(key):
    keys = iter(jax.random.split(key, 256))

    def dense(k_in, k_out, scale=0.05):
        return {"w": jax.random.normal(next(keys), (k_in, k_out), jnp.float32) * scale,
                "b": jax.random.normal(next(keys), (1, k_out), jnp.float32) * scale}

    def ln(size):
        return {"g": jnp.ones((1, size), jnp.float32),
                "b": jnp.zeros((1, size), jnp.float32)}

    def mha_p():
        return {"linear_v": dense(HIDDEN_SIZE, HIDDEN_SIZE),
                "linear_k": dense(HIDDEN_SIZE, HIDDEN_SIZE),
                "linear_q": dense(HIDDEN_SIZE, HIDDEN_SIZE),
                "linear_merge": dense(HIDDEN_SIZE, HIDDEN_SIZE)}

    def ffn_p():
        return {"fc": dense(HIDDEN_SIZE, FF_SIZE), "out": dense(FF_SIZE, HIDDEN_SIZE)}

    def sa_p():
        return {"mhatt": mha_p(), "ffn": ffn_p(),
                "norm1": ln(HIDDEN_SIZE), "norm2": ln(HIDDEN_SIZE)}

    def sga_p():
        return {"mhatt1": mha_p(), "mhatt2": mha_p(), "ffn": ffn_p(),
                "norm1": ln(HIDDEN_SIZE), "norm2": ln(HIDDEN_SIZE),
                "norm3": ln(HIDDEN_SIZE)}

    def attflat_p():
        return {"mlp_fc": dense(HIDDEN_SIZE, FLAT_MLP_SIZE),
                "mlp_out": dense(FLAT_MLP_SIZE, FLAT_GLIMPSES),
                "linear_merge": dense(HIDDEN_SIZE * FLAT_GLIMPSES, FLAT_OUT_SIZE)}

    return {
        "embedding": jax.random.normal(next(keys), (TOKEN_SIZE, WORD_EMBED_SIZE),
                                       jnp.float32) * 0.1,
        "lstm": {
            "w_ih_t": jax.random.normal(next(keys), (WORD_EMBED_SIZE, 4 * HIDDEN_SIZE),
                                        jnp.float32) * 0.05,
            "w_hh_t": jax.random.normal(next(keys), (HIDDEN_SIZE, 4 * HIDDEN_SIZE),
                                        jnp.float32) * 0.05,
            "b_ih": jax.random.normal(next(keys), (1, 4 * HIDDEN_SIZE), jnp.float32) * 0.05,
            "b_hh": jax.random.normal(next(keys), (1, 4 * HIDDEN_SIZE), jnp.float32) * 0.05,
        },
        "img_feat_linear": dense(IMG_FEAT_SIZE, HIDDEN_SIZE),
        "enc": [sa_p() for _ in range(LAYER)],
        "dec": [sga_p() for _ in range(LAYER)],
        "attflat_lang": attflat_p(),
        "attflat_img": attflat_p(),
        "proj_norm": ln(FLAT_OUT_SIZE),
        "proj": dense(FLAT_OUT_SIZE, ANSWER_SIZE),
    }


# --------------------------------- main -------------------------------------
if __name__ == "__main__":
    key = jax.random.PRNGKey(0)
    kp, ki, kq = jax.random.split(key, 3)
    params = init_params(kp)

    img_feat = jax.random.normal(ki, (B, SO, IMG_FEAT_SIZE), jnp.float32)
    img_feat = img_feat.at[1, SO - 2:].set(0.0)          # padded image objects

    ques_ix = jax.random.randint(kq, (B, SQ), 1, TOKEN_SIZE, dtype=jnp.int32)
    ques_ix = ques_ix.at[0, SQ - 3:].set(0)              # padded tokens
    ques_ix = ques_ix.at[1, SQ - 1:].set(0)

    packed, meta = prepare_params(params)                # one-time weight packing
    forward = jax.jit(make_forward(meta))

    out = forward(packed, params["embedding"], img_feat, ques_ix)
    out = jax.block_until_ready(out)

    assert out.shape == (B, ANSWER_SIZE), out.shape
    assert bool(jnp.all(jnp.isfinite(out)))
    assert bool(jnp.all((out >= 0.0) & (out <= 1.0)))    # sigmoid output range
    print("KERNEL_OK")
</pallas_src>

<mosaic_0001>
module attributes {stable_mosaic.version = 11 : i64} {
  func.func @kernel(%arg0: memref<8x2x32xf32, #tpu.memory_space<vmem>>, %arg1: memref<2x8x48xf32, #tpu.memory_space<vmem>>, %arg2: memref<2x1x8xf32, #tpu.memory_space<vmem>>, %arg3: memref<2x1x8xf32, #tpu.memory_space<vmem>>, %arg4: memref<2x8x1xf32, #tpu.memory_space<vmem>>, %arg5: memref<2x8x1xf32, #tpu.memory_space<vmem>>, %arg6: memref<2x1x1xf32, #tpu.memory_space<vmem>>, %arg7: memref<1x1x10xf32, #tpu.memory_space<vmem>>, %arg8: memref<31x1x32xf32, #tpu.memory_space<vmem>>, %arg9: memref<12x1x64xf32, #tpu.memory_space<vmem>>, %arg10: memref<6x1x96xf32, #tpu.memory_space<vmem>>, %arg11: memref<1x1x128xf32, #tpu.memory_space<vmem>>, %arg12: memref<6x32x32xf32, #tpu.memory_space<vmem>>, %arg13: memref<8x32x64xf32, #tpu.memory_space<vmem>>, %arg14: memref<6x32x96xf32, #tpu.memory_space<vmem>>, %arg15: memref<2x32x128xf32, #tpu.memory_space<vmem>>, %arg16: memref<1x48x32xf32, #tpu.memory_space<vmem>>, %arg17: memref<1x64x10xf32, #tpu.memory_space<vmem>>, %arg18: memref<4x64x32xf32, #tpu.memory_space<vmem>>, %arg19: memref<2x10xf32, #tpu.memory_space<vmem>>) attributes {dimension_semantics = [], scalar_prefetch = 0 : i64, scratch_operands = 0 : i64, tpu.core_type = #tpu.core_type<tc>} {
    %c0 = arith.constant 0 : index
    %c0_0 = arith.constant 0 : index
    %c0_1 = arith.constant 0 : index
    %0 = vector.load %arg0[%c0, %c0_0, %c0_1] : memref<8x2x32xf32, #tpu.memory_space<vmem>>, vector<8x2x32xf32>
    %c0_2 = arith.constant 0 : index
    %c0_3 = arith.constant 0 : index
    %c0_4 = arith.constant 0 : index
    %1 = vector.load %arg1[%c0_2, %c0_3, %c0_4] : memref<2x8x48xf32, #tpu.memory_space<vmem>>, vector<2x8x48xf32>
    %c0_5 = arith.constant 0 : index
    %c0_6 = arith.constant 0 : index
    %c0_7 = arith.constant 0 : index
    %2 = vector.load %arg2[%c0_5, %c0_6, %c0_7] : memref<2x1x8xf32, #tpu.memory_space<vmem>>, vector<2x1x8xf32>
    %cst = arith.constant 0.000000e+00 : f32
    %3 = vector.broadcast %cst : f32 to vector<2x1x8xf32>
    %4 = arith.cmpf ogt, %2, %3 : vector<2x1x8xf32>
    %c0_8 = arith.constant 0 : index
    %c0_9 = arith.constant 0 : index
    %c0_10 = arith.constant 0 : index
    %5 = vector.load %arg3[%c0_8, %c0_9, %c0_10] : memref<2x1x8xf32, #tpu.memory_space<vmem>>, vector<2x1x8xf32>
    %cst_11 = arith.constant 0.000000e+00 : f32
    %6 = vector.broadcast %cst_11 : f32 to vector<2x1x8xf32>
    %7 = arith.cmpf ogt, %5, %6 : vector<2x1x8xf32>
    %c0_12 = arith.constant 0 : index
    %c0_13 = arith.constant 0 : index
    %c0_14 = arith.constant 0 : index
    %8 = vector.load %arg4[%c0_12, %c0_13, %c0_14] : memref<2x8x1xf32, #tpu.memory_space<vmem>>, vector<2x8x1xf32>
    %cst_15 = arith.constant 0.000000e+00 : f32
    %9 = vector.broadcast %cst_15 : f32 to vector<2x8x1xf32>
    %10 = arith.cmpf ogt, %8, %9 : vector<2x8x1xf32>
    %c0_16 = arith.constant 0 : index
    %c0_17 = arith.constant 0 : index
    %c0_18 = arith.constant 0 : index
    %11 = vector.load %arg5[%c0_16, %c0_17, %c0_18] : memref<2x8x1xf32, #tpu.memory_space<vmem>>, vector<2x8x1xf32>
    %cst_19 = arith.constant 0.000000e+00 : f32
    %12 = vector.broadcast %cst_19 : f32 to vector<2x8x1xf32>
    %13 = arith.cmpf ogt, %11, %12 : vector<2x8x1xf32>
    %c1 = arith.constant 1 : index
    %c0_20 = arith.constant 0 : index
    %c0_21 = arith.constant 0 : index
    %14 = vector.load %arg15[%c1, %c0_20, %c0_21] : memref<2x32x128xf32, #tpu.memory_space<vmem>>, vector<1x32x128xf32>
    %15 = vector.shape_cast %14 : vector<1x32x128xf32> to vector<32x128xf32>
    %c0_22 = arith.constant 0 : index
    %c0_23 = arith.constant 0 : index
    %c0_24 = arith.constant 0 : index
    %16 = vector.load %arg15[%c0_22, %c0_23, %c0_24] : memref<2x32x128xf32, #tpu.memory_space<vmem>>, vector<1x32x128xf32>
    %17 = vector.shape_cast %16 : vector<1x32x128xf32> to vector<32x128xf32>
    %18 = arith.truncf %17 : vector<32x128xf32> to vector<32x128xbf16>
    %c0_25 = arith.constant 0 : index
    %c0_26 = arith.constant 0 : index
    %c0_27 = arith.constant 0 : index
    %19 = vector.load %arg11[%c0_25, %c0_26, %c0_27] : memref<1x1x128xf32, #tpu.memory_space<vmem>>, vector<1x1x128xf32>
    %20 = vector.shape_cast %19 : vector<1x1x128xf32> to vector<1x128xf32>
    %21 = vector.shape_cast %0 : vector<8x2x32xf32> to vector<16x32xf32>
    %22 = arith.truncf %21 : vector<16x32xf32> to vector<16x32xbf16>
    %23 = arith.truncf %15 : vector<32x128xf32> to vector<32x128xbf16>
    %cst_28 = arith.constant dense<0.000000e+00> : vector<16x128xf32>
    %24 = tpu.matmul %22, %23, %cst_28 {dimension_numbers = #tpu.dot_dimension_numbers<[1], [0], [0], [1], [0, 0, 1, 1], [], []>} : vector<16x32xbf16>, vector<32x128xbf16>, vector<16x128xf32> -> vector<16x128xf32>
    %25 = vector.broadcast %20 : vector<1x128xf32> to vector<16x128xf32>
    %26 = arith.addf %24, %25 : vector<16x128xf32>
    %27 = vector.shape_cast %26 : vector<16x128xf32> to vector<8x2x128xf32>
    %cst_29 = arith.constant 0.000000e+00 : f32
    %28 = vector.broadcast %cst_29 : f32 to vector<2x32xf32>
    %cst_30 = arith.constant 0.000000e+00 : f32
    %29 = vector.broadcast %cst_30 : f32 to vector<2x32xf32>
    %30 = vector.extract_strided_slice %27 {offsets = [0, 0, 0], sizes = [1, 2, 128], strides = [1, 1, 1]} : vector<8x2x128xf32> to vector<1x2x128xf32>
    %31 = vector.shape_cast %30 : vector<1x2x128xf32> to vector<2x128xf32>
    %32 = arith.truncf %28 : vector<2x32xf32> to vector<2x32xbf16>
    %cst_31 = arith.constant dense<0.000000e+00> : vector<2x128xf32>
    %33 = tpu.matmul %32, %18, %cst_31 {dimension_numbers = #tpu.dot_dimension_numbers<[1], [0], [0], [1], [0, 0, 1, 1], [], []>} : vector<2x32xbf16>, vector<32x128xbf16>, vector<2x128xf32> -> vector<2x128xf32>
    %34 = arith.addf %31, %33 : vector<2x128xf32>
    %35 = vector.extract_strided_slice %34 {offsets = [0, 0], sizes = [2, 32], strides = [1, 1]} : vector<2x128xf32> to vector<2x32xf32>
    %cst_32 = arith.constant 0.000000e+00 : f32
    %36 = vector.broadcast %cst_32 : f32 to vector<2x32xf32>
    %37 = arith.subf %36, %35 : vector<2x32xf32>
    %38 = math.exp %37 : vector<2x32xf32>
    %cst_33 = arith.constant 1.000000e+00 : f32
    %39 = vector.broadcast %cst_33 : f32 to vector<2x32xf32>
    %40 = arith.addf %39, %38 : vector<2x32xf32>
    %41 = tpu.reciprocal %40 {approx = true} : vector<2x32xf32> -> vector<2x32xf32>
    %42 = vector.extract_strided_slice %34 {offsets = [0, 32], sizes = [2, 32], strides = [1, 1]} : vector<2x128xf32> to vector<2x32xf32>
    %cst_34 = arith.constant 0.000000e+00 : f32
    %43 = vector.broadcast %cst_34 : f32 to vector<2x32xf32>
    %44 = arith.subf %43, %42 : vector<2x32xf32>
    %45 = math.exp %44 : vector<2x32xf32>
    %cst_35 = arith.constant 1.000000e+00 : f32
    %46 = vector.broadcast %cst_35 : f32 to vector<2x32xf32>
    %47 = arith.addf %46, %45 : vector<2x32xf32>
    %48 = tpu.reciprocal %47 {approx = true} : vector<2x32xf32> -> vector<2x32xf32>
    %49 = vector.extract_strided_slice %34 {offsets = [0, 64], sizes = [2, 32], strides = [1, 1]} : vector<2x128xf32> to vector<2x32xf32>
    %50 = math.tanh %49 : vector<2x32xf32>
    %51 = vector.extract_strided_slice %34 {offsets = [0, 96], sizes = [2, 32], strides = [1, 1]} : vector<2x128xf32> to vector<2x32xf32>
    %cst_36 = arith.constant 0.000000e+00 : f32
    %52 = vector.broadcast %cst_36 : f32 to vector<2x32xf32>
    %53 = arith.subf %52, %51 : vector<2x32xf32>
    %54 = math.exp %53 : vector<2x32xf32>
    %cst_37 = arith.constant 1.000000e+00 : f32
    %55 = vector.broadcast %cst_37 : f32 to vector<2x32xf32>
    %56 = arith.addf %55, %54 : vector<2x32xf32>
    %57 = tpu.reciprocal %56 {approx = true} : vector<2x32xf32> -> vector<2x32xf32>
    %58 = arith.mulf %48, %29 : vector<2x32xf32>
    %59 = arith.mulf %41, %50 : vector<2x32xf32>
    %60 = arith.addf %58, %59 : vector<2x32xf32>
    %61 = math.tanh %60 : vector<2x32xf32>
    %62 = arith.mulf %57, %61 : vector<2x32xf32>
    %63 = vector.extract_strided_slice %27 {offsets = [1, 0, 0], sizes = [1, 2, 128], strides = [1, 1, 1]} : vector<8x2x128xf32> to vector<1x2x128xf32>
    %64 = vector.shape_cast %63 : vector<1x2x128xf32> to vector<2x128xf32>
    %65 = arith.truncf %62 : vector<2x32xf32> to vector<2x32xbf16>
    %cst_38 = arith.constant dense<0.000000e+00> : vector<2x128xf32>
    %66 = tpu.matmul %65, %18, %cst_38 {dimension_numbers = #tpu.dot_dimension_numbers<[1], [0], [0], [1], [0, 0, 1, 1], [], []>} : vector<2x32xbf16>, vector<32x128xbf16>, vector<2x128xf32> -> vector<2x128xf32>
    %67 = arith.addf %64, %66 : vector<2x128xf32>
    %68 = vector.extract_strided_slice %67 {offsets = [0, 0], sizes = [2, 32], strides = [1, 1]} : vector<2x128xf32> to vector<2x32xf32>
    %cst_39 = arith.constant 0.000000e+00 : f32
    %69 = vector.broadcast %cst_39 : f32 to vector<2x32xf32>
    %70 = arith.subf %69, %68 : vector<2x32xf32>
    %71 = math.exp %70 : vector<2x32xf32>
    %cst_40 = arith.constant 1.000000e+00 : f32
    %72 = vector.broadcast %cst_40 : f32 to vector<2x32xf32>
    %73 = arith.addf %72, %71 : vector<2x32xf32>
    %74 = tpu.reciprocal %73 {approx = true} : vector<2x32xf32> -> vector<2x32xf32>
    %75 = vector.extract_strided_slice %67 {offsets = [0, 32], sizes = [2, 32], strides = [1, 1]} : vector<2x128xf32> to vector<2x32xf32>
    %cst_41 = arith.constant 0.000000e+00 : f32
    %76 = vector.broadcast %cst_41 : f32 to vector<2x32xf32>
    %77 = arith.subf %76, %75 : vector<2x32xf32>
    %78 = math.exp %77 : vector<2x32xf32>
    %cst_42 = arith.constant 1.000000e+00 : f32
    %79 = vector.broadcast %cst_42 : f32 to vector<2x32xf32>
    %80 = arith.addf %79, %78 : vector<2x32xf32>
    %81 = tpu.reciprocal %80 {approx = true} : vector<2x32xf32> -> vector<2x32xf32>
    %82 = vector.extract_strided_slice %67 {offsets = [0, 64], sizes = [2, 32], strides = [1, 1]} : vector<2x128xf32> to vector<2x32xf32>
    %83 = math.tanh %82 : vector<2x32xf32>
    %84 = vector.extract_strided_slice %67 {offsets = [0, 96], sizes = [2, 32], strides = [1, 1]} : vector<2x128xf32> to vector<2x32xf32>
    %cst_43 = arith.constant 0.000000e+00 : f32
    %85 = vector.broadcast %cst_43 : f32 to vector<2x32xf32>
    %86 = arith.subf %85, %84 : vector<2x32xf32>
    %87 = math.exp %86 : vector<2x32xf32>
    %cst_44 = arith.constant 1.000000e+00 : f32
    %88 = vector.broadcast %cst_44 : f32 to vector<2x32xf32>
    %89 = arith.addf %88, %87 : vector<2x32xf32>
    %90 = tpu.reciprocal %89 {approx = true} : vector<2x32xf32> -> vector<2x32xf32>
    %91 = arith.mulf %81, %60 : vector<2x32xf32>
    %92 = arith.mulf %74, %83 : vector<2x32xf32>
    %93 = arith.addf %91, %92 : vector<2x32xf32>
    %94 = math.tanh %93 : vector<2x32xf32>
    %95 = arith.mulf %90, %94 : vector<2x32xf32>
    %96 = vector.extract_strided_slice %27 {offsets = [2, 0, 0], sizes = [1, 2, 128], strides = [1, 1, 1]} : vector<8x2x128xf32> to vector<1x2x128xf32>
    %97 = vector.shape_cast %96 : vector<1x2x128xf32> to vector<2x128xf32>
    %98 = arith.truncf %95 : vector<2x32xf32> to vector<2x32xbf16>
    %cst_45 = arith.constant dense<0.000000e+00> : vector<2x128xf32>
    %99 = tpu.matmul %98, %18, %cst_45 {dimension_numbers = #tpu.dot_dimension_numbers<[1], [0], [0], [1], [0, 0, 1, 1], [], []>} : vector<2x32xbf16>, vector<32x128xbf16>, vector<2x128xf32> -> vector<2x128xf32>
    %100 = arith.addf %97, %99 : vector<2x128xf32>
    %101 = vector.extract_strided_slice %100 {offsets = [0, 0], sizes = [2, 32], strides = [1, 1]} : vector<2x128xf32> to vector<2x32xf32>
    %cst_46 = arith.constant 0.000000e+00 : f32
    %102 = vector.broadcast %cst_46 : f32 to vector<2x32xf32>
    %103 = arith.subf %102, %101 : vector<2x32xf32>
    %104 = math.exp %103 : vector<2x32xf32>
    %cst_47 = arith.constant 1.000000e+00 : f32
    %105 = vector.broadcast %cst_47 : f32 to vector<2x32xf32>
    %106 = arith.addf %105, %104 : vector<2x32xf32>
    %107 = tpu.reciprocal %106 {approx = true} : vector<2x32xf32> -> vector<2x32xf32>
    %108 = vector.extract_strided_slice %100 {offsets = [0, 32], sizes = [2, 32], strides = [1, 1]} : vector<2x128xf32> to vector<2x32xf32>
    %cst_48 = arith.constant 0.000000e+00 : f32
    %109 = vector.broadcast %cst_48 : f32 to vector<2x32xf32>
    %110 = arith.subf %109, %108 : vector<2x32xf32>
    %111 = math.exp %110 : vector<2x32xf32>
    %cst_49 = arith.constant 1.000000e+00 : f32
    %112 = vector.broadcast %cst_49 : f32 to vector<2x32xf32>
    %113 = arith.addf %112, %111 : vector<2x32xf32>
    %114 = tpu.reciprocal %113 {approx = true} : vector<2x32xf32> -> vector<2x32xf32>
    %115 = vector.extract_strided_slice %100 {offsets = [0, 64], sizes = [2, 32], strides = [1, 1]} : vector<2x128xf32> to vector<2x32xf32>
    %116 = math.tanh %115 : vector<2x32xf32>
    %117 = vector.extract_strided_slice %100 {offsets = [0, 96], sizes = [2, 32], strides = [1, 1]} : vector<2x128xf32> to vector<2x32xf32>
    %cst_50 = arith.constant 0.000000e+00 : f32
    %118 = vector.broadcast %cst_50 : f32 to vector<2x32xf32>
    %119 = arith.subf %118, %117 : vector<2x32xf32>
    %120 = math.exp %119 : vector<2x32xf32>
    %cst_51 = arith.constant 1.000000e+00 : f32
    %121 = vector.broadcast %cst_51 : f32 to vector<2x32xf32>
    %122 = arith.addf %121, %120 : vector<2x32xf32>
    %123 = tpu.reciprocal %122 {approx = true} : vector<2x32xf32> -> vector<2x32xf32>
    %124 = arith.mulf %114, %93 : vector<2x32xf32>
    %125 = arith.mulf %107, %116 : vector<2x32xf32>
    %126 = arith.addf %124, %125 : vector<2x32xf32>
    %127 = math.tanh %126 : vector<2x32xf32>
    %128 = arith.mulf %123, %127 : vector<2x32xf32>
    %129 = vector.extract_strided_slice %27 {offsets = [3, 0, 0], sizes = [1, 2, 128], strides = [1, 1, 1]} : vector<8x2x128xf32> to vector<1x2x128xf32>
    %130 = vector.shape_cast %129 : vector<1x2x128xf32> to vector<2x128xf32>
    %131 = arith.truncf %128 : vector<2x32xf32> to vector<2x32xbf16>
    %cst_52 = arith.constant dense<0.000000e+00> : vector<2x128xf32>
    %132 = tpu.matmul %131, %18, %cst_52 {dimension_numbers = #tpu.dot_dimension_numbers<[1], [0], [0], [1], [0, 0, 1, 1], [], []>} : vector<2x32xbf16>, vector<32x128xbf16>, vector<2x128xf32> -> vector<2x128xf32>
    %133 = arith.addf %130, %132 : vector<2x128xf32>
    %134 = vector.extract_strided_slice %133 {offsets = [0, 0], sizes = [2, 32], strides = [1, 1]} : vector<2x128xf32> to vector<2x32xf32>
    %cst_53 = arith.constant 0.000000e+00 : f32
    %135 = vector.broadcast %cst_53 : f32 to vector<2x32xf32>
    %136 = arith.subf %135, %134 : vector<2x32xf32>
    %137 = math.exp %136 : vector<2x32xf32>
    %cst_54 = arith.constant 1.000000e+00 : f32
    %138 = vector.broadcast %cst_54 : f32 to vector<2x32xf32>
    %139 = arith.addf %138, %137 : vector<2x32xf32>
    %140 = tpu.reciprocal %139 {approx = true} : vector<2x32xf32> -> vector<2x32xf32>
    %141 = vector.extract_strided_slice %133 {offsets = [0, 32], sizes = [2, 32], strides = [1, 1]} : vector<2x128xf32> to vector<2x32xf32>
    %cst_55 = arith.constant 0.000000e+00 : f32
    %142 = vector.broadcast %cst_55 : f32 to vector<2x32xf32>
    %143 = arith.subf %142, %141 : vector<2x32xf32>
    %144 = math.exp %143 : vector<2x32xf32>
    %cst_56 = arith.constant 1.000000e+00 : f32
    %145 = vector.broadcast %cst_56 : f32 to vector<2x32xf32>
    %146 = arith.addf %145, %144 : vector<2x32xf32>
    %147 = tpu.reciprocal %146 {approx = true} : vector<2x32xf32> -> vector<2x32xf32>
    %148 = vector.extract_strided_slice %133 {offsets = [0, 64], sizes = [2, 32], strides = [1, 1]} : vector<2x128xf32> to vector<2x32xf32>
    %149 = math.tanh %148 : vector<2x32xf32>
    %150 = vector.extract_strided_slice %133 {offsets = [0, 96], sizes = [2, 32], strides = [1, 1]} : vector<2x128xf32> to vector<2x32xf32>
    %cst_57 = arith.constant 0.000000e+00 : f32
    %151 = vector.broadcast %cst_57 : f32 to vector<2x32xf32>
    %152 = arith.subf %151, %150 : vector<2x32xf32>
    %153 = math.exp %152 : vector<2x32xf32>
    %cst_58 = arith.constant 1.000000e+00 : f32
    %154 = vector.broadcast %cst_58 : f32 to vector<2x32xf32>
    %155 = arith.addf %154, %153 : vector<2x32xf32>
    %156 = tpu.reciprocal %155 {approx = true} : vector<2x32xf32> -> vector<2x32xf32>
    %157 = arith.mulf %147, %126 : vector<2x32xf32>
    %158 = arith.mulf %140, %149 : vector<2x32xf32>
    %159 = arith.addf %157, %158 : vector<2x32xf32>
    %160 = math.tanh %159 : vector<2x32xf32>
    %161 = arith.mulf %156, %160 : vector<2x32xf32>
    %162 = vector.extract_strided_slice %27 {offsets = [4, 0, 0], sizes = [1, 2, 128], strides = [1, 1, 1]} : vector<8x2x128xf32> to vector<1x2x128xf32>
    %163 = vector.shape_cast %162 : vector<1x2x128xf32> to vector<2x128xf32>
    %164 = arith.truncf %161 : vector<2x32xf32> to vector<2x32xbf16>
    %cst_59 = arith.constant dense<0.000000e+00> : vector<2x128xf32>
    %165 = tpu.matmul %164, %18, %cst_59 {dimension_numbers = #tpu.dot_dimension_numbers<[1], [0], [0], [1], [0, 0, 1, 1], [], []>} : vector<2x32xbf16>, vector<32x128xbf16>, vector<2x128xf32> -> vector<2x128xf32>
    %166 = arith.addf %163, %165 : vector<2x128xf32>
    %167 = vector.extract_strided_slice %166 {offsets = [0, 0], sizes = [2, 32], strides = [1, 1]} : vector<2x128xf32> to vector<2x32xf32>
    %cst_60 = arith.constant 0.000000e+00 : f32
    %168 = vector.broadcast %cst_60 : f32 to vector<2x32xf32>
    %169 = arith.subf %168, %167 : vector<2x32xf32>
    %170 = math.exp %169 : vector<2x32xf32>
    %cst_61 = arith.constant 1.000000e+00 : f32
    %171 = vector.broadcast %cst_61 : f32 to vector<2x32xf32>
    %172 = arith.addf %171, %170 : vector<2x32xf32>
    %173 = tpu.reciprocal %172 {approx = true} : vector<2x32xf32> -> vector<2x32xf32>
    %174 = vector.extract_strided_slice %166 {offsets = [0, 32], sizes = [2, 32], strides = [1, 1]} : vector<2x128xf32> to vector<2x32xf32>
    %cst_62 = arith.constant 0.000000e+00 : f32
    %175 = vector.broadcast %cst_62 : f32 to vector<2x32xf32>
    %176 = arith.subf %175, %174 : vector<2x32xf32>
    %177 = math.exp %176 : vector<2x32xf32>
    %cst_63 = arith.constant 1.000000e+00 : f32
    %178 = vector.broadcast %cst_63 : f32 to vector<2x32xf32>
    %179 = arith.addf %178, %177 : vector<2x32xf32>
    %180 = tpu.reciprocal %179 {approx = true} : vector<2x32xf32> -> vector<2x32xf32>
    %181 = vector.extract_strided_slice %166 {offsets = [0, 64], sizes = [2, 32], strides = [1, 1]} : vector<2x128xf32> to vector<2x32xf32>
    %182 = math.tanh %181 : vector<2x32xf32>
    %183 = vector.extract_strided_slice %166 {offsets = [0, 96], sizes = [2, 32], strides = [1, 1]} : vector<2x128xf32> to vector<2x32xf32>
    %cst_64 = arith.constant 0.000000e+00 : f32
    %184 = vector.broadcast %cst_64 : f32 to vector<2x32xf32>
    %185 = arith.subf %184, %183 : vector<2x32xf32>
    %186 = math.exp %185 : vector<2x32xf32>
    %cst_65 = arith.constant 1.000000e+00 : f32
    %187 = vector.broadcast %cst_65 : f32 to vector<2x32xf32>
    %188 = arith.addf %187, %186 : vector<2x32xf32>
    %189 = tpu.reciprocal %188 {approx = true} : vector<2x32xf32> -> vector<2x32xf32>
    %190 = arith.mulf %180, %159 : vector<2x32xf32>
    %191 = arith.mulf %173, %182 : vector<2x32xf32>
    %192 = arith.addf %190, %191 : vector<2x32xf32>
    %193 = math.tanh %192 : vector<2x32xf32>
    %194 = arith.mulf %189, %193 : vector<2x32xf32>
    %195 = vector.extract_strided_slice %27 {offsets = [5, 0, 0], sizes = [1, 2, 128], strides = [1, 1, 1]} : vector<8x2x128xf32> to vector<1x2x128xf32>
    %196 = vector.shape_cast %195 : vector<1x2x128xf32> to vector<2x128xf32>
    %197 = arith.truncf %194 : vector<2x32xf32> to vector<2x32xbf16>
    %cst_66 = arith.constant dense<0.000000e+00> : vector<2x128xf32>
    %198 = tpu.matmul %197, %18, %cst_66 {dimension_numbers = #tpu.dot_dimension_numbers<[1], [0], [0], [1], [0, 0, 1, 1], [], []>} : vector<2x32xbf16>, vector<32x128xbf16>, vector<2x128xf32> -> vector<2x128xf32>
    %199 = arith.addf %196, %198 : vector<2x128xf32>
    %200 = vector.extract_strided_slice %199 {offsets = [0, 0], sizes = [2, 32], strides = [1, 1]} : vector<2x128xf32> to vector<2x32xf32>
    %cst_67 = arith.constant 0.000000e+00 : f32
    %201 = vector.broadcast %cst_67 : f32 to vector<2x32xf32>
    %202 = arith.subf %201, %200 : vector<2x32xf32>
    %203 = math.exp %202 : vector<2x32xf32>
    %cst_68 = arith.constant 1.000000e+00 : f32
    %204 = vector.broadcast %cst_68 : f32 to vector<2x32xf32>
    %205 = arith.addf %204, %203 : vector<2x32xf32>
    %206 = tpu.reciprocal %205 {approx = true} : vector<2x32xf32> -> vector<2x32xf32>
    %207 = vector.extract_strided_slice %199 {offsets = [0, 32], sizes = [2, 32], strides = [1, 1]} : vector<2x128xf32> to vector<2x32xf32>
    %cst_69 = arith.constant 0.000000e+00 : f32
    %208 = vector.broadcast %cst_69 : f32 to vector<2x32xf32>
    %209 = arith.subf %208, %207 : vector<2x32xf32>
    %210 = math.exp %209 : vector<2x32xf32>
    %cst_70 = arith.constant 1.000000e+00 : f32
    %211 = vector.broadcast %cst_70 : f32 to vector<2x32xf32>
    %212 = arith.addf %211, %210 : vector<2x32xf32>
    %213 = tpu.reciprocal %212 {approx = true} : vector<2x32xf32> -> vector<2x32xf32>
    %214 = vector.extract_strided_slice %199 {offsets = [0, 64], sizes = [2, 32], strides = [1, 1]} : vector<2x128xf32> to vector<2x32xf32>
    %215 = math.tanh %214 : vector<2x32xf32>
    %216 = vector.extract_strided_slice %199 {offsets = [0, 96], sizes = [2, 32], strides = [1, 1]} : vector<2x128xf32> to vector<2x32xf32>
    %cst_71 = arith.constant 0.000000e+00 : f32
    %217 = vector.broadcast %cst_71 : f32 to vector<2x32xf32>
    %218 = arith.subf %217, %216 : vector<2x32xf32>
    %219 = math.exp %218 : vector<2x32xf32>
    %cst_72 = arith.constant 1.000000e+00 : f32
    %220 = vector.broadcast %cst_72 : f32 to vector<2x32xf32>
    %221 = arith.addf %220, %219 : vector<2x32xf32>
    %222 = tpu.reciprocal %221 {approx = true} : vector<2x32xf32> -> vector<2x32xf32>
    %223 = arith.mulf %213, %192 : vector<2x32xf32>
    %224 = arith.mulf %206, %215 : vector<2x32xf32>
    %225 = arith.addf %223, %224 : vector<2x32xf32>
    %226 = math.tanh %225 : vector<2x32xf32>
    %227 = arith.mulf %222, %226 : vector<2x32xf32>
    %228 = vector.extract_strided_slice %27 {offsets = [6, 0, 0], sizes = [1, 2, 128], strides = [1, 1, 1]} : vector<8x2x128xf32> to vector<1x2x128xf32>
    %229 = vector.shape_cast %228 : vector<1x2x128xf32> to vector<2x128xf32>
    %230 = arith.truncf %227 : vector<2x32xf32> to vector<2x32xbf16>
    %cst_73 = arith.constant dense<0.000000e+00> : vector<2x128xf32>
    %231 = tpu.matmul %230, %18, %cst_73 {dimension_numbers = #tpu.dot_dimension_numbers<[1], [0], [0], [1], [0, 0, 1, 1], [], []>} : vector<2x32xbf16>, vector<32x128xbf16>, vector<2x128xf32> -> vector<2x128xf32>
    %232 = arith.addf %229, %231 : vector<2x128xf32>
    %233 = vector.extract_strided_slice %232 {offsets = [0, 0], sizes = [2, 32], strides = [1, 1]} : vector<2x128xf32> to vector<2x32xf32>
    %cst_74 = arith.constant 0.000000e+00 : f32
    %234 = vector.broadcast %cst_74 : f32 to vector<2x32xf32>
    %235 = arith.subf %234, %233 : vector<2x32xf32>
    %236 = math.exp %235 : vector<2x32xf32>
    %cst_75 = arith.constant 1.000000e+00 : f32
    %237 = vector.broadcast %cst_75 : f32 to vector<2x32xf32>
    %238 = arith.addf %237, %236 : vector<2x32xf32>
    %239 = tpu.reciprocal %238 {approx = true} : vector<2x32xf32> -> vector<2x32xf32>
    %240 = vector.extract_strided_slice %232 {offsets = [0, 32], sizes = [2, 32], strides = [1, 1]} : vector<2x128xf32> to vector<2x32xf32>
    %cst_76 = arith.constant 0.000000e+00 : f32
    %241 = vector.broadcast %cst_76 : f32 to vector<2x32xf32>
    %242 = arith.subf %241, %240 : vector<2x32xf32>
    %243 = math.exp %242 : vector<2x32xf32>
    %cst_77 = arith.constant 1.000000e+00 : f32
    %244 = vector.broadcast %cst_77 : f32 to vector<2x32xf32>
    %245 = arith.addf %244, %243 : vector<2x32xf32>
    %246 = tpu.reciprocal %245 {approx = true} : vector<2x32xf32> -> vector<2x32xf32>
    %247 = vector.extract_strided_slice %232 {offsets = [0, 64], sizes = [2, 32], strides = [1, 1]} : vector<2x128xf32> to vector<2x32xf32>
    %248 = math.tanh %247 : vector<2x32xf32>
    %249 = vector.extract_strided_slice %232 {offsets = [0, 96], sizes = [2, 32], strides = [1, 1]} : vector<2x128xf32> to vector<2x32xf32>
    %cst_78 = arith.constant 0.000000e+00 : f32
    %250 = vector.broadcast %cst_78 : f32 to vector<2x32xf32>
    %251 = arith.subf %250, %249 : vector<2x32xf32>
    %252 = math.exp %251 : vector<2x32xf32>
    %cst_79 = arith.constant 1.000000e+00 : f32
    %253 = vector.broadcast %cst_79 : f32 to vector<2x32xf32>
    %254 = arith.addf %253, %252 : vector<2x32xf32>
    %255 = tpu.reciprocal %254 {approx = true} : vector<2x32xf32> -> vector<2x32xf32>
    %256 = arith.mulf %246, %225 : vector<2x32xf32>
    %257 = arith.mulf %239, %248 : vector<2x32xf32>
    %258 = arith.addf %256, %257 : vector<2x32xf32>
    %259 = math.tanh %258 : vector<2x32xf32>
    %260 = arith.mulf %255, %259 : vector<2x32xf32>
    %261 = vector.extract_strided_slice %27 {offsets = [7, 0, 0], sizes = [1, 2, 128], strides = [1, 1, 1]} : vector<8x2x128xf32> to vector<1x2x128xf32>
    %262 = vector.shape_cast %261 : vector<1x2x128xf32> to vector<2x128xf32>
    %263 = arith.truncf %260 : vector<2x32xf32> to vector<2x32xbf16>
    %cst_80 = arith.constant dense<0.000000e+00> : vector<2x128xf32>
    %264 = tpu.matmul %263, %18, %cst_80 {dimension_numbers = #tpu.dot_dimension_numbers<[1], [0], [0], [1], [0, 0, 1, 1], [], []>} : vector<2x32xbf16>, vector<32x128xbf16>, vector<2x128xf32> -> vector<2x128xf32>
    %265 = arith.addf %262, %264 : vector<2x128xf32>
    %266 = vector.extract_strided_slice %265 {offsets = [0, 0], sizes = [2, 32], strides = [1, 1]} : vector<2x128xf32> to vector<2x32xf32>
    %cst_81 = arith.constant 0.000000e+00 : f32
    %267 = vector.broadcast %cst_81 : f32 to vector<2x32xf32>
    %268 = arith.subf %267, %266 : vector<2x32xf32>
    %269 = math.exp %268 : vector<2x32xf32>
    %cst_82 = arith.constant 1.000000e+00 : f32
    %270 = vector.broadcast %cst_82 : f32 to vector<2x32xf32>
    %271 = arith.addf %270, %269 : vector<2x32xf32>
    %272 = tpu.reciprocal %271 {approx = true} : vector<2x32xf32> -> vector<2x32xf32>
    %273 = vector.extract_strided_slice %265 {offsets = [0, 32], sizes = [2, 32], strides = [1, 1]} : vector<2x128xf32> to vector<2x32xf32>
    %cst_83 = arith.constant 0.000000e+00 : f32
    %274 = vector.broadcast %cst_83 : f32 to vector<2x32xf32>
    %275 = arith.subf %274, %273 : vector<2x32xf32>
    %276 = math.exp %275 : vector<2x32xf32>
    %cst_84 = arith.constant 1.000000e+00 : f32
    %277 = vector.broadcast %cst_84 : f32 to vector<2x32xf32>
    %278 = arith.addf %277, %276 : vector<2x32xf32>
    %279 = tpu.reciprocal %278 {approx = true} : vector<2x32xf32> -> vector<2x32xf32>
    %280 = vector.extract_strided_slice %265 {offsets = [0, 64], sizes = [2, 32], strides = [1, 1]} : vector<2x128xf32> to vector<2x32xf32>
    %281 = math.tanh %280 : vector<2x32xf32>
    %282 = vector.extract_strided_slice %265 {offsets = [0, 96], sizes = [2, 32], strides = [1, 1]} : vector<2x128xf32> to vector<2x32xf32>
    %cst_85 = arith.constant 0.000000e+00 : f32
    %283 = vector.broadcast %cst_85 : f32 to vector<2x32xf32>
    %284 = arith.subf %283, %282 : vector<2x32xf32>
    %285 = math.exp %284 : vector<2x32xf32>
    %cst_86 = arith.constant 1.000000e+00 : f32
    %286 = vector.broadcast %cst_86 : f32 to vector<2x32xf32>
    %287 = arith.addf %286, %285 : vector<2x32xf32>
    %288 = tpu.reciprocal %287 {approx = true} : vector<2x32xf32> -> vector<2x32xf32>
    %289 = arith.mulf %279, %258 : vector<2x32xf32>
    %290 = arith.mulf %272, %281 : vector<2x32xf32>
    %291 = arith.addf %289, %290 : vector<2x32xf32>
    %292 = math.tanh %291 : vector<2x32xf32>
    %293 = arith.mulf %288, %292 : vector<2x32xf32>
    %294 = vector.shape_cast %62 : vector<2x32xf32> to vector<2x1x32xf32>
    %295 = vector.shape_cast %95 : vector<2x32xf32> to vector<2x1x32xf32>
    %296 = vector.shape_cast %128 : vector<2x32xf32> to vector<2x1x32xf32>
    %297 = vector.shape_cast %161 : vector<2x32xf32> to vector<2x1x32xf32>
    %298 = vector.shape_cast %194 : vector<2x32xf32> to vector<2x1x32xf32>
    %299 = vector.shape_cast %227 : vector<2x32xf32> to vector<2x1x32xf32>
    %300 = vector.shape_cast %260 : vector<2x32xf32> to vector<2x1x32xf32>
    %301 = vector.shape_cast %293 : vector<2x32xf32> to vector<2x1x32xf32>
    %302 = tpu.concatenate %294, %295, %296, %297, %298, %299, %300, %301 in 1 : vector<2x1x32xf32>, vector<2x1x32xf32>, vector<2x1x32xf32>, vector<2x1x32xf32>, vector<2x1x32xf32>, vector<2x1x32xf32>, vector<2x1x32xf32>, vector<2x1x32xf32> -> vector<2x8x32xf32>
    %303 = vector.shape_cast %1 : vector<2x8x48xf32> to vector<16x48xf32>
    %c0_87 = arith.constant 0 : index
    %c0_88 = arith.constant 0 : index
    %c0_89 = arith.constant 0 : index
    %304 = vector.load %arg16[%c0_87, %c0_88, %c0_89] : memref<1x48x32xf32, #tpu.memory_space<vmem>>, vector<1x48x32xf32>
    %305 = vector.shape_cast %304 : vector<1x48x32xf32> to vector<48x32xf32>
    %306 = arith.truncf %303 : vector<16x48xf32> to vector<16x48xbf16>
    %307 = arith.truncf %305 : vector<48x32xf32> to vector<48x32xbf16>
    %cst_90 = arith.constant dense<0.000000e+00> : vector<16x32xf32>
    %308 = tpu.matmul %306, %307, %cst_90 {dimension_numbers = #tpu.dot_dimension_numbers<[1], [0], [0], [1], [0, 0, 1, 1], [], []>} : vector<16x48xbf16>, vector<48x32xbf16>, vector<16x32xf32> -> vector<16x32xf32>
    %c30 = arith.constant 30 : index
    %c0_91 = arith.constant 0 : index
    %c0_92 = arith.constant 0 : index
    %309 = vector.load %arg8[%c30, %c0_91, %c0_92] : memref<31x1x32xf32, #tpu.memory_space<vmem>>, vector<1x1x32xf32>
    %310 = vector.shape_cast %309 : vector<1x1x32xf32> to vector<1x32xf32>
    %311 = vector.broadcast %310 : vector<1x32xf32> to vector<16x32xf32>
    %312 = arith.addf %308, %311 : vector<16x32xf32>
    %313 = vector.shape_cast %312 : vector<16x32xf32> to vector<2x8x32xf32>
    %c4 = arith.constant 4 : index
    %c0_93 = arith.constant 0 : index
    %c0_94 = arith.constant 0 : index
    %314 = vector.load %arg14[%c4, %c0_93, %c0_94] : memref<6x32x96xf32, #tpu.memory_space<vmem>>, vector<1x32x96xf32>
    %315 = vector.shape_cast %314 : vector<1x32x96xf32> to vector<32x96xf32>
    %c4_95 = arith.constant 4 : index
    %c0_96 = arith.constant 0 : index
    %c0_97 = arith.constant 0 : index
    %316 = vector.load %arg10[%c4_95, %c0_96, %c0_97] : memref<6x1x96xf32, #tpu.memory_space<vmem>>, vector<1x1x96xf32>
    %317 = vector.shape_cast %316 : vector<1x1x96xf32> to vector<1x96xf32>
    %318 = vector.shape_cast %302 : vector<2x8x32xf32> to vector<16x32xf32>
    %319 = arith.truncf %318 : vector<16x32xf32> to vector<16x32xbf16>
    %320 = arith.truncf %315 : vector<32x96xf32> to vector<32x96xbf16>
    %cst_98 = arith.constant dense<0.000000e+00> : vector<16x96xf32>
    %321 = tpu.matmul %319, %320, %cst_98 {dimension_numbers = #tpu.dot_dimension_numbers<[1], [0], [0], [1], [0, 0, 1, 1], [], []>} : vector<16x32xbf16>, vector<32x96xbf16>, vector<16x96xf32> -> vector<16x96xf32>
    %322 = vector.broadcast %317 : vector<1x96xf32> to vector<16x96xf32>
    %323 = arith.addf %321, %322 : vector<16x96xf32>
    %324 = vector.extract_strided_slice %323 {offsets = [0, 0], sizes = [16, 32], strides = [1, 1]} : vector<16x96xf32> to vector<16x32xf32>
    %325 = vector.shape_cast %324 : vector<16x32xf32> to vector<2x8x32xf32>
    %326 = vector.extract_strided_slice %323 {offsets = [0, 32], sizes = [16, 32], strides = [1, 1]} : vector<16x96xf32> to vector<16x32xf32>
    %327 = vector.shape_cast %326 : vector<16x32xf32> to vector<2x8x32xf32>
    %328 = vector.extract_strided_slice %323 {offsets = [0, 64], sizes = [16, 32], strides = [1, 1]} : vector<16x96xf32> to vector<16x32xf32>
    %329 = vector.shape_cast %328 : vector<16x32xf32> to vector<2x8x32xf32>
    %330 = vector.extract_strided_slice %329 {offsets = [0, 0, 0], sizes = [2, 8, 8], strides = [1, 1, 1]} : vector<2x8x32xf32> to vector<2x8x8xf32>
    %331 = vector.extract_strided_slice %327 {offsets = [0, 0, 0], sizes = [2, 8, 8], strides = [1, 1, 1]} : vector<2x8x32xf32> to vector<2x8x8xf32>
    "tpu.trace_start"() <{level = 10 : i32, message = "bqd,bkd->bqk"}> : () -> ()
    %cst_99 = arith.constant dense<0.000000e+00> : vector<2x8x8xf32>
    %332 = tpu.matmul %330, %331, %cst_99 {dimension_numbers = #tpu.dot_dimension_numbers<[2], [2], [1], [1], [0, 0, 0, 1, 1, 1], [0], [0]>} : vector<2x8x8xf32>, vector<2x8x8xf32>, vector<2x8x8xf32> -> vector<2x8x8xf32>
    "tpu.trace_stop"() : () -> ()
    %333 = vector.extract_strided_slice %329 {offsets = [0, 0, 8], sizes = [2, 8, 8], strides = [1, 1, 1]} : vector<2x8x32xf32> to vector<2x8x8xf32>
    %334 = vector.extract_strided_slice %327 {offsets = [0, 0, 8], sizes = [2, 8, 8], strides = [1, 1, 1]} : vector<2x8x32xf32> to vector<2x8x8xf32>
    "tpu.trace_start"() <{level = 10 : i32, message = "bqd,bkd->bqk"}> : () -> ()
    %cst_100 = arith.constant dense<0.000000e+00> : vector<2x8x8xf32>
    %335 = tpu.matmul %333, %334, %cst_100 {dimension_numbers = #tpu.dot_dimension_numbers<[2], [2], [1], [1], [0, 0, 0, 1, 1, 1], [0], [0]>} : vector<2x8x8xf32>, vector<2x8x8xf32>, vector<2x8x8xf32> -> vector<2x8x8xf32>
    "tpu.trace_stop"() : () -> ()
    %336 = vector.extract_strided_slice %329 {offsets = [0, 0, 16], sizes = [2, 8, 8], strides = [1, 1, 1]} : vector<2x8x32xf32> to vector<2x8x8xf32>
    %337 = vector.extract_strided_slice %327 {offsets = [0, 0, 16], sizes = [2, 8, 8], strides = [1, 1, 1]} : vector<2x8x32xf32> to vector<2x8x8xf32>
    "tpu.trace_start"() <{level = 10 : i32, message = "bqd,bkd->bqk"}> : () -> ()
    %cst_101 = arith.constant dense<0.000000e+00> : vector<2x8x8xf32>
    %338 = tpu.matmul %336, %337, %cst_101 {dimension_numbers = #tpu.dot_dimension_numbers<[2], [2], [1], [1], [0, 0, 0, 1, 1, 1], [0], [0]>} : vector<2x8x8xf32>, vector<2x8x8xf32>, vector<2x8x8xf32> -> vector<2x8x8xf32>
    "tpu.trace_stop"() : () -> ()
    %339 = vector.extract_strided_slice %329 {offsets = [0, 0, 24], sizes = [2, 8, 8], strides = [1, 1, 1]} : vector<2x8x32xf32> to vector<2x8x8xf32>
    %340 = vector.extract_strided_slice %327 {offsets = [0, 0, 24], sizes = [2, 8, 8], strides = [1, 1, 1]} : vector<2x8x32xf32> to vector<2x8x8xf32>
    "tpu.trace_start"() <{level = 10 : i32, message = "bqd,bkd->bqk"}> : () -> ()
    %cst_102 = arith.constant dense<0.000000e+00> : vector<2x8x8xf32>
    %341 = tpu.matmul %339, %340, %cst_102 {dimension_numbers = #tpu.dot_dimension_numbers<[2], [2], [1], [1], [0, 0, 0, 1, 1, 1], [0], [0]>} : vector<2x8x8xf32>, vector<2x8x8xf32>, vector<2x8x8xf32> -> vector<2x8x8xf32>
    "tpu.trace_stop"() : () -> ()
    %342 = tpu.concatenate %332, %335, %338, %341 in 1 : vector<2x8x8xf32>, vector<2x8x8xf32>, vector<2x8x8xf32>, vector<2x8x8xf32> -> vector<2x32x8xf32>
    %cst_103 = arith.constant 0.353553385 : f32
    %343 = vector.broadcast %cst_103 : f32 to vector<2x32x8xf32>
    %344 = arith.mulf %342, %343 : vector<2x32x8xf32>
    %cst_104 = arith.constant -1.000000e+09 : f32
    %345 = vector.shape_cast %4 : vector<2x1x8xi1> to vector<2x1x8xi1>
    %346 = vector.broadcast %345 : vector<2x1x8xi1> to vector<2x32x8xi1>
    %347 = vector.broadcast %cst_104 : f32 to vector<2x32x8xf32>
    %348 = arith.select %346, %347, %344 : vector<2x32x8xi1>, vector<2x32x8xf32>
    %cst_105 = arith.constant dense<0xFF800000> : vector<2x32xf32>
    %349 = vector.multi_reduction <maximumf>, %348, %cst_105 [2] : vector<2x32x8xf32> to vector<2x32xf32>
    %350 = vector.shape_cast %349 : vector<2x32xf32> to vector<2x32x1xf32>
    %351 = vector.broadcast %350 : vector<2x32x1xf32> to vector<2x32x8xf32>
    %352 = arith.subf %348, %351 : vector<2x32x8xf32>
    %353 = math.exp %352 : vector<2x32x8xf32>
    %cst_106 = arith.constant dense<0.000000e+00> : vector<2x32xf32>
    %354 = vector.multi_reduction <add>, %353, %cst_106 [2] : vector<2x32x8xf32> to vector<2x32xf32>
    %355 = vector.shape_cast %354 : vector<2x32xf32> to vector<2x32x1xf32>
    %356 = tpu.reciprocal %355 {approx = true} : vector<2x32x1xf32> -> vector<2x32x1xf32>
    %357 = vector.broadcast %356 : vector<2x32x1xf32> to vector<2x32x8xf32>
    %358 = arith.mulf %353, %357 : vector<2x32x8xf32>
    %359 = vector.extract_strided_slice %358 {offsets = [0, 0, 0], sizes = [2, 8, 8], strides = [1, 1, 1]} : vector<2x32x8xf32> to vector<2x8x8xf32>
    %360 = vector.extract_strided_slice %325 {offsets = [0, 0, 0], sizes = [2, 8, 8], strides = [1, 1, 1]} : vector<2x8x32xf32> to vector<2x8x8xf32>
    "tpu.trace_start"() <{level = 10 : i32, message = "bqk,bkd->bqd"}> : () -> ()
    %cst_107 = arith.constant dense<0.000000e+00> : vector<2x8x8xf32>
    %361 = tpu.matmul %359, %360, %cst_107 {dimension_numbers = #tpu.dot_dimension_numbers<[2], [1], [1], [2], [0, 0, 0, 1, 1, 2], [0], [0]>} : vector<2x8x8xf32>, vector<2x8x8xf32>, vector<2x8x8xf32> -> vector<2x8x8xf32>
    "tpu.trace_stop"() : () -> ()
    %362 = vector.extract_strided_slice %358 {offsets = [0, 8, 0], sizes = [2, 8, 8], strides = [1, 1, 1]} : vector<2x32x8xf32> to vector<2x8x8xf32>
    %363 = vector.extract_strided_slice %325 {offsets = [0, 0, 8], sizes = [2, 8, 8], strides = [1, 1, 1]} : vector<2x8x32xf32> to vector<2x8x8xf32>
    "tpu.trace_start"() <{level = 10 : i32, message = "bqk,bkd->bqd"}> : () -> ()
    %cst_108 = arith.constant dense<0.000000e+00> : vector<2x8x8xf32>
    %364 = tpu.matmul %362, %363, %cst_108 {dimension_numbers = #tpu.dot_dimension_numbers<[2], [1], [1], [2], [0, 0, 0, 1, 1, 2], [0], [0]>} : vector<2x8x8xf32>, vector<2x8x8xf32>, vector<2x8x8xf32> -> vector<2x8x8xf32>
    "tpu.trace_stop"() : () -> ()
    %365 = vector.extract_strided_slice %358 {offsets = [0, 16, 0], sizes = [2, 8, 8], strides = [1, 1, 1]} : vector<2x32x8xf32> to vector<2x8x8xf32>
    %366 = vector.extract_strided_slice %325 {offsets = [0, 0, 16], sizes = [2, 8, 8], strides = [1, 1, 1]} : vector<2x8x32xf32> to vector<2x8x8xf32>
    "tpu.trace_start"() <{level = 10 : i32, message = "bqk,bkd->bqd"}> : () -> ()
    %cst_109 = arith.constant dense<0.000000e+00> : vector<2x8x8xf32>
    %367 = tpu.matmul %365, %366, %cst_109 {dimension_numbers = #tpu.dot_dimension_numbers<[2], [1], [1], [2], [0, 0, 0, 1, 1, 2], [0], [0]>} : vector<2x8x8xf32>, vector<2x8x8xf32>, vector<2x8x8xf32> -> vector<2x8x8xf32>
    "tpu.trace_stop"() : () -> ()
    %368 = vector.extract_strided_slice %358 {offsets = [0, 24, 0], sizes = [2, 8, 8], strides = [1, 1, 1]} : vector<2x32x8xf32> to vector<2x8x8xf32>
    %369 = vector.extract_strided_slice %325 {offsets = [0, 0, 24], sizes = [2, 8, 8], strides = [1, 1, 1]} : vector<2x8x32xf32> to vector<2x8x8xf32>
    "tpu.trace_start"() <{level = 10 : i32, message = "bqk,bkd->bqd"}> : () -> ()
    %cst_110 = arith.constant dense<0.000000e+00> : vector<2x8x8xf32>
    %370 = tpu.matmul %368, %369, %cst_110 {dimension_numbers = #tpu.dot_dimension_numbers<[2], [1], [1], [2], [0, 0, 0, 1, 1, 2], [0], [0]>} : vector<2x8x8xf32>, vector<2x8x8xf32>, vector<2x8x8xf32> -> vector<2x8x8xf32>
    "tpu.trace_stop"() : () -> ()
    %371 = tpu.concatenate %361, %364, %367, %370 in 2 : vector<2x8x8xf32>, vector<2x8x8xf32>, vector<2x8x8xf32>, vector<2x8x8xf32> -> vector<2x8x32xf32>
    %372 = vector.shape_cast %371 : vector<2x8x32xf32> to vector<16x32xf32>
    %c4_111 = arith.constant 4 : index
    %c0_112 = arith.constant 0 : index
    %c0_113 = arith.constant 0 : index
    %373 = vector.load %arg12[%c4_111, %c0_112, %c0_113] : memref<6x32x32xf32, #tpu.memory_space<vmem>>, vector<1x32x32xf32>
    %374 = vector.shape_cast %373 : vector<1x32x32xf32> to vector<32x32xf32>
    %375 = arith.truncf %372 : vector<16x32xf32> to vector<16x32xbf16>
    %376 = arith.truncf %374 : vector<32x32xf32> to vector<32x32xbf16>
    %cst_114 = arith.constant dense<0.000000e+00> : vector<16x32xf32>
    %377 = tpu.matmul %375, %376, %cst_114 {dimension_numbers = #tpu.dot_dimension_numbers<[1], [0], [0], [1], [0, 0, 1, 1], [], []>} : vector<16x32xbf16>, vector<32x32xbf16>, vector<16x32xf32> -> vector<16x32xf32>
    %c19 = arith.constant 19 : index
    %c0_115 = arith.constant 0 : index
    %c0_116 = arith.constant 0 : index
    %378 = vector.load %arg8[%c19, %c0_115, %c0_116] : memref<31x1x32xf32, #tpu.memory_space<vmem>>, vector<1x1x32xf32>
    %379 = vector.shape_cast %378 : vector<1x1x32xf32> to vector<1x32xf32>
    %380 = vector.broadcast %379 : vector<1x32xf32> to vector<16x32xf32>
    %381 = arith.addf %377, %380 : vector<16x32xf32>
    %382 = vector.shape_cast %381 : vector<16x32xf32> to vector<2x8x32xf32>
    %383 = arith.addf %302, %382 : vector<2x8x32xf32>
    %cst_117 = arith.constant dense<0.000000e+00> : vector<2x8xf32>
    %384 = vector.multi_reduction <add>, %383, %cst_117 [2] : vector<2x8x32xf32> to vector<2x8xf32>
    %385 = vector.shape_cast %384 : vector<2x8xf32> to vector<2x8x1xf32>
    %cst_118 = arith.constant 3.125000e-02 : f32
    %386 = vector.broadcast %cst_118 : f32 to vector<2x8x1xf32>
    %387 = arith.mulf %385, %386 : vector<2x8x1xf32>
    %388 = vector.broadcast %387 : vector<2x8x1xf32> to vector<2x8x32xf32>
    %389 = arith.subf %383, %388 : vector<2x8x32xf32>
    %390 = arith.mulf %389, %389 : vector<2x8x32xf32>
    %cst_119 = arith.constant dense<0.000000e+00> : vector<2x8xf32>
    %391 = vector.multi_reduction <add>, %390, %cst_119 [2] : vector<2x8x32xf32> to vector<2x8xf32>
    %392 = vector.shape_cast %391 : vector<2x8xf32> to vector<2x8x1xf32>
    %cst_120 = arith.constant 0.0322580636 : f32
    %393 = vector.broadcast %cst_120 : f32 to vector<2x8x1xf32>
    %394 = arith.mulf %392, %393 : vector<2x8x1xf32>
    %395 = math.sqrt %394 : vector<2x8x1xf32>
    %cst_121 = arith.constant 9.99999997E-7 : f32
    %396 = vector.broadcast %cst_121 : f32 to vector<2x8x1xf32>
    %397 = arith.addf %395, %396 : vector<2x8x1xf32>
    %398 = tpu.reciprocal %397 {approx = true} : vector<2x8x1xf32> -> vector<2x8x1xf32>
    %c21 = arith.constant 21 : index
    %c0_122 = arith.constant 0 : index
    %c0_123 = arith.constant 0 : index
    %399 = vector.load %arg8[%c21, %c0_122, %c0_123] : memref<31x1x32xf32, #tpu.memory_space<vmem>>, vector<1x1x32xf32>
    %400 = vector.shape_cast %399 : vector<1x1x32xf32> to vector<1x32xf32>
    %401 = vector.broadcast %398 : vector<2x8x1xf32> to vector<2x8x32xf32>
    %402 = arith.mulf %389, %401 : vector<2x8x32xf32>
    %403 = vector.shape_cast %400 : vector<1x32xf32> to vector<1x1x32xf32>
    %404 = vector.broadcast %403 : vector<1x1x32xf32> to vector<2x8x32xf32>
    %405 = arith.mulf %404, %402 : vector<2x8x32xf32>
    %c20 = arith.constant 20 : index
    %c0_124 = arith.constant 0 : index
    %c0_125 = arith.constant 0 : index
    %406 = vector.load %arg8[%c20, %c0_124, %c0_125] : memref<31x1x32xf32, #tpu.memory_space<vmem>>, vector<1x1x32xf32>
    %407 = vector.shape_cast %406 : vector<1x1x32xf32> to vector<1x32xf32>
    %408 = vector.shape_cast %407 : vector<1x32xf32> to vector<1x1x32xf32>
    %409 = vector.broadcast %408 : vector<1x1x32xf32> to vector<2x8x32xf32>
    %410 = arith.addf %405, %409 : vector<2x8x32xf32>
    %411 = vector.shape_cast %410 : vector<2x8x32xf32> to vector<16x32xf32>
    %c6 = arith.constant 6 : index
    %c0_126 = arith.constant 0 : index
    %c0_127 = arith.constant 0 : index
    %412 = vector.load %arg13[%c6, %c0_126, %c0_127] : memref<8x32x64xf32, #tpu.memory_space<vmem>>, vector<1x32x64xf32>
    %413 = vector.shape_cast %412 : vector<1x32x64xf32> to vector<32x64xf32>
    %414 = arith.truncf %411 : vector<16x32xf32> to vector<16x32xbf16>
    %415 = arith.truncf %413 : vector<32x64xf32> to vector<32x64xbf16>
    %cst_128 = arith.constant dense<0.000000e+00> : vector<16x64xf32>
    %416 = tpu.matmul %414, %415, %cst_128 {dimension_numbers = #tpu.dot_dimension_numbers<[1], [0], [0], [1], [0, 0, 1, 1], [], []>} : vector<16x32xbf16>, vector<32x64xbf16>, vector<16x64xf32> -> vector<16x64xf32>
    %c8 = arith.constant 8 : index
    %c0_129 = arith.constant 0 : index
    %c0_130 = arith.constant 0 : index
    %417 = vector.load %arg9[%c8, %c0_129, %c0_130] : memref<12x1x64xf32, #tpu.memory_space<vmem>>, vector<1x1x64xf32>
    %418 = vector.shape_cast %417 : vector<1x1x64xf32> to vector<1x64xf32>
    %419 = vector.broadcast %418 : vector<1x64xf32> to vector<16x64xf32>
    %420 = arith.addf %416, %419 : vector<16x64xf32>
    %cst_131 = arith.constant 0.000000e+00 : f32
    %421 = vector.broadcast %cst_131 : f32 to vector<16x64xf32>
    %422 = arith.maximumf %420, %421 : vector<16x64xf32>
    %c2 = arith.constant 2 : index
    %c0_132 = arith.constant 0 : index
    %c0_133 = arith.constant 0 : index
    %423 = vector.load %arg18[%c2, %c0_132, %c0_133] : memref<4x64x32xf32, #tpu.memory_space<vmem>>, vector<1x64x32xf32>
    %424 = vector.shape_cast %423 : vector<1x64x32xf32> to vector<64x32xf32>
    %425 = arith.truncf %422 : vector<16x64xf32> to vector<16x64xbf16>
    %426 = arith.truncf %424 : vector<64x32xf32> to vector<64x32xbf16>
    %cst_134 = arith.constant dense<0.000000e+00> : vector<16x32xf32>
    %427 = tpu.matmul %425, %426, %cst_134 {dimension_numbers = #tpu.dot_dimension_numbers<[1], [0], [0], [1], [0, 0, 1, 1], [], []>} : vector<16x64xbf16>, vector<64x32xbf16>, vector<16x32xf32> -> vector<16x32xf32>
    %c18 = arith.constant 18 : index
    %c0_135 = arith.constant 0 : index
    %c0_136 = arith.constant 0 : index
    %428 = vector.load %arg8[%c18, %c0_135, %c0_136] : memref<31x1x32xf32, #tpu.memory_space<vmem>>, vector<1x1x32xf32>
    %429 = vector.shape_cast %428 : vector<1x1x32xf32> to vector<1x32xf32>
    %430 = vector.broadcast %429 : vector<1x32xf32> to vector<16x32xf32>
    %431 = arith.addf %427, %430 : vector<16x32xf32>
    %432 = vector.shape_cast %431 : vector<16x32xf32> to vector<2x8x32xf32>
    %433 = arith.addf %410, %432 : vector<2x8x32xf32>
    %cst_137 = arith.constant dense<0.000000e+00> : vector<2x8xf32>
    %434 = vector.multi_reduction <add>, %433, %cst_137 [2] : vector<2x8x32xf32> to vector<2x8xf32>
    %435 = vector.shape_cast %434 : vector<2x8xf32> to vector<2x8x1xf32>
    %cst_138 = arith.constant 3.125000e-02 : f32
    %436 = vector.broadcast %cst_138 : f32 to vector<2x8x1xf32>
    %437 = arith.mulf %435, %436 : vector<2x8x1xf32>
    %438 = vector.broadcast %437 : vector<2x8x1xf32> to vector<2x8x32xf32>
    %439 = arith.subf %433, %438 : vector<2x8x32xf32>
    %440 = arith.mulf %439, %439 : vector<2x8x32xf32>
    %cst_139 = arith.constant dense<0.000000e+00> : vector<2x8xf32>
    %441 = vector.multi_reduction <add>, %440, %cst_139 [2] : vector<2x8x32xf32> to vector<2x8xf32>
    %442 = vector.shape_cast %441 : vector<2x8xf32> to vector<2x8x1xf32>
    %cst_140 = arith.constant 0.0322580636 : f32
    %443 = vector.broadcast %cst_140 : f32 to vector<2x8x1xf32>
    %444 = arith.mulf %442, %443 : vector<2x8x1xf32>
    %445 = math.sqrt %444 : vector<2x8x1xf32>
    %cst_141 = arith.constant 9.99999997E-7 : f32
    %446 = vector.broadcast %cst_141 : f32 to vector<2x8x1xf32>
    %447 = arith.addf %445, %446 : vector<2x8x1xf32>
    %448 = tpu.reciprocal %447 {approx = true} : vector<2x8x1xf32> -> vector<2x8x1xf32>
    %c23 = arith.constant 23 : index
    %c0_142 = arith.constant 0 : index
    %c0_143 = arith.constant 0 : index
    %449 = vector.load %arg8[%c23, %c0_142, %c0_143] : memref<31x1x32xf32, #tpu.memory_space<vmem>>, vector<1x1x32xf32>
    %450 = vector.shape_cast %449 : vector<1x1x32xf32> to vector<1x32xf32>
    %451 = vector.broadcast %448 : vector<2x8x1xf32> to vector<2x8x32xf32>
    %452 = arith.mulf %439, %451 : vector<2x8x32xf32>
    %453 = vector.shape_cast %450 : vector<1x32xf32> to vector<1x1x32xf32>
    %454 = vector.broadcast %453 : vector<1x1x32xf32> to vector<2x8x32xf32>
    %455 = arith.mulf %454, %452 : vector<2x8x32xf32>
    %c22 = arith.constant 22 : index
    %c0_144 = arith.constant 0 : index
    %c0_145 = arith.constant 0 : index
    %456 = vector.load %arg8[%c22, %c0_144, %c0_145] : memref<31x1x32xf32, #tpu.memory_space<vmem>>, vector<1x1x32xf32>
    %457 = vector.shape_cast %456 : vector<1x1x32xf32> to vector<1x32xf32>
    %458 = vector.shape_cast %457 : vector<1x32xf32> to vector<1x1x32xf32>
    %459 = vector.broadcast %458 : vector<1x1x32xf32> to vector<2x8x32xf32>
    %460 = arith.addf %455, %459 : vector<2x8x32xf32>
    %c5 = arith.constant 5 : index
    %c0_146 = arith.constant 0 : index
    %c0_147 = arith.constant 0 : index
    %461 = vector.load %arg14[%c5, %c0_146, %c0_147] : memref<6x32x96xf32, #tpu.memory_space<vmem>>, vector<1x32x96xf32>
    %462 = vector.shape_cast %461 : vector<1x32x96xf32> to vector<32x96xf32>
    %c5_148 = arith.constant 5 : index
    %c0_149 = arith.constant 0 : index
    %c0_150 = arith.constant 0 : index
    %463 = vector.load %arg10[%c5_148, %c0_149, %c0_150] : memref<6x1x96xf32, #tpu.memory_space<vmem>>, vector<1x1x96xf32>
    %464 = vector.shape_cast %463 : vector<1x1x96xf32> to vector<1x96xf32>
    %465 = vector.shape_cast %460 : vector<2x8x32xf32> to vector<16x32xf32>
    %466 = arith.truncf %465 : vector<16x32xf32> to vector<16x32xbf16>
    %467 = arith.truncf %462 : vector<32x96xf32> to vector<32x96xbf16>
    %cst_151 = arith.constant dense<0.000000e+00> : vector<16x96xf32>
    %468 = tpu.matmul %466, %467, %cst_151 {dimension_numbers = #tpu.dot_dimension_numbers<[1], [0], [0], [1], [0, 0, 1, 1], [], []>} : vector<16x32xbf16>, vector<32x96xbf16>, vector<16x96xf32> -> vector<16x96xf32>
    %469 = vector.broadcast %464 : vector<1x96xf32> to vector<16x96xf32>
    %470 = arith.addf %468, %469 : vector<16x96xf32>
    %471 = vector.extract_strided_slice %470 {offsets = [0, 0], sizes = [16, 32], strides = [1, 1]} : vector<16x96xf32> to vector<16x32xf32>
    %472 = vector.shape_cast %471 : vector<16x32xf32> to vector<2x8x32xf32>
    %473 = vector.extract_strided_slice %470 {offsets = [0, 32], sizes = [16, 32], strides = [1, 1]} : vector<16x96xf32> to vector<16x32xf32>
    %474 = vector.shape_cast %473 : vector<16x32xf32> to vector<2x8x32xf32>
    %475 = vector.extract_strided_slice %470 {offsets = [0, 64], sizes = [16, 32], strides = [1, 1]} : vector<16x96xf32> to vector<16x32xf32>
    %476 = vector.shape_cast %475 : vector<16x32xf32> to vector<2x8x32xf32>
    %477 = vector.extract_strided_slice %476 {offsets = [0, 0, 0], sizes = [2, 8, 8], strides = [1, 1, 1]} : vector<2x8x32xf32> to vector<2x8x8xf32>
    %478 = vector.extract_strided_slice %474 {offsets = [0, 0, 0], sizes = [2, 8, 8], strides = [1, 1, 1]} : vector<2x8x32xf32> to vector<2x8x8xf32>
    "tpu.trace_start"() <{level = 10 : i32, message = "bqd,bkd->bqk"}> : () -> ()
    %cst_152 = arith.constant dense<0.000000e+00> : vector<2x8x8xf32>
    %479 = tpu.matmul %477, %478, %cst_152 {dimension_numbers = #tpu.dot_dimension_numbers<[2], [2], [1], [1], [0, 0, 0, 1, 1, 1], [0], [0]>} : vector<2x8x8xf32>, vector<2x8x8xf32>, vector<2x8x8xf32> -> vector<2x8x8xf32>
    "tpu.trace_stop"() : () -> ()
    %480 = vector.extract_strided_slice %476 {offsets = [0, 0, 8], sizes = [2, 8, 8], strides = [1, 1, 1]} : vector<2x8x32xf32> to vector<2x8x8xf32>
    %481 = vector.extract_strided_slice %474 {offsets = [0, 0, 8], sizes = [2, 8, 8], strides = [1, 1, 1]} : vector<2x8x32xf32> to vector<2x8x8xf32>
    "tpu.trace_start"() <{level = 10 : i32, message = "bqd,bkd->bqk"}> : () -> ()
    %cst_153 = arith.constant dense<0.000000e+00> : vector<2x8x8xf32>
    %482 = tpu.matmul %480, %481, %cst_153 {dimension_numbers = #tpu.dot_dimension_numbers<[2], [2], [1], [1], [0, 0, 0, 1, 1, 1], [0], [0]>} : vector<2x8x8xf32>, vector<2x8x8xf32>, vector<2x8x8xf32> -> vector<2x8x8xf32>
    "tpu.trace_stop"() : () -> ()
    %483 = vector.extract_strided_slice %476 {offsets = [0, 0, 16], sizes = [2, 8, 8], strides = [1, 1, 1]} : vector<2x8x32xf32> to vector<2x8x8xf32>
    %484 = vector.extract_strided_slice %474 {offsets = [0, 0, 16], sizes = [2, 8, 8], strides = [1, 1, 1]} : vector<2x8x32xf32> to vector<2x8x8xf32>
    "tpu.trace_start"() <{level = 10 : i32, message = "bqd,bkd->bqk"}> : () -> ()
    %cst_154 = arith.constant dense<0.000000e+00> : vector<2x8x8xf32>
    %485 = tpu.matmul %483, %484, %cst_154 {dimension_numbers = #tpu.dot_dimension_numbers<[2], [2], [1], [1], [0, 0, 0, 1, 1, 1], [0], [0]>} : vector<2x8x8xf32>, vector<2x8x8xf32>, vector<2x8x8xf32> -> vector<2x8x8xf32>
    "tpu.trace_stop"() : () -> ()
    %486 = vector.extract_strided_slice %476 {offsets = [0, 0, 24], sizes = [2, 8, 8], strides = [1, 1, 1]} : vector<2x8x32xf32> to vector<2x8x8xf32>
    %487 = vector.extract_strided_slice %474 {offsets = [0, 0, 24], sizes = [2, 8, 8], strides = [1, 1, 1]} : vector<2x8x32xf32> to vector<2x8x8xf32>
    "tpu.trace_start"() <{level = 10 : i32, message = "bqd,bkd->bqk"}> : () -> ()
    %cst_155 = arith.constant dense<0.000000e+00> : vector<2x8x8xf32>
    %488 = tpu.matmul %486, %487, %cst_155 {dimension_numbers = #tpu.dot_dimension_numbers<[2], [2], [1], [1], [0, 0, 0, 1, 1, 1], [0], [0]>} : vector<2x8x8xf32>, vector<2x8x8xf32>, vector<2x8x8xf32> -> vector<2x8x8xf32>
    "tpu.trace_stop"() : () -> ()
    %489 = tpu.concatenate %479, %482, %485, %488 in 1 : vector<2x8x8xf32>, vector<2x8x8xf32>, vector<2x8x8xf32>, vector<2x8x8xf32> -> vector<2x32x8xf32>
    %cst_156 = arith.constant 0.353553385 : f32
    %490 = vector.broadcast %cst_156 : f32 to vector<2x32x8xf32>
    %491 = arith.mulf %489, %490 : vector<2x32x8xf32>
    %cst_157 = arith.constant -1.000000e+09 : f32
    %492 = vector.shape_cast %4 : vector<2x1x8xi1> to vector<2x1x8xi1>
    %493 = vector.broadcast %492 : vector<2x1x8xi1> to vector<2x32x8xi1>
    %494 = vector.broadcast %cst_157 : f32 to vector<2x32x8xf32>
    %495 = arith.select %493, %494, %491 : vector<2x32x8xi1>, vector<2x32x8xf32>
    %cst_158 = arith.constant dense<0xFF800000> : vector<2x32xf32>
    %496 = vector.multi_reduction <maximumf>, %495, %cst_158 [2] : vector<2x32x8xf32> to vector<2x32xf32>
    %497 = vector.shape_cast %496 : vector<2x32xf32> to vector<2x32x1xf32>
    %498 = vector.broadcast %497 : vector<2x32x1xf32> to vector<2x32x8xf32>
    %499 = arith.subf %495, %498 : vector<2x32x8xf32>
    %500 = math.exp %499 : vector<2x32x8xf32>
    %cst_159 = arith.constant dense<0.000000e+00> : vector<2x32xf32>
    %501 = vector.multi_reduction <add>, %500, %cst_159 [2] : vector<2x32x8xf32> to vector<2x32xf32>
    %502 = vector.shape_cast %501 : vector<2x32xf32> to vector<2x32x1xf32>
    %503 = tpu.reciprocal %502 {approx = true} : vector<2x32x1xf32> -> vector<2x32x1xf32>
    %504 = vector.broadcast %503 : vector<2x32x1xf32> to vector<2x32x8xf32>
    %505 = arith.mulf %500, %504 : vector<2x32x8xf32>
    %506 = vector.extract_strided_slice %505 {offsets = [0, 0, 0], sizes = [2, 8, 8], strides = [1, 1, 1]} : vector<2x32x8xf32> to vector<2x8x8xf32>
    %507 = vector.extract_strided_slice %472 {offsets = [0, 0, 0], sizes = [2, 8, 8], strides = [1, 1, 1]} : vector<2x8x32xf32> to vector<2x8x8xf32>
    "tpu.trace_start"() <{level = 10 : i32, message = "bqk,bkd->bqd"}> : () -> ()
    %cst_160 = arith.constant dense<0.000000e+00> : vector<2x8x8xf32>
    %508 = tpu.matmul %506, %507, %cst_160 {dimension_numbers = #tpu.dot_dimension_numbers<[2], [1], [1], [2], [0, 0, 0, 1, 1, 2], [0], [0]>} : vector<2x8x8xf32>, vector<2x8x8xf32>, vector<2x8x8xf32> -> vector<2x8x8xf32>
    "tpu.trace_stop"() : () -> ()
    %509 = vector.extract_strided_slice %505 {offsets = [0, 8, 0], sizes = [2, 8, 8], strides = [1, 1, 1]} : vector<2x32x8xf32> to vector<2x8x8xf32>
    %510 = vector.extract_strided_slice %472 {offsets = [0, 0, 8], sizes = [2, 8, 8], strides = [1, 1, 1]} : vector<2x8x32xf32> to vector<2x8x8xf32>
    "tpu.trace_start"() <{level = 10 : i32, message = "bqk,bkd->bqd"}> : () -> ()
    %cst_161 = arith.constant dense<0.000000e+00> : vector<2x8x8xf32>
    %511 = tpu.matmul %509, %510, %cst_161 {dimension_numbers = #tpu.dot_dimension_numbers<[2], [1], [1], [2], [0, 0, 0, 1, 1, 2], [0], [0]>} : vector<2x8x8xf32>, vector<2x8x8xf32>, vector<2x8x8xf32> -> vector<2x8x8xf32>
    "tpu.trace_stop"() : () -> ()
    %512 = vector.extract_strided_slice %505 {offsets = [0, 16, 0], sizes = [2, 8, 8], strides = [1, 1, 1]} : vector<2x32x8xf32> to vector<2x8x8xf32>
    %513 = vector.extract_strided_slice %472 {offsets = [0, 0, 16], sizes = [2, 8, 8], strides = [1, 1, 1]} : vector<2x8x32xf32> to vector<2x8x8xf32>
    "tpu.trace_start"() <{level = 10 : i32, message = "bqk,bkd->bqd"}> : () -> ()
    %cst_162 = arith.constant dense<0.000000e+00> : vector<2x8x8xf32>
    %514 = tpu.matmul %512, %513, %cst_162 {dimension_numbers = #tpu.dot_dimension_numbers<[2], [1], [1], [2], [0, 0, 0, 1, 1, 2], [0], [0]>} : vector<2x8x8xf32>, vector<2x8x8xf32>, vector<2x8x8xf32> -> vector<2x8x8xf32>
    "tpu.trace_stop"() : () -> ()
    %515 = vector.extract_strided_slice %505 {offsets = [0, 24, 0], sizes = [2, 8, 8], strides = [1, 1, 1]} : vector<2x32x8xf32> to vector<2x8x8xf32>
    %516 = vector.extract_strided_slice %472 {offsets = [0, 0, 24], sizes = [2, 8, 8], strides = [1, 1, 1]} : vector<2x8x32xf32> to vector<2x8x8xf32>
    "tpu.trace_start"() <{level = 10 : i32, message = "bqk,bkd->bqd"}> : () -> ()
    %cst_163 = arith.constant dense<0.000000e+00> : vector<2x8x8xf32>
    %517 = tpu.matmul %515, %516, %cst_163 {dimension_numbers = #tpu.dot_dimension_numbers<[2], [1], [1], [2], [0, 0, 0, 1, 1, 2], [0], [0]>} : vector<2x8x8xf32>, vector<2x8x8xf32>, vector<2x8x8xf32> -> vector<2x8x8xf32>
    "tpu.trace_stop"() : () -> ()
    %518 = tpu.concatenate %508, %511, %514, %517 in 2 : vector<2x8x8xf32>, vector<2x8x8xf32>, vector<2x8x8xf32>, vector<2x8x8xf32> -> vector<2x8x32xf32>
    %519 = vector.shape_cast %518 : vector<2x8x32xf32> to vector<16x32xf32>
    %c5_164 = arith.constant 5 : index
    %c0_165 = arith.constant 0 : index
    %c0_166 = arith.constant 0 : index
    %520 = vector.load %arg12[%c5_164, %c0_165, %c0_166] : memref<6x32x32xf32, #tpu.memory_space<vmem>>, vector<1x32x32xf32>
    %521 = vector.shape_cast %520 : vector<1x32x32xf32> to vector<32x32xf32>
    %522 = arith.truncf %519 : vector<16x32xf32> to vector<16x32xbf16>
    %523 = arith.truncf %521 : vector<32x32xf32> to vector<32x32xbf16>
    %cst_167 = arith.constant dense<0.000000e+00> : vector<16x32xf32>
    %524 = tpu.matmul %522, %523, %cst_167 {dimension_numbers = #tpu.dot_dimension_numbers<[1], [0], [0], [1], [0, 0, 1, 1], [], []>} : vector<16x32xbf16>, vector<32x32xbf16>, vector<16x32xf32> -> vector<16x32xf32>
    %c25 = arith.constant 25 : index
    %c0_168 = arith.constant 0 : index
    %c0_169 = arith.constant 0 : index
    %525 = vector.load %arg8[%c25, %c0_168, %c0_169] : memref<31x1x32xf32, #tpu.memory_space<vmem>>, vector<1x1x32xf32>
    %526 = vector.shape_cast %525 : vector<1x1x32xf32> to vector<1x32xf32>
    %527 = vector.broadcast %526 : vector<1x32xf32> to vector<16x32xf32>
    %528 = arith.addf %524, %527 : vector<16x32xf32>
    %529 = vector.shape_cast %528 : vector<16x32xf32> to vector<2x8x32xf32>
    %530 = arith.addf %460, %529 : vector<2x8x32xf32>
    %cst_170 = arith.constant dense<0.000000e+00> : vector<2x8xf32>
    %531 = vector.multi_reduction <add>, %530, %cst_170 [2] : vector<2x8x32xf32> to vector<2x8xf32>
    %532 = vector.shape_cast %531 : vector<2x8xf32> to vector<2x8x1xf32>
    %cst_171 = arith.constant 3.125000e-02 : f32
    %533 = vector.broadcast %cst_171 : f32 to vector<2x8x1xf32>
    %534 = arith.mulf %532, %533 : vector<2x8x1xf32>
    %535 = vector.broadcast %534 : vector<2x8x1xf32> to vector<2x8x32xf32>
    %536 = arith.subf %530, %535 : vector<2x8x32xf32>
    %537 = arith.mulf %536, %536 : vector<2x8x32xf32>
    %cst_172 = arith.constant dense<0.000000e+00> : vector<2x8xf32>
    %538 = vector.multi_reduction <add>, %537, %cst_172 [2] : vector<2x8x32xf32> to vector<2x8xf32>
    %539 = vector.shape_cast %538 : vector<2x8xf32> to vector<2x8x1xf32>
    %cst_173 = arith.constant 0.0322580636 : f32
    %540 = vector.broadcast %cst_173 : f32 to vector<2x8x1xf32>
    %541 = arith.mulf %539, %540 : vector<2x8x1xf32>
    %542 = math.sqrt %541 : vector<2x8x1xf32>
    %cst_174 = arith.constant 9.99999997E-7 : f32
    %543 = vector.broadcast %cst_174 : f32 to vector<2x8x1xf32>
    %544 = arith.addf %542, %543 : vector<2x8x1xf32>
    %545 = tpu.reciprocal %544 {approx = true} : vector<2x8x1xf32> -> vector<2x8x1xf32>
    %c27 = arith.constant 27 : index
    %c0_175 = arith.constant 0 : index
    %c0_176 = arith.constant 0 : index
    %546 = vector.load %arg8[%c27, %c0_175, %c0_176] : memref<31x1x32xf32, #tpu.memory_space<vmem>>, vector<1x1x32xf32>
    %547 = vector.shape_cast %546 : vector<1x1x32xf32> to vector<1x32xf32>
    %548 = vector.broadcast %545 : vector<2x8x1xf32> to vector<2x8x32xf32>
    %549 = arith.mulf %536, %548 : vector<2x8x32xf32>
    %550 = vector.shape_cast %547 : vector<1x32xf32> to vector<1x1x32xf32>
    %551 = vector.broadcast %550 : vector<1x1x32xf32> to vector<2x8x32xf32>
    %552 = arith.mulf %551, %549 : vector<2x8x32xf32>
    %c26 = arith.constant 26 : index
    %c0_177 = arith.constant 0 : index
    %c0_178 = arith.constant 0 : index
    %553 = vector.load %arg8[%c26, %c0_177, %c0_178] : memref<31x1x32xf32, #tpu.memory_space<vmem>>, vector<1x1x32xf32>
    %554 = vector.shape_cast %553 : vector<1x1x32xf32> to vector<1x32xf32>
    %555 = vector.shape_cast %554 : vector<1x32xf32> to vector<1x1x32xf32>
    %556 = vector.broadcast %555 : vector<1x1x32xf32> to vector<2x8x32xf32>
    %557 = arith.addf %552, %556 : vector<2x8x32xf32>
    %558 = vector.shape_cast %557 : vector<2x8x32xf32> to vector<16x32xf32>
    %c7 = arith.constant 7 : index
    %c0_179 = arith.constant 0 : index
    %c0_180 = arith.constant 0 : index
    %559 = vector.load %arg13[%c7, %c0_179, %c0_180] : memref<8x32x64xf32, #tpu.memory_space<vmem>>, vector<1x32x64xf32>
    %560 = vector.shape_cast %559 : vector<1x32x64xf32> to vector<32x64xf32>
    %561 = arith.truncf %558 : vector<16x32xf32> to vector<16x32xbf16>
    %562 = arith.truncf %560 : vector<32x64xf32> to vector<32x64xbf16>
    %cst_181 = arith.constant dense<0.000000e+00> : vector<16x64xf32>
    %563 = tpu.matmul %561, %562, %cst_181 {dimension_numbers = #tpu.dot_dimension_numbers<[1], [0], [0], [1], [0, 0, 1, 1], [], []>} : vector<16x32xbf16>, vector<32x64xbf16>, vector<16x64xf32> -> vector<16x64xf32>
    %c9 = arith.constant 9 : index
    %c0_182 = arith.constant 0 : index
    %c0_183 = arith.constant 0 : index
    %564 = vector.load %arg9[%c9, %c0_182, %c0_183] : memref<12x1x64xf32, #tpu.memory_space<vmem>>, vector<1x1x64xf32>
    %565 = vector.shape_cast %564 : vector<1x1x64xf32> to vector<1x64xf32>
    %566 = vector.broadcast %565 : vector<1x64xf32> to vector<16x64xf32>
    %567 = arith.addf %563, %566 : vector<16x64xf32>
    %cst_184 = arith.constant 0.000000e+00 : f32
    %568 = vector.broadcast %cst_184 : f32 to vector<16x64xf32>
    %569 = arith.maximumf %567, %568 : vector<16x64xf32>
    %c3 = arith.constant 3 : index
    %c0_185 = arith.constant 0 : index
    %c0_186 = arith.constant 0 : index
    %570 = vector.load %arg18[%c3, %c0_185, %c0_186] : memref<4x64x32xf32, #tpu.memory_space<vmem>>, vector<1x64x32xf32>
    %571 = vector.shape_cast %570 : vector<1x64x32xf32> to vector<64x32xf32>
    %572 = arith.truncf %569 : vector<16x64xf32> to vector<16x64xbf16>
    %573 = arith.truncf %571 : vector<64x32xf32> to vector<64x32xbf16>
    %cst_187 = arith.constant dense<0.000000e+00> : vector<16x32xf32>
    %574 = tpu.matmul %572, %573, %cst_187 {dimension_numbers = #tpu.dot_dimension_numbers<[1], [0], [0], [1], [0, 0, 1, 1], [], []>} : vector<16x64xbf16>, vector<64x32xbf16>, vector<16x32xf32> -> vector<16x32xf32>
    %c24 = arith.constant 24 : index
    %c0_188 = arith.constant 0 : index
    %c0_189 = arith.constant 0 : index
    %575 = vector.load %arg8[%c24, %c0_188, %c0_189] : memref<31x1x32xf32, #tpu.memory_space<vmem>>, vector<1x1x32xf32>
    %576 = vector.shape_cast %575 : vector<1x1x32xf32> to vector<1x32xf32>
    %577 = vector.broadcast %576 : vector<1x32xf32> to vector<16x32xf32>
    %578 = arith.addf %574, %577 : vector<16x32xf32>
    %579 = vector.shape_cast %578 : vector<16x32xf32> to vector<2x8x32xf32>
    %580 = arith.addf %557, %579 : vector<2x8x32xf32>
    %cst_190 = arith.constant dense<0.000000e+00> : vector<2x8xf32>
    %581 = vector.multi_reduction <add>, %580, %cst_190 [2] : vector<2x8x32xf32> to vector<2x8xf32>
    %582 = vector.shape_cast %581 : vector<2x8xf32> to vector<2x8x1xf32>
    %cst_191 = arith.constant 3.125000e-02 : f32
    %583 = vector.broadcast %cst_191 : f32 to vector<2x8x1xf32>
    %584 = arith.mulf %582, %583 : vector<2x8x1xf32>
    %585 = vector.broadcast %584 : vector<2x8x1xf32> to vector<2x8x32xf32>
    %586 = arith.subf %580, %585 : vector<2x8x32xf32>
    %587 = arith.mulf %586, %586 : vector<2x8x32xf32>
    %cst_192 = arith.constant dense<0.000000e+00> : vector<2x8xf32>
    %588 = vector.multi_reduction <add>, %587, %cst_192 [2] : vector<2x8x32xf32> to vector<2x8xf32>
    %589 = vector.shape_cast %588 : vector<2x8xf32> to vector<2x8x1xf32>
    %cst_193 = arith.constant 0.0322580636 : f32
    %590 = vector.broadcast %cst_193 : f32 to vector<2x8x1xf32>
    %591 = arith.mulf %589, %590 : vector<2x8x1xf32>
    %592 = math.sqrt %591 : vector<2x8x1xf32>
    %cst_194 = arith.constant 9.99999997E-7 : f32
    %593 = vector.broadcast %cst_194 : f32 to vector<2x8x1xf32>
    %594 = arith.addf %592, %593 : vector<2x8x1xf32>
    %595 = tpu.reciprocal %594 {approx = true} : vector<2x8x1xf32> -> vector<2x8x1xf32>
    %c29 = arith.constant 29 : index
    %c0_195 = arith.constant 0 : index
    %c0_196 = arith.constant 0 : index
    %596 = vector.load %arg8[%c29, %c0_195, %c0_196] : memref<31x1x32xf32, #tpu.memory_space<vmem>>, vector<1x1x32xf32>
    %597 = vector.shape_cast %596 : vector<1x1x32xf32> to vector<1x32xf32>
    %598 = vector.broadcast %595 : vector<2x8x1xf32> to vector<2x8x32xf32>
    %599 = arith.mulf %586, %598 : vector<2x8x32xf32>
    %600 = vector.shape_cast %597 : vector<1x32xf32> to vector<1x1x32xf32>
    %601 = vector.broadcast %600 : vector<1x1x32xf32> to vector<2x8x32xf32>
    %602 = arith.mulf %601, %599 : vector<2x8x32xf32>
    %c28 = arith.constant 28 : index
    %c0_197 = arith.constant 0 : index
    %c0_198 = arith.constant 0 : index
    %603 = vector.load %arg8[%c28, %c0_197, %c0_198] : memref<31x1x32xf32, #tpu.memory_space<vmem>>, vector<1x1x32xf32>
    %604 = vector.shape_cast %603 : vector<1x1x32xf32> to vector<1x32xf32>
    %605 = vector.shape_cast %604 : vector<1x32xf32> to vector<1x1x32xf32>
    %606 = vector.broadcast %605 : vector<1x1x32xf32> to vector<2x8x32xf32>
    %607 = arith.addf %602, %606 : vector<2x8x32xf32>
    %c0_199 = arith.constant 0 : index
    %c0_200 = arith.constant 0 : index
    %c0_201 = arith.constant 0 : index
    %608 = vector.load %arg14[%c0_199, %c0_200, %c0_201] : memref<6x32x96xf32, #tpu.memory_space<vmem>>, vector<1x32x96xf32>
    %609 = vector.shape_cast %608 : vector<1x32x96xf32> to vector<32x96xf32>
    %c0_202 = arith.constant 0 : index
    %c0_203 = arith.constant 0 : index
    %c0_204 = arith.constant 0 : index
    %610 = vector.load %arg10[%c0_202, %c0_203, %c0_204] : memref<6x1x96xf32, #tpu.memory_space<vmem>>, vector<1x1x96xf32>
    %611 = vector.shape_cast %610 : vector<1x1x96xf32> to vector<1x96xf32>
    %612 = vector.shape_cast %313 : vector<2x8x32xf32> to vector<16x32xf32>
    %613 = arith.truncf %612 : vector<16x32xf32> to vector<16x32xbf16>
    %614 = arith.truncf %609 : vector<32x96xf32> to vector<32x96xbf16>
    %cst_205 = arith.constant dense<0.000000e+00> : vector<16x96xf32>
    %615 = tpu.matmul %613, %614, %cst_205 {dimension_numbers = #tpu.dot_dimension_numbers<[1], [0], [0], [1], [0, 0, 1, 1], [], []>} : vector<16x32xbf16>, vector<32x96xbf16>, vector<16x96xf32> -> vector<16x96xf32>
    %616 = vector.broadcast %611 : vector<1x96xf32> to vector<16x96xf32>
    %617 = arith.addf %615, %616 : vector<16x96xf32>
    %618 = vector.extract_strided_slice %617 {offsets = [0, 0], sizes = [16, 32], strides = [1, 1]} : vector<16x96xf32> to vector<16x32xf32>
    %619 = vector.shape_cast %618 : vector<16x32xf32> to vector<2x8x32xf32>
    %620 = vector.extract_strided_slice %617 {offsets = [0, 32], sizes = [16, 32], strides = [1, 1]} : vector<16x96xf32> to vector<16x32xf32>
    %621 = vector.shape_cast %620 : vector<16x32xf32> to vector<2x8x32xf32>
    %622 = vector.extract_strided_slice %617 {offsets = [0, 64], sizes = [16, 32], strides = [1, 1]} : vector<16x96xf32> to vector<16x32xf32>
    %623 = vector.shape_cast %622 : vector<16x32xf32> to vector<2x8x32xf32>
    %624 = vector.extract_strided_slice %623 {offsets = [0, 0, 0], sizes = [2, 8, 8], strides = [1, 1, 1]} : vector<2x8x32xf32> to vector<2x8x8xf32>
    %625 = vector.extract_strided_slice %621 {offsets = [0, 0, 0], sizes = [2, 8, 8], strides = [1, 1, 1]} : vector<2x8x32xf32> to vector<2x8x8xf32>
    "tpu.trace_start"() <{level = 10 : i32, message = "bqd,bkd->bqk"}> : () -> ()
    %cst_206 = arith.constant dense<0.000000e+00> : vector<2x8x8xf32>
    %626 = tpu.matmul %624, %625, %cst_206 {dimension_numbers = #tpu.dot_dimension_numbers<[2], [2], [1], [1], [0, 0, 0, 1, 1, 1], [0], [0]>} : vector<2x8x8xf32>, vector<2x8x8xf32>, vector<2x8x8xf32> -> vector<2x8x8xf32>
    "tpu.trace_stop"() : () -> ()
    %627 = vector.extract_strided_slice %623 {offsets = [0, 0, 8], sizes = [2, 8, 8], strides = [1, 1, 1]} : vector<2x8x32xf32> to vector<2x8x8xf32>
    %628 = vector.extract_strided_slice %621 {offsets = [0, 0, 8], sizes = [2, 8, 8], strides = [1, 1, 1]} : vector<2x8x32xf32> to vector<2x8x8xf32>
    "tpu.trace_start"() <{level = 10 : i32, message = "bqd,bkd->bqk"}> : () -> ()
    %cst_207 = arith.constant dense<0.000000e+00> : vector<2x8x8xf32>
    %629 = tpu.matmul %627, %628, %cst_207 {dimension_numbers = #tpu.dot_dimension_numbers<[2], [2], [1], [1], [0, 0, 0, 1, 1, 1], [0], [0]>} : vector<2x8x8xf32>, vector<2x8x8xf32>, vector<2x8x8xf32> -> vector<2x8x8xf32>
    "tpu.trace_stop"() : () -> ()
    %630 = vector.extract_strided_slice %623 {offsets = [0, 0, 16], sizes = [2, 8, 8], strides = [1, 1, 1]} : vector<2x8x32xf32> to vector<2x8x8xf32>
    %631 = vector.extract_strided_slice %621 {offsets = [0, 0, 16], sizes = [2, 8, 8], strides = [1, 1, 1]} : vector<2x8x32xf32> to vector<2x8x8xf32>
    "tpu.trace_start"() <{level = 10 : i32, message = "bqd,bkd->bqk"}> : () -> ()
    %cst_208 = arith.constant dense<0.000000e+00> : vector<2x8x8xf32>
    %632 = tpu.matmul %630, %631, %cst_208 {dimension_numbers = #tpu.dot_dimension_numbers<[2], [2], [1], [1], [0, 0, 0, 1, 1, 1], [0], [0]>} : vector<2x8x8xf32>, vector<2x8x8xf32>, vector<2x8x8xf32> -> vector<2x8x8xf32>
    "tpu.trace_stop"() : () -> ()
    %633 = vector.extract_strided_slice %623 {offsets = [0, 0, 24], sizes = [2, 8, 8], strides = [1, 1, 1]} : vector<2x8x32xf32> to vector<2x8x8xf32>
    %634 = vector.extract_strided_slice %621 {offsets = [0, 0, 24], sizes = [2, 8, 8], strides = [1, 1, 1]} : vector<2x8x32xf32> to vector<2x8x8xf32>
    "tpu.trace_start"() <{level = 10 : i32, message = "bqd,bkd->bqk"}> : () -> ()
    %cst_209 = arith.constant dense<0.000000e+00> : vector<2x8x8xf32>
    %635 = tpu.matmul %633, %634, %cst_209 {dimension_numbers = #tpu.dot_dimension_numbers<[2], [2], [1], [1], [0, 0, 0, 1, 1, 1], [0], [0]>} : vector<2x8x8xf32>, vector<2x8x8xf32>, vector<2x8x8xf32> -> vector<2x8x8xf32>
    "tpu.trace_stop"() : () -> ()
    %636 = tpu.concatenate %626, %629, %632, %635 in 1 : vector<2x8x8xf32>, vector<2x8x8xf32>, vector<2x8x8xf32>, vector<2x8x8xf32> -> vector<2x32x8xf32>
    %cst_210 = arith.constant 0.353553385 : f32
    %637 = vector.broadcast %cst_210 : f32 to vector<2x32x8xf32>
    %638 = arith.mulf %636, %637 : vector<2x32x8xf32>
    %cst_211 = arith.constant -1.000000e+09 : f32
    %639 = vector.shape_cast %7 : vector<2x1x8xi1> to vector<2x1x8xi1>
    %640 = vector.broadcast %639 : vector<2x1x8xi1> to vector<2x32x8xi1>
    %641 = vector.broadcast %cst_211 : f32 to vector<2x32x8xf32>
    %642 = arith.select %640, %641, %638 : vector<2x32x8xi1>, vector<2x32x8xf32>
    %cst_212 = arith.constant dense<0xFF800000> : vector<2x32xf32>
    %643 = vector.multi_reduction <maximumf>, %642, %cst_212 [2] : vector<2x32x8xf32> to vector<2x32xf32>
    %644 = vector.shape_cast %643 : vector<2x32xf32> to vector<2x32x1xf32>
    %645 = vector.broadcast %644 : vector<2x32x1xf32> to vector<2x32x8xf32>
    %646 = arith.subf %642, %645 : vector<2x32x8xf32>
    %647 = math.exp %646 : vector<2x32x8xf32>
    %cst_213 = arith.constant dense<0.000000e+00> : vector<2x32xf32>
    %648 = vector.multi_reduction <add>, %647, %cst_213 [2] : vector<2x32x8xf32> to vector<2x32xf32>
    %649 = vector.shape_cast %648 : vector<2x32xf32> to vector<2x32x1xf32>
    %650 = tpu.reciprocal %649 {approx = true} : vector<2x32x1xf32> -> vector<2x32x1xf32>
    %651 = vector.broadcast %650 : vector<2x32x1xf32> to vector<2x32x8xf32>
    %652 = arith.mulf %647, %651 : vector<2x32x8xf32>
    %653 = vector.extract_strided_slice %652 {offsets = [0, 0, 0], sizes = [2, 8, 8], strides = [1, 1, 1]} : vector<2x32x8xf32> to vector<2x8x8xf32>
    %654 = vector.extract_strided_slice %619 {offsets = [0, 0, 0], sizes = [2, 8, 8], strides = [1, 1, 1]} : vector<2x8x32xf32> to vector<2x8x8xf32>
    "tpu.trace_start"() <{level = 10 : i32, message = "bqk,bkd->bqd"}> : () -> ()
    %cst_214 = arith.constant dense<0.000000e+00> : vector<2x8x8xf32>
    %655 = tpu.matmul %653, %654, %cst_214 {dimension_numbers = #tpu.dot_dimension_numbers<[2], [1], [1], [2], [0, 0, 0, 1, 1, 2], [0], [0]>} : vector<2x8x8xf32>, vector<2x8x8xf32>, vector<2x8x8xf32> -> vector<2x8x8xf32>
    "tpu.trace_stop"() : () -> ()
    %656 = vector.extract_strided_slice %652 {offsets = [0, 8, 0], sizes = [2, 8, 8], strides = [1, 1, 1]} : vector<2x32x8xf32> to vector<2x8x8xf32>
    %657 = vector.extract_strided_slice %619 {offsets = [0, 0, 8], sizes = [2, 8, 8], strides = [1, 1, 1]} : vector<2x8x32xf32> to vector<2x8x8xf32>
    "tpu.trace_start"() <{level = 10 : i32, message = "bqk,bkd->bqd"}> : () -> ()
    %cst_215 = arith.constant dense<0.000000e+00> : vector<2x8x8xf32>
    %658 = tpu.matmul %656, %657, %cst_215 {dimension_numbers = #tpu.dot_dimension_numbers<[2], [1], [1], [2], [0, 0, 0, 1, 1, 2], [0], [0]>} : vector<2x8x8xf32>, vector<2x8x8xf32>, vector<2x8x8xf32> -> vector<2x8x8xf32>
    "tpu.trace_stop"() : () -> ()
    %659 = vector.extract_strided_slice %652 {offsets = [0, 16, 0], sizes = [2, 8, 8], strides = [1, 1, 1]} : vector<2x32x8xf32> to vector<2x8x8xf32>
    %660 = vector.extract_strided_slice %619 {offsets = [0, 0, 16], sizes = [2, 8, 8], strides = [1, 1, 1]} : vector<2x8x32xf32> to vector<2x8x8xf32>
    "tpu.trace_start"() <{level = 10 : i32, message = "bqk,bkd->bqd"}> : () -> ()
    %cst_216 = arith.constant dense<0.000000e+00> : vector<2x8x8xf32>
    %661 = tpu.matmul %659, %660, %cst_216 {dimension_numbers = #tpu.dot_dimension_numbers<[2], [1], [1], [2], [0, 0, 0, 1, 1, 2], [0], [0]>} : vector<2x8x8xf32>, vector<2x8x8xf32>, vector<2x8x8xf32> -> vector<2x8x8xf32>
    "tpu.trace_stop"() : () -> ()
    %662 = vector.extract_strided_slice %652 {offsets = [0, 24, 0], sizes = [2, 8, 8], strides = [1, 1, 1]} : vector<2x32x8xf32> to vector<2x8x8xf32>
    %663 = vector.extract_strided_slice %619 {offsets = [0, 0, 24], sizes = [2, 8, 8], strides = [1, 1, 1]} : vector<2x8x32xf32> to vector<2x8x8xf32>
    "tpu.trace_start"() <{level = 10 : i32, message = "bqk,bkd->bqd"}> : () -> ()
    %cst_217 = arith.constant dense<0.000000e+00> : vector<2x8x8xf32>
    %664 = tpu.matmul %662, %663, %cst_217 {dimension_numbers = #tpu.dot_dimension_numbers<[2], [1], [1], [2], [0, 0, 0, 1, 1, 2], [0], [0]>} : vector<2x8x8xf32>, vector<2x8x8xf32>, vector<2x8x8xf32> -> vector<2x8x8xf32>
    "tpu.trace_stop"() : () -> ()
    %665 = tpu.concatenate %655, %658, %661, %664 in 2 : vector<2x8x8xf32>, vector<2x8x8xf32>, vector<2x8x8xf32>, vector<2x8x8xf32> -> vector<2x8x32xf32>
    %666 = vector.shape_cast %665 : vector<2x8x32xf32> to vector<16x32xf32>
    %c0_218 = arith.constant 0 : index
    %c0_219 = arith.constant 0 : index
    %c0_220 = arith.constant 0 : index
    %667 = vector.load %arg12[%c0_218, %c0_219, %c0_220] : memref<6x32x32xf32, #tpu.memory_space<vmem>>, vector<1x32x32xf32>
    %668 = vector.shape_cast %667 : vector<1x32x32xf32> to vector<32x32xf32>
    %669 = arith.truncf %666 : vector<16x32xf32> to vector<16x32xbf16>
    %670 = arith.truncf %668 : vector<32x32xf32> to vector<32x32xbf16>
    %cst_221 = arith.constant dense<0.000000e+00> : vector<16x32xf32>
    %671 = tpu.matmul %669, %670, %cst_221 {dimension_numbers = #tpu.dot_dimension_numbers<[1], [0], [0], [1], [0, 0, 1, 1], [], []>} : vector<16x32xbf16>, vector<32x32xbf16>, vector<16x32xf32> -> vector<16x32xf32>
    %c1_222 = arith.constant 1 : index
    %c0_223 = arith.constant 0 : index
    %c0_224 = arith.constant 0 : index
    %672 = vector.load %arg8[%c1_222, %c0_223, %c0_224] : memref<31x1x32xf32, #tpu.memory_space<vmem>>, vector<1x1x32xf32>
    %673 = vector.shape_cast %672 : vector<1x1x32xf32> to vector<1x32xf32>
    %674 = vector.broadcast %673 : vector<1x32xf32> to vector<16x32xf32>
    %675 = arith.addf %671, %674 : vector<16x32xf32>
    %676 = vector.shape_cast %675 : vector<16x32xf32> to vector<2x8x32xf32>
    %677 = arith.addf %313, %676 : vector<2x8x32xf32>
    %cst_225 = arith.constant dense<0.000000e+00> : vector<2x8xf32>
    %678 = vector.multi_reduction <add>, %677, %cst_225 [2] : vector<2x8x32xf32> to vector<2x8xf32>
    %679 = vector.shape_cast %678 : vector<2x8xf32> to vector<2x8x1xf32>
    %cst_226 = arith.constant 3.125000e-02 : f32
    %680 = vector.broadcast %cst_226 : f32 to vector<2x8x1xf32>
    %681 = arith.mulf %679, %680 : vector<2x8x1xf32>
    %682 = vector.broadcast %681 : vector<2x8x1xf32> to vector<2x8x32xf32>
    %683 = arith.subf %677, %682 : vector<2x8x32xf32>
    %684 = arith.mulf %683, %683 : vector<2x8x32xf32>
    %cst_227 = arith.constant dense<0.000000e+00> : vector<2x8xf32>
    %685 = vector.multi_reduction <add>, %684, %cst_227 [2] : vector<2x8x32xf32> to vector<2x8xf32>
    %686 = vector.shape_cast %685 : vector<2x8xf32> to vector<2x8x1xf32>
    %cst_228 = arith.constant 0.0322580636 : f32
    %687 = vector.broadcast %cst_228 : f32 to vector<2x8x1xf32>
    %688 = arith.mulf %686, %687 : vector<2x8x1xf32>
    %689 = math.sqrt %688 : vector<2x8x1xf32>
    %cst_229 = arith.constant 9.99999997E-7 : f32
    %690 = vector.broadcast %cst_229 : f32 to vector<2x8x1xf32>
    %691 = arith.addf %689, %690 : vector<2x8x1xf32>
    %692 = tpu.reciprocal %691 {approx = true} : vector<2x8x1xf32> -> vector<2x8x1xf32>
    %c4_230 = arith.constant 4 : index
    %c0_231 = arith.constant 0 : index
    %c0_232 = arith.constant 0 : index
    %693 = vector.load %arg8[%c4_230, %c0_231, %c0_232] : memref<31x1x32xf32, #tpu.memory_space<vmem>>, vector<1x1x32xf32>
    %694 = vector.shape_cast %693 : vector<1x1x32xf32> to vector<1x32xf32>
    %695 = vector.broadcast %692 : vector<2x8x1xf32> to vector<2x8x32xf32>
    %696 = arith.mulf %683, %695 : vector<2x8x32xf32>
    %697 = vector.shape_cast %694 : vector<1x32xf32> to vector<1x1x32xf32>
    %698 = vector.broadcast %697 : vector<1x1x32xf32> to vector<2x8x32xf32>
    %699 = arith.mulf %698, %696 : vector<2x8x32xf32>
    %c3_233 = arith.constant 3 : index
    %c0_234 = arith.constant 0 : index
    %c0_235 = arith.constant 0 : index
    %700 = vector.load %arg8[%c3_233, %c0_234, %c0_235] : memref<31x1x32xf32, #tpu.memory_space<vmem>>, vector<1x1x32xf32>
    %701 = vector.shape_cast %700 : vector<1x1x32xf32> to vector<1x32xf32>
    %702 = vector.shape_cast %701 : vector<1x32xf32> to vector<1x1x32xf32>
    %703 = vector.broadcast %702 : vector<1x1x32xf32> to vector<2x8x32xf32>
    %704 = arith.addf %699, %703 : vector<2x8x32xf32>
    %c1_236 = arith.constant 1 : index
    %c0_237 = arith.constant 0 : index
    %c0_238 = arith.constant 0 : index
    %705 = vector.load %arg14[%c1_236, %c0_237, %c0_238] : memref<6x32x96xf32, #tpu.memory_space<vmem>>, vector<1x32x96xf32>
    %706 = vector.shape_cast %705 : vector<1x32x96xf32> to vector<32x96xf32>
    %c1_239 = arith.constant 1 : index
    %c0_240 = arith.constant 0 : index
    %c0_241 = arith.constant 0 : index
    %707 = vector.load %arg10[%c1_239, %c0_240, %c0_241] : memref<6x1x96xf32, #tpu.memory_space<vmem>>, vector<1x1x96xf32>
    %708 = vector.shape_cast %707 : vector<1x1x96xf32> to vector<1x96xf32>
    %709 = vector.shape_cast %607 : vector<2x8x32xf32> to vector<16x32xf32>
    %710 = vector.extract_strided_slice %706 {offsets = [0, 0], sizes = [32, 64], strides = [1, 1]} : vector<32x96xf32> to vector<32x64xf32>
    %711 = arith.truncf %709 : vector<16x32xf32> to vector<16x32xbf16>
    %712 = arith.truncf %710 : vector<32x64xf32> to vector<32x64xbf16>
    %cst_242 = arith.constant dense<0.000000e+00> : vector<16x64xf32>
    %713 = tpu.matmul %711, %712, %cst_242 {dimension_numbers = #tpu.dot_dimension_numbers<[1], [0], [0], [1], [0, 0, 1, 1], [], []>} : vector<16x32xbf16>, vector<32x64xbf16>, vector<16x64xf32> -> vector<16x64xf32>
    %714 = vector.extract_strided_slice %708 {offsets = [0, 0], sizes = [1, 64], strides = [1, 1]} : vector<1x96xf32> to vector<1x64xf32>
    %715 = vector.broadcast %714 : vector<1x64xf32> to vector<16x64xf32>
    %716 = arith.addf %713, %715 : vector<16x64xf32>
    %717 = vector.extract_strided_slice %716 {offsets = [0, 0], sizes = [16, 32], strides = [1, 1]} : vector<16x64xf32> to vector<16x32xf32>
    %718 = vector.shape_cast %717 : vector<16x32xf32> to vector<2x8x32xf32>
    %719 = vector.extract_strided_slice %716 {offsets = [0, 32], sizes = [16, 32], strides = [1, 1]} : vector<16x64xf32> to vector<16x32xf32>
    %720 = vector.shape_cast %719 : vector<16x32xf32> to vector<2x8x32xf32>
    %721 = vector.shape_cast %704 : vector<2x8x32xf32> to vector<16x32xf32>
    %722 = vector.extract_strided_slice %706 {offsets = [0, 64], sizes = [32, 32], strides = [1, 1]} : vector<32x96xf32> to vector<32x32xf32>
    %723 = arith.truncf %721 : vector<16x32xf32> to vector<16x32xbf16>
    %724 = arith.truncf %722 : vector<32x32xf32> to vector<32x32xbf16>
    %cst_243 = arith.constant dense<0.000000e+00> : vector<16x32xf32>
    %725 = tpu.matmul %723, %724, %cst_243 {dimension_numbers = #tpu.dot_dimension_numbers<[1], [0], [0], [1], [0, 0, 1, 1], [], []>} : vector<16x32xbf16>, vector<32x32xbf16>, vector<16x32xf32> -> vector<16x32xf32>
    %726 = vector.extract_strided_slice %708 {offsets = [0, 64], sizes = [1, 32], strides = [1, 1]} : vector<1x96xf32> to vector<1x32xf32>
    %727 = vector.broadcast %726 : vector<1x32xf32> to vector<16x32xf32>
    %728 = arith.addf %725, %727 : vector<16x32xf32>
    %729 = vector.shape_cast %728 : vector<16x32xf32> to vector<2x8x32xf32>
    %730 = vector.extract_strided_slice %729 {offsets = [0, 0, 0], sizes = [2, 8, 8], strides = [1, 1, 1]} : vector<2x8x32xf32> to vector<2x8x8xf32>
    %731 = vector.extract_strided_slice %720 {offsets = [0, 0, 0], sizes = [2, 8, 8], strides = [1, 1, 1]} : vector<2x8x32xf32> to vector<2x8x8xf32>
    "tpu.trace_start"() <{level = 10 : i32, message = "bqd,bkd->bqk"}> : () -> ()
    %cst_244 = arith.constant dense<0.000000e+00> : vector<2x8x8xf32>
    %732 = tpu.matmul %730, %731, %cst_244 {dimension_numbers = #tpu.dot_dimension_numbers<[2], [2], [1], [1], [0, 0, 0, 1, 1, 1], [0], [0]>} : vector<2x8x8xf32>, vector<2x8x8xf32>, vector<2x8x8xf32> -> vector<2x8x8xf32>
    "tpu.trace_stop"() : () -> ()
    %733 = vector.extract_strided_slice %729 {offsets = [0, 0, 8], sizes = [2, 8, 8], strides = [1, 1, 1]} : vector<2x8x32xf32> to vector<2x8x8xf32>
    %734 = vector.extract_strided_slice %720 {offsets = [0, 0, 8], sizes = [2, 8, 8], strides = [1, 1, 1]} : vector<2x8x32xf32> to vector<2x8x8xf32>
    "tpu.trace_start"() <{level = 10 : i32, message = "bqd,bkd->bqk"}> : () -> ()
    %cst_245 = arith.constant dense<0.000000e+00> : vector<2x8x8xf32>
    %735 = tpu.matmul %733, %734, %cst_245 {dimension_numbers = #tpu.dot_dimension_numbers<[2], [2], [1], [1], [0, 0, 0, 1, 1, 1], [0], [0]>} : vector<2x8x8xf32>, vector<2x8x8xf32>, vector<2x8x8xf32> -> vector<2x8x8xf32>
    "tpu.trace_stop"() : () -> ()
    %736 = vector.extract_strided_slice %729 {offsets = [0, 0, 16], sizes = [2, 8, 8], strides = [1, 1, 1]} : vector<2x8x32xf32> to vector<2x8x8xf32>
    %737 = vector.extract_strided_slice %720 {offsets = [0, 0, 16], sizes = [2, 8, 8], strides = [1, 1, 1]} : vector<2x8x32xf32> to vector<2x8x8xf32>
    "tpu.trace_start"() <{level = 10 : i32, message = "bqd,bkd->bqk"}> : () -> ()
    %cst_246 = arith.constant dense<0.000000e+00> : vector<2x8x8xf32>
    %738 = tpu.matmul %736, %737, %cst_246 {dimension_numbers = #tpu.dot_dimension_numbers<[2], [2], [1], [1], [0, 0, 0, 1, 1, 1], [0], [0]>} : vector<2x8x8xf32>, vector<2x8x8xf32>, vector<2x8x8xf32> -> vector<2x8x8xf32>
    "tpu.trace_stop"() : () -> ()
    %739 = vector.extract_strided_slice %729 {offsets = [0, 0, 24], sizes = [2, 8, 8], strides = [1, 1, 1]} : vector<2x8x32xf32> to vector<2x8x8xf32>
    %740 = vector.extract_strided_slice %720 {offsets = [0, 0, 24], sizes = [2, 8, 8], strides = [1, 1, 1]} : vector<2x8x32xf32> to vector<2x8x8xf32>
    "tpu.trace_start"() <{level = 10 : i32, message = "bqd,bkd->bqk"}> : () -> ()
    %cst_247 = arith.constant dense<0.000000e+00> : vector<2x8x8xf32>
    %741 = tpu.matmul %739, %740, %cst_247 {dimension_numbers = #tpu.dot_dimension_numbers<[2], [2], [1], [1], [0, 0, 0, 1, 1, 1], [0], [0]>} : vector<2x8x8xf32>, vector<2x8x8xf32>, vector<2x8x8xf32> -> vector<2x8x8xf32>
    "tpu.trace_stop"() : () -> ()
    %742 = tpu.concatenate %732, %735, %738, %741 in 1 : vector<2x8x8xf32>, vector<2x8x8xf32>, vector<2x8x8xf32>, vector<2x8x8xf32> -> vector<2x32x8xf32>
    %cst_248 = arith.constant 0.353553385 : f32
    %743 = vector.broadcast %cst_248 : f32 to vector<2x32x8xf32>
    %744 = arith.mulf %742, %743 : vector<2x32x8xf32>
    %cst_249 = arith.constant -1.000000e+09 : f32
    %745 = vector.shape_cast %4 : vector<2x1x8xi1> to vector<2x1x8xi1>
    %746 = vector.broadcast %745 : vector<2x1x8xi1> to vector<2x32x8xi1>
    %747 = vector.broadcast %cst_249 : f32 to vector<2x32x8xf32>
    %748 = arith.select %746, %747, %744 : vector<2x32x8xi1>, vector<2x32x8xf32>
    %cst_250 = arith.constant dense<0xFF800000> : vector<2x32xf32>
    %749 = vector.multi_reduction <maximumf>, %748, %cst_250 [2] : vector<2x32x8xf32> to vector<2x32xf32>
    %750 = vector.shape_cast %749 : vector<2x32xf32> to vector<2x32x1xf32>
    %751 = vector.broadcast %750 : vector<2x32x1xf32> to vector<2x32x8xf32>
    %752 = arith.subf %748, %751 : vector<2x32x8xf32>
    %753 = math.exp %752 : vector<2x32x8xf32>
    %cst_251 = arith.constant dense<0.000000e+00> : vector<2x32xf32>
    %754 = vector.multi_reduction <add>, %753, %cst_251 [2] : vector<2x32x8xf32> to vector<2x32xf32>
    %755 = vector.shape_cast %754 : vector<2x32xf32> to vector<2x32x1xf32>
    %756 = tpu.reciprocal %755 {approx = true} : vector<2x32x1xf32> -> vector<2x32x1xf32>
    %757 = vector.broadcast %756 : vector<2x32x1xf32> to vector<2x32x8xf32>
    %758 = arith.mulf %753, %757 : vector<2x32x8xf32>
    %759 = vector.extract_strided_slice %758 {offsets = [0, 0, 0], sizes = [2, 8, 8], strides = [1, 1, 1]} : vector<2x32x8xf32> to vector<2x8x8xf32>
    %760 = vector.extract_strided_slice %718 {offsets = [0, 0, 0], sizes = [2, 8, 8], strides = [1, 1, 1]} : vector<2x8x32xf32> to vector<2x8x8xf32>
    "tpu.trace_start"() <{level = 10 : i32, message = "bqk,bkd->bqd"}> : () -> ()
    %cst_252 = arith.constant dense<0.000000e+00> : vector<2x8x8xf32>
    %761 = tpu.matmul %759, %760, %cst_252 {dimension_numbers = #tpu.dot_dimension_numbers<[2], [1], [1], [2], [0, 0, 0, 1, 1, 2], [0], [0]>} : vector<2x8x8xf32>, vector<2x8x8xf32>, vector<2x8x8xf32> -> vector<2x8x8xf32>
    "tpu.trace_stop"() : () -> ()
    %762 = vector.extract_strided_slice %758 {offsets = [0, 8, 0], sizes = [2, 8, 8], strides = [1, 1, 1]} : vector<2x32x8xf32> to vector<2x8x8xf32>
    %763 = vector.extract_strided_slice %718 {offsets = [0, 0, 8], sizes = [2, 8, 8], strides = [1, 1, 1]} : vector<2x8x32xf32> to vector<2x8x8xf32>
    "tpu.trace_start"() <{level = 10 : i32, message = "bqk,bkd->bqd"}> : () -> ()
    %cst_253 = arith.constant dense<0.000000e+00> : vector<2x8x8xf32>
    %764 = tpu.matmul %762, %763, %cst_253 {dimension_numbers = #tpu.dot_dimension_numbers<[2], [1], [1], [2], [0, 0, 0, 1, 1, 2], [0], [0]>} : vector<2x8x8xf32>, vector<2x8x8xf32>, vector<2x8x8xf32> -> vector<2x8x8xf32>
    "tpu.trace_stop"() : () -> ()
    %765 = vector.extract_strided_slice %758 {offsets = [0, 16, 0], sizes = [2, 8, 8], strides = [1, 1, 1]} : vector<2x32x8xf32> to vector<2x8x8xf32>
    %766 = vector.extract_strided_slice %718 {offsets = [0, 0, 16], sizes = [2, 8, 8], strides = [1, 1, 1]} : vector<2x8x32xf32> to vector<2x8x8xf32>
    "tpu.trace_start"() <{level = 10 : i32, message = "bqk,bkd->bqd"}> : () -> ()
    %cst_254 = arith.constant dense<0.000000e+00> : vector<2x8x8xf32>
    %767 = tpu.matmul %765, %766, %cst_254 {dimension_numbers = #tpu.dot_dimension_numbers<[2], [1], [1], [2], [0, 0, 0, 1, 1, 2], [0], [0]>} : vector<2x8x8xf32>, vector<2x8x8xf32>, vector<2x8x8xf32> -> vector<2x8x8xf32>
    "tpu.trace_stop"() : () -> ()
    %768 = vector.extract_strided_slice %758 {offsets = [0, 24, 0], sizes = [2, 8, 8], strides = [1, 1, 1]} : vector<2x32x8xf32> to vector<2x8x8xf32>
    %769 = vector.extract_strided_slice %718 {offsets = [0, 0, 24], sizes = [2, 8, 8], strides = [1, 1, 1]} : vector<2x8x32xf32> to vector<2x8x8xf32>
    "tpu.trace_start"() <{level = 10 : i32, message = "bqk,bkd->bqd"}> : () -> ()
    %cst_255 = arith.constant dense<0.000000e+00> : vector<2x8x8xf32>
    %770 = tpu.matmul %768, %769, %cst_255 {dimension_numbers = #tpu.dot_dimension_numbers<[2], [1], [1], [2], [0, 0, 0, 1, 1, 2], [0], [0]>} : vector<2x8x8xf32>, vector<2x8x8xf32>, vector<2x8x8xf32> -> vector<2x8x8xf32>
    "tpu.trace_stop"() : () -> ()
    %771 = tpu.concatenate %761, %764, %767, %770 in 2 : vector<2x8x8xf32>, vector<2x8x8xf32>, vector<2x8x8xf32>, vector<2x8x8xf32> -> vector<2x8x32xf32>
    %772 = vector.shape_cast %771 : vector<2x8x32xf32> to vector<16x32xf32>
    %c1_256 = arith.constant 1 : index
    %c0_257 = arith.constant 0 : index
    %c0_258 = arith.constant 0 : index
    %773 = vector.load %arg12[%c1_256, %c0_257, %c0_258] : memref<6x32x32xf32, #tpu.memory_space<vmem>>, vector<1x32x32xf32>
    %774 = vector.shape_cast %773 : vector<1x32x32xf32> to vector<32x32xf32>
    %775 = arith.truncf %772 : vector<16x32xf32> to vector<16x32xbf16>
    %776 = arith.truncf %774 : vector<32x32xf32> to vector<32x32xbf16>
    %cst_259 = arith.constant dense<0.000000e+00> : vector<16x32xf32>
    %777 = tpu.matmul %775, %776, %cst_259 {dimension_numbers = #tpu.dot_dimension_numbers<[1], [0], [0], [1], [0, 0, 1, 1], [], []>} : vector<16x32xbf16>, vector<32x32xbf16>, vector<16x32xf32> -> vector<16x32xf32>
    %c2_260 = arith.constant 2 : index
    %c0_261 = arith.constant 0 : index
    %c0_262 = arith.constant 0 : index
    %778 = vector.load %arg8[%c2_260, %c0_261, %c0_262] : memref<31x1x32xf32, #tpu.memory_space<vmem>>, vector<1x1x32xf32>
    %779 = vector.shape_cast %778 : vector<1x1x32xf32> to vector<1x32xf32>
    %780 = vector.broadcast %779 : vector<1x32xf32> to vector<16x32xf32>
    %781 = arith.addf %777, %780 : vector<16x32xf32>
    %782 = vector.shape_cast %781 : vector<16x32xf32> to vector<2x8x32xf32>
    %783 = arith.addf %704, %782 : vector<2x8x32xf32>
    %cst_263 = arith.constant dense<0.000000e+00> : vector<2x8xf32>
    %784 = vector.multi_reduction <add>, %783, %cst_263 [2] : vector<2x8x32xf32> to vector<2x8xf32>
    %785 = vector.shape_cast %784 : vector<2x8xf32> to vector<2x8x1xf32>
    %cst_264 = arith.constant 3.125000e-02 : f32
    %786 = vector.broadcast %cst_264 : f32 to vector<2x8x1xf32>
    %787 = arith.mulf %785, %786 : vector<2x8x1xf32>
    %788 = vector.broadcast %787 : vector<2x8x1xf32> to vector<2x8x32xf32>
    %789 = arith.subf %783, %788 : vector<2x8x32xf32>
    %790 = arith.mulf %789, %789 : vector<2x8x32xf32>
    %cst_265 = arith.constant dense<0.000000e+00> : vector<2x8xf32>
    %791 = vector.multi_reduction <add>, %790, %cst_265 [2] : vector<2x8x32xf32> to vector<2x8xf32>
    %792 = vector.shape_cast %791 : vector<2x8xf32> to vector<2x8x1xf32>
    %cst_266 = arith.constant 0.0322580636 : f32
    %793 = vector.broadcast %cst_266 : f32 to vector<2x8x1xf32>
    %794 = arith.mulf %792, %793 : vector<2x8x1xf32>
    %795 = math.sqrt %794 : vector<2x8x1xf32>
    %cst_267 = arith.constant 9.99999997E-7 : f32
    %796 = vector.broadcast %cst_267 : f32 to vector<2x8x1xf32>
    %797 = arith.addf %795, %796 : vector<2x8x1xf32>
    %798 = tpu.reciprocal %797 {approx = true} : vector<2x8x1xf32> -> vector<2x8x1xf32>
    %c6_268 = arith.constant 6 : index
    %c0_269 = arith.constant 0 : index
    %c0_270 = arith.constant 0 : index
    %799 = vector.load %arg8[%c6_268, %c0_269, %c0_270] : memref<31x1x32xf32, #tpu.memory_space<vmem>>, vector<1x1x32xf32>
    %800 = vector.shape_cast %799 : vector<1x1x32xf32> to vector<1x32xf32>
    %801 = vector.broadcast %798 : vector<2x8x1xf32> to vector<2x8x32xf32>
    %802 = arith.mulf %789, %801 : vector<2x8x32xf32>
    %803 = vector.shape_cast %800 : vector<1x32xf32> to vector<1x1x32xf32>
    %804 = vector.broadcast %803 : vector<1x1x32xf32> to vector<2x8x32xf32>
    %805 = arith.mulf %804, %802 : vector<2x8x32xf32>
    %c5_271 = arith.constant 5 : index
    %c0_272 = arith.constant 0 : index
    %c0_273 = arith.constant 0 : index
    %806 = vector.load %arg8[%c5_271, %c0_272, %c0_273] : memref<31x1x32xf32, #tpu.memory_space<vmem>>, vector<1x1x32xf32>
    %807 = vector.shape_cast %806 : vector<1x1x32xf32> to vector<1x32xf32>
    %808 = vector.shape_cast %807 : vector<1x32xf32> to vector<1x1x32xf32>
    %809 = vector.broadcast %808 : vector<1x1x32xf32> to vector<2x8x32xf32>
    %810 = arith.addf %805, %809 : vector<2x8x32xf32>
    %811 = vector.shape_cast %810 : vector<2x8x32xf32> to vector<16x32xf32>
    %c4_274 = arith.constant 4 : index
    %c0_275 = arith.constant 0 : index
    %c0_276 = arith.constant 0 : index
    %812 = vector.load %arg13[%c4_274, %c0_275, %c0_276] : memref<8x32x64xf32, #tpu.memory_space<vmem>>, vector<1x32x64xf32>
    %813 = vector.shape_cast %812 : vector<1x32x64xf32> to vector<32x64xf32>
    %814 = arith.truncf %811 : vector<16x32xf32> to vector<16x32xbf16>
    %815 = arith.truncf %813 : vector<32x64xf32> to vector<32x64xbf16>
    %cst_277 = arith.constant dense<0.000000e+00> : vector<16x64xf32>
    %816 = tpu.matmul %814, %815, %cst_277 {dimension_numbers = #tpu.dot_dimension_numbers<[1], [0], [0], [1], [0, 0, 1, 1], [], []>} : vector<16x32xbf16>, vector<32x64xbf16>, vector<16x64xf32> -> vector<16x64xf32>
    %c6_278 = arith.constant 6 : index
    %c0_279 = arith.constant 0 : index
    %c0_280 = arith.constant 0 : index
    %817 = vector.load %arg9[%c6_278, %c0_279, %c0_280] : memref<12x1x64xf32, #tpu.memory_space<vmem>>, vector<1x1x64xf32>
    %818 = vector.shape_cast %817 : vector<1x1x64xf32> to vector<1x64xf32>
    %819 = vector.broadcast %818 : vector<1x64xf32> to vector<16x64xf32>
    %820 = arith.addf %816, %819 : vector<16x64xf32>
    %cst_281 = arith.constant 0.000000e+00 : f32
    %821 = vector.broadcast %cst_281 : f32 to vector<16x64xf32>
    %822 = arith.maximumf %820, %821 : vector<16x64xf32>
    %c0_282 = arith.constant 0 : index
    %c0_283 = arith.constant 0 : index
    %c0_284 = arith.constant 0 : index
    %823 = vector.load %arg18[%c0_282, %c0_283, %c0_284] : memref<4x64x32xf32, #tpu.memory_space<vmem>>, vector<1x64x32xf32>
    %824 = vector.shape_cast %823 : vector<1x64x32xf32> to vector<64x32xf32>
    %825 = arith.truncf %822 : vector<16x64xf32> to vector<16x64xbf16>
    %826 = arith.truncf %824 : vector<64x32xf32> to vector<64x32xbf16>
    %cst_285 = arith.constant dense<0.000000e+00> : vector<16x32xf32>
    %827 = tpu.matmul %825, %826, %cst_285 {dimension_numbers = #tpu.dot_dimension_numbers<[1], [0], [0], [1], [0, 0, 1, 1], [], []>} : vector<16x64xbf16>, vector<64x32xbf16>, vector<16x32xf32> -> vector<16x32xf32>
    %c0_286 = arith.constant 0 : index
    %c0_287 = arith.constant 0 : index
    %c0_288 = arith.constant 0 : index
    %828 = vector.load %arg8[%c0_286, %c0_287, %c0_288] : memref<31x1x32xf32, #tpu.memory_space<vmem>>, vector<1x1x32xf32>
    %829 = vector.shape_cast %828 : vector<1x1x32xf32> to vector<1x32xf32>
    %830 = vector.broadcast %829 : vector<1x32xf32> to vector<16x32xf32>
    %831 = arith.addf %827, %830 : vector<16x32xf32>
    %832 = vector.shape_cast %831 : vector<16x32xf32> to vector<2x8x32xf32>
    %833 = arith.addf %810, %832 : vector<2x8x32xf32>
    %cst_289 = arith.constant dense<0.000000e+00> : vector<2x8xf32>
    %834 = vector.multi_reduction <add>, %833, %cst_289 [2] : vector<2x8x32xf32> to vector<2x8xf32>
    %835 = vector.shape_cast %834 : vector<2x8xf32> to vector<2x8x1xf32>
    %cst_290 = arith.constant 3.125000e-02 : f32
    %836 = vector.broadcast %cst_290 : f32 to vector<2x8x1xf32>
    %837 = arith.mulf %835, %836 : vector<2x8x1xf32>
    %838 = vector.broadcast %837 : vector<2x8x1xf32> to vector<2x8x32xf32>
    %839 = arith.subf %833, %838 : vector<2x8x32xf32>
    %840 = arith.mulf %839, %839 : vector<2x8x32xf32>
    %cst_291 = arith.constant dense<0.000000e+00> : vector<2x8xf32>
    %841 = vector.multi_reduction <add>, %840, %cst_291 [2] : vector<2x8x32xf32> to vector<2x8xf32>
    %842 = vector.shape_cast %841 : vector<2x8xf32> to vector<2x8x1xf32>
    %cst_292 = arith.constant 0.0322580636 : f32
    %843 = vector.broadcast %cst_292 : f32 to vector<2x8x1xf32>
    %844 = arith.mulf %842, %843 : vector<2x8x1xf32>
    %845 = math.sqrt %844 : vector<2x8x1xf32>
    %cst_293 = arith.constant 9.99999997E-7 : f32
    %846 = vector.broadcast %cst_293 : f32 to vector<2x8x1xf32>
    %847 = arith.addf %845, %846 : vector<2x8x1xf32>
    %848 = tpu.reciprocal %847 {approx = true} : vector<2x8x1xf32> -> vector<2x8x1xf32>
    %c8_294 = arith.constant 8 : index
    %c0_295 = arith.constant 0 : index
    %c0_296 = arith.constant 0 : index
    %849 = vector.load %arg8[%c8_294, %c0_295, %c0_296] : memref<31x1x32xf32, #tpu.memory_space<vmem>>, vector<1x1x32xf32>
    %850 = vector.shape_cast %849 : vector<1x1x32xf32> to vector<1x32xf32>
    %851 = vector.broadcast %848 : vector<2x8x1xf32> to vector<2x8x32xf32>
    %852 = arith.mulf %839, %851 : vector<2x8x32xf32>
    %853 = vector.shape_cast %850 : vector<1x32xf32> to vector<1x1x32xf32>
    %854 = vector.broadcast %853 : vector<1x1x32xf32> to vector<2x8x32xf32>
    %855 = arith.mulf %854, %852 : vector<2x8x32xf32>
    %c7_297 = arith.constant 7 : index
    %c0_298 = arith.constant 0 : index
    %c0_299 = arith.constant 0 : index
    %856 = vector.load %arg8[%c7_297, %c0_298, %c0_299] : memref<31x1x32xf32, #tpu.memory_space<vmem>>, vector<1x1x32xf32>
    %857 = vector.shape_cast %856 : vector<1x1x32xf32> to vector<1x32xf32>
    %858 = vector.shape_cast %857 : vector<1x32xf32> to vector<1x1x32xf32>
    %859 = vector.broadcast %858 : vector<1x1x32xf32> to vector<2x8x32xf32>
    %860 = arith.addf %855, %859 : vector<2x8x32xf32>
    %c2_300 = arith.constant 2 : index
    %c0_301 = arith.constant 0 : index
    %c0_302 = arith.constant 0 : index
    %861 = vector.load %arg14[%c2_300, %c0_301, %c0_302] : memref<6x32x96xf32, #tpu.memory_space<vmem>>, vector<1x32x96xf32>
    %862 = vector.shape_cast %861 : vector<1x32x96xf32> to vector<32x96xf32>
    %c2_303 = arith.constant 2 : index
    %c0_304 = arith.constant 0 : index
    %c0_305 = arith.constant 0 : index
    %863 = vector.load %arg10[%c2_303, %c0_304, %c0_305] : memref<6x1x96xf32, #tpu.memory_space<vmem>>, vector<1x1x96xf32>
    %864 = vector.shape_cast %863 : vector<1x1x96xf32> to vector<1x96xf32>
    %865 = vector.shape_cast %860 : vector<2x8x32xf32> to vector<16x32xf32>
    %866 = arith.truncf %865 : vector<16x32xf32> to vector<16x32xbf16>
    %867 = arith.truncf %862 : vector<32x96xf32> to vector<32x96xbf16>
    %cst_306 = arith.constant dense<0.000000e+00> : vector<16x96xf32>
    %868 = tpu.matmul %866, %867, %cst_306 {dimension_numbers = #tpu.dot_dimension_numbers<[1], [0], [0], [1], [0, 0, 1, 1], [], []>} : vector<16x32xbf16>, vector<32x96xbf16>, vector<16x96xf32> -> vector<16x96xf32>
    %869 = vector.broadcast %864 : vector<1x96xf32> to vector<16x96xf32>
    %870 = arith.addf %868, %869 : vector<16x96xf32>
    %871 = vector.extract_strided_slice %870 {offsets = [0, 0], sizes = [16, 32], strides = [1, 1]} : vector<16x96xf32> to vector<16x32xf32>
    %872 = vector.shape_cast %871 : vector<16x32xf32> to vector<2x8x32xf32>
    %873 = vector.extract_strided_slice %870 {offsets = [0, 32], sizes = [16, 32], strides = [1, 1]} : vector<16x96xf32> to vector<16x32xf32>
    %874 = vector.shape_cast %873 : vector<16x32xf32> to vector<2x8x32xf32>
    %875 = vector.extract_strided_slice %870 {offsets = [0, 64], sizes = [16, 32], strides = [1, 1]} : vector<16x96xf32> to vector<16x32xf32>
    %876 = vector.shape_cast %875 : vector<16x32xf32> to vector<2x8x32xf32>
    %877 = vector.extract_strided_slice %876 {offsets = [0, 0, 0], sizes = [2, 8, 8], strides = [1, 1, 1]} : vector<2x8x32xf32> to vector<2x8x8xf32>
    %878 = vector.extract_strided_slice %874 {offsets = [0, 0, 0], sizes = [2, 8, 8], strides = [1, 1, 1]} : vector<2x8x32xf32> to vector<2x8x8xf32>
    "tpu.trace_start"() <{level = 10 : i32, message = "bqd,bkd->bqk"}> : () -> ()
    %cst_307 = arith.constant dense<0.000000e+00> : vector<2x8x8xf32>
    %879 = tpu.matmul %877, %878, %cst_307 {dimension_numbers = #tpu.dot_dimension_numbers<[2], [2], [1], [1], [0, 0, 0, 1, 1, 1], [0], [0]>} : vector<2x8x8xf32>, vector<2x8x8xf32>, vector<2x8x8xf32> -> vector<2x8x8xf32>
    "tpu.trace_stop"() : () -> ()
    %880 = vector.extract_strided_slice %876 {offsets = [0, 0, 8], sizes = [2, 8, 8], strides = [1, 1, 1]} : vector<2x8x32xf32> to vector<2x8x8xf32>
    %881 = vector.extract_strided_slice %874 {offsets = [0, 0, 8], sizes = [2, 8, 8], strides = [1, 1, 1]} : vector<2x8x32xf32> to vector<2x8x8xf32>
    "tpu.trace_start"() <{level = 10 : i32, message = "bqd,bkd->bqk"}> : () -> ()
    %cst_308 = arith.constant dense<0.000000e+00> : vector<2x8x8xf32>
    %882 = tpu.matmul %880, %881, %cst_308 {dimension_numbers = #tpu.dot_dimension_numbers<[2], [2], [1], [1], [0, 0, 0, 1, 1, 1], [0], [0]>} : vector<2x8x8xf32>, vector<2x8x8xf32>, vector<2x8x8xf32> -> vector<2x8x8xf32>
    "tpu.trace_stop"() : () -> ()
    %883 = vector.extract_strided_slice %876 {offsets = [0, 0, 16], sizes = [2, 8, 8], strides = [1, 1, 1]} : vector<2x8x32xf32> to vector<2x8x8xf32>
    %884 = vector.extract_strided_slice %874 {offsets = [0, 0, 16], sizes = [2, 8, 8], strides = [1, 1, 1]} : vector<2x8x32xf32> to vector<2x8x8xf32>
    "tpu.trace_start"() <{level = 10 : i32, message = "bqd,bkd->bqk"}> : () -> ()
    %cst_309 = arith.constant dense<0.000000e+00> : vector<2x8x8xf32>
    %885 = tpu.matmul %883, %884, %cst_309 {dimension_numbers = #tpu.dot_dimension_numbers<[2], [2], [1], [1], [0, 0, 0, 1, 1, 1], [0], [0]>} : vector<2x8x8xf32>, vector<2x8x8xf32>, vector<2x8x8xf32> -> vector<2x8x8xf32>
    "tpu.trace_stop"() : () -> ()
    %886 = vector.extract_strided_slice %876 {offsets = [0, 0, 24], sizes = [2, 8, 8], strides = [1, 1, 1]} : vector<2x8x32xf32> to vector<2x8x8xf32>
    %887 = vector.extract_strided_slice %874 {offsets = [0, 0, 24], sizes = [2, 8, 8], strides = [1, 1, 1]} : vector<2x8x32xf32> to vector<2x8x8xf32>
    "tpu.trace_start"() <{level = 10 : i32, message = "bqd,bkd->bqk"}> : () -> ()
    %cst_310 = arith.constant dense<0.000000e+00> : vector<2x8x8xf32>
    %888 = tpu.matmul %886, %887, %cst_310 {dimension_numbers = #tpu.dot_dimension_numbers<[2], [2], [1], [1], [0, 0, 0, 1, 1, 1], [0], [0]>} : vector<2x8x8xf32>, vector<2x8x8xf32>, vector<2x8x8xf32> -> vector<2x8x8xf32>
    "tpu.trace_stop"() : () -> ()
    %889 = tpu.concatenate %879, %882, %885, %888 in 1 : vector<2x8x8xf32>, vector<2x8x8xf32>, vector<2x8x8xf32>, vector<2x8x8xf32> -> vector<2x32x8xf32>
    %cst_311 = arith.constant 0.353553385 : f32
    %890 = vector.broadcast %cst_311 : f32 to vector<2x32x8xf32>
    %891 = arith.mulf %889, %890 : vector<2x32x8xf32>
    %cst_312 = arith.constant -1.000000e+09 : f32
    %892 = vector.shape_cast %7 : vector<2x1x8xi1> to vector<2x1x8xi1>
    %893 = vector.broadcast %892 : vector<2x1x8xi1> to vector<2x32x8xi1>
    %894 = vector.broadcast %cst_312 : f32 to vector<2x32x8xf32>
    %895 = arith.select %893, %894, %891 : vector<2x32x8xi1>, vector<2x32x8xf32>
    %cst_313 = arith.constant dense<0xFF800000> : vector<2x32xf32>
    %896 = vector.multi_reduction <maximumf>, %895, %cst_313 [2] : vector<2x32x8xf32> to vector<2x32xf32>
    %897 = vector.shape_cast %896 : vector<2x32xf32> to vector<2x32x1xf32>
    %898 = vector.broadcast %897 : vector<2x32x1xf32> to vector<2x32x8xf32>
    %899 = arith.subf %895, %898 : vector<2x32x8xf32>
    %900 = math.exp %899 : vector<2x32x8xf32>
    %cst_314 = arith.constant dense<0.000000e+00> : vector<2x32xf32>
    %901 = vector.multi_reduction <add>, %900, %cst_314 [2] : vector<2x32x8xf32> to vector<2x32xf32>
    %902 = vector.shape_cast %901 : vector<2x32xf32> to vector<2x32x1xf32>
    %903 = tpu.reciprocal %902 {approx = true} : vector<2x32x1xf32> -> vector<2x32x1xf32>
    %904 = vector.broadcast %903 : vector<2x32x1xf32> to vector<2x32x8xf32>
    %905 = arith.mulf %900, %904 : vector<2x32x8xf32>
    %906 = vector.extract_strided_slice %905 {offsets = [0, 0, 0], sizes = [2, 8, 8], strides = [1, 1, 1]} : vector<2x32x8xf32> to vector<2x8x8xf32>
    %907 = vector.extract_strided_slice %872 {offsets = [0, 0, 0], sizes = [2, 8, 8], strides = [1, 1, 1]} : vector<2x8x32xf32> to vector<2x8x8xf32>
    "tpu.trace_start"() <{level = 10 : i32, message = "bqk,bkd->bqd"}> : () -> ()
    %cst_315 = arith.constant dense<0.000000e+00> : vector<2x8x8xf32>
    %908 = tpu.matmul %906, %907, %cst_315 {dimension_numbers = #tpu.dot_dimension_numbers<[2], [1], [1], [2], [0, 0, 0, 1, 1, 2], [0], [0]>} : vector<2x8x8xf32>, vector<2x8x8xf32>, vector<2x8x8xf32> -> vector<2x8x8xf32>
    "tpu.trace_stop"() : () -> ()
    %909 = vector.extract_strided_slice %905 {offsets = [0, 8, 0], sizes = [2, 8, 8], strides = [1, 1, 1]} : vector<2x32x8xf32> to vector<2x8x8xf32>
    %910 = vector.extract_strided_slice %872 {offsets = [0, 0, 8], sizes = [2, 8, 8], strides = [1, 1, 1]} : vector<2x8x32xf32> to vector<2x8x8xf32>
    "tpu.trace_start"() <{level = 10 : i32, message = "bqk,bkd->bqd"}> : () -> ()
    %cst_316 = arith.constant dense<0.000000e+00> : vector<2x8x8xf32>
    %911 = tpu.matmul %909, %910, %cst_316 {dimension_numbers = #tpu.dot_dimension_numbers<[2], [1], [1], [2], [0, 0, 0, 1, 1, 2], [0], [0]>} : vector<2x8x8xf32>, vector<2x8x8xf32>, vector<2x8x8xf32> -> vector<2x8x8xf32>
    "tpu.trace_stop"() : () -> ()
    %912 = vector.extract_strided_slice %905 {offsets = [0, 16, 0], sizes = [2, 8, 8], strides = [1, 1, 1]} : vector<2x32x8xf32> to vector<2x8x8xf32>
    %913 = vector.extract_strided_slice %872 {offsets = [0, 0, 16], sizes = [2, 8, 8], strides = [1, 1, 1]} : vector<2x8x32xf32> to vector<2x8x8xf32>
    "tpu.trace_start"() <{level = 10 : i32, message = "bqk,bkd->bqd"}> : () -> ()
    %cst_317 = arith.constant dense<0.000000e+00> : vector<2x8x8xf32>
    %914 = tpu.matmul %912, %913, %cst_317 {dimension_numbers = #tpu.dot_dimension_numbers<[2], [1], [1], [2], [0, 0, 0, 1, 1, 2], [0], [0]>} : vector<2x8x8xf32>, vector<2x8x8xf32>, vector<2x8x8xf32> -> vector<2x8x8xf32>
    "tpu.trace_stop"() : () -> ()
    %915 = vector.extract_strided_slice %905 {offsets = [0, 24, 0], sizes = [2, 8, 8], strides = [1, 1, 1]} : vector<2x32x8xf32> to vector<2x8x8xf32>
    %916 = vector.extract_strided_slice %872 {offsets = [0, 0, 24], sizes = [2, 8, 8], strides = [1, 1, 1]} : vector<2x8x32xf32> to vector<2x8x8xf32>
    "tpu.trace_start"() <{level = 10 : i32, message = "bqk,bkd->bqd"}> : () -> ()
    %cst_318 = arith.constant dense<0.000000e+00> : vector<2x8x8xf32>
    %917 = tpu.matmul %915, %916, %cst_318 {dimension_numbers = #tpu.dot_dimension_numbers<[2], [1], [1], [2], [0, 0, 0, 1, 1, 2], [0], [0]>} : vector<2x8x8xf32>, vector<2x8x8xf32>, vector<2x8x8xf32> -> vector<2x8x8xf32>
    "tpu.trace_stop"() : () -> ()
    %918 = tpu.concatenate %908, %911, %914, %917 in 2 : vector<2x8x8xf32>, vector<2x8x8xf32>, vector<2x8x8xf32>, vector<2x8x8xf32> -> vector<2x8x32xf32>
    %919 = vector.shape_cast %918 : vector<2x8x32xf32> to vector<16x32xf32>
    %c2_319 = arith.constant 2 : index
    %c0_320 = arith.constant 0 : index
    %c0_321 = arith.constant 0 : index
    %920 = vector.load %arg12[%c2_319, %c0_320, %c0_321] : memref<6x32x32xf32, #tpu.memory_space<vmem>>, vector<1x32x32xf32>
    %921 = vector.shape_cast %920 : vector<1x32x32xf32> to vector<32x32xf32>
    %922 = arith.truncf %919 : vector<16x32xf32> to vector<16x32xbf16>
    %923 = arith.truncf %921 : vector<32x32xf32> to vector<32x32xbf16>
    %cst_322 = arith.constant dense<0.000000e+00> : vector<16x32xf32>
    %924 = tpu.matmul %922, %923, %cst_322 {dimension_numbers = #tpu.dot_dimension_numbers<[1], [0], [0], [1], [0, 0, 1, 1], [], []>} : vector<16x32xbf16>, vector<32x32xbf16>, vector<16x32xf32> -> vector<16x32xf32>
    %c10 = arith.constant 10 : index
    %c0_323 = arith.constant 0 : index
    %c0_324 = arith.constant 0 : index
    %925 = vector.load %arg8[%c10, %c0_323, %c0_324] : memref<31x1x32xf32, #tpu.memory_space<vmem>>, vector<1x1x32xf32>
    %926 = vector.shape_cast %925 : vector<1x1x32xf32> to vector<1x32xf32>
    %927 = vector.broadcast %926 : vector<1x32xf32> to vector<16x32xf32>
    %928 = arith.addf %924, %927 : vector<16x32xf32>
    %929 = vector.shape_cast %928 : vector<16x32xf32> to vector<2x8x32xf32>
    %930 = arith.addf %860, %929 : vector<2x8x32xf32>
    %cst_325 = arith.constant dense<0.000000e+00> : vector<2x8xf32>
    %931 = vector.multi_reduction <add>, %930, %cst_325 [2] : vector<2x8x32xf32> to vector<2x8xf32>
    %932 = vector.shape_cast %931 : vector<2x8xf32> to vector<2x8x1xf32>
    %cst_326 = arith.constant 3.125000e-02 : f32
    %933 = vector.broadcast %cst_326 : f32 to vector<2x8x1xf32>
    %934 = arith.mulf %932, %933 : vector<2x8x1xf32>
    %935 = vector.broadcast %934 : vector<2x8x1xf32> to vector<2x8x32xf32>
    %936 = arith.subf %930, %935 : vector<2x8x32xf32>
    %937 = arith.mulf %936, %936 : vector<2x8x32xf32>
    %cst_327 = arith.constant dense<0.000000e+00> : vector<2x8xf32>
    %938 = vector.multi_reduction <add>, %937, %cst_327 [2] : vector<2x8x32xf32> to vector<2x8xf32>
    %939 = vector.shape_cast %938 : vector<2x8xf32> to vector<2x8x1xf32>
    %cst_328 = arith.constant 0.0322580636 : f32
    %940 = vector.broadcast %cst_328 : f32 to vector<2x8x1xf32>
    %941 = arith.mulf %939, %940 : vector<2x8x1xf32>
    %942 = math.sqrt %941 : vector<2x8x1xf32>
    %cst_329 = arith.constant 9.99999997E-7 : f32
    %943 = vector.broadcast %cst_329 : f32 to vector<2x8x1xf32>
    %944 = arith.addf %942, %943 : vector<2x8x1xf32>
    %945 = tpu.reciprocal %944 {approx = true} : vector<2x8x1xf32> -> vector<2x8x1xf32>
    %c13 = arith.constant 13 : index
    %c0_330 = arith.constant 0 : index
    %c0_331 = arith.constant 0 : index
    %946 = vector.load %arg8[%c13, %c0_330, %c0_331] : memref<31x1x32xf32, #tpu.memory_space<vmem>>, vector<1x1x32xf32>
    %947 = vector.shape_cast %946 : vector<1x1x32xf32> to vector<1x32xf32>
    %948 = vector.broadcast %945 : vector<2x8x1xf32> to vector<2x8x32xf32>
    %949 = arith.mulf %936, %948 : vector<2x8x32xf32>
    %950 = vector.shape_cast %947 : vector<1x32xf32> to vector<1x1x32xf32>
    %951 = vector.broadcast %950 : vector<1x1x32xf32> to vector<2x8x32xf32>
    %952 = arith.mulf %951, %949 : vector<2x8x32xf32>
    %c12 = arith.constant 12 : index
    %c0_332 = arith.constant 0 : index
    %c0_333 = arith.constant 0 : index
    %953 = vector.load %arg8[%c12, %c0_332, %c0_333] : memref<31x1x32xf32, #tpu.memory_space<vmem>>, vector<1x1x32xf32>
    %954 = vector.shape_cast %953 : vector<1x1x32xf32> to vector<1x32xf32>
    %955 = vector.shape_cast %954 : vector<1x32xf32> to vector<1x1x32xf32>
    %956 = vector.broadcast %955 : vector<1x1x32xf32> to vector<2x8x32xf32>
    %957 = arith.addf %952, %956 : vector<2x8x32xf32>
    %c3_334 = arith.constant 3 : index
    %c0_335 = arith.constant 0 : index
    %c0_336 = arith.constant 0 : index
    %958 = vector.load %arg14[%c3_334, %c0_335, %c0_336] : memref<6x32x96xf32, #tpu.memory_space<vmem>>, vector<1x32x96xf32>
    %959 = vector.shape_cast %958 : vector<1x32x96xf32> to vector<32x96xf32>
    %c3_337 = arith.constant 3 : index
    %c0_338 = arith.constant 0 : index
    %c0_339 = arith.constant 0 : index
    %960 = vector.load %arg10[%c3_337, %c0_338, %c0_339] : memref<6x1x96xf32, #tpu.memory_space<vmem>>, vector<1x1x96xf32>
    %961 = vector.shape_cast %960 : vector<1x1x96xf32> to vector<1x96xf32>
    %962 = vector.shape_cast %607 : vector<2x8x32xf32> to vector<16x32xf32>
    %963 = vector.extract_strided_slice %959 {offsets = [0, 0], sizes = [32, 64], strides = [1, 1]} : vector<32x96xf32> to vector<32x64xf32>
    %964 = arith.truncf %962 : vector<16x32xf32> to vector<16x32xbf16>
    %965 = arith.truncf %963 : vector<32x64xf32> to vector<32x64xbf16>
    %cst_340 = arith.constant dense<0.000000e+00> : vector<16x64xf32>
    %966 = tpu.matmul %964, %965, %cst_340 {dimension_numbers = #tpu.dot_dimension_numbers<[1], [0], [0], [1], [0, 0, 1, 1], [], []>} : vector<16x32xbf16>, vector<32x64xbf16>, vector<16x64xf32> -> vector<16x64xf32>
    %967 = vector.extract_strided_slice %961 {offsets = [0, 0], sizes = [1, 64], strides = [1, 1]} : vector<1x96xf32> to vector<1x64xf32>
    %968 = vector.broadcast %967 : vector<1x64xf32> to vector<16x64xf32>
    %969 = arith.addf %966, %968 : vector<16x64xf32>
    %970 = vector.extract_strided_slice %969 {offsets = [0, 0], sizes = [16, 32], strides = [1, 1]} : vector<16x64xf32> to vector<16x32xf32>
    %971 = vector.shape_cast %970 : vector<16x32xf32> to vector<2x8x32xf32>
    %972 = vector.extract_strided_slice %969 {offsets = [0, 32], sizes = [16, 32], strides = [1, 1]} : vector<16x64xf32> to vector<16x32xf32>
    %973 = vector.shape_cast %972 : vector<16x32xf32> to vector<2x8x32xf32>
    %974 = vector.shape_cast %957 : vector<2x8x32xf32> to vector<16x32xf32>
    %975 = vector.extract_strided_slice %959 {offsets = [0, 64], sizes = [32, 32], strides = [1, 1]} : vector<32x96xf32> to vector<32x32xf32>
    %976 = arith.truncf %974 : vector<16x32xf32> to vector<16x32xbf16>
    %977 = arith.truncf %975 : vector<32x32xf32> to vector<32x32xbf16>
    %cst_341 = arith.constant dense<0.000000e+00> : vector<16x32xf32>
    %978 = tpu.matmul %976, %977, %cst_341 {dimension_numbers = #tpu.dot_dimension_numbers<[1], [0], [0], [1], [0, 0, 1, 1], [], []>} : vector<16x32xbf16>, vector<32x32xbf16>, vector<16x32xf32> -> vector<16x32xf32>
    %979 = vector.extract_strided_slice %961 {offsets = [0, 64], sizes = [1, 32], strides = [1, 1]} : vector<1x96xf32> to vector<1x32xf32>
    %980 = vector.broadcast %979 : vector<1x32xf32> to vector<16x32xf32>
    %981 = arith.addf %978, %980 : vector<16x32xf32>
    %982 = vector.shape_cast %981 : vector<16x32xf32> to vector<2x8x32xf32>
    %983 = vector.extract_strided_slice %982 {offsets = [0, 0, 0], sizes = [2, 8, 8], strides = [1, 1, 1]} : vector<2x8x32xf32> to vector<2x8x8xf32>
    %984 = vector.extract_strided_slice %973 {offsets = [0, 0, 0], sizes = [2, 8, 8], strides = [1, 1, 1]} : vector<2x8x32xf32> to vector<2x8x8xf32>
    "tpu.trace_start"() <{level = 10 : i32, message = "bqd,bkd->bqk"}> : () -> ()
    %cst_342 = arith.constant dense<0.000000e+00> : vector<2x8x8xf32>
    %985 = tpu.matmul %983, %984, %cst_342 {dimension_numbers = #tpu.dot_dimension_numbers<[2], [2], [1], [1], [0, 0, 0, 1, 1, 1], [0], [0]>} : vector<2x8x8xf32>, vector<2x8x8xf32>, vector<2x8x8xf32> -> vector<2x8x8xf32>
    "tpu.trace_stop"() : () -> ()
    %986 = vector.extract_strided_slice %982 {offsets = [0, 0, 8], sizes = [2, 8, 8], strides = [1, 1, 1]} : vector<2x8x32xf32> to vector<2x8x8xf32>
    %987 = vector.extract_strided_slice %973 {offsets = [0, 0, 8], sizes = [2, 8, 8], strides = [1, 1, 1]} : vector<2x8x32xf32> to vector<2x8x8xf32>
    "tpu.trace_start"() <{level = 10 : i32, message = "bqd,bkd->bqk"}> : () -> ()
    %cst_343 = arith.constant dense<0.000000e+00> : vector<2x8x8xf32>
    %988 = tpu.matmul %986, %987, %cst_343 {dimension_numbers = #tpu.dot_dimension_numbers<[2], [2], [1], [1], [0, 0, 0, 1, 1, 1], [0], [0]>} : vector<2x8x8xf32>, vector<2x8x8xf32>, vector<2x8x8xf32> -> vector<2x8x8xf32>
    "tpu.trace_stop"() : () -> ()
    %989 = vector.extract_strided_slice %982 {offsets = [0, 0, 16], sizes = [2, 8, 8], strides = [1, 1, 1]} : vector<2x8x32xf32> to vector<2x8x8xf32>
    %990 = vector.extract_strided_slice %973 {offsets = [0, 0, 16], sizes = [2, 8, 8], strides = [1, 1, 1]} : vector<2x8x32xf32> to vector<2x8x8xf32>
    "tpu.trace_start"() <{level = 10 : i32, message = "bqd,bkd->bqk"}> : () -> ()
    %cst_344 = arith.constant dense<0.000000e+00> : vector<2x8x8xf32>
    %991 = tpu.matmul %989, %990, %cst_344 {dimension_numbers = #tpu.dot_dimension_numbers<[2], [2], [1], [1], [0, 0, 0, 1, 1, 1], [0], [0]>} : vector<2x8x8xf32>, vector<2x8x8xf32>, vector<2x8x8xf32> -> vector<2x8x8xf32>
    "tpu.trace_stop"() : () -> ()
    %992 = vector.extract_strided_slice %982 {offsets = [0, 0, 24], sizes = [2, 8, 8], strides = [1, 1, 1]} : vector<2x8x32xf32> to vector<2x8x8xf32>
    %993 = vector.extract_strided_slice %973 {offsets = [0, 0, 24], sizes = [2, 8, 8], strides = [1, 1, 1]} : vector<2x8x32xf32> to vector<2x8x8xf32>
    "tpu.trace_start"() <{level = 10 : i32, message = "bqd,bkd->bqk"}> : () -> ()
    %cst_345 = arith.constant dense<0.000000e+00> : vector<2x8x8xf32>
    %994 = tpu.matmul %992, %993, %cst_345 {dimension_numbers = #tpu.dot_dimension_numbers<[2], [2], [1], [1], [0, 0, 0, 1, 1, 1], [0], [0]>} : vector<2x8x8xf32>, vector<2x8x8xf32>, vector<2x8x8xf32> -> vector<2x8x8xf32>
    "tpu.trace_stop"() : () -> ()
    %995 = tpu.concatenate %985, %988, %991, %994 in 1 : vector<2x8x8xf32>, vector<2x8x8xf32>, vector<2x8x8xf32>, vector<2x8x8xf32> -> vector<2x32x8xf32>
    %cst_346 = arith.constant 0.353553385 : f32
    %996 = vector.broadcast %cst_346 : f32 to vector<2x32x8xf32>
    %997 = arith.mulf %995, %996 : vector<2x32x8xf32>
    %cst_347 = arith.constant -1.000000e+09 : f32
    %998 = vector.shape_cast %4 : vector<2x1x8xi1> to vector<2x1x8xi1>
    %999 = vector.broadcast %998 : vector<2x1x8xi1> to vector<2x32x8xi1>
    %1000 = vector.broadcast %cst_347 : f32 to vector<2x32x8xf32>
    %1001 = arith.select %999, %1000, %997 : vector<2x32x8xi1>, vector<2x32x8xf32>
    %cst_348 = arith.constant dense<0xFF800000> : vector<2x32xf32>
    %1002 = vector.multi_reduction <maximumf>, %1001, %cst_348 [2] : vector<2x32x8xf32> to vector<2x32xf32>
    %1003 = vector.shape_cast %1002 : vector<2x32xf32> to vector<2x32x1xf32>
    %1004 = vector.broadcast %1003 : vector<2x32x1xf32> to vector<2x32x8xf32>
    %1005 = arith.subf %1001, %1004 : vector<2x32x8xf32>
    %1006 = math.exp %1005 : vector<2x32x8xf32>
    %cst_349 = arith.constant dense<0.000000e+00> : vector<2x32xf32>
    %1007 = vector.multi_reduction <add>, %1006, %cst_349 [2] : vector<2x32x8xf32> to vector<2x32xf32>
    %1008 = vector.shape_cast %1007 : vector<2x32xf32> to vector<2x32x1xf32>
    %1009 = tpu.reciprocal %1008 {approx = true} : vector<2x32x1xf32> -> vector<2x32x1xf32>
    %1010 = vector.broadcast %1009 : vector<2x32x1xf32> to vector<2x32x8xf32>
    %1011 = arith.mulf %1006, %1010 : vector<2x32x8xf32>
    %1012 = vector.extract_strided_slice %1011 {offsets = [0, 0, 0], sizes = [2, 8, 8], strides = [1, 1, 1]} : vector<2x32x8xf32> to vector<2x8x8xf32>
    %1013 = vector.extract_strided_slice %971 {offsets = [0, 0, 0], sizes = [2, 8, 8], strides = [1, 1, 1]} : vector<2x8x32xf32> to vector<2x8x8xf32>
    "tpu.trace_start"() <{level = 10 : i32, message = "bqk,bkd->bqd"}> : () -> ()
    %cst_350 = arith.constant dense<0.000000e+00> : vector<2x8x8xf32>
    %1014 = tpu.matmul %1012, %1013, %cst_350 {dimension_numbers = #tpu.dot_dimension_numbers<[2], [1], [1], [2], [0, 0, 0, 1, 1, 2], [0], [0]>} : vector<2x8x8xf32>, vector<2x8x8xf32>, vector<2x8x8xf32> -> vector<2x8x8xf32>
    "tpu.trace_stop"() : () -> ()
    %1015 = vector.extract_strided_slice %1011 {offsets = [0, 8, 0], sizes = [2, 8, 8], strides = [1, 1, 1]} : vector<2x32x8xf32> to vector<2x8x8xf32>
    %1016 = vector.extract_strided_slice %971 {offsets = [0, 0, 8], sizes = [2, 8, 8], strides = [1, 1, 1]} : vector<2x8x32xf32> to vector<2x8x8xf32>
    "tpu.trace_start"() <{level = 10 : i32, message = "bqk,bkd->bqd"}> : () -> ()
    %cst_351 = arith.constant dense<0.000000e+00> : vector<2x8x8xf32>
    %1017 = tpu.matmul %1015, %1016, %cst_351 {dimension_numbers = #tpu.dot_dimension_numbers<[2], [1], [1], [2], [0, 0, 0, 1, 1, 2], [0], [0]>} : vector<2x8x8xf32>, vector<2x8x8xf32>, vector<2x8x8xf32> -> vector<2x8x8xf32>
    "tpu.trace_stop"() : () -> ()
    %1018 = vector.extract_strided_slice %1011 {offsets = [0, 16, 0], sizes = [2, 8, 8], strides = [1, 1, 1]} : vector<2x32x8xf32> to vector<2x8x8xf32>
    %1019 = vector.extract_strided_slice %971 {offsets = [0, 0, 16], sizes = [2, 8, 8], strides = [1, 1, 1]} : vector<2x8x32xf32> to vector<2x8x8xf32>
    "tpu.trace_start"() <{level = 10 : i32, message = "bqk,bkd->bqd"}> : () -> ()
    %cst_352 = arith.constant dense<0.000000e+00> : vector<2x8x8xf32>
    %1020 = tpu.matmul %1018, %1019, %cst_352 {dimension_numbers = #tpu.dot_dimension_numbers<[2], [1], [1], [2], [0, 0, 0, 1, 1, 2], [0], [0]>} : vector<2x8x8xf32>, vector<2x8x8xf32>, vector<2x8x8xf32> -> vector<2x8x8xf32>
    "tpu.trace_stop"() : () -> ()
    %1021 = vector.extract_strided_slice %1011 {offsets = [0, 24, 0], sizes = [2, 8, 8], strides = [1, 1, 1]} : vector<2x32x8xf32> to vector<2x8x8xf32>
    %1022 = vector.extract_strided_slice %971 {offsets = [0, 0, 24], sizes = [2, 8, 8], strides = [1, 1, 1]} : vector<2x8x32xf32> to vector<2x8x8xf32>
    "tpu.trace_start"() <{level = 10 : i32, message = "bqk,bkd->bqd"}> : () -> ()
    %cst_353 = arith.constant dense<0.000000e+00> : vector<2x8x8xf32>
    %1023 = tpu.matmul %1021, %1022, %cst_353 {dimension_numbers = #tpu.dot_dimension_numbers<[2], [1], [1], [2], [0, 0, 0, 1, 1, 2], [0], [0]>} : vector<2x8x8xf32>, vector<2x8x8xf32>, vector<2x8x8xf32> -> vector<2x8x8xf32>
    "tpu.trace_stop"() : () -> ()
    %1024 = tpu.concatenate %1014, %1017, %1020, %1023 in 2 : vector<2x8x8xf32>, vector<2x8x8xf32>, vector<2x8x8xf32>, vector<2x8x8xf32> -> vector<2x8x32xf32>
    %1025 = vector.shape_cast %1024 : vector<2x8x32xf32> to vector<16x32xf32>
    %c3_354 = arith.constant 3 : index
    %c0_355 = arith.constant 0 : index
    %c0_356 = arith.constant 0 : index
    %1026 = vector.load %arg12[%c3_354, %c0_355, %c0_356] : memref<6x32x32xf32, #tpu.memory_space<vmem>>, vector<1x32x32xf32>
    %1027 = vector.shape_cast %1026 : vector<1x32x32xf32> to vector<32x32xf32>
    %1028 = arith.truncf %1025 : vector<16x32xf32> to vector<16x32xbf16>
    %1029 = arith.truncf %1027 : vector<32x32xf32> to vector<32x32xbf16>
    %cst_357 = arith.constant dense<0.000000e+00> : vector<16x32xf32>
    %1030 = tpu.matmul %1028, %1029, %cst_357 {dimension_numbers = #tpu.dot_dimension_numbers<[1], [0], [0], [1], [0, 0, 1, 1], [], []>} : vector<16x32xbf16>, vector<32x32xbf16>, vector<16x32xf32> -> vector<16x32xf32>
    %c11 = arith.constant 11 : index
    %c0_358 = arith.constant 0 : index
    %c0_359 = arith.constant 0 : index
    %1031 = vector.load %arg8[%c11, %c0_358, %c0_359] : memref<31x1x32xf32, #tpu.memory_space<vmem>>, vector<1x1x32xf32>
    %1032 = vector.shape_cast %1031 : vector<1x1x32xf32> to vector<1x32xf32>
    %1033 = vector.broadcast %1032 : vector<1x32xf32> to vector<16x32xf32>
    %1034 = arith.addf %1030, %1033 : vector<16x32xf32>
    %1035 = vector.shape_cast %1034 : vector<16x32xf32> to vector<2x8x32xf32>
    %1036 = arith.addf %957, %1035 : vector<2x8x32xf32>
    %cst_360 = arith.constant dense<0.000000e+00> : vector<2x8xf32>
    %1037 = vector.multi_reduction <add>, %1036, %cst_360 [2] : vector<2x8x32xf32> to vector<2x8xf32>
    %1038 = vector.shape_cast %1037 : vector<2x8xf32> to vector<2x8x1xf32>
    %cst_361 = arith.constant 3.125000e-02 : f32
    %1039 = vector.broadcast %cst_361 : f32 to vector<2x8x1xf32>
    %1040 = arith.mulf %1038, %1039 : vector<2x8x1xf32>
    %1041 = vector.broadcast %1040 : vector<2x8x1xf32> to vector<2x8x32xf32>
    %1042 = arith.subf %1036, %1041 : vector<2x8x32xf32>
    %1043 = arith.mulf %1042, %1042 : vector<2x8x32xf32>
    %cst_362 = arith.constant dense<0.000000e+00> : vector<2x8xf32>
    %1044 = vector.multi_reduction <add>, %1043, %cst_362 [2] : vector<2x8x32xf32> to vector<2x8xf32>
    %1045 = vector.shape_cast %1044 : vector<2x8xf32> to vector<2x8x1xf32>
    %cst_363 = arith.constant 0.0322580636 : f32
    %1046 = vector.broadcast %cst_363 : f32 to vector<2x8x1xf32>
    %1047 = arith.mulf %1045, %1046 : vector<2x8x1xf32>
    %1048 = math.sqrt %1047 : vector<2x8x1xf32>
    %cst_364 = arith.constant 9.99999997E-7 : f32
    %1049 = vector.broadcast %cst_364 : f32 to vector<2x8x1xf32>
    %1050 = arith.addf %1048, %1049 : vector<2x8x1xf32>
    %1051 = tpu.reciprocal %1050 {approx = true} : vector<2x8x1xf32> -> vector<2x8x1xf32>
    %c15 = arith.constant 15 : index
    %c0_365 = arith.constant 0 : index
    %c0_366 = arith.constant 0 : index
    %1052 = vector.load %arg8[%c15, %c0_365, %c0_366] : memref<31x1x32xf32, #tpu.memory_space<vmem>>, vector<1x1x32xf32>
    %1053 = vector.shape_cast %1052 : vector<1x1x32xf32> to vector<1x32xf32>
    %1054 = vector.broadcast %1051 : vector<2x8x1xf32> to vector<2x8x32xf32>
    %1055 = arith.mulf %1042, %1054 : vector<2x8x32xf32>
    %1056 = vector.shape_cast %1053 : vector<1x32xf32> to vector<1x1x32xf32>
    %1057 = vector.broadcast %1056 : vector<1x1x32xf32> to vector<2x8x32xf32>
    %1058 = arith.mulf %1057, %1055 : vector<2x8x32xf32>
    %c14 = arith.constant 14 : index
    %c0_367 = arith.constant 0 : index
    %c0_368 = arith.constant 0 : index
    %1059 = vector.load %arg8[%c14, %c0_367, %c0_368] : memref<31x1x32xf32, #tpu.memory_space<vmem>>, vector<1x1x32xf32>
    %1060 = vector.shape_cast %1059 : vector<1x1x32xf32> to vector<1x32xf32>
    %1061 = vector.shape_cast %1060 : vector<1x32xf32> to vector<1x1x32xf32>
    %1062 = vector.broadcast %1061 : vector<1x1x32xf32> to vector<2x8x32xf32>
    %1063 = arith.addf %1058, %1062 : vector<2x8x32xf32>
    %1064 = vector.shape_cast %1063 : vector<2x8x32xf32> to vector<16x32xf32>
    %c5_369 = arith.constant 5 : index
    %c0_370 = arith.constant 0 : index
    %c0_371 = arith.constant 0 : index
    %1065 = vector.load %arg13[%c5_369, %c0_370, %c0_371] : memref<8x32x64xf32, #tpu.memory_space<vmem>>, vector<1x32x64xf32>
    %1066 = vector.shape_cast %1065 : vector<1x32x64xf32> to vector<32x64xf32>
    %1067 = arith.truncf %1064 : vector<16x32xf32> to vector<16x32xbf16>
    %1068 = arith.truncf %1066 : vector<32x64xf32> to vector<32x64xbf16>
    %cst_372 = arith.constant dense<0.000000e+00> : vector<16x64xf32>
    %1069 = tpu.matmul %1067, %1068, %cst_372 {dimension_numbers = #tpu.dot_dimension_numbers<[1], [0], [0], [1], [0, 0, 1, 1], [], []>} : vector<16x32xbf16>, vector<32x64xbf16>, vector<16x64xf32> -> vector<16x64xf32>
    %c7_373 = arith.constant 7 : index
    %c0_374 = arith.constant 0 : index
    %c0_375 = arith.constant 0 : index
    %1070 = vector.load %arg9[%c7_373, %c0_374, %c0_375] : memref<12x1x64xf32, #tpu.memory_space<vmem>>, vector<1x1x64xf32>
    %1071 = vector.shape_cast %1070 : vector<1x1x64xf32> to vector<1x64xf32>
    %1072 = vector.broadcast %1071 : vector<1x64xf32> to vector<16x64xf32>
    %1073 = arith.addf %1069, %1072 : vector<16x64xf32>
    %cst_376 = arith.constant 0.000000e+00 : f32
    %1074 = vector.broadcast %cst_376 : f32 to vector<16x64xf32>
    %1075 = arith.maximumf %1073, %1074 : vector<16x64xf32>
    %c1_377 = arith.constant 1 : index
    %c0_378 = arith.constant 0 : index
    %c0_379 = arith.constant 0 : index
    %1076 = vector.load %arg18[%c1_377, %c0_378, %c0_379] : memref<4x64x32xf32, #tpu.memory_space<vmem>>, vector<1x64x32xf32>
    %1077 = vector.shape_cast %1076 : vector<1x64x32xf32> to vector<64x32xf32>
    %1078 = arith.truncf %1075 : vector<16x64xf32> to vector<16x64xbf16>
    %1079 = arith.truncf %1077 : vector<64x32xf32> to vector<64x32xbf16>
    %cst_380 = arith.constant dense<0.000000e+00> : vector<16x32xf32>
    %1080 = tpu.matmul %1078, %1079, %cst_380 {dimension_numbers = #tpu.dot_dimension_numbers<[1], [0], [0], [1], [0, 0, 1, 1], [], []>} : vector<16x64xbf16>, vector<64x32xbf16>, vector<16x32xf32> -> vector<16x32xf32>
    %c9_381 = arith.constant 9 : index
    %c0_382 = arith.constant 0 : index
    %c0_383 = arith.constant 0 : index
    %1081 = vector.load %arg8[%c9_381, %c0_382, %c0_383] : memref<31x1x32xf32, #tpu.memory_space<vmem>>, vector<1x1x32xf32>
    %1082 = vector.shape_cast %1081 : vector<1x1x32xf32> to vector<1x32xf32>
    %1083 = vector.broadcast %1082 : vector<1x32xf32> to vector<16x32xf32>
    %1084 = arith.addf %1080, %1083 : vector<16x32xf32>
    %1085 = vector.shape_cast %1084 : vector<16x32xf32> to vector<2x8x32xf32>
    %1086 = arith.addf %1063, %1085 : vector<2x8x32xf32>
    %cst_384 = arith.constant dense<0.000000e+00> : vector<2x8xf32>
    %1087 = vector.multi_reduction <add>, %1086, %cst_384 [2] : vector<2x8x32xf32> to vector<2x8xf32>
    %1088 = vector.shape_cast %1087 : vector<2x8xf32> to vector<2x8x1xf32>
    %cst_385 = arith.constant 3.125000e-02 : f32
    %1089 = vector.broadcast %cst_385 : f32 to vector<2x8x1xf32>
    %1090 = arith.mulf %1088, %1089 : vector<2x8x1xf32>
    %1091 = vector.broadcast %1090 : vector<2x8x1xf32> to vector<2x8x32xf32>
    %1092 = arith.subf %1086, %1091 : vector<2x8x32xf32>
    %1093 = arith.mulf %1092, %1092 : vector<2x8x32xf32>
    %cst_386 = arith.constant dense<0.000000e+00> : vector<2x8xf32>
    %1094 = vector.multi_reduction <add>, %1093, %cst_386 [2] : vector<2x8x32xf32> to vector<2x8xf32>
    %1095 = vector.shape_cast %1094 : vector<2x8xf32> to vector<2x8x1xf32>
    %cst_387 = arith.constant 0.0322580636 : f32
    %1096 = vector.broadcast %cst_387 : f32 to vector<2x8x1xf32>
    %1097 = arith.mulf %1095, %1096 : vector<2x8x1xf32>
    %1098 = math.sqrt %1097 : vector<2x8x1xf32>
    %cst_388 = arith.constant 9.99999997E-7 : f32
    %1099 = vector.broadcast %cst_388 : f32 to vector<2x8x1xf32>
    %1100 = arith.addf %1098, %1099 : vector<2x8x1xf32>
    %1101 = tpu.reciprocal %1100 {approx = true} : vector<2x8x1xf32> -> vector<2x8x1xf32>
    %c17 = arith.constant 17 : index
    %c0_389 = arith.constant 0 : index
    %c0_390 = arith.constant 0 : index
    %1102 = vector.load %arg8[%c17, %c0_389, %c0_390] : memref<31x1x32xf32, #tpu.memory_space<vmem>>, vector<1x1x32xf32>
    %1103 = vector.shape_cast %1102 : vector<1x1x32xf32> to vector<1x32xf32>
    %1104 = vector.broadcast %1101 : vector<2x8x1xf32> to vector<2x8x32xf32>
    %1105 = arith.mulf %1092, %1104 : vector<2x8x32xf32>
    %1106 = vector.shape_cast %1103 : vector<1x32xf32> to vector<1x1x32xf32>
    %1107 = vector.broadcast %1106 : vector<1x1x32xf32> to vector<2x8x32xf32>
    %1108 = arith.mulf %1107, %1105 : vector<2x8x32xf32>
    %c16 = arith.constant 16 : index
    %c0_391 = arith.constant 0 : index
    %c0_392 = arith.constant 0 : index
    %1109 = vector.load %arg8[%c16, %c0_391, %c0_392] : memref<31x1x32xf32, #tpu.memory_space<vmem>>, vector<1x1x32xf32>
    %1110 = vector.shape_cast %1109 : vector<1x1x32xf32> to vector<1x32xf32>
    %1111 = vector.shape_cast %1110 : vector<1x32xf32> to vector<1x1x32xf32>
    %1112 = vector.broadcast %1111 : vector<1x1x32xf32> to vector<2x8x32xf32>
    %1113 = arith.addf %1108, %1112 : vector<2x8x32xf32>
    %1114 = vector.shape_cast %607 : vector<2x8x32xf32> to vector<16x32xf32>
    %c3_393 = arith.constant 3 : index
    %c0_394 = arith.constant 0 : index
    %c0_395 = arith.constant 0 : index
    %1115 = vector.load %arg13[%c3_393, %c0_394, %c0_395] : memref<8x32x64xf32, #tpu.memory_space<vmem>>, vector<1x32x64xf32>
    %1116 = vector.shape_cast %1115 : vector<1x32x64xf32> to vector<32x64xf32>
    %1117 = arith.truncf %1114 : vector<16x32xf32> to vector<16x32xbf16>
    %1118 = arith.truncf %1116 : vector<32x64xf32> to vector<32x64xbf16>
    %cst_396 = arith.constant dense<0.000000e+00> : vector<16x64xf32>
    %1119 = tpu.matmul %1117, %1118, %cst_396 {dimension_numbers = #tpu.dot_dimension_numbers<[1], [0], [0], [1], [0, 0, 1, 1], [], []>} : vector<16x32xbf16>, vector<32x64xbf16>, vector<16x64xf32> -> vector<16x64xf32>
    %c4_397 = arith.constant 4 : index
    %c0_398 = arith.constant 0 : index
    %c0_399 = arith.constant 0 : index
    %1120 = vector.load %arg9[%c4_397, %c0_398, %c0_399] : memref<12x1x64xf32, #tpu.memory_space<vmem>>, vector<1x1x64xf32>
    %1121 = vector.shape_cast %1120 : vector<1x1x64xf32> to vector<1x64xf32>
    %1122 = vector.broadcast %1121 : vector<1x64xf32> to vector<16x64xf32>
    %1123 = arith.addf %1119, %1122 : vector<16x64xf32>
    %cst_400 = arith.constant 0.000000e+00 : f32
    %1124 = vector.broadcast %cst_400 : f32 to vector<16x64xf32>
    %1125 = arith.maximumf %1123, %1124 : vector<16x64xf32>
    %c5_401 = arith.constant 5 : index
    %c0_402 = arith.constant 0 : index
    %c0_403 = arith.constant 0 : index
    %1126 = vector.load %arg9[%c5_401, %c0_402, %c0_403] : memref<12x1x64xf32, #tpu.memory_space<vmem>>, vector<1x1x64xf32>
    %1127 = vector.shape_cast %1126 : vector<1x1x64xf32> to vector<1x64xf32>
    %1128 = vector.broadcast %1127 : vector<1x64xf32> to vector<16x64xf32>
    %1129 = arith.mulf %1125, %1128 : vector<16x64xf32>
    %cst_404 = arith.constant dense<0.000000e+00> : vector<16xf32>
    %1130 = vector.multi_reduction <add>, %1129, %cst_404 [1] : vector<16x64xf32> to vector<16xf32>
    %1131 = vector.shape_cast %1130 : vector<16xf32> to vector<16x1xf32>
    %c1_405 = arith.constant 1 : index
    %c0_406 = arith.constant 0 : index
    %c0_407 = arith.constant 0 : index
    %1132 = vector.load %arg6[%c1_405, %c0_406, %c0_407] : memref<2x1x1xf32, #tpu.memory_space<vmem>>, vector<1x1x1xf32>
    %1133 = vector.shape_cast %1132 : vector<1x1x1xf32> to vector<1x1xf32>
    %1134 = vector.broadcast %1133 : vector<1x1xf32> to vector<16x1xf32>
    %1135 = arith.addf %1131, %1134 : vector<16x1xf32>
    %1136 = vector.shape_cast %1135 : vector<16x1xf32> to vector<2x8x1xf32>
    %cst_408 = arith.constant -1.000000e+09 : f32
    %1137 = vector.broadcast %cst_408 : f32 to vector<2x8x1xf32>
    %1138 = arith.select %10, %1137, %1136 : vector<2x8x1xi1>, vector<2x8x1xf32>
    %cst_409 = arith.constant dense<0xFF800000> : vector<2x1xf32>
    %1139 = vector.multi_reduction <maximumf>, %1138, %cst_409 [1] : vector<2x8x1xf32> to vector<2x1xf32>
    %1140 = vector.shape_cast %1139 : vector<2x1xf32> to vector<2x1x1xf32>
    %1141 = vector.broadcast %1140 : vector<2x1x1xf32> to vector<2x8x1xf32>
    %1142 = arith.subf %1138, %1141 : vector<2x8x1xf32>
    %1143 = math.exp %1142 : vector<2x8x1xf32>
    %cst_410 = arith.constant dense<0.000000e+00> : vector<2x1xf32>
    %1144 = vector.multi_reduction <add>, %1143, %cst_410 [1] : vector<2x8x1xf32> to vector<2x1xf32>
    %1145 = vector.shape_cast %1144 : vector<2x1xf32> to vector<2x1x1xf32>
    %1146 = tpu.reciprocal %1145 {approx = true} : vector<2x1x1xf32> -> vector<2x1x1xf32>
    %1147 = vector.broadcast %1146 : vector<2x1x1xf32> to vector<2x8x1xf32>
    %1148 = arith.mulf %1143, %1147 : vector<2x8x1xf32>
    %1149 = vector.broadcast %1148 : vector<2x8x1xf32> to vector<2x8x32xf32>
    %1150 = arith.mulf %1149, %607 : vector<2x8x32xf32>
    %cst_411 = arith.constant dense<0.000000e+00> : vector<2x32xf32>
    %1151 = vector.multi_reduction <add>, %1150, %cst_411 [1] : vector<2x8x32xf32> to vector<2x32xf32>
    %c2_412 = arith.constant 2 : index
    %c0_413 = arith.constant 0 : index
    %c0_414 = arith.constant 0 : index
    %1152 = vector.load %arg13[%c2_412, %c0_413, %c0_414] : memref<8x32x64xf32, #tpu.memory_space<vmem>>, vector<1x32x64xf32>
    %1153 = vector.shape_cast %1152 : vector<1x32x64xf32> to vector<32x64xf32>
    %1154 = arith.truncf %1151 : vector<2x32xf32> to vector<2x32xbf16>
    %1155 = arith.truncf %1153 : vector<32x64xf32> to vector<32x64xbf16>
    %cst_415 = arith.constant dense<0.000000e+00> : vector<2x64xf32>
    %1156 = tpu.matmul %1154, %1155, %cst_415 {dimension_numbers = #tpu.dot_dimension_numbers<[1], [0], [0], [1], [0, 0, 1, 1], [], []>} : vector<2x32xbf16>, vector<32x64xbf16>, vector<2x64xf32> -> vector<2x64xf32>
    %c3_416 = arith.constant 3 : index
    %c0_417 = arith.constant 0 : index
    %c0_418 = arith.constant 0 : index
    %1157 = vector.load %arg9[%c3_416, %c0_417, %c0_418] : memref<12x1x64xf32, #tpu.memory_space<vmem>>, vector<1x1x64xf32>
    %1158 = vector.shape_cast %1157 : vector<1x1x64xf32> to vector<1x64xf32>
    %1159 = vector.broadcast %1158 : vector<1x64xf32> to vector<2x64xf32>
    %1160 = arith.addf %1156, %1159 : vector<2x64xf32>
    %1161 = vector.shape_cast %1113 : vector<2x8x32xf32> to vector<16x32xf32>
    %c1_419 = arith.constant 1 : index
    %c0_420 = arith.constant 0 : index
    %c0_421 = arith.constant 0 : index
    %1162 = vector.load %arg13[%c1_419, %c0_420, %c0_421] : memref<8x32x64xf32, #tpu.memory_space<vmem>>, vector<1x32x64xf32>
    %1163 = vector.shape_cast %1162 : vector<1x32x64xf32> to vector<32x64xf32>
    %1164 = arith.truncf %1161 : vector<16x32xf32> to vector<16x32xbf16>
    %1165 = arith.truncf %1163 : vector<32x64xf32> to vector<32x64xbf16>
    %cst_422 = arith.constant dense<0.000000e+00> : vector<16x64xf32>
    %1166 = tpu.matmul %1164, %1165, %cst_422 {dimension_numbers = #tpu.dot_dimension_numbers<[1], [0], [0], [1], [0, 0, 1, 1], [], []>} : vector<16x32xbf16>, vector<32x64xbf16>, vector<16x64xf32> -> vector<16x64xf32>
    %c1_423 = arith.constant 1 : index
    %c0_424 = arith.constant 0 : index
    %c0_425 = arith.constant 0 : index
    %1167 = vector.load %arg9[%c1_423, %c0_424, %c0_425] : memref<12x1x64xf32, #tpu.memory_space<vmem>>, vector<1x1x64xf32>
    %1168 = vector.shape_cast %1167 : vector<1x1x64xf32> to vector<1x64xf32>
    %1169 = vector.broadcast %1168 : vector<1x64xf32> to vector<16x64xf32>
    %1170 = arith.addf %1166, %1169 : vector<16x64xf32>
    %cst_426 = arith.constant 0.000000e+00 : f32
    %1171 = vector.broadcast %cst_426 : f32 to vector<16x64xf32>
    %1172 = arith.maximumf %1170, %1171 : vector<16x64xf32>
    %c2_427 = arith.constant 2 : index
    %c0_428 = arith.constant 0 : index
    %c0_429 = arith.constant 0 : index
    %1173 = vector.load %arg9[%c2_427, %c0_428, %c0_429] : memref<12x1x64xf32, #tpu.memory_space<vmem>>, vector<1x1x64xf32>
    %1174 = vector.shape_cast %1173 : vector<1x1x64xf32> to vector<1x64xf32>
    %1175 = vector.broadcast %1174 : vector<1x64xf32> to vector<16x64xf32>
    %1176 = arith.mulf %1172, %1175 : vector<16x64xf32>
    %cst_430 = arith.constant dense<0.000000e+00> : vector<16xf32>
    %1177 = vector.multi_reduction <add>, %1176, %cst_430 [1] : vector<16x64xf32> to vector<16xf32>
    %1178 = vector.shape_cast %1177 : vector<16xf32> to vector<16x1xf32>
    %c0_431 = arith.constant 0 : index
    %c0_432 = arith.constant 0 : index
    %c0_433 = arith.constant 0 : index
    %1179 = vector.load %arg6[%c0_431, %c0_432, %c0_433] : memref<2x1x1xf32, #tpu.memory_space<vmem>>, vector<1x1x1xf32>
    %1180 = vector.shape_cast %1179 : vector<1x1x1xf32> to vector<1x1xf32>
    %1181 = vector.broadcast %1180 : vector<1x1xf32> to vector<16x1xf32>
    %1182 = arith.addf %1178, %1181 : vector<16x1xf32>
    %1183 = vector.shape_cast %1182 : vector<16x1xf32> to vector<2x8x1xf32>
    %cst_434 = arith.constant -1.000000e+09 : f32
    %1184 = vector.broadcast %cst_434 : f32 to vector<2x8x1xf32>
    %1185 = arith.select %13, %1184, %1183 : vector<2x8x1xi1>, vector<2x8x1xf32>
    %cst_435 = arith.constant dense<0xFF800000> : vector<2x1xf32>
    %1186 = vector.multi_reduction <maximumf>, %1185, %cst_435 [1] : vector<2x8x1xf32> to vector<2x1xf32>
    %1187 = vector.shape_cast %1186 : vector<2x1xf32> to vector<2x1x1xf32>
    %1188 = vector.broadcast %1187 : vector<2x1x1xf32> to vector<2x8x1xf32>
    %1189 = arith.subf %1185, %1188 : vector<2x8x1xf32>
    %1190 = math.exp %1189 : vector<2x8x1xf32>
    %cst_436 = arith.constant dense<0.000000e+00> : vector<2x1xf32>
    %1191 = vector.multi_reduction <add>, %1190, %cst_436 [1] : vector<2x8x1xf32> to vector<2x1xf32>
    %1192 = vector.shape_cast %1191 : vector<2x1xf32> to vector<2x1x1xf32>
    %1193 = tpu.reciprocal %1192 {approx = true} : vector<2x1x1xf32> -> vector<2x1x1xf32>
    %1194 = vector.broadcast %1193 : vector<2x1x1xf32> to vector<2x8x1xf32>
    %1195 = arith.mulf %1190, %1194 : vector<2x8x1xf32>
    %1196 = vector.broadcast %1195 : vector<2x8x1xf32> to vector<2x8x32xf32>
    %1197 = arith.mulf %1196, %1113 : vector<2x8x32xf32>
    %cst_437 = arith.constant dense<0.000000e+00> : vector<2x32xf32>
    %1198 = vector.multi_reduction <add>, %1197, %cst_437 [1] : vector<2x8x32xf32> to vector<2x32xf32>
    %c0_438 = arith.constant 0 : index
    %c0_439 = arith.constant 0 : index
    %c0_440 = arith.constant 0 : index
    %1199 = vector.load %arg13[%c0_438, %c0_439, %c0_440] : memref<8x32x64xf32, #tpu.memory_space<vmem>>, vector<1x32x64xf32>
    %1200 = vector.shape_cast %1199 : vector<1x32x64xf32> to vector<32x64xf32>
    %1201 = arith.truncf %1198 : vector<2x32xf32> to vector<2x32xbf16>
    %1202 = arith.truncf %1200 : vector<32x64xf32> to vector<32x64xbf16>
    %cst_441 = arith.constant dense<0.000000e+00> : vector<2x64xf32>
    %1203 = tpu.matmul %1201, %1202, %cst_441 {dimension_numbers = #tpu.dot_dimension_numbers<[1], [0], [0], [1], [0, 0, 1, 1], [], []>} : vector<2x32xbf16>, vector<32x64xbf16>, vector<2x64xf32> -> vector<2x64xf32>
    %c0_442 = arith.constant 0 : index
    %c0_443 = arith.constant 0 : index
    %c0_444 = arith.constant 0 : index
    %1204 = vector.load %arg9[%c0_442, %c0_443, %c0_444] : memref<12x1x64xf32, #tpu.memory_space<vmem>>, vector<1x1x64xf32>
    %1205 = vector.shape_cast %1204 : vector<1x1x64xf32> to vector<1x64xf32>
    %1206 = vector.broadcast %1205 : vector<1x64xf32> to vector<2x64xf32>
    %1207 = arith.addf %1203, %1206 : vector<2x64xf32>
    %1208 = arith.addf %1160, %1207 : vector<2x64xf32>
    %cst_445 = arith.constant dense<0.000000e+00> : vector<2xf32>
    %1209 = vector.multi_reduction <add>, %1208, %cst_445 [1] : vector<2x64xf32> to vector<2xf32>
    %1210 = vector.shape_cast %1209 : vector<2xf32> to vector<2x1xf32>
    %cst_446 = arith.constant 1.562500e-02 : f32
    %1211 = vector.broadcast %cst_446 : f32 to vector<2x1xf32>
    %1212 = arith.mulf %1210, %1211 : vector<2x1xf32>
    %1213 = vector.broadcast %1212 : vector<2x1xf32> to vector<2x64xf32>
    %1214 = arith.subf %1208, %1213 : vector<2x64xf32>
    %1215 = arith.mulf %1214, %1214 : vector<2x64xf32>
    %cst_447 = arith.constant dense<0.000000e+00> : vector<2xf32>
    %1216 = vector.multi_reduction <add>, %1215, %cst_447 [1] : vector<2x64xf32> to vector<2xf32>
    %1217 = vector.shape_cast %1216 : vector<2xf32> to vector<2x1xf32>
    %cst_448 = arith.constant 0.0158730168 : f32
    %1218 = vector.broadcast %cst_448 : f32 to vector<2x1xf32>
    %1219 = arith.mulf %1217, %1218 : vector<2x1xf32>
    %1220 = math.sqrt %1219 : vector<2x1xf32>
    %cst_449 = arith.constant 9.99999997E-7 : f32
    %1221 = vector.broadcast %cst_449 : f32 to vector<2x1xf32>
    %1222 = arith.addf %1220, %1221 : vector<2x1xf32>
    %1223 = tpu.reciprocal %1222 {approx = true} : vector<2x1xf32> -> vector<2x1xf32>
    %c11_450 = arith.constant 11 : index
    %c0_451 = arith.constant 0 : index
    %c0_452 = arith.constant 0 : index
    %1224 = vector.load %arg9[%c11_450, %c0_451, %c0_452] : memref<12x1x64xf32, #tpu.memory_space<vmem>>, vector<1x1x64xf32>
    %1225 = vector.shape_cast %1224 : vector<1x1x64xf32> to vector<1x64xf32>
    %1226 = vector.broadcast %1223 : vector<2x1xf32> to vector<2x64xf32>
    %1227 = arith.mulf %1214, %1226 : vector<2x64xf32>
    %1228 = vector.broadcast %1225 : vector<1x64xf32> to vector<2x64xf32>
    %1229 = arith.mulf %1228, %1227 : vector<2x64xf32>
    %c10_453 = arith.constant 10 : index
    %c0_454 = arith.constant 0 : index
    %c0_455 = arith.constant 0 : index
    %1230 = vector.load %arg9[%c10_453, %c0_454, %c0_455] : memref<12x1x64xf32, #tpu.memory_space<vmem>>, vector<1x1x64xf32>
    %1231 = vector.shape_cast %1230 : vector<1x1x64xf32> to vector<1x64xf32>
    %1232 = vector.broadcast %1231 : vector<1x64xf32> to vector<2x64xf32>
    %1233 = arith.addf %1229, %1232 : vector<2x64xf32>
    %c0_456 = arith.constant 0 : index
    %c0_457 = arith.constant 0 : index
    %c0_458 = arith.constant 0 : index
    %1234 = vector.load %arg17[%c0_456, %c0_457, %c0_458] : memref<1x64x10xf32, #tpu.memory_space<vmem>>, vector<1x64x10xf32>
    %1235 = vector.shape_cast %1234 : vector<1x64x10xf32> to vector<64x10xf32>
    %1236 = arith.truncf %1233 : vector<2x64xf32> to vector<2x64xbf16>
    %1237 = arith.truncf %1235 : vector<64x10xf32> to vector<64x10xbf16>
    %cst_459 = arith.constant dense<0.000000e+00> : vector<2x10xf32>
    %1238 = tpu.matmul %1236, %1237, %cst_459 {dimension_numbers = #tpu.dot_dimension_numbers<[1], [0], [0], [1], [0, 0, 1, 1], [], []>} : vector<2x64xbf16>, vector<64x10xbf16>, vector<2x10xf32> -> vector<2x10xf32>
    %c0_460 = arith.constant 0 : index
    %c0_461 = arith.constant 0 : index
    %c0_462 = arith.constant 0 : index
    %1239 = vector.load %arg7[%c0_460, %c0_461, %c0_462] : memref<1x1x10xf32, #tpu.memory_space<vmem>>, vector<1x1x10xf32>
    %1240 = vector.shape_cast %1239 : vector<1x1x10xf32> to vector<1x10xf32>
    %1241 = vector.broadcast %1240 : vector<1x10xf32> to vector<2x10xf32>
    %1242 = arith.addf %1238, %1241 : vector<2x10xf32>
    %cst_463 = arith.constant 0.000000e+00 : f32
    %1243 = vector.broadcast %cst_463 : f32 to vector<2x10xf32>
    %1244 = arith.subf %1243, %1242 : vector<2x10xf32>
    %1245 = math.exp %1244 : vector<2x10xf32>
    %cst_464 = arith.constant 1.000000e+00 : f32
    %1246 = vector.broadcast %cst_464 : f32 to vector<2x10xf32>
    %1247 = arith.addf %1246, %1245 : vector<2x10xf32>
    %cst_465 = arith.constant 1.000000e+00 : f32
    %1248 = vector.broadcast %cst_465 : f32 to vector<2x10xf32>
    %1249 = arith.divf %1248, %1247 : vector<2x10xf32>
    %c0_466 = arith.constant 0 : index
    %c0_467 = arith.constant 0 : index
    %1250 = vector.load %arg19[%c0_466, %c0_467] : memref<2x10xf32, #tpu.memory_space<vmem>>, vector<2x10xf32>
    tpu.vector_store %arg19[%c0_466, %c0_467], %1249 {strides = array<i32>} : memref<2x10xf32, #tpu.memory_space<vmem>>, vector<2x10xf32>,
    return
  }
}

</mosaic_0001>

<bundles_post_ra>
// kernel: forward.1
= control target key start
LH: loop header
LB: loop body
LE: loop exit
PB: predicated region body
PF: predicated region fallthrough
CT: control target
= control target key end

     0   :  { %s8637_s0 = inlined_call_operand.vmem [shape: f32[8,2,32], index: 0, kind: input, shape index: {}]   ;;  %s8638_s1 = inlined_call_operand.vmem [shape: f32[2,8,48], index: 1, kind: input, shape index: {}]   ;;  %s8639_s2 = inlined_call_operand.vmem [shape: f32[2,1,8], index: 2, kind: input, shape index: {}]   ;;  %s8640_s3 = inlined_call_operand.vmem [shape: f32[2,1,8], index: 3, kind: input, shape index: {}]   ;;  %s8641_s4 = inlined_call_operand.vmem [shape: f32[2,8,1], index: 4, kind: input, shape index: {}]   ;;  %s8642_s5 = inlined_call_operand.vmem [shape: f32[2,8,1], index: 5, kind: input, shape index: {}]   ;;  %s8643_s6 = inlined_call_operand.vmem [shape: f32[2,1,1], index: 6, kind: input, shape index: {}]   ;;  %s8644_s7 = inlined_call_operand.vmem [shape: f32[1,1,10], index: 7, kind: input, shape index: {}]   ;;  %s8645_s8 = inlined_call_operand.hbm [shape: f32[31,1,32], index: 8, kind: input, shape index: {}]   ;;  %s8646_s9 = inlined_call_operand.hbm [shape: f32[12,1,64], index: 9, kind: input, shape index: {}]   ;;  %s8647_s10 = inlined_call_operand.hbm [shape: f32[6,1,96], index: 10, kind: input, shape index: {}]   ;;  %s8648_s11 = inlined_call_operand.vmem [shape: f32[1,1,128], index: 11, kind: input, shape index: {}]   ;;  %s8649_s12 = inlined_call_operand.vmem [shape: f32[6,32,32], index: 12, kind: input, shape index: {}]   ;;  %s8650_s13 = inlined_call_operand.vmem [shape: f32[8,32,64], index: 13, kind: input, shape index: {}]   ;;  %s8651_s14 = inlined_call_operand.vmem [shape: f32[6,32,96], index: 14, kind: input, shape index: {}]   ;;  %s8652_s15 = inlined_call_operand.hbm [shape: f32[2,32,128], index: 15, kind: input, shape index: {}]   ;;  %s8653_s16 = inlined_call_operand.vmem [shape: f32[1,48,32], index: 16, kind: input, shape index: {}]   ;;  %s8654_s17 = inlined_call_operand.vmem [shape: f32[1,64,10], index: 17, kind: input, shape index: {}]   ;;  %s8655_s18 = inlined_call_operand.vmem [shape: f32[4,64,32], index: 18, kind: input, shape index: {}]   ;;  %s8656_s19 = inlined_call_operand.hbm [shape: f32[2,10], index: 19, kind: output, shape index: {}]  }
   0x1   :  { %8675 = sst [smem:[#allocation15_spill]] %s8637_s0 }
   0x2   :  { %8676 = sst [smem:[#allocation16_spill]] %s8638_s1 }
   0x3   :  { %8677 = sst [smem:[#allocation17_spill]] %s8639_s2 }
   0x4   :  { %8678 = sst [smem:[#allocation18_spill]] %s8640_s3 }
   0x5   :  { %24 = vsyncpa [#allocation3], 0 }
   0x6   :  { %25 = vsyncpa [#allocation6], 0 }
   0x7   :  { %26 = vsyncpa [#allocation9], 0 }
   0x8   :  { %27 = vsyncpa [#allocation4], 0  ;;  %s61_s20 = sshll.u32 %s8646_s9, 4  ;;  %s6918_s21 = smov [#allocation5]   ;;  %s62_s20 = int_to_ptr.hbm [resolvable:$true] %s61_s20 }
   0x9   :  { %s63_s1 = sshll.u32 %s6918_s21, 4  ;;  %s48_s23 = sshll.u32 %s8645_s8, 4  ;;  %s64_s1 = int_to_ptr.vmem [resolvable:$true] %s63_s1  ;;  %s49_s23 = int_to_ptr.hbm [resolvable:$true] %s48_s23 }
   0xa   :  { %s8665_s24 = smov 16   ;;  %s6920_s25 = smov 1  }
   0xb   :  { %69 = dma.hbm_to_vmem [thread:$0]  %s62_s20, 192, %s64_s1, [#allocation6], %s8665_s24, %s8665_s24, %s6920_s25  }
   0xc   :  { %s6921_s3 = smov [#allocation2]   ;;  %s74_s9 = sshll.u32 %s8647_s10, 4  ;;  %s75_s9 = int_to_ptr.hbm [resolvable:$true] %s74_s9 }
   0xd   :  { %s50_s26 = sshll.u32 %s6921_s3, 4  ;;  %s95_s8 = sshll.u32 %s8652_s15, 4  ;;  %s51_s26 = int_to_ptr.vmem [resolvable:$true] %s50_s26  ;;  %s96_s8 = int_to_ptr.hbm [resolvable:$true] %s95_s8 }
   0xe   :  { %56 = dma.hbm_to_vmem [thread:$0]  %s49_s23, 496, %s51_s26, [#allocation3], %s8665_s24, %s8665_s24, %s6920_s25  }
   0xf   :  { %s6922_s30 = smov [#allocation7]   ;;  %s6923_s20 = smov [#allocation8]  }
  0x10   :  { %s76_s21 = sshll.u32 %s6922_s30, 4  ;;  %s97_s1 = sshll.u32 %s6923_s20, 4  ;;  %s77_s21 = int_to_ptr.vmem [resolvable:$true] %s76_s21  ;;  %s98_s1 = int_to_ptr.vmem [resolvable:$true] %s97_s1 }
  0x11   :  { %82 = dma.hbm_to_vmem [thread:$0]  %s75_s9, 96, %s77_s21, [#allocation6], %s8665_s24, %s8665_s24, %s6920_s25  }
  0x12   :  { %s6924_s10 = smov 128   ;;  %s8667_s22 = smov 8  }
  0x13   :  { %103 = dma.hbm_to_vmem [thread:$0]  %s96_s8, 1024, %s98_s1, [#allocation9], %s6924_s10, %s6924_s10, %s8667_s22  }
  0x14   :  { %6910 = dma.done.wait [#allocation3], 496  }
  0x15   :  { %6911 = vsyncadd [#allocation3], 4294966800 }
  0x16   :  { %6912 = dma.done.wait [#allocation6], 288  }
  0x17   :  { %6913 = vsyncadd [#allocation6], 4294967008 }
  0x18   :  { %6914 = dma.done.wait [#allocation9], 1024  }
  0x19   :  { %6915 = vsyncadd [#allocation9], 4294966272  ;;  %v6926_v0 = vmov 0   ;;  %v160_v1 = vld [vmem:[#allocation8 + $0x10] sm:$0xff]  ;;  %v161_v2 = vld [vmem:[#allocation8 + $0x18] sm:$0xff]  ;;  %s8679_s23 = sld [smem:[#allocation15_spill]] }
  0x1a   :  { %6374 = vset.pattern.permute.xlu2 %v6926_v0  ;;  %6375 = vset.pattern.permute.xlu1 %v6926_v0  ;;  %v156_v3 = vld [vmem:[#allocation8 + $0x30] sm:$0xff]  ;;  %v163_v4 = vpack.c.bf16 %v161_v2, %v160_v1  ;;  %v157_v5 = vld [vmem:[#allocation8 + $0x38] sm:$0xff]  ;;  %v158_v6 = vld [vmem:[#allocation8] sm:$0xff]  ;;  %vm198_vm0 = vcmask 261120   ;;  %vm588_vm1 = vcmask 1041409   ;;  %vm590_vm2 = vcmask 1043459  }
  0x1b   :  { %6376 = vset.pattern.permute.xlu0 %v6926_v0  ;;  %v159_v7 = vld [vmem:[#allocation8 + $0x8] sm:$0xff]  ;;  %v194_v8 = vpack.c.bf16 %v157_v5, %v156_v3  ;;  %v154_v9 = vld [vmem:[#allocation8 + $0x20] sm:$0xff]  ;;  %vm582_vm3 = vcmask 1040384   ;;  %vm584_vm4 = vcmask 1042434   ;;  %vm592_vm5 = vcmask 1042433   ;;  %s6929_s8 = smov 88  }
  0x1c   :  { %v155_v10 = vld [vmem:[#allocation8 + $0x28] sm:$0xff]  ;;  %239 = vmatpush.bf16.msra.mxu1 %v163_v4  ;;  %v162_v11 = vpack.c.bf16 %v159_v7, %v158_v6  ;;  %283 = vmatpush.bf16.msra.mxu2 %v163_v4  ;;  %v7092_v26 = vld [vmem:[%s8648_s11] ss:$0 sm:$0xff]  ;;  %s6928_s11 = smov 32   ;;  %vm586_vm6 = vcmask 1041408   ;;  %vm706_vm7 = vcmask 1042432  }
  0x1d   :  { %208 = vmatpush.bf16.msra.mxu0 %v194_v8  ;;  %v193_v12 = vpack.c.bf16 %v155_v10, %v154_v9  ;;  %327 = vmatpush.bf16.msra.mxu3 %v163_v4  ;;  %vm709_vm8 = vcmask 1043456   ;;  %vm712_vm9 = vcmask 1044480   ;;  %vm715_vm10 = vcmask 1045504   ;;  %s6930_s30 = smov 96   ;;  %s6931_s21 = smov 80  }
  0x1e   :  { %vm718_vm11 = vcmask 1046528   ;;  %s8669_s20 = smov 48   ;;  %s6933_s1 = smov 56   ;;  %vm792_vm12 = vcmask 64512   ;;  %vm736_vm13 = vcmask 392192  }
  0x1f   :  { %v127_v13 = vld [vmem:[%s8679_s23] sm:$0x3]  ;;  %v128_v14 = vld [vmem:[%s8679_s23 + $0x2] sm:$0x3]  ;;  %v129_v15 = vld [vmem:[%s8679_s23 + $0x4] sm:$0x3] }
  0x20   :  { %v130_v16 = vld [vmem:[%s8679_s23 + $0x6] sm:$0x3]  ;;  %240 = vmatpush.bf16.msra.mxu1 %v162_v11  ;;  %v131_v17 = vld [vmem:[%s8679_s23 + $0x8] sm:$0x3]  ;;  %v132_v18 = vld [vmem:[%s8679_s23 + $0xa] sm:$0x3]  ;;  %284 = vmatpush.bf16.msra.mxu2 %v162_v11 }
  0x21   :  { %173 = vst [vmem:[#allocation1] ss:$4 sm:$0xff] %v127_v13  ;;  %209 = vmatpush.bf16.msra.mxu0 %v193_v12  ;;  %v133_v19 = vld [vmem:[%s8679_s23 + $0xc] sm:$0x3]  ;;  %328 = vmatpush.bf16.msra.mxu3 %v162_v11  ;;  %v134_v20 = vld [vmem:[%s8679_s23 + $0xe] sm:$0x3] }
  0x22   :  { %175 = vst [vmem:[#allocation1 + $0x1] ss:$4 sm:$0xff] %v128_v14  ;;  %s6927_s23 = smov 64   ;;  %s8661_s10 = smov 40  }
  0x23   :  { %177 = vst [vmem:[#allocation1 + $0x2] ss:$4 sm:$0xff] %v129_v15  ;;  %241 = vmatmul.bf16.vlgmr.msra.gmra.mxu1 %v6926_v0  ;;  %s6935_s15 = smov 72   ;;  %s8680_s27 = sld [smem:[#allocation16_spill]] }
  0x24   :  { %415 = vmatpush.bf16.msrb.mxu1 %v163_v4  ;;  %179 = vst [vmem:[#allocation1 + $0x3] ss:$4 sm:$0xff] %v130_v16  ;;  %459 = vmatpush.bf16.msrb.mxu2 %v163_v4  ;;  %s8681_s29 = sld [smem:[#allocation17_spill]]  ;;  %s6936_s25 = smov 120  }
  0x25   :  { %371 = vmatpush.bf16.msrb.mxu0 %v163_v4  ;;  %181 = vst [vmem:[#allocation1 + $0x20] ss:$4 sm:$0xff] %v131_v17  ;;  %503 = vmatpush.bf16.msrb.mxu3 %v163_v4  ;;  %s8671_s3 = smov 104   ;;  %s8673_s26 = smov 112  }
  0x26   :  { %183 = vst [vmem:[#allocation1 + $0x21] ss:$4 sm:$0xff] %v132_v18  ;;  %s8687_s9 = smov 24  }
  0x27   :  { %185 = vst [vmem:[#allocation1 + $0x22] ss:$4 sm:$0xff] %v133_v19 }
  0x28   :  { %416 = vmatpush.bf16.msrb.mxu1 %v162_v11  ;;  %187 = vst [vmem:[#allocation1 + $0x23] ss:$4 sm:$0xff] %v134_v20  ;;  %460 = vmatpush.bf16.msrb.mxu2 %v162_v11 }
  0x29   :  { %372 = vmatpush.bf16.msrb.mxu0 %v162_v11  ;;  %504 = vmatpush.bf16.msrb.mxu3 %v162_v11 }
  0x2b   :  { %v188_v21 = vld.sshfl [vmem:[#allocation1] sm:$0xff pattern:$0x73625140] }
  0x2f   :  { %v189_v22 = vld.sshfl [vmem:[#allocation1 + $0x20] sm:$0xff pattern:$0x73625140] }
  0x30   :  { %v192_v23 = vpack.c.bf16 %v189_v22, %v188_v21 }
  0x32   :  { %5928 = vmatmul.msk.bf16.vlgmr.msra.gmra.mxu0 %vm198_vm0, %v192_v23 }
  0x33   :  { %547 = vmatpush.bf16.msra.mxu0 %v163_v4 }
  0x37   :  { %548 = vmatpush.bf16.msra.mxu0 %v162_v11 }
  0xa0   :  { %v242_v24 = vpop.f32.mrf.mxu1 }
  0xa8   :  { %v244_v25 = vpop.f32.mrf.mxu1 }
  0xaf   :  { %v211_v27 = vpop.f32.mrf.mxu0 }
  0xb0   :  { %v7095_v28 = vadd.f32 %v7092_v26, %v211_v27 }
  0xb2   :  { %v246_v29 = vadd.f32 %v242_v24, %v7095_v28  ;;  %v218_v46 = vrot.slane %v7095_v28, 2 }
  0xb4   :  { %6430 = vtanh.f32 %v246_v29  ;;  %v247_v31 = vsub.f32 0.0, %v246_v29  ;;  %v219_v29 = vrot.slane %v7095_v28, 4 }
  0xb6   :  { %v248_v32 = vmul.f32 1.442695, %v247_v31 }
  0xb8   :  { %6432 = vpow2.f32 %v248_v32 }
  0xba   :  { %v6431_v30 = vpop.eup %6430 }
  0xbb   :  { %255 = vrot.lane.b32.xlu0 %v6431_v30, %s6927_s23 }
  0xbe   :  { %v6433_v33 = vpop.eup %6432 }
  0xbf   :  { %v250_v34 = vadd.f32 1.0, %v6433_v33 }
  0xc1   :  { %6434 = vrcp.f32 %v250_v34 }
  0xc7   :  { %v6435_v35 = vpop.eup %6434 }
  0xc8   :  { %v253_v38 = vmul.f32 0.0, %v6435_v35 }
 0x12d   :  { %v256_v36 = vpop.permute.xlu0 %255 }
 0x12e   :  { %v258_v37 = vmul.f32 %v6435_v35, %v256_v36 }
 0x130   :  { %260 = vrot.lane.b32.xlu0 %v258_v37, %s6928_s11 }
 0x1a2   :  { %v261_v39 = vpop.permute.xlu0 %260 }
 0x1a3   :  { %v263_v40 = vadd.f32 %v261_v39, %v253_v38 }
 0x1a5   :  { %6436 = vtanh.f32 %v263_v40 }
 0x1ab   :  { %v6437_v41 = vpop.eup %6436 }
 0x1ac   :  { %266 = vrot.lane.b32.xlu1 %v6437_v41, %s6927_s23 }
 0x21e   :  { %v267_v42 = vpop.permute.xlu1 %266 }
 0x21f   :  { %v269_v43 = vmul.f32 %v6435_v35, %v267_v42 }
 0x221   :  { %v270_v44 = vpack.c.bf16 %v269_v43, %v269_v43  ;;  %v579_v62 = vrot.slane %v269_v43, 1  ;;  %v580_v63 = vrot.slane %v269_v43, 2  ;;  %v581_v1 = vrot.slane %v269_v43, 3 }
 0x223   :  { %272 = vrot.lane.b32.xlu1 %v270_v44, %s6928_s11  ;;  %v589_v4 = vsel %vm588_vm1, %v269_v43, %v579_v62  ;;  %v591_v5 = vsel %vm590_vm2, %v580_v63, %v581_v1  ;;  %v583_v10 = vsel %vm582_vm3, %v269_v43, %v579_v62  ;;  %v585_v11 = vsel %vm584_vm4, %v580_v63, %v581_v1  ;;  %v213_v63 = vpop.f32.mrf.mxu0 }
 0x224   :  { %v593_v16 = vsel %vm592_vm5, %v589_v4, %v591_v5  ;;  %v587_v21 = vsel %vm586_vm6, %v583_v10, %v585_v11  ;;  %v220_v1 = vrot.slane %v7095_v28, 6 }
 0x225   :  { %v594_v22 = vrot.slane %v593_v16, 1 }
 0x295   :  { %v273_v45 = vpop.permute.xlu1 %272 }
 0x296   :  { %5929 = vmatmul.msk.bf16.vlgmr.msra.gmra.mxu2 %vm198_vm0, %v273_v45 }
 0x319   :  { %v286_v47 = vpop.f32.mrf.mxu2 }
 0x31a   :  { %v290_v48 = vadd.f32 %v286_v47, %v218_v46 }
 0x31c   :  { %6438 = vtanh.f32 %v290_v48  ;;  %v291_v51 = vsub.f32 0.0, %v290_v48 }
 0x31e   :  { %v292_v52 = vmul.f32 1.442695, %v291_v51 }
 0x320   :  { %6440 = vpow2.f32 %v292_v52 }
 0x321   :  { %v288_v49 = vpop.f32.mrf.mxu2 }
 0x322   :  { %v6439_v50 = vpop.eup %6438 }
 0x323   :  { %299 = vrot.lane.b32.xlu2 %v6439_v50, %s6927_s23 }
 0x326   :  { %v6441_v53 = vpop.eup %6440 }
 0x327   :  { %v294_v54 = vadd.f32 1.0, %v6441_v53 }
 0x329   :  { %6442 = vrcp.f32 %v294_v54 }
 0x32f   :  { %v6443_v55 = vpop.eup %6442 }
 0x330   :  { %v297_v58 = vmul.f32 %v6443_v55, %v263_v40 }
 0x37d   :  { %v300_v56 = vpop.permute.xlu2 %299 }
 0x37e   :  { %v302_v57 = vmul.f32 %v6443_v55, %v300_v56 }
 0x380   :  { %304 = vrot.lane.b32.xlu2 %v302_v57, %s6928_s11 }
 0x3da   :  { %v305_v59 = vpop.permute.xlu2 %304 }
 0x3db   :  { %v307_v60 = vadd.f32 %v305_v59, %v297_v58 }
 0x3dd   :  { %6444 = vtanh.f32 %v307_v60 }
 0x3e3   :  { %v6445_v61 = vpop.eup %6444 }
 0x3e4   :  { %310 = vrot.lane.b32.xlu0 %v6445_v61, %s6927_s23 }
 0x456   :  { %v311_v2 = vpop.permute.xlu0 %310 }
 0x457   :  { %v313_v3 = vmul.f32 %v6443_v55, %v311_v2 }
 0x459   :  { %v598_v6 = vrot.slane %v313_v3, 1  ;;  %v599_v7 = vrot.slane %v313_v3, 2  ;;  %v600_v8 = vrot.slane %v313_v3, 3  ;;  %v314_v9 = vpack.c.bf16 %v313_v3, %v313_v3 }
 0x45b   :  { %v601_v12 = vsel %vm582_vm3, %v313_v3, %v598_v6  ;;  %v602_v13 = vsel %vm584_vm4, %v599_v7, %v600_v8  ;;  %v604_v14 = vsel %vm588_vm1, %v313_v3, %v598_v6  ;;  %v605_v15 = vsel %vm590_vm2, %v599_v7, %v600_v8  ;;  %316 = vrot.lane.b32.xlu1 %v314_v9, %s6928_s11 }
 0x45c   :  { %v603_v17 = vsel %vm586_vm6, %v601_v12, %v602_v13  ;;  %v606_v18 = vsel %vm592_vm5, %v604_v14, %v605_v15 }
 0x45d   :  { %v607_v19 = vrot.slane %v606_v18, 1  ;;  %v674_v20 = vperm.slane %v603_v17, 0 }
 0x45f   :  { %v675_v23 = vperm.slane %v607_v19, 0  ;;  %v702_v24 = vsel %vm582_vm3, %v587_v21, %v674_v20 }
 0x461   :  { %v703_v25 = vsel %vm582_vm3, %v594_v22, %v675_v23 }
 0x4cd   :  { %v317_v27 = vpop.permute.xlu1 %316 }
 0x4ce   :  { %5930 = vmatmul.msk.bf16.vlgmr.msra.gmra.mxu3 %vm198_vm0, %v317_v27 }
 0x551   :  { %v330_v30 = vpop.f32.mrf.mxu3 }
 0x552   :  { %v334_v31 = vadd.f32 %v330_v30, %v219_v29 }
 0x554   :  { %6446 = vtanh.f32 %v334_v31  ;;  %v335_v34 = vsub.f32 0.0, %v334_v31 }
 0x556   :  { %v336_v35 = vmul.f32 1.442695, %v335_v34 }
 0x558   :  { %6448 = vpow2.f32 %v336_v35 }
 0x559   :  { %v332_v32 = vpop.f32.mrf.mxu3 }
 0x55a   :  { %v6447_v33 = vpop.eup %6446 }
 0x55b   :  { %343 = vrot.lane.b32.xlu2 %v6447_v33, %s6927_s23 }
 0x55e   :  { %v6449_v36 = vpop.eup %6448 }
 0x55f   :  { %v338_v37 = vadd.f32 1.0, %v6449_v36  ;;  %v7150_v36 = vadd.f32 %v7092_v26, %v213_v63 }
 0x561   :  { %6450 = vrcp.f32 %v338_v37 }
 0x567   :  { %v6451_v38 = vpop.eup %6450 }
 0x568   :  { %v341_v41 = vmul.f32 %v6451_v38, %v307_v60 }
 0x5b5   :  { %v344_v39 = vpop.permute.xlu2 %343 }
 0x5b6   :  { %v346_v40 = vmul.f32 %v6451_v38, %v344_v39 }
 0x5b8   :  { %348 = vrot.lane.b32.xlu0 %v346_v40, %s6928_s11 }
 0x62a   :  { %v349_v42 = vpop.permute.xlu0 %348 }
 0x62b   :  { %v351_v43 = vadd.f32 %v349_v42, %v341_v41 }
 0x62d   :  { %6452 = vtanh.f32 %v351_v43 }
 0x633   :  { %v6453_v44 = vpop.eup %6452 }
 0x634   :  { %354 = vrot.lane.b32.xlu1 %v6453_v44, %s6927_s23 }
 0x6a6   :  { %v355_v45 = vpop.permute.xlu1 %354 }
 0x6a7   :  { %v357_v46 = vmul.f32 %v6451_v38, %v355_v45 }
 0x6a9   :  { %v609_v47 = vrot.slane %v357_v46, 1  ;;  %v610_v48 = vrot.slane %v357_v46, 2  ;;  %v611_v49 = vrot.slane %v357_v46, 3  ;;  %v358_v50 = vpack.c.bf16 %v357_v46, %v357_v46 }
 0x6ab   :  { %v612_v51 = vsel %vm582_vm3, %v357_v46, %v609_v47  ;;  %v615_v52 = vsel %vm588_vm1, %v357_v46, %v609_v47  ;;  %360 = vrot.lane.b32.xlu2 %v358_v50, %s6928_s11  ;;  %v613_v53 = vsel %vm584_vm4, %v610_v48, %v611_v49  ;;  %v616_v54 = vsel %vm590_vm2, %v610_v48, %v611_v49 }
 0x6ac   :  { %v614_v55 = vsel %vm586_vm6, %v612_v51, %v613_v53  ;;  %v617_v56 = vsel %vm592_vm5, %v615_v52, %v616_v54 }
 0x6ad   :  { %v618_v57 = vrot.slane %v617_v56, 1  ;;  %v678_v58 = vperm.slane %v614_v55, 0 }
 0x6af   :  { %v679_v59 = vperm.slane %v618_v57, 0  ;;  %v704_v60 = vsel %vm586_vm6, %v702_v24, %v678_v58 }
 0x6b1   :  { %v705_v61 = vsel %vm586_vm6, %v703_v25, %v679_v59 }
 0x705   :  { %v361_v62 = vpop.permute.xlu2 %360 }
 0x706   :  { %5931 = vmatmul.msk.bf16.vlgmr.msrb.gmra.mxu0 %vm198_vm0, %v361_v62 }
 0x783   :  { %v374_v2 = vpop.f32.mrf.mxu0 }
 0x784   :  { %v378_v3 = vadd.f32 %v374_v2, %v220_v1 }
 0x786   :  { %6454 = vtanh.f32 %v378_v3  ;;  %v379_v6 = vsub.f32 0.0, %v378_v3 }
 0x788   :  { %v380_v7 = vmul.f32 1.442695, %v379_v6  ;;  %v221_v6 = vrot.slane %v7150_v36, 2 }
 0x78a   :  { %6456 = vpow2.f32 %v380_v7 }
 0x78b   :  { %v376_v4 = vpop.f32.mrf.mxu0 }
 0x78c   :  { %v6455_v5 = vpop.eup %6454 }
 0x78d   :  { %387 = vrot.lane.b32.xlu0 %v6455_v5, %s6927_s23 }
 0x790   :  { %v6457_v8 = vpop.eup %6456 }
 0x791   :  { %v382_v9 = vadd.f32 1.0, %v6457_v8 }
 0x793   :  { %6458 = vrcp.f32 %v382_v9 }
 0x799   :  { %v6459_v10 = vpop.eup %6458 }
 0x79a   :  { %v385_v13 = vmul.f32 %v6459_v10, %v351_v43 }
 0x7ff   :  { %v388_v11 = vpop.permute.xlu0 %387 }
 0x800   :  { %v390_v12 = vmul.f32 %v6459_v10, %v388_v11 }
 0x802   :  { %392 = vrot.lane.b32.xlu1 %v390_v12, %s6928_s11 }
 0x874   :  { %v393_v28 = vpop.permute.xlu1 %392 }
 0x875   :  { %v395_v14 = vadd.f32 %v393_v28, %v385_v13 }
 0x877   :  { %6460 = vtanh.f32 %v395_v14 }
 0x87d   :  { %v6461_v15 = vpop.eup %6460 }
 0x87e   :  { %398 = vrot.lane.b32.xlu2 %v6461_v15, %s6927_s23 }
 0x8d8   :  { %v399_v16 = vpop.permute.xlu2 %398 }
 0x8d9   :  { %v401_v17 = vmul.f32 %v6459_v10, %v399_v16 }
 0x8db   :  { %v620_v18 = vrot.slane %v401_v17, 1  ;;  %v621_v19 = vrot.slane %v401_v17, 2  ;;  %v622_v20 = vrot.slane %v401_v17, 3  ;;  %v402_v21 = vpack.c.bf16 %v401_v17, %v401_v17 }
 0x8dd   :  { %v623_v22 = vsel %vm582_vm3, %v401_v17, %v620_v18  ;;  %v626_v23 = vsel %vm588_vm1, %v401_v17, %v620_v18  ;;  %404 = vrot.lane.b32.xlu0 %v402_v21, %s6928_s11  ;;  %v624_v24 = vsel %vm584_vm4, %v621_v19, %v622_v20  ;;  %v627_v25 = vsel %vm590_vm2, %v621_v19, %v622_v20 }
 0x8de   :  { %v625_v27 = vsel %vm586_vm6, %v623_v22, %v624_v24  ;;  %v628_v29 = vsel %vm592_vm5, %v626_v23, %v627_v25 }
 0x8df   :  { %v629_v30 = vrot.slane %v628_v29, 1  ;;  %v682_v31 = vperm.slane %v625_v27, 0 }
 0x8e1   :  { %v683_v32 = vperm.slane %v629_v30, 0  ;;  %v707_v33 = vsel %vm706_vm7, %v704_v60, %v682_v31 }
 0x8e3   :  { %v708_v34 = vsel %vm706_vm7, %v705_v61, %v683_v32 }
 0x94f   :  { %v405_v35 = vpop.permute.xlu0 %404 }
 0x950   :  { %5932 = vmatmul.msk.bf16.vlgmr.msrb.gmra.mxu1 %vm198_vm0, %v405_v35 }
 0x9cd   :  { %v418_v37 = vpop.f32.mrf.mxu1 }
 0x9ce   :  { %v422_v38 = vadd.f32 %v418_v37, %v7150_v36 }
 0x9d0   :  { %6462 = vtanh.f32 %v422_v38  ;;  %v423_v41 = vsub.f32 0.0, %v422_v38 }
 0x9d2   :  { %v424_v42 = vmul.f32 1.442695, %v423_v41 }
 0x9d4   :  { %6464 = vpow2.f32 %v424_v42  ;;  %v222_v42 = vrot.slane %v7150_v36, 4 }
 0x9d5   :  { %v420_v39 = vpop.f32.mrf.mxu1 }
 0x9d6   :  { %v6463_v40 = vpop.eup %6462 }
 0x9d7   :  { %431 = vrot.lane.b32.xlu1 %v6463_v40, %s6927_s23 }
 0x9da   :  { %v6465_v43 = vpop.eup %6464 }
 0x9db   :  { %v426_v44 = vadd.f32 1.0, %v6465_v43 }
 0x9dd   :  { %6466 = vrcp.f32 %v426_v44 }
 0x9e3   :  { %v6467_v45 = vpop.eup %6466 }
 0x9e4   :  { %v429_v26 = vmul.f32 %v6467_v45, %v395_v14 }
 0xa49   :  { %v432_v46 = vpop.permute.xlu1 %431 }
 0xa4a   :  { %v434_v47 = vmul.f32 %v6467_v45, %v432_v46 }
 0xa4c   :  { %436 = vrot.lane.b32.xlu2 %v434_v47, %s6928_s11 }
 0xaa6   :  { %v437_v48 = vpop.permute.xlu2 %436 }
 0xaa7   :  { %v439_v49 = vadd.f32 %v437_v48, %v429_v26 }
 0xaa9   :  { %6468 = vtanh.f32 %v439_v49 }
 0xaaf   :  { %v6469_v50 = vpop.eup %6468 }
 0xab0   :  { %442 = vrot.lane.b32.xlu0 %v6469_v50, %s6927_s23 }
 0xb22   :  { %v443_v51 = vpop.permute.xlu0 %442 }
 0xb23   :  { %v445_v52 = vmul.f32 %v6467_v45, %v443_v51 }
 0xb25   :  { %v631_v53 = vrot.slane %v445_v52, 1  ;;  %v632_v54 = vrot.slane %v445_v52, 2  ;;  %v633_v55 = vrot.slane %v445_v52, 3  ;;  %v446_v56 = vpack.c.bf16 %v445_v52, %v445_v52 }
 0xb27   :  { %448 = vrot.lane.b32.xlu1 %v446_v56, %s6928_s11  ;;  %v634_v57 = vsel %vm582_vm3, %v445_v52, %v631_v53  ;;  %v635_v58 = vsel %vm584_vm4, %v632_v54, %v633_v55  ;;  %v637_v59 = vsel %vm588_vm1, %v445_v52, %v631_v53  ;;  %v638_v60 = vsel %vm590_vm2, %v632_v54, %v633_v55 }
 0xb28   :  { %v636_v61 = vsel %vm586_vm6, %v634_v57, %v635_v58  ;;  %v639_v62 = vsel %vm592_vm5, %v637_v59, %v638_v60 }
 0xb29   :  { %v640_v63 = vrot.slane %v639_v62, 1  ;;  %v686_v1 = vperm.slane %v636_v61, 0 }
 0xb2b   :  { %v687_v2 = vperm.slane %v640_v63, 0  ;;  %v710_v3 = vsel %vm709_vm8, %v707_v33, %v686_v1 }
 0xb2d   :  { %v711_v4 = vsel %vm709_vm8, %v708_v34, %v687_v2 }
 0xb99   :  { %v449_v5 = vpop.permute.xlu1 %448 }
 0xb9a   :  { %5933 = vmatmul.msk.bf16.vlgmr.msrb.gmra.mxu2 %vm198_vm0, %v449_v5 }
 0xc1d   :  { %v462_v7 = vpop.f32.mrf.mxu2 }
 0xc1e   :  { %v466_v8 = vadd.f32 %v462_v7, %v221_v6 }
 0xc20   :  { %6470 = vtanh.f32 %v466_v8  ;;  %v467_v11 = vsub.f32 0.0, %v466_v8 }
 0xc22   :  { %v468_v12 = vmul.f32 1.442695, %v467_v11 }
 0xc24   :  { %6472 = vpow2.f32 %v468_v12  ;;  %v223_v12 = vrot.slane %v7150_v36, 6 }
 0xc25   :  { %v464_v9 = vpop.f32.mrf.mxu2 }
 0xc26   :  { %v6471_v10 = vpop.eup %6470 }
 0xc27   :  { %475 = vrot.lane.b32.xlu2 %v6471_v10, %s6927_s23 }
 0xc2a   :  { %v6473_v13 = vpop.eup %6472 }
 0xc2b   :  { %v470_v28 = vadd.f32 1.0, %v6473_v13 }
 0xc2d   :  { %6474 = vrcp.f32 %v470_v28 }
 0xc33   :  { %v6475_v14 = vpop.eup %6474 }
 0xc34   :  { %v473_v17 = vmul.f32 %v6475_v14, %v439_v49 }
 0xc81   :  { %v476_v15 = vpop.permute.xlu2 %475 }
 0xc82   :  { %v478_v16 = vmul.f32 %v6475_v14, %v476_v15 }
 0xc84   :  { %480 = vrot.lane.b32.xlu0 %v478_v16, %s6928_s11 }
 0xcf6   :  { %v481_v18 = vpop.permute.xlu0 %480 }
 0xcf7   :  { %v483_v19 = vadd.f32 %v481_v18, %v473_v17 }
 0xcf9   :  { %6476 = vtanh.f32 %v483_v19 }
 0xcff   :  { %v6477_v20 = vpop.eup %6476 }
 0xd00   :  { %486 = vrot.lane.b32.xlu1 %v6477_v20, %s6927_s23 }
 0xd72   :  { %v487_v21 = vpop.permute.xlu1 %486 }
 0xd73   :  { %v489_v22 = vmul.f32 %v6475_v14, %v487_v21 }
 0xd75   :  { %v642_v23 = vrot.slane %v489_v22, 1  ;;  %v643_v24 = vrot.slane %v489_v22, 2  ;;  %v644_v25 = vrot.slane %v489_v22, 3  ;;  %v490_v27 = vpack.c.bf16 %v489_v22, %v489_v22 }
 0xd77   :  { %492 = vrot.lane.b32.xlu2 %v490_v27, %s6928_s11  ;;  %v645_v29 = vsel %vm582_vm3, %v489_v22, %v642_v23  ;;  %v646_v30 = vsel %vm584_vm4, %v643_v24, %v644_v25  ;;  %v648_v31 = vsel %vm588_vm1, %v489_v22, %v642_v23  ;;  %v649_v32 = vsel %vm590_vm2, %v643_v24, %v644_v25  ;;  %v5939_v27 = vld [vmem:[%s8651_s14 + $0x90] sm:$0xff] }
 0xd78   :  { %v647_v33 = vsel %vm586_vm6, %v645_v29, %v646_v30  ;;  %v650_v34 = vsel %vm592_vm5, %v648_v31, %v649_v32  ;;  %v5940_v29 = vld [vmem:[%s8651_s14 + $0x98] sm:$0xff]  ;;  %v5937_v30 = vld [vmem:[%s8651_s14 + $0x80] sm:$0xff]  ;;  %v5938_v32 = vld [vmem:[%s8651_s14 + $0x88] sm:$0xff] }
 0xd79   :  { %v651_v35 = vrot.slane %v650_v34, 1  ;;  %v690_v37 = vperm.slane %v647_v33, 0  ;;  %v763_v31 = vpack.c.bf16 %v5940_v29, %v5939_v27  ;;  %v762_v33 = vpack.c.bf16 %v5938_v32, %v5937_v30 }
 0xd7b   :  { %v691_v38 = vperm.slane %v651_v35, 0  ;;  %v713_v39 = vsel %vm712_vm9, %v710_v3, %v690_v37  ;;  %779 = vmatpush.bf16.msra.mxu2 %v763_v31 }
 0xd7d   :  { %v714_v40 = vsel %vm712_vm9, %v711_v4, %v691_v38 }
 0xd7f   :  { %780 = vmatpush.bf16.msra.mxu2 %v762_v33 }
 0xdd1   :  { %v493_v41 = vpop.permute.xlu2 %492 }
 0xdd2   :  { %5934 = vmatmul.msk.bf16.vlgmr.msrb.gmra.mxu3 %vm198_vm0, %v493_v41 }
 0xe55   :  { %v506_v43 = vpop.f32.mrf.mxu3 }
 0xe56   :  { %v510_v44 = vadd.f32 %v506_v43, %v222_v42 }
 0xe58   :  { %6478 = vtanh.f32 %v510_v44  ;;  %v511_v47 = vsub.f32 0.0, %v510_v44 }
 0xe5a   :  { %v512_v26 = vmul.f32 1.442695, %v511_v47 }
 0xe5c   :  { %6480 = vpow2.f32 %v512_v26 }
 0xe5d   :  { %v508_v45 = vpop.f32.mrf.mxu3 }
 0xe5e   :  { %v6479_v46 = vpop.eup %6478 }
 0xe5f   :  { %519 = vrot.lane.b32.xlu0 %v6479_v46, %s6927_s23 }
 0xe62   :  { %v6481_v48 = vpop.eup %6480 }
 0xe63   :  { %v514_v49 = vadd.f32 1.0, %v6481_v48 }
 0xe65   :  { %6482 = vrcp.f32 %v514_v49 }
 0xe6b   :  { %v6483_v50 = vpop.eup %6482 }
 0xe6c   :  { %v517_v53 = vmul.f32 %v6483_v50, %v483_v19 }
 0xed1   :  { %v520_v51 = vpop.permute.xlu0 %519 }
 0xed2   :  { %v522_v52 = vmul.f32 %v6483_v50, %v520_v51 }
 0xed4   :  { %524 = vrot.lane.b32.xlu1 %v522_v52, %s6928_s11  ;;  %v6378_v52 = vld [vmem:[#allocation7 + $0x4] ss:$0 sm:$0xff] }
 0xf46   :  { %v525_v54 = vpop.permute.xlu1 %524 }
 0xf47   :  { %v527_v55 = vadd.f32 %v525_v54, %v517_v53 }
 0xf49   :  { %6484 = vtanh.f32 %v527_v55 }
 0xf4f   :  { %v6485_v56 = vpop.eup %6484 }
 0xf50   :  { %530 = vrot.lane.b32.xlu2 %v6485_v56, %s6927_s23 }
 0xfaa   :  { %v531_v57 = vpop.permute.xlu2 %530 }
 0xfab   :  { %v533_v58 = vmul.f32 %v6483_v50, %v531_v57  ;;  %v725_v57 = vld [vmem:[%s8653_s16 + $0x20] sm:$0xff] }
 0xfad   :  { %v534_v59 = vpack.c.bf16 %v533_v58, %v533_v58  ;;  %v653_v60 = vrot.slane %v533_v58, 1  ;;  %v654_v61 = vrot.slane %v533_v58, 2  ;;  %v655_v62 = vrot.slane %v533_v58, 3 }
 0xfaf   :  { %536 = vrot.lane.b32.xlu0 %v534_v59, %s6928_s11  ;;  %v656_v63 = vsel %vm582_vm3, %v533_v58, %v653_v60  ;;  %v657_v1 = vsel %vm584_vm4, %v654_v61, %v655_v62  ;;  %v659_v2 = vsel %vm588_vm1, %v533_v58, %v653_v60  ;;  %v660_v3 = vsel %vm590_vm2, %v654_v61, %v655_v62  ;;  %v726_v58 = vld [vmem:[%s8653_s16 + $0x28] sm:$0xff]  ;;  %v723_v60 = vld [vmem:[%s8653_s16 + $0x10] sm:$0xff]  ;;  %v724_v61 = vld [vmem:[%s8653_s16 + $0x18] sm:$0xff] }
 0xfb0   :  { %v658_v4 = vsel %vm586_vm6, %v656_v63, %v657_v1  ;;  %v661_v5 = vsel %vm592_vm5, %v659_v2, %v660_v3  ;;  %v730_v59 = vpack.c.bf16 %v726_v58, %v725_v57  ;;  %v721_v62 = vld [vmem:[%s8653_s16] sm:$0xff]  ;;  %v729_v63 = vpack.c.bf16 %v724_v61, %v723_v60  ;;  %v722_v1 = vld [vmem:[%s8653_s16 + $0x8] sm:$0xff]  ;;  %s8686_s16 = smov 40  }
 0xfb1   :  { %v662_v6 = vrot.slane %v661_v5, 1  ;;  %v694_v7 = vperm.slane %v658_v4, 0  ;;  %v728_v2 = vpack.c.bf16 %v722_v1, %v721_v62  ;;  %v135_v3 = vld [vmem:[%s8680_s27] sm:$0xff]  ;;  %v136_v4 = vld [vmem:[%s8680_s27 + $0x8] sm:$0xff]  ;;  %s8663_s27 = smov 24  }
 0xfb2   :  { %745 = vmatpush.bf16.msra.mxu1 %v730_v59  ;;  %v727_v5 = vpack.c.bf16 %v136_v4, %v135_v3 }
 0xfb3   :  { %v695_v8 = vperm.slane %v662_v6, 0  ;;  %v716_v9 = vsel %vm715_vm10, %v713_v39, %v694_v7 }
 0xfb5   :  { %v717_v10 = vsel %vm715_vm10, %v714_v40, %v695_v8  ;;  %vm1537_vm10 = vcmask 523264  }
 0xfb6   :  { %746 = vmatpush.bf16.msra.mxu1 %v729_v63 }
 0xfba   :  { %747 = vmatpush.bf16.msra.mxu1 %v728_v2 }
 0xfbd   :  { %5936 = vmatmul.msk.bf16.vlgmr.msra.gmra.mxu1 %vm736_vm13, %v727_v5 }
0x1021   :  { %v537_v11 = vpop.permute.xlu0 %536 }
0x1022   :  { %5935 = vmatmul.msk.bf16.vlgmr.msra.gmra.mxu0 %vm198_vm0, %v537_v11 }
0x103a   :  { %v7307_v27 = vpop.f32.mrf.mxu1 }
0x109f   :  { %v550_v13 = vpop.f32.mrf.mxu0 }
0x10a0   :  { %v554_v28 = vadd.f32 %v550_v13, %v223_v12 }
0x10a2   :  { %6486 = vtanh.f32 %v554_v28  ;;  %v555_v16 = vsub.f32 0.0, %v554_v28 }
0x10a4   :  { %v556_v17 = vmul.f32 1.442695, %v555_v16 }
0x10a6   :  { %6488 = vpow2.f32 %v556_v17 }
0x10a7   :  { %v552_v14 = vpop.f32.mrf.mxu0 }
0x10a8   :  { %v6487_v15 = vpop.eup %6486 }
0x10a9   :  { %563 = vrot.lane.b32.xlu1 %v6487_v15, %s6927_s23 }
0x10ac   :  { %v6489_v18 = vpop.eup %6488 }
0x10ad   :  { %v558_v19 = vadd.f32 1.0, %v6489_v18 }
0x10af   :  { %6490 = vrcp.f32 %v558_v19 }
0x10b5   :  { %v6491_v20 = vpop.eup %6490 }
0x10b6   :  { %v561_v23 = vmul.f32 %v6491_v20, %v527_v55 }
0x111b   :  { %v564_v21 = vpop.permute.xlu1 %563 }
0x111c   :  { %v566_v22 = vmul.f32 %v6491_v20, %v564_v21  ;;  %v137_v21 = vld [vmem:[%s8681_s29] sm:$0x1] }
0x111d   :  { %vm139_vm14 = vcmp.gt.f32.partialorder %v137_v21, 0.0 }
0x111e   :  { %568 = vrot.lane.b32.xlu2 %v566_v22, %s6928_s11  ;;  %v1022_v22 = vsel %vm139_vm14, 1, %v6926_v0 }
0x1178   :  { %v569_v36 = vpop.permute.xlu2 %568 }
0x1179   :  { %v571_v24 = vadd.f32 %v569_v36, %v561_v23  ;;  %v1024_v23 = vperm.slane %v1022_v22, 0  ;;  %v138_v36 = vld [vmem:[%s8681_s29 + $0x1] sm:$0x1]  ;;  %s8689_s29 = sld [smem:[#allocation18_spill]] }
0x117b   :  { %6492 = vtanh.f32 %v571_v24  ;;  %vm7303_vm15 = vcmp.eq.s32.totalorder %v1024_v23, 1 }
0x1181   :  { %v6493_v25 = vpop.eup %6492 }
0x1182   :  { %574 = vrot.lane.b32.xlu0 %v6493_v25, %s6927_s23 }
0x11f4   :  { %v575_v34 = vpop.permute.xlu0 %574 }
0x11f5   :  { %v577_v35 = vmul.f32 %v6491_v20, %v575_v34  ;;  %v7313_v34 = vpop.f32.mrf.mxu1 }
0x11f7   :  { %v664_v37 = vrot.slane %v577_v35, 1  ;;  %v665_v38 = vrot.slane %v577_v35, 2  ;;  %v666_v39 = vrot.slane %v577_v35, 3 }
0x11f9   :  { %v667_v40 = vsel %vm582_vm3, %v577_v35, %v664_v37  ;;  %v668_v41 = vsel %vm584_vm4, %v665_v38, %v666_v39  ;;  %v670_v42 = vsel %vm588_vm1, %v577_v35, %v664_v37  ;;  %v671_v43 = vsel %vm590_vm2, %v665_v38, %v666_v39 }
0x11fa   :  { %v669_v44 = vsel %vm586_vm6, %v667_v40, %v668_v41  ;;  %v672_v45 = vsel %vm592_vm5, %v670_v42, %v671_v43  ;;  %vm140_vm2 = vcmp.gt.f32.partialorder %v138_v36, 0.0  ;;  %vm1352_vm4 = vcmask 130048  }
0x11fb   :  { %v673_v46 = vrot.slane %v672_v45, 1  ;;  %v698_v47 = vperm.slane %v669_v44, 0  ;;  %v1023_v31 = vsel %vm140_vm2, 1, %v6926_v0  ;;  %vm1355_vm5 = vcmask 195584  }
0x11fc   :  { %v1025_v33 = vperm.slane %v1023_v31, 0 }
0x11fd   :  { %v699_v26 = vperm.slane %v673_v46, 0  ;;  %v7210_v48 = vsel %vm718_vm11, %v716_v9, %v698_v47 }
0x11fe   :  { %vm7315_vm3 = vcmp.eq.s32.totalorder %v1025_v33, 1 }
0x11ff   :  { %v7212_v49 = vsel %vm718_vm11, %v717_v10, %v699_v26 }
0x1200   :  { %v761_v50 = vpack.c.bf16 %v7212_v49, %v7210_v48 }
0x1202   :  { %768 = vrot.lane.b32.xlu1 %v761_v50, %s6928_s11 }
0x1274   :  { %v769_v51 = vpop.permute.xlu1 %768 }
0x1275   :  { %5941 = vmatmul.msk.bf16.vlgmr.msra.gmra.mxu2 %vm198_vm0, %v769_v51 }
0x12f8   :  { %v782_v53 = vpop.f32.mrf.mxu2 }
0x12f9   :  { %v7218_v54 = vadd.f32 %v6378_v52, %v782_v53 }
0x12fb   :  { %848 = vrot.lane.b32.xlu1 %v7218_v54, %s6929_s8  ;;  %788 = vrot.lane.b32.xlu0 %v7218_v54, %s6927_s23 }
0x12fc   :  { %790 = vrot.lane.b32.xlu2 %v7218_v54, %s6930_s30 }
0x1300   :  { %v784_v55 = vpop.f32.mrf.mxu2 }
0x1301   :  { %v7226_v56 = vadd.f32 %v6378_v52, %v784_v55 }
0x1303   :  { %820 = vrot.lane.b32.xlu1 %v7226_v56, %s6930_s30  ;;  %904 = vrot.lane.b32.xlu0 %v7218_v54, %s6931_s21 }
0x1304   :  { %902 = vrot.lane.b32.xlu2 %v7218_v54, %s8669_s20 }
0x130b   :  { %932 = vrot.lane.b32.xlu1 %v7226_v56, %s6931_s21  ;;  %930 = vrot.lane.b32.xlu0 %v7226_v56, %s8669_s20 }
0x130c   :  { %818 = vrot.lane.b32.xlu2 %v7226_v56, %s6927_s23 }
0x1313   :  { %874 = vrot.lane.b32.xlu1 %v7226_v56, %s6933_s1  ;;  %846 = vrot.lane.b32.xlu0 %v7218_v54, %s6933_s1 }
0x1314   :  { %876 = vrot.lane.b32.xlu2 %v7226_v56, %s6929_s8 }
0x131b   :  { %958 = vrot.lane.b32.xlu1 %v7218_v54, %s8661_s10  ;;  %988 = vrot.lane.b32.xlu0 %v7226_v56, %s6935_s15 }
0x131c   :  { %960 = vrot.lane.b32.xlu2 %v7218_v54, %s6935_s15 }
0x1324   :  { %986 = vrot.lane.b32.xlu2 %v7226_v56, %s8661_s10  ;;  %s8688_s10 = smov 16  }
0x1356   :  { %v791_v6 = vpop.permute.xlu2 %790 }
0x1357   :  { %5942 = vmatpush.xpose.msk.msra.mxu3 %vm792_vm12, %v791_v6 }
0x135e   :  { %v903_v7 = vpop.permute.xlu2 %902 }
0x1366   :  { %v819_v8 = vpop.permute.xlu2 %818 }
0x136d   :  { %v849_v9 = vpop.permute.xlu1 %848  ;;  %v789_v10 = vpop.permute.xlu0 %788 }
0x136e   :  { %v877_v11 = vpop.permute.xlu2 %876  ;;  %5943 = vmatmul.msk.f32.vlgmr.msra.gmra.mxu3 %vm792_vm12, %v789_v10  ;;  %5946 = vmatpush.xpose.msk.msrb.mxu0 %vm792_vm12, %v849_v9 }
0x136f   :  { %5948 = vmatpush.xpose.msk.msrb.mxu1 %vm792_vm12, %v877_v11 }
0x1375   :  { %v821_v12 = vpop.permute.xlu1 %820  ;;  %v905_v13 = vpop.permute.xlu0 %904 }
0x1376   :  { %v961_v28 = vpop.permute.xlu2 %960  ;;  %5944 = vmatpush.xpose.msk.msrb.mxu3 %vm792_vm12, %v821_v12  ;;  %5950 = vmatpush.xpose.msk.msrb.mxu2 %vm792_vm12, %v905_v13 }
0x1377   :  { %5954 = vmatpush.xpose.msk.msra.mxu0 %vm792_vm12, %v961_v28 }
0x1379   :  { %5945 = vmatmul.msk.f32.vlgmr.msrb.gmra.mxu3 %vm792_vm12, %v819_v8  ;;  %5951 = vmatmul.msk.f32.vlgmr.msrb.gmra.mxu2 %vm792_vm12, %v903_v7 }
0x137a   :  { %1142 = vmatpush.msra.mxu2 %v7218_v54 }
0x137d   :  { %v933_v14 = vpop.permute.xlu1 %932  ;;  %v931_v15 = vpop.permute.xlu0 %930 }
0x137e   :  { %5952 = vmatpush.xpose.msk.msra.mxu3 %vm792_vm12, %v933_v14  ;;  %v987_v20 = vpop.permute.xlu2 %986 }
0x1381   :  { %5953 = vmatmul.msk.f32.vlgmr.msra.gmra.mxu3 %vm792_vm12, %v931_v15 }
0x1382   :  { %1165 = vmatpush.msrb.mxu3 %v7226_v56 }
0x1385   :  { %v875_v16 = vpop.permute.xlu1 %874  ;;  %v847_v17 = vpop.permute.xlu0 %846 }
0x1386   :  { %5947 = vmatmul.msk.f32.vlgmr.msrb.gmra.mxu0 %vm792_vm12, %v847_v17  ;;  %5949 = vmatmul.msk.f32.vlgmr.msrb.gmra.mxu1 %vm792_vm12, %v875_v16 }
0x138d   :  { %v959_v18 = vpop.permute.xlu1 %958  ;;  %v989_v19 = vpop.permute.xlu0 %988 }
0x138e   :  { %5955 = vmatmul.msk.f32.vlgmr.msra.gmra.mxu0 %vm792_vm12, %v959_v18  ;;  %5956 = vmatpush.xpose.msk.msra.mxu1 %vm792_vm12, %v989_v19 }
0x1391   :  { %5957 = vmatmul.msk.f32.vlgmr.msra.gmra.mxu1 %vm792_vm12, %v987_v20 }
0x13f1   :  { %v814_v25 = vpop.f32.mrf.mxu3 }
0x13f2   :  { %v1014_v29 = vmul.f32 0.35355338, %v814_v25 }
0x13f4   :  { %v1028_v30 = vsel %vm7303_vm15, -1e+09, %v1014_v29 }
0x13f5   :  { %v1036_v32 = vsel %vm792_vm12, %v1028_v30, -inf }
0x13f6   :  { %1037 = vmax.xlane.f32.xlu0 %v1036_v32 }
0x13fc   :  { %v843_v37 = vpop.f32.mrf.mxu3  ;;  %v927_v38 = vpop.f32.mrf.mxu2 }
0x13fd   :  { %v1018_v39 = vmul.f32 0.35355338, %v843_v37  ;;  %v1016_v40 = vmul.f32 0.35355338, %v927_v38 }
0x13ff   :  { %v1030_v41 = vsel %vm7303_vm15, -1e+09, %v1016_v40  ;;  %v1032_v42 = vsel %vm7315_vm3, -1e+09, %v1018_v39 }
0x1400   :  { %v1042_v43 = vsel %vm792_vm12, %v1030_v41, -inf  ;;  %v1048_v44 = vsel %vm792_vm12, %v1032_v42, -inf }
0x1401   :  { %1043 = vmax.xlane.f32.xlu0 %v1042_v43  ;;  %1049 = vmax.xlane.f32.xlu1 %v1048_v44 }
0x1403   :  { %v871_v45 = vpop.f32.mrf.mxu0  ;;  %v899_v26 = vpop.f32.mrf.mxu1 }
0x1404   :  { %v1015_v46 = vmul.f32 0.35355338, %v871_v45  ;;  %v955_v47 = vpop.f32.mrf.mxu3  ;;  %v1019_v55 = vmul.f32 0.35355338, %v899_v26 }
0x1405   :  { %v1020_v50 = vmul.f32 0.35355338, %v955_v47 }
0x1406   :  { %v1029_v51 = vsel %vm7303_vm15, -1e+09, %v1015_v46  ;;  %v1033_v58 = vsel %vm7315_vm3, -1e+09, %v1019_v55 }
0x1407   :  { %v1039_v52 = vsel %vm792_vm12, %v1029_v51, -inf  ;;  %v1034_v53 = vsel %vm7315_vm3, -1e+09, %v1020_v50  ;;  %v1051_v62 = vsel %vm792_vm12, %v1033_v58, -inf }
0x1408   :  { %1040 = vmax.xlane.f32.xlu2 %v1039_v52  ;;  %v1054_v57 = vsel %vm792_vm12, %v1034_v53, -inf }
0x1409   :  { %1055 = vmax.xlane.f32.xlu1 %v1054_v57 }
0x140b   :  { %v983_v59 = vpop.f32.mrf.mxu0 }
0x140c   :  { %v1017_v63 = vmul.f32 0.35355338, %v983_v59 }
0x140e   :  { %v1011_v60 = vpop.f32.mrf.mxu1  ;;  %v1031_v3 = vsel %vm7303_vm15, -1e+09, %v1017_v63 }
0x140f   :  { %v1021_v61 = vmul.f32 0.35355338, %v1011_v60  ;;  %v1045_v4 = vsel %vm792_vm12, %v1031_v3, -inf }
0x1410   :  { %1052 = vmax.xlane.f32.xlu2 %v1051_v62 }
0x1411   :  { %v1035_v1 = vsel %vm7315_vm3, -1e+09, %v1021_v61 }
0x1412   :  { %v1057_v2 = vsel %vm792_vm12, %v1035_v1, -inf }
0x1413   :  { %1058 = vmax.xlane.f32.xlu0 %v1057_v2 }
0x1418   :  { %1046 = vmax.xlane.f32.xlu2 %v1045_v4 }
0x1469   :  { %v1038_v5 = vpop.xlane.xlu0 %1037 }
0x146a   :  { %v1060_v6 = vsub.f32 %v1028_v30, %v1038_v5 }
0x146c   :  { %v1068_v7 = vmul.f32 1.442695, %v1060_v6 }
0x146e   :  { %6494 = vpow2.f32 %v1068_v7 }
0x1474   :  { %v6495_v8 = vpop.eup %6494  ;;  %v1044_v9 = vpop.xlane.xlu0 %1043 }
0x1475   :  { %v1050_v10 = vpop.xlane.xlu1 %1049  ;;  %v1062_v11 = vsub.f32 %v1030_v41, %v1044_v9  ;;  %v1084_v12 = vsel %vm792_vm12, %v6495_v8, 0.0 }
0x1476   :  { %1085 = vadd.xlane.f32.xlu1 %v1084_v12  ;;  %v1064_v28 = vsub.f32 %v1032_v42, %v1050_v10 }
0x1477   :  { %v1072_v13 = vmul.f32 1.442695, %v1062_v11 }
0x1478   :  { %v1076_v14 = vmul.f32 1.442695, %v1064_v28 }
0x1479   :  { %6496 = vpow2.f32 %v1072_v13 }
0x147a   :  { %6498 = vpow2.f32 %v1076_v14 }
0x147b   :  { %v1041_v15 = vpop.xlane.xlu2 %1040 }
0x147c   :  { %v1061_v16 = vsub.f32 %v1029_v51, %v1041_v15  ;;  %v6224_v51 = vpack.i.bf16 %v7226_v56, %v7218_v54 }
0x147d   :  { %v1056_v17 = vpop.xlane.xlu1 %1055 }
0x147e   :  { %v1070_v18 = vmul.f32 1.442695, %v1061_v16  ;;  %v1066_v19 = vsub.f32 %v1034_v53, %v1056_v17 }
0x147f   :  { %v7341_v20 = vpop.eup %6496 }
0x1480   :  { %6500 = vpow2.f32 %v1070_v18  ;;  %v1090_v21 = vsel %vm792_vm12, %v7341_v20, 0.0  ;;  %v1080_v22 = vmul.f32 1.442695, %v1066_v19  ;;  %v6499_v25 = vpop.eup %6498 }
0x1481   :  { %1091 = vadd.xlane.f32.xlu2 %v1090_v21  ;;  %v1096_v37 = vsel %vm792_vm12, %v6499_v25, 0.0 }
0x1482   :  { %6502 = vpow2.f32 %v1080_v22 }
0x1483   :  { %v1053_v23 = vpop.xlane.xlu2 %1052 }
0x1484   :  { %v1065_v36 = vsub.f32 %v1033_v58, %v1053_v23 }
0x1486   :  { %v6501_v29 = vpop.eup %6500  ;;  %v1078_v30 = vmul.f32 1.442695, %v1065_v36  ;;  %v1059_v31 = vpop.xlane.xlu0 %1058 }
0x1487   :  { %v1067_v32 = vsub.f32 %v1035_v1, %v1059_v31  ;;  %v1087_v33 = vsel %vm792_vm12, %v6501_v29, 0.0 }
0x1488   :  { %6504 = vpow2.f32 %v1078_v30  ;;  %1088 = vadd.xlane.f32.xlu0 %v1087_v33  ;;  %v7347_v40 = vpop.eup %6502 }
0x1489   :  { %v1082_v38 = vmul.f32 1.442695, %v1067_v32  ;;  %1097 = vadd.xlane.f32.xlu2 %v1096_v37  ;;  %v1102_v45 = vsel %vm792_vm12, %v7347_v40, 0.0 }
0x148b   :  { %6506 = vpow2.f32 %v1082_v38  ;;  %v1047_v39 = vpop.xlane.xlu2 %1046  ;;  %v5968_v38 = vld [vmem:[%s8649_s12 + $0x90] sm:$0xff] }
0x148c   :  { %v1063_v41 = vsub.f32 %v1031_v3, %v1047_v39  ;;  %v5969_v39 = vld [vmem:[%s8649_s12 + $0x98] sm:$0xff] }
0x148e   :  { %v6505_v42 = vpop.eup %6504  ;;  %v1074_v43 = vmul.f32 1.442695, %v1063_v41  ;;  %v5966_v41 = vld [vmem:[%s8649_s12 + $0x80] sm:$0xff] }
0x148f   :  { %v1099_v44 = vsel %vm792_vm12, %v6505_v42, 0.0 }
0x1490   :  { %6508 = vpow2.f32 %v1074_v43  ;;  %1100 = vadd.xlane.f32.xlu1 %v1099_v44  ;;  %1103 = vadd.xlane.f32.xlu0 %v1102_v45 }
0x1491   :  { %v6507_v46 = vpop.eup %6506 }
0x1492   :  { %v1105_v47 = vsel %vm792_vm12, %v6507_v46, 0.0 }
0x1493   :  { %1106 = vadd.xlane.f32.xlu2 %v1105_v47 }
0x1496   :  { %v6509_v26 = vpop.eup %6508 }
0x1497   :  { %v1093_v50 = vsel %vm792_vm12, %v6509_v26, 0.0 }
0x1498   :  { %1094 = vadd.xlane.f32.xlu1 %v1093_v50 }
0x14a4   :  { %6225 = vrot.lane.b32.xlu0 %v6224_v51, %s6936_s25 }
0x14ab   :  { %6235 = vrot.lane.b32.xlu2 %v6224_v51, %s8671_s3 }
0x14b1   :  { %6230 = vrot.lane.b32.xlu1 %v6224_v51, %s8673_s26 }
0x14e9   :  { %v1086_v52 = vpop.xlane.xlu1 %1085 }
0x14ea   :  { %6510 = vrcp.f32 %v1086_v52 }
0x14f0   :  { %v6511_v53 = vpop.eup %6510 }
0x14f1   :  { %v1116_v55 = vmul.f32 %v6511_v53, %v6495_v8 }
0x14f3   :  { %5958 = vmatmul.msk.f32.vlgmr.msra.gmra.mxu2 %vm792_vm12, %v1116_v55 }
0x14f4   :  { %v1092_v57 = vpop.xlane.xlu2 %1091 }
0x14fb   :  { %v1089_v54 = vpop.xlane.xlu0 %1088 }
0x14fc   :  { %v1098_v58 = vpop.xlane.xlu2 %1097 }
0x14fd   :  { %6512 = vrcp.f32 %v1098_v58 }
0x14fe   :  { %6514 = vrcp.f32 %v1089_v54 }
0x1503   :  { %v6513_v59 = vpop.eup %6512  ;;  %v1101_v60 = vpop.xlane.xlu1 %1100 }
0x1504   :  { %v1120_v56 = vmul.f32 %v6513_v59, %v6499_v25  ;;  %v1104_v62 = vpop.xlane.xlu0 %1103  ;;  %6516 = vrcp.f32 %v1101_v60  ;;  %v6515_v63 = vpop.eup %6514 }
0x1505   :  { %v1117_v7 = vmul.f32 %v6515_v63, %v6501_v29 }
0x1506   :  { %5959 = vmatmul.msk.f32.vlgmr.msrb.gmra.mxu3 %vm792_vm12, %v1120_v56  ;;  %v1107_v61 = vpop.xlane.xlu2 %1106 }
0x1507   :  { %6518 = vrcp.f32 %v1107_v61  ;;  %v6380_v61 = vld [vmem:[#allocation2 + $0x13] ss:$0 sm:$0xff] }
0x150a   :  { %v6517_v2 = vpop.eup %6516 }
0x150b   :  { %v1095_v1 = vpop.xlane.xlu1 %1094  ;;  %v1121_v8 = vmul.f32 %v6517_v2, %v6505_v42  ;;  %v5967_v42 = vld [vmem:[%s8649_s12 + $0x88] sm:$0xff] }
0x150c   :  { %6520 = vrcp.f32 %v1095_v1  ;;  %v1364_v43 = vpack.c.bf16 %v5967_v42, %v5966_v41 }
0x150d   :  { %6522 = vrcp.f32 %v1092_v57  ;;  %v6519_v11 = vpop.eup %6518 }
0x150e   :  { %v6236_v3 = vpop.permute.xlu2 %6235  ;;  %6524 = vrcp.f32 %v1104_v62  ;;  %v1123_v13 = vmul.f32 %v6519_v11, %v6507_v46 }
0x150f   :  { %v6238_v9 = vunpack.i.h.bf16 %v6236_v3  ;;  %v6237_v10 = vunpack.i.l.bf16 %v6236_v3 }
0x1512   :  { %v6521_v12 = vpop.eup %6520 }
0x1513   :  { %v1119_v28 = vmul.f32 %v6521_v12, %v6509_v26  ;;  %v6523_v14 = vpop.eup %6522 }
0x1514   :  { %v6525_v15 = vpop.eup %6524  ;;  %v1118_v19 = vmul.f32 %v6523_v14, %v7341_v20 }
0x1515   :  { %v1122_v21 = vmul.f32 %v6525_v15, %v7347_v40  ;;  %v1365_v40 = vpack.c.bf16 %v5969_v39, %v5968_v38 }
0x1516   :  { %v6226_v4 = vpop.permute.xlu0 %6225 }
0x1517   :  { %v6228_v5 = vunpack.i.h.bf16 %v6226_v4  ;;  %v6227_v6 = vunpack.i.l.bf16 %v6226_v4 }
0x1519   :  { %1191 = vmatpush.msrb.mxu0 %v6227_v6  ;;  %1217 = vmatpush.msrb.mxu1 %v6228_v5 }
0x151a   :  { %5960 = vmatmul.msk.f32.vlgmr.msrb.gmra.mxu0 %vm792_vm12, %v1117_v7  ;;  %5961 = vmatmul.msk.f32.vlgmr.msrb.gmra.mxu1 %vm792_vm12, %v1121_v8 }
0x151b   :  { %1295 = vmatpush.msra.mxu0 %v6237_v10  ;;  %1321 = vmatpush.msra.mxu1 %v6238_v9 }
0x1522   :  { %5964 = vmatmul.msk.f32.vlgmr.msra.gmra.mxu0 %vm792_vm12, %v1119_v28  ;;  %5965 = vmatmul.msk.f32.vlgmr.msra.gmra.mxu1 %vm792_vm12, %v1123_v13 }
0x1523   :  { %v6231_v16 = vpop.permute.xlu1 %6230 }
0x1524   :  { %v6233_v17 = vunpack.i.h.bf16 %v6231_v16  ;;  %v6232_v18 = vunpack.i.l.bf16 %v6231_v16 }
0x1526   :  { %1243 = vmatpush.msrb.mxu2 %v6232_v18  ;;  %1269 = vmatpush.msra.mxu3 %v6233_v17 }
0x1527   :  { %5962 = vmatmul.msk.f32.vlgmr.msrb.gmra.mxu2 %vm792_vm12, %v1118_v19  ;;  %5963 = vmatmul.msk.f32.vlgmr.msra.gmra.mxu3 %vm792_vm12, %v1122_v21 }
0x1528   :  { %1380 = vmatpush.bf16.msra.mxu2 %v1365_v40 }
0x152c   :  { %1381 = vmatpush.bf16.msra.mxu2 %v1364_v43 }
0x1576   :  { %v1144_v31 = vpop.f32.mrf.mxu2 }
0x1589   :  { %v1167_v32 = vpop.f32.mrf.mxu3 }
0x1597   :  { %v1193_v22 = vpop.f32.mrf.mxu0  ;;  %v1219_v23 = vpop.f32.mrf.mxu1 }
0x1598   :  { %v6239_v36 = vpack.i.bf16 %v1219_v23, %v1193_v22 }
0x159a   :  { %6240 = vrot.lane.b32.xlu0 %v6239_v36, %s8667_s22 }
0x159f   :  { %v1297_v25 = vpop.f32.mrf.mxu0  ;;  %v1323_v29 = vpop.f32.mrf.mxu1 }
0x15a0   :  { %v6249_v30 = vpack.i.bf16 %v1323_v29, %v1297_v25 }
0x15a2   :  { %6250 = vrot.lane.b32.xlu0 %v6249_v30, %s8663_s27 }
0x15aa   :  { %v1245_v20 = vpop.f32.mrf.mxu2  ;;  %v1271_v33 = vpop.f32.mrf.mxu3 }
0x15ab   :  { %v6244_v37 = vpack.i.bf16 %v1271_v33, %v1245_v20 }
0x15ad   :  { %6245 = vrot.lane.b32.xlu1 %v6244_v37, %s8665_s24  ;;  %s6940_s24 = smov [#allocation10]  }
0x160c   :  { %v6241_v44 = vpop.permute.xlu0 %6240 }
0x160d   :  { %v6243_v45 = vunpack.i.h.bf16 %v6241_v44  ;;  %v6242_v46 = vunpack.i.l.bf16 %v6241_v44 }
0x160f   :  { %v1351_v52 = vsel %vm792_vm12, %v1167_v32, %v6243_v45  ;;  %v1350_v53 = vsel %vm792_vm12, %v1144_v31, %v6242_v46 }
0x1614   :  { %v6251_v47 = vpop.permute.xlu0 %6250 }
0x1615   :  { %v6253_v55 = vunpack.i.h.bf16 %v6251_v47  ;;  %v6252_v57 = vunpack.i.l.bf16 %v6251_v47 }
0x161f   :  { %v6246_v26 = vpop.permute.xlu1 %6245 }
0x1620   :  { %v6248_v50 = vunpack.i.h.bf16 %v6246_v26  ;;  %v6247_v51 = vunpack.i.l.bf16 %v6246_v26 }
0x1622   :  { %v1354_v58 = vsel %vm1352_vm4, %v1351_v52, %v6248_v50  ;;  %v1353_v59 = vsel %vm1352_vm4, %v1350_v53, %v6247_v51 }
0x1623   :  { %v1357_v54 = vsel %vm1355_vm5, %v1354_v58, %v6253_v55  ;;  %v1356_v56 = vsel %vm1355_vm5, %v1353_v59, %v6252_v57  ;;  %v5973_v59 = vld [vmem:[%s8650_s13 + $0xd0] sm:$0xff] }
0x1624   :  { %v1363_v60 = vpack.c.bf16 %v1357_v54, %v1356_v56  ;;  %v5974_v54 = vld [vmem:[%s8650_s13 + $0xd8] sm:$0xff] }
0x1625   :  { %v1493_v56 = vpack.c.bf16 %v5974_v54, %v5973_v59 }
0x1626   :  { %5970 = vmatmul.msk.bf16.vlgmr.msra.gmra.mxu2 %vm198_vm0, %v1363_v60  ;;  %v5971_v60 = vld [vmem:[%s8650_s13 + $0xc0] sm:$0xff] }
0x1627   :  { %1508 = vmatpush.bf16.msrb.mxu3 %v1493_v56 }
0x16a9   :  { %v1383_v62 = vpop.f32.mrf.mxu2 }
0x16aa   :  { %v1384_v63 = vadd.f32 %v6380_v61, %v1383_v62 }
0x16ac   :  { %1390 = vrot.lane.b32.xlu2 %v1384_v63, %s6930_s30  ;;  %v6381_v63 = vld [vmem:[#allocation2 + $0x15] ss:$0 sm:$0xff] }
0x16b1   :  { %v1385_v1 = vpop.f32.mrf.mxu2 }
0x16b2   :  { %v1386_v2 = vadd.f32 %v6380_v61, %v1385_v1  ;;  %v5972_v61 = vld [vmem:[%s8650_s13 + $0xc8] sm:$0xff] }
0x16b3   :  { %v1492_v62 = vpack.c.bf16 %v5972_v61, %v5971_v60 }
0x16b4   :  { %1392 = vrot.lane.b32.xlu1 %v1386_v2, %s6930_s30  ;;  %v6382_v2 = vld [vmem:[#allocation2 + $0x14] ss:$0 sm:$0xff] }
0x16b5   :  { %1509 = vmatpush.bf16.msrb.mxu3 %v1492_v62 }
0x1706   :  { %v1391_v3 = vpop.permute.xlu2 %1390 }
0x1707   :  { %v1396_v4 = vadd.f32 %v1391_v3, %v7210_v48 }
0x1709   :  { %1400 = vrot.lane.b32.xlu0 %v1396_v4, %s6928_s11 }
0x1726   :  { %v1393_v5 = vpop.permute.xlu1 %1392 }
0x1727   :  { %v1397_v6 = vadd.f32 %v1393_v5, %v7212_v49 }
0x1729   :  { %1402 = vrot.lane.b32.xlu2 %v1397_v6, %s6928_s11 }
0x177b   :  { %v1401_v7 = vpop.permute.xlu0 %1400 }
0x177c   :  { %v1406_v8 = vsel %vm198_vm0, %v1401_v7, 0.0 }
0x177d   :  { %1407 = vadd.xlane.f32.xlu1 %v1406_v8 }
0x1783   :  { %v1403_v9 = vpop.permute.xlu2 %1402 }
0x1784   :  { %v1409_v10 = vsel %vm198_vm0, %v1403_v9, 0.0  ;;  %v5982_v9 = vld [vmem:[%s8655_s18 + $0xb0] sm:$0xff] }
0x1785   :  { %1410 = vadd.xlane.f32.xlu0 %v1409_v10  ;;  %v5983_v10 = vld [vmem:[%s8655_s18 + $0xb8] sm:$0xff] }
0x17f0   :  { %v1408_v11 = vpop.xlane.xlu1 %1407 }
0x17f1   :  { %v1412_v12 = vmul.f32 0.03125, %v1408_v11  ;;  %v1531_v11 = vpack.c.bf16 %v5983_v10, %v5982_v9 }
0x17f3   :  { %v1414_v13 = vsub.f32 %v1396_v4, %v1412_v12  ;;  %1545 = vmatpush.bf16.msrb.mxu0 %v1531_v11  ;;  %v5980_v12 = vld [vmem:[%s8655_s18 + $0xa0] sm:$0xff] }
0x17f5   :  { %v1416_v28 = vmul.f32 %v1414_v13, %v1414_v13 }
0x17f7   :  { %1420 = vrot.lane.b32.xlu2 %v1416_v28, %s6928_s11 }
0x17f8   :  { %v1411_v48 = vpop.xlane.xlu0 %1410 }
0x17f9   :  { %v1413_v14 = vmul.f32 0.03125, %v1411_v48  ;;  %v5978_v48 = vld [vmem:[%s8655_s18 + $0x90] sm:$0xff] }
0x17fb   :  { %v1415_v15 = vsub.f32 %v1397_v6, %v1413_v14  ;;  %v5979_v14 = vld [vmem:[%s8655_s18 + $0x98] sm:$0xff] }
0x17fd   :  { %v1417_v49 = vmul.f32 %v1415_v15, %v1415_v15 }
0x17ff   :  { %1422 = vrot.lane.b32.xlu2 %v1417_v49, %s6928_s11  ;;  %v5976_v49 = vld [vmem:[%s8655_s18 + $0x80] sm:$0xff] }
0x1851   :  { %v1421_v16 = vpop.permute.xlu2 %1420 }
0x1852   :  { %v1426_v17 = vsel %vm198_vm0, %v1421_v16, 0.0  ;;  %v5977_v16 = vld [vmem:[%s8655_s18 + $0x88] sm:$0xff] }
0x1853   :  { %1427 = vadd.xlane.f32.xlu2 %v1426_v17  ;;  %v1528_v17 = vpack.c.bf16 %v5977_v16, %v5976_v49 }
0x1859   :  { %v1423_v18 = vpop.permute.xlu2 %1422 }
0x185a   :  { %v1429_v19 = vsel %vm198_vm0, %v1423_v18, 0.0 }
0x185b   :  { %1430 = vadd.xlane.f32.xlu1 %v1429_v19  ;;  %v6383_v19 = vld [vmem:[#allocation5 + $0x8] ss:$0 sm:$0xff] }
0x18c6   :  { %v1428_v21 = vpop.xlane.xlu2 %1427 }
0x18c7   :  { %v1432_v22 = vmul.f32 0.032258064, %v1428_v21 }
0x18c9   :  { %6526 = vrsqrt.f32 %v1432_v22  ;;  %vm1441_vm6 = vcmp.eq.f32.partialorder %v1432_v22, inf  ;;  %v1444_v40 = vand.u32 2147483648, %v1432_v22  ;;  %vm1443_vm7 = vcmp.eq.f32.partialorder %v1432_v22, 0.0 }
0x18ce   :  { %v1431_v23 = vpop.xlane.xlu1 %1430 }
0x18cf   :  { %v6527_v36 = vpop.eup %6526  ;;  %v1433_v25 = vmul.f32 0.032258064, %v1431_v23 }
0x18d0   :  { %v1435_v29 = vmul.f32 %v6527_v36, %v1432_v22 }
0x18d1   :  { %6528 = vrsqrt.f32 %v1433_v25  ;;  %vm1453_vm8 = vcmp.eq.f32.partialorder %v1433_v25, inf  ;;  %v1456_v26 = vand.u32 2147483648, %v1433_v25  ;;  %vm1455_vm9 = vcmp.eq.f32.partialorder %v1433_v25, 0.0 }
0x18d2   :  { %v1436_v30 = vmul.f32 %v6527_v36, %v1435_v29 }
0x18d4   :  { %v1437_v31 = vmul.f32 0.5, %v1436_v30  ;;  %v6384_v30 = vld [vmem:[#allocation2 + $0x12] ss:$0 sm:$0xff] }
0x18d6   :  { %v1438_v32 = vsub.f32 1.5, %v1437_v31 }
0x18d7   :  { %v6529_v20 = vpop.eup %6528 }
0x18d8   :  { %v1439_v33 = vmul.f32 %v6527_v36, %v1438_v32  ;;  %v1447_v37 = vmul.f32 %v6529_v20, %v1433_v25 }
0x18da   :  { %v1440_v38 = vmul.f32 %v1439_v33, %v1432_v22  ;;  %v1448_v39 = vmul.f32 %v6529_v20, %v1447_v37 }
0x18dc   :  { %v1442_v41 = vsel %vm1441_vm6, %v1432_v22, %v1440_v38  ;;  %v1449_v42 = vmul.f32 0.5, %v1448_v39 }
0x18dd   :  { %v1445_v43 = vsel %vm1443_vm7, %v1444_v40, %v1442_v41 }
0x18de   :  { %v1458_v44 = vadd.f32 1e-06, %v1445_v43  ;;  %v1450_v45 = vsub.f32 1.5, %v1449_v42 }
0x18e0   :  { %6530 = vrcp.f32 %v1458_v44  ;;  %v1451_v46 = vmul.f32 %v6529_v20, %v1450_v45 }
0x18e2   :  { %v1452_v47 = vmul.f32 %v1451_v46, %v1433_v25 }
0x18e4   :  { %v1454_v50 = vsel %vm1453_vm8, %v1433_v25, %v1452_v47 }
0x18e5   :  { %v1457_v51 = vsel %vm1455_vm9, %v1456_v26, %v1454_v50 }
0x18e6   :  { %v6531_v52 = vpop.eup %6530  ;;  %v1459_v53 = vadd.f32 1e-06, %v1457_v51 }
0x18e7   :  { %v1464_v55 = vmul.f32 %v6531_v52, %v1414_v13  ;;  %v5981_v13 = vld [vmem:[%s8655_s18 + $0xa8] sm:$0xff]  ;;  %v5987_v52 = vld [vmem:[%s8651_s14 + $0xb0] sm:$0xff] }
0x18e8   :  { %6532 = vrcp.f32 %v1459_v53  ;;  %v1530_v28 = vpack.c.bf16 %v5981_v13, %v5980_v12  ;;  %v5988_v53 = vld [vmem:[%s8651_s14 + $0xb8] sm:$0xff] }
0x18e9   :  { %1471 = vrot.lane.b32.xlu0 %v1464_v55, %s6928_s11  ;;  %v5985_v55 = vld [vmem:[%s8651_s14 + $0xa0] sm:$0xff] }
0x18ea   :  { %1546 = vmatpush.bf16.msrb.mxu0 %v1530_v28 }
0x18ee   :  { %v6533_v57 = vpop.eup %6532 }
0x18ef   :  { %v1465_v58 = vmul.f32 %v6533_v57, %v1415_v15  ;;  %v1529_v15 = vpack.c.bf16 %v5979_v14, %v5978_v48  ;;  %v1630_v57 = vpack.c.bf16 %v5988_v53, %v5987_v52 }
0x18f1   :  { %1473 = vrot.lane.b32.xlu1 %v1465_v58, %s6928_s11  ;;  %1547 = vmatpush.bf16.msrb.mxu0 %v1529_v15  ;;  %v5986_v58 = vld [vmem:[%s8651_s14 + $0xa8] sm:$0xff]  ;;  %s8694_s11 = smov 8  }
0x18f2   :  { %1643 = vmatpush.bf16.msrb.mxu1 %v1630_v57  ;;  %v1629_v56 = vpack.c.bf16 %v5986_v58, %v5985_v55 }
0x18f5   :  { %1548 = vmatpush.bf16.msrb.mxu0 %v1528_v17 }
0x18f6   :  { %1644 = vmatpush.bf16.msrb.mxu1 %v1629_v56 }
0x195b   :  { %v1472_v1 = vpop.permute.xlu0 %1471 }
0x195c   :  { %v1477_v3 = vmul.f32 %v6381_v63, %v1472_v1 }
0x195e   :  { %v1484_v6 = vadd.f32 %v6382_v2, %v1477_v3 }
0x1963   :  { %v1474_v4 = vpop.permute.xlu1 %1473 }
0x1964   :  { %v1478_v5 = vmul.f32 %v6381_v63, %v1474_v4 }
0x1966   :  { %v1485_v7 = vadd.f32 %v6382_v2, %v1478_v5 }
0x1968   :  { %v1491_v8 = vpack.c.bf16 %v1485_v7, %v1484_v6 }
0x196a   :  { %5975 = vmatmul.msk.bf16.vlgmr.msrb.gmra.mxu3 %vm198_vm0, %v1491_v8 }
0x19ed   :  { %v1511_v18 = vpop.f32.mrf.mxu3 }
0x19ee   :  { %v1512_v21 = vadd.f32 %v6383_v19, %v1511_v18 }
0x19f0   :  { %v1516_v36 = vmax.f32 %v1512_v21, 0.0  ;;  %v6385_v21 = vld [vmem:[#allocation2 + $0x17] ss:$0 sm:$0xff] }
0x19f5   :  { %v1513_v22 = vpop.f32.mrf.mxu3 }
0x19f6   :  { %v1514_v23 = vadd.f32 %v6383_v19, %v1513_v22 }
0x19f8   :  { %v1517_v25 = vmax.f32 %v1514_v23, 0.0 }
0x19fa   :  { %v1527_v29 = vpack.c.bf16 %v1517_v25, %v1516_v36  ;;  %v6386_v25 = vld [vmem:[#allocation2 + $0x16] ss:$0 sm:$0xff] }
0x19fc   :  { %5984 = vmatmul.msk.bf16.vlgmr.msrb.gmra.mxu0 %vm1537_vm10, %v1527_v29 }
0x1a79   :  { %v1550_v31 = vpop.f32.mrf.mxu0 }
0x1a7a   :  { %v1551_v32 = vadd.f32 %v6384_v30, %v1550_v31 }
0x1a7c   :  { %v1555_v20 = vadd.f32 %v1551_v32, %v1484_v6 }
0x1a7e   :  { %v1557_v33 = vsel %vm198_vm0, %v1555_v20, 0.0 }
0x1a7f   :  { %1558 = vadd.xlane.f32.xlu2 %v1557_v33 }
0x1a81   :  { %v1552_v37 = vpop.f32.mrf.mxu0 }
0x1a82   :  { %v1553_v38 = vadd.f32 %v6384_v30, %v1552_v37 }
0x1a84   :  { %v1556_v39 = vadd.f32 %v1553_v38, %v1485_v7 }
0x1a86   :  { %v1560_v40 = vsel %vm198_vm0, %v1556_v39, 0.0 }
0x1a87   :  { %1561 = vadd.xlane.f32.xlu0 %v1560_v40 }
0x1af2   :  { %v1559_v41 = vpop.xlane.xlu2 %1558 }
0x1af3   :  { %v1563_v42 = vmul.f32 0.03125, %v1559_v41 }
0x1af5   :  { %v1565_v43 = vsub.f32 %v1555_v20, %v1563_v42  ;;  %v6387_v20 = vld [vmem:[#allocation7 + $0x5] ss:$0 sm:$0xff] }
0x1af7   :  { %v1567_v44 = vmul.f32 %v1565_v43, %v1565_v43 }
0x1af9   :  { %v1569_v45 = vsel %vm198_vm0, %v1567_v44, 0.0 }
0x1afa   :  { %v1562_v46 = vpop.xlane.xlu0 %1561  ;;  %1570 = vadd.xlane.f32.xlu2 %v1569_v45 }
0x1afb   :  { %v1564_v47 = vmul.f32 0.03125, %v1562_v46 }
0x1afd   :  { %v1566_v26 = vsub.f32 %v1556_v39, %v1564_v47 }
0x1aff   :  { %v1568_v50 = vmul.f32 %v1566_v26, %v1566_v26 }
0x1b01   :  { %v1572_v51 = vsel %vm198_vm0, %v1568_v50, 0.0 }
0x1b02   :  { %1573 = vadd.xlane.f32.xlu1 %v1572_v51 }
0x1b6d   :  { %v1571_v59 = vpop.xlane.xlu2 %1570 }
0x1b6e   :  { %v1575_v54 = vmul.f32 0.032258064, %v1571_v59 }
0x1b70   :  { %6534 = vrsqrt.f32 %v1575_v54  ;;  %vm1584_vm11 = vcmp.eq.f32.partialorder %v1575_v54, inf  ;;  %v1587_v9 = vand.u32 2147483648, %v1575_v54  ;;  %vm1586_vm13 = vcmp.eq.f32.partialorder %v1575_v54, 0.0 }
0x1b75   :  { %v1574_v60 = vpop.xlane.xlu1 %1573 }
0x1b76   :  { %v6535_v61 = vpop.eup %6534  ;;  %v1576_v62 = vmul.f32 0.032258064, %v1574_v60 }
0x1b77   :  { %v1578_v63 = vmul.f32 %v6535_v61, %v1575_v54 }
0x1b78   :  { %6536 = vrsqrt.f32 %v1576_v62  ;;  %vm1596_vm14 = vcmp.eq.f32.partialorder %v1576_v62, inf  ;;  %v1599_v15 = vand.u32 2147483648, %v1576_v62  ;;  %vm1598_vm2 = vcmp.eq.f32.partialorder %v1576_v62, 0.0 }
0x1b79   :  { %v1579_v1 = vmul.f32 %v6535_v61, %v1578_v63 }
0x1b7b   :  { %v1580_v2 = vmul.f32 0.5, %v1579_v1 }
0x1b7d   :  { %v1581_v3 = vsub.f32 1.5, %v1580_v2 }
0x1b7e   :  { %v6537_v4 = vpop.eup %6536 }
0x1b7f   :  { %v1582_v5 = vmul.f32 %v6535_v61, %v1581_v3  ;;  %v1590_v6 = vmul.f32 %v6537_v4, %v1576_v62 }
0x1b81   :  { %v1583_v7 = vmul.f32 %v1582_v5, %v1575_v54  ;;  %v1591_v8 = vmul.f32 %v6537_v4, %v1590_v6 }
0x1b83   :  { %v1585_v10 = vsel %vm1584_vm11, %v1575_v54, %v1583_v7  ;;  %v1592_v11 = vmul.f32 0.5, %v1591_v8 }
0x1b84   :  { %v1588_v12 = vsel %vm1586_vm13, %v1587_v9, %v1585_v10 }
0x1b85   :  { %v1593_v13 = vsub.f32 1.5, %v1592_v11  ;;  %v1601_v28 = vadd.f32 1e-06, %v1588_v12 }
0x1b87   :  { %v1594_v48 = vmul.f32 %v6537_v4, %v1593_v13  ;;  %6538 = vrcp.f32 %v1601_v28 }
0x1b89   :  { %v1595_v14 = vmul.f32 %v1594_v48, %v1576_v62 }
0x1b8b   :  { %v1597_v49 = vsel %vm1596_vm14, %v1576_v62, %v1595_v14 }
0x1b8c   :  { %v1600_v16 = vsel %vm1598_vm2, %v1599_v15, %v1597_v49 }
0x1b8d   :  { %v1602_v17 = vadd.f32 1e-06, %v1600_v16  ;;  %v6539_v18 = vpop.eup %6538 }
0x1b8e   :  { %v1607_v19 = vmul.f32 %v6539_v18, %v1565_v43 }
0x1b8f   :  { %6540 = vrcp.f32 %v1602_v17 }
0x1b90   :  { %v1612_v36 = vmul.f32 %v6385_v21, %v1607_v19 }
0x1b92   :  { %v7459_v30 = vadd.f32 %v6386_v25, %v1612_v36 }
0x1b95   :  { %v6541_v22 = vpop.eup %6540 }
0x1b96   :  { %v1608_v23 = vmul.f32 %v6541_v22, %v1566_v26 }
0x1b98   :  { %v1613_v29 = vmul.f32 %v6385_v21, %v1608_v23 }
0x1b9a   :  { %v7461_v31 = vadd.f32 %v6386_v25, %v1613_v29 }
0x1b9c   :  { %v1628_v32 = vpack.c.bf16 %v7461_v31, %v7459_v30 }
0x1b9e   :  { %5989 = vmatmul.msk.bf16.vlgmr.msrb.gmra.mxu1 %vm198_vm0, %v1628_v32 }
0x1c1b   :  { %v1646_v33 = vpop.f32.mrf.mxu1 }
0x1c1c   :  { %v7466_v37 = vadd.f32 %v6387_v20, %v1646_v33 }
0x1c1e   :  { %1654 = vrot.lane.b32.xlu2 %v7466_v37, %s6930_s30 }
0x1c23   :  { %v1648_v38 = vpop.f32.mrf.mxu1 }
0x1c24   :  { %v7470_v39 = vadd.f32 %v6387_v20, %v1648_v38 }
0x1c26   :  { %1681 = vrot.lane.b32.xlu1 %v7470_v39, %s6927_s23  ;;  %1683 = vrot.lane.b32.xlu0 %v7470_v39, %s6930_s30  ;;  %v6254_v49 = vpack.i.bf16 %v7466_v37, %v7470_v39 }
0x1c27   :  { %1652 = vrot.lane.b32.xlu2 %v7466_v37, %s6927_s23 }
0x1c2e   :  { %1711 = vrot.lane.b32.xlu1 %v7466_v37, %s6929_s8  ;;  %1767 = vrot.lane.b32.xlu0 %v7466_v37, %s6931_s21 }
0x1c2f   :  { %1739 = vrot.lane.b32.xlu2 %v7470_v39, %s6929_s8 }
0x1c36   :  { %1823 = vrot.lane.b32.xlu1 %v7466_v37, %s6935_s15  ;;  %1765 = vrot.lane.b32.xlu0 %v7466_v37, %s8669_s20 }
0x1c37   :  { %1737 = vrot.lane.b32.xlu2 %v7470_v39, %s6933_s1 }
0x1c3e   :  { %1709 = vrot.lane.b32.xlu0 %v7466_v37, %s6933_s1 }
0x1c3f   :  { %1851 = vrot.lane.b32.xlu2 %v7470_v39, %s6935_s15 }
0x1c46   :  { %1793 = vrot.lane.b32.xlu0 %v7470_v39, %s8669_s20 }
0x1c47   :  { %1849 = vrot.lane.b32.xlu2 %v7470_v39, %s8686_s16 }
0x1c4f   :  { %1795 = vrot.lane.b32.xlu2 %v7470_v39, %s6931_s21 }
0x1c57   :  { %1821 = vrot.lane.b32.xlu2 %v7466_v37, %s8686_s16 }
0x1c78   :  { %v1655_v40 = vpop.permute.xlu2 %1654 }
0x1c79   :  { %5990 = vmatpush.xpose.msk.msrb.mxu2 %vm792_vm12, %v1655_v40 }
0x1c81   :  { %v1653_v41 = vpop.permute.xlu2 %1652 }
0x1c82   :  { %5991 = vmatmul.msk.f32.vlgmr.msrb.gmra.mxu2 %vm792_vm12, %v1653_v41 }
0x1c89   :  { %v1740_v42 = vpop.permute.xlu2 %1739 }
0x1c8a   :  { %5996 = vmatpush.xpose.msk.msra.mxu2 %vm792_vm12, %v1740_v42 }
0x1c91   :  { %v1738_v43 = vpop.permute.xlu2 %1737 }
0x1c92   :  { %5997 = vmatmul.msk.f32.vlgmr.msra.gmra.mxu2 %vm792_vm12, %v1738_v43 }
0x1c98   :  { %v1682_v44 = vpop.permute.xlu1 %1681  ;;  %v1684_v45 = vpop.permute.xlu0 %1683 }
0x1c99   :  { %v1852_v46 = vpop.permute.xlu2 %1851  ;;  %5992 = vmatpush.xpose.msk.msra.mxu3 %vm792_vm12, %v1684_v45 }
0x1c9a   :  { %6004 = vmatpush.xpose.msk.msrb.mxu2 %vm792_vm12, %v1852_v46 }
0x1c9c   :  { %5993 = vmatmul.msk.f32.vlgmr.msra.gmra.mxu3 %vm792_vm12, %v1682_v44 }
0x1ca0   :  { %v1712_v47 = vpop.permute.xlu1 %1711  ;;  %v1768_v26 = vpop.permute.xlu0 %1767 }
0x1ca1   :  { %v1850_v50 = vpop.permute.xlu2 %1849  ;;  %5994 = vmatpush.xpose.msk.msra.mxu1 %vm792_vm12, %v1712_v47  ;;  %5998 = vmatpush.xpose.msk.msrb.mxu3 %vm792_vm12, %v1768_v26 }
0x1ca2   :  { %6005 = vmatmul.msk.f32.vlgmr.msrb.gmra.mxu2 %vm792_vm12, %v1850_v50 }
0x1ca5   :  { %1999 = vmatpush.msra.mxu3 %v7466_v37 }
0x1ca8   :  { %v1824_v51 = vpop.permute.xlu1 %1823  ;;  %v1766_v52 = vpop.permute.xlu0 %1765 }
0x1ca9   :  { %v1796_v53 = vpop.permute.xlu2 %1795  ;;  %5999 = vmatmul.msk.f32.vlgmr.msrb.gmra.mxu3 %vm792_vm12, %v1766_v52  ;;  %6002 = vmatpush.xpose.msk.msrb.mxu1 %vm792_vm12, %v1824_v51 }
0x1caa   :  { %6000 = vmatpush.xpose.msk.msra.mxu0 %vm792_vm12, %v1796_v53 }
0x1cae   :  { %2022 = vmatpush.msrb.mxu0 %v7470_v39 }
0x1cb0   :  { %v1710_v55 = vpop.permute.xlu0 %1709 }
0x1cb1   :  { %5995 = vmatmul.msk.f32.vlgmr.msra.gmra.mxu1 %vm792_vm12, %v1710_v55  ;;  %v1822_v57 = vpop.permute.xlu2 %1821 }
0x1cb8   :  { %v1794_v58 = vpop.permute.xlu0 %1793 }
0x1cb9   :  { %6001 = vmatmul.msk.f32.vlgmr.msra.gmra.mxu0 %vm792_vm12, %v1794_v58  ;;  %6003 = vmatmul.msk.f32.vlgmr.msrb.gmra.mxu1 %vm792_vm12, %v1822_v57 }
0x1d05   :  { %v1677_v59 = vpop.f32.mrf.mxu2 }
0x1d06   :  { %v1877_v7 = vmul.f32 0.35355338, %v1677_v59 }
0x1d08   :  { %v1885_v10 = vsel %vm7303_vm15, -1e+09, %v1877_v7 }
0x1d09   :  { %v1893_v28 = vsel %vm792_vm12, %v1885_v10, -inf }
0x1d15   :  { %v1762_v54 = vpop.f32.mrf.mxu2 }
0x1d16   :  { %v1882_v56 = vmul.f32 0.35355338, %v1762_v54 }
0x1d18   :  { %v7522_v60 = vsel %vm7315_vm3, -1e+09, %v1882_v56 }
0x1d19   :  { %v1908_v61 = vsel %vm792_vm12, %v7522_v60, -inf }
0x1d1a   :  { %1909 = vmax.xlane.f32.xlu0 %v1908_v61 }
0x1d1f   :  { %v1706_v11 = vpop.f32.mrf.mxu3 }
0x1d20   :  { %v1881_v14 = vmul.f32 0.35355338, %v1706_v11 }
0x1d22   :  { %v1889_v17 = vsel %vm7315_vm3, -1e+09, %v1881_v14 }
0x1d23   :  { %v1905_v21 = vsel %vm792_vm12, %v1889_v17, -inf }
0x1d25   :  { %v1874_v62 = vpop.f32.mrf.mxu2 }
0x1d26   :  { %v1884_v63 = vmul.f32 0.35355338, %v1874_v62 }
0x1d28   :  { %v7528_v1 = vsel %vm7315_vm3, -1e+09, %v1884_v63 }
0x1d29   :  { %v1914_v2 = vsel %vm792_vm12, %v7528_v1, -inf }
0x1d2a   :  { %1915 = vmax.xlane.f32.xlu0 %v1914_v2 }
0x1d2c   :  { %v1790_v18 = vpop.f32.mrf.mxu3 }
0x1d2d   :  { %v1879_v22 = vmul.f32 0.35355338, %v1790_v18 }
0x1d2e   :  { %v1734_v3 = vpop.f32.mrf.mxu1 }
0x1d2f   :  { %v1878_v4 = vmul.f32 0.35355338, %v1734_v3  ;;  %v1887_v23 = vsel %vm7303_vm15, -1e+09, %v1879_v22 }
0x1d30   :  { %v1899_v36 = vsel %vm792_vm12, %v1887_v23, -inf }
0x1d31   :  { %v1886_v5 = vsel %vm7303_vm15, -1e+09, %v1878_v4 }
0x1d32   :  { %v1896_v6 = vsel %vm792_vm12, %v1886_v5, -inf }
0x1d33   :  { %1897 = vmax.xlane.f32.xlu1 %v1896_v6 }
0x1d36   :  { %v1846_v8 = vpop.f32.mrf.mxu1  ;;  %v1818_v12 = vpop.f32.mrf.mxu0 }
0x1d37   :  { %v1880_v9 = vmul.f32 0.35355338, %v1846_v8  ;;  %v1883_v15 = vmul.f32 0.35355338, %v1818_v12 }
0x1d39   :  { %v1888_v13 = vsel %vm7303_vm15, -1e+09, %v1880_v9  ;;  %v1891_v16 = vsel %vm7315_vm3, -1e+09, %v1883_v15 }
0x1d3a   :  { %v1902_v48 = vsel %vm792_vm12, %v1888_v13, -inf  ;;  %v1911_v19 = vsel %vm792_vm12, %v1891_v16, -inf }
0x1d3b   :  { %1894 = vmax.xlane.f32.xlu1 %v1893_v28  ;;  %1903 = vmax.xlane.f32.xlu2 %v1902_v48 }
0x1d3e   :  { %6255 = vrot.lane.b32.xlu0 %v6254_v49, %s6936_s25 }
0x1d43   :  { %1912 = vmax.xlane.f32.xlu1 %v1911_v19  ;;  %1906 = vmax.xlane.f32.xlu2 %v1905_v21 }
0x1d4b   :  { %1900 = vmax.xlane.f32.xlu2 %v1899_v36 }
0x1d8d   :  { %v1910_v25 = vpop.xlane.xlu0 %1909 }
0x1d8e   :  { %v1922_v58 = vsub.f32 %v7522_v60, %v1910_v25  ;;  %v2445_v25 = vld [vmem:[%s8651_s14 + $0x10] sm:$0xff] }
0x1d90   :  { %v1935_v2 = vmul.f32 1.442695, %v1922_v58 }
0x1d9d   :  { %v1916_v20 = vpop.xlane.xlu0 %1915 }
0x1d9e   :  { %v1924_v61 = vsub.f32 %v7528_v1, %v1916_v20 }
0x1da0   :  { %v1939_v3 = vmul.f32 1.442695, %v1924_v61 }
0x1da6   :  { %v1898_v29 = vpop.xlane.xlu1 %1897 }
0x1da7   :  { %v1918_v32 = vsub.f32 %v1886_v5, %v1898_v29  ;;  %v2446_v29 = vld [vmem:[%s8651_s14 + $0x18] sm:$0xff] }
0x1da9   :  { %v1927_v33 = vmul.f32 1.442695, %v1918_v32 }
0x1dab   :  { %6542 = vpow2.f32 %v1927_v33 }
0x1dae   :  { %v1895_v38 = vpop.xlane.xlu1 %1894  ;;  %v1904_v40 = vpop.xlane.xlu2 %1903 }
0x1daf   :  { %v1917_v41 = vsub.f32 %v1885_v10, %v1895_v38  ;;  %v1920_v42 = vsub.f32 %v1888_v13, %v1904_v40  ;;  %v2450_v38 = vpack.c.bf16 %v2446_v29, %v2445_v25 }
0x1db0   :  { %v6256_v43 = vpop.permute.xlu0 %6255 }
0x1db1   :  { %v6543_v44 = vpop.eup %6542  ;;  %v1925_v45 = vmul.f32 1.442695, %v1917_v41  ;;  %v1931_v46 = vmul.f32 1.442695, %v1920_v42  ;;  %v6258_v47 = vunpack.i.h.bf16 %v6256_v43  ;;  %v6257_v26 = vunpack.i.l.bf16 %v6256_v43  ;;  %v2443_v43 = vld [vmem:[%s8651_s14] sm:$0xff] }
0x1db2   :  { %v1944_v50 = vsel %vm792_vm12, %v6543_v44, 0.0 }
0x1db3   :  { %6544 = vpow2.f32 %v1925_v45  ;;  %2048 = vmatpush.msra.mxu1 %v6258_v47  ;;  %2074 = vmatpush.msra.mxu2 %v6257_v26 }
0x1db4   :  { %6546 = vpow2.f32 %v1931_v46  ;;  %1945 = vadd.xlane.f32.xlu0 %v1944_v50  ;;  %v6379_v50 = vld [vmem:[#allocation2 + $0x1e] ss:$0 sm:$0xff] }
0x1db6   :  { %v1913_v51 = vpop.xlane.xlu1 %1912  ;;  %v1907_v52 = vpop.xlane.xlu2 %1906 }
0x1db7   :  { %v1923_v53 = vsub.f32 %v1891_v16, %v1913_v51  ;;  %v1921_v55 = vsub.f32 %v1889_v17, %v1907_v52 }
0x1db9   :  { %v6545_v57 = vpop.eup %6544  ;;  %v1937_v59 = vmul.f32 1.442695, %v1923_v53  ;;  %v1933_v54 = vmul.f32 1.442695, %v1921_v55  ;;  %v7598_v53 = vadd.f32 %v6379_v50, %v7307_v27  ;;  %v7601_v55 = vadd.f32 %v6379_v50, %v7313_v34 }
0x1dba   :  { %v7555_v56 = vpop.eup %6546  ;;  %v1941_v62 = vsel %vm792_vm12, %v6545_v57, 0.0 }
0x1dbb   :  { %6548 = vpow2.f32 %v1937_v59  ;;  %v1950_v63 = vsel %vm792_vm12, %v7555_v56, 0.0 }
0x1dbc   :  { %6550 = vpow2.f32 %v1933_v54  ;;  %1942 = vadd.xlane.f32.xlu0 %v1941_v62  ;;  %1951 = vadd.xlane.f32.xlu2 %v1950_v63 }
0x1dbd   :  { %6552 = vpow2.f32 %v1935_v2 }
0x1dbe   :  { %v1901_v4 = vpop.xlane.xlu2 %1900  ;;  %6554 = vpow2.f32 %v1939_v3 }
0x1dbf   :  { %v1919_v60 = vsub.f32 %v1887_v23, %v1901_v4 }
0x1dc1   :  { %v6549_v5 = vpop.eup %6548  ;;  %v1929_v8 = vmul.f32 1.442695, %v1919_v60 }
0x1dc2   :  { %v6551_v6 = vpop.eup %6550  ;;  %v1959_v7 = vsel %vm792_vm12, %v6549_v5, 0.0 }
0x1dc3   :  { %1960 = vadd.xlane.f32.xlu1 %v1959_v7  ;;  %v1953_v1 = vsel %vm792_vm12, %v6551_v6, 0.0  ;;  %v6553_v9 = vpop.eup %6552  ;;  %6556 = vpow2.f32 %v1929_v8  ;;  %v6017_v7 = vld [vmem:[%s8649_s12 + $0xb8] sm:$0xff]  ;;  %v6014_v8 = vld [vmem:[%s8649_s12 + $0xa0] sm:$0xff] }
0x1dc4   :  { %1954 = vadd.xlane.f32.xlu2 %v1953_v1  ;;  %v6555_v10 = vpop.eup %6554  ;;  %v1956_v11 = vsel %vm792_vm12, %v6553_v9, 0.0 }
0x1dc5   :  { %v1962_v12 = vsel %vm792_vm12, %v6555_v10, 0.0 }
0x1dc9   :  { %v7565_v13 = vpop.eup %6556 }
0x1dca   :  { %v1947_v28 = vsel %vm792_vm12, %v7565_v13, 0.0 }
0x1dcb   :  { %1957 = vadd.xlane.f32.xlu1 %v1956_v11 }
0x1dcc   :  { %1963 = vadd.xlane.f32.xlu2 %v1962_v12 }
0x1dd0   :  { %2105 = vrot.lane.b32.xlu0 %v7470_v39, %s8673_s26 }
0x1dd3   :  { %1948 = vadd.xlane.f32.xlu1 %v1947_v28 }
0x1dd8   :  { %2131 = vrot.lane.b32.xlu0 %v7466_v37, %s8671_s3 }
0x1de4   :  { %2157 = vrot.lane.b32.xlu2 %v7470_v39, %s8671_s3 }
0x1dec   :  { %2079 = vrot.lane.b32.xlu1 %v7466_v37, %s8673_s26 }
0x1e27   :  { %v1946_v48 = vpop.xlane.xlu0 %1945 }
0x1e28   :  { %6558 = vrcp.f32 %v1946_v48 }
0x1e2e   :  { %v6559_v14 = vpop.eup %6558 }
0x1e2f   :  { %v1974_v15 = vmul.f32 %v6559_v14, %v6543_v44  ;;  %v1943_v49 = vpop.xlane.xlu0 %1942  ;;  %v1952_v16 = vpop.xlane.xlu2 %1951  ;;  %v2444_v44 = vld [vmem:[%s8651_s14 + $0x8] sm:$0xff] }
0x1e30   :  { %6560 = vrcp.f32 %v1943_v49  ;;  %v2449_v47 = vpack.c.bf16 %v2444_v44, %v2443_v43 }
0x1e31   :  { %6008 = vmatmul.msk.f32.vlgmr.msra.gmra.mxu1 %vm792_vm12, %v1974_v15 }
0x1e36   :  { %v6561_v17 = vpop.eup %6560  ;;  %v1961_v18 = vpop.xlane.xlu1 %1960 }
0x1e37   :  { %v1973_v19 = vmul.f32 %v6561_v17, %v6545_v57  ;;  %v1955_v21 = vpop.xlane.xlu2 %1954  ;;  %v2448_v57 = vpack.c.bf16 %v7601_v55, %v7598_v53 }
0x1e38   :  { %6562 = vrcp.f32 %v1955_v21 }
0x1e39   :  { %6006 = vmatmul.msk.f32.vlgmr.msra.gmra.mxu3 %vm792_vm12, %v1973_v19  ;;  %6564 = vrcp.f32 %v1961_v18 }
0x1e3e   :  { %v6563_v39 = vpop.eup %6562  ;;  %v1958_v22 = vpop.xlane.xlu1 %1957 }
0x1e3f   :  { %v1977_v37 = vmul.f32 %v6563_v39, %v6551_v6  ;;  %6566 = vrcp.f32 %v1958_v22  ;;  %v1964_v23 = vpop.xlane.xlu2 %1963  ;;  %v6565_v32 = vpop.eup %6564  ;;  %v6016_v6 = vld [vmem:[%s8649_s12 + $0xb0] sm:$0xff] }
0x1e40   :  { %6568 = vrcp.f32 %v1952_v16  ;;  %v1979_v41 = vmul.f32 %v6565_v32, %v6549_v5  ;;  %v2220_v1 = vpack.c.bf16 %v6017_v7, %v6016_v6 }
0x1e41   :  { %6007 = vmatmul.msk.f32.vlgmr.msrb.gmra.mxu0 %vm792_vm12, %v1977_v37  ;;  %6570 = vrcp.f32 %v1964_v23  ;;  %v6389_v23 = vld [vmem:[#allocation2 + $0x19] ss:$0 sm:$0xff] }
0x1e42   :  { %v2106_v36 = vpop.permute.xlu0 %2105 }
0x1e43   :  { %2126 = vmatpush.msra.mxu0 %v2106_v36 }
0x1e45   :  { %v6567_v20 = vpop.eup %6566 }
0x1e46   :  { %v1978_v33 = vmul.f32 %v6567_v20, %v6553_v9  ;;  %v6569_v40 = vpop.eup %6568  ;;  %v1949_v52 = vpop.xlane.xlu1 %1948  ;;  %v6015_v9 = vld [vmem:[%s8649_s12 + $0xa8] sm:$0xff] }
0x1e47   :  { %v2158_v42 = vpop.permute.xlu2 %2157  ;;  %v1976_v45 = vmul.f32 %v6569_v40, %v7555_v56  ;;  %v6571_v26 = vpop.eup %6570  ;;  %6572 = vrcp.f32 %v1949_v52 }
0x1e48   :  { %2178 = vmatpush.msrb.mxu2 %v2158_v42  ;;  %v1980_v51 = vmul.f32 %v6571_v26, %v6555_v10  ;;  %v2219_v10 = vpack.c.bf16 %v6015_v9, %v6014_v8  ;;  %v6388_v42 = vld [vmem:[#allocation7] ss:$0 sm:$0xff]  ;;  %v6031_v8 = vld [vmem:[%s8655_s18 + $0xf8] sm:$0xff] }
0x1e49   :  { %6009 = vmatmul.msk.f32.vlgmr.msra.gmra.mxu2 %vm792_vm12, %v1978_v33  ;;  %6011 = vmatmul.msk.f32.vlgmr.msra.gmra.mxu0 %vm792_vm12, %v1979_v41 }
0x1e4a   :  { %v2132_v46 = vpop.permute.xlu0 %2131  ;;  %2463 = vmatpush.bf16.msra.mxu2 %v2450_v38 }
0x1e4b   :  { %2152 = vmatpush.msrb.mxu1 %v2132_v46 }
0x1e4c   :  { %6012 = vmatmul.msk.f32.vlgmr.msrb.gmra.mxu1 %vm792_vm12, %v1976_v45 }
0x1e4d   :  { %v6573_v58 = vpop.eup %6572 }
0x1e4e   :  { %2464 = vmatpush.bf16.msra.mxu2 %v2449_v47  ;;  %v1975_v59 = vmul.f32 %v6573_v58, %v7565_v13 }
0x1e51   :  { %6013 = vmatmul.msk.f32.vlgmr.msrb.gmra.mxu2 %vm792_vm12, %v1980_v51 }
0x1e59   :  { %6033 = vmatmul.msk.bf16.vlgmr.msra.gmra.mxu2 %vm198_vm0, %v2448_v57 }
0x1e5e   :  { %v2080_v54 = vpop.permute.xlu1 %2079 }
0x1e5f   :  { %2100 = vmatpush.msrb.mxu3 %v2080_v54 }
0x1e60   :  { %6010 = vmatmul.msk.f32.vlgmr.msrb.gmra.mxu3 %vm792_vm12, %v1975_v59 }
0x1e61   :  { %2235 = vmatpush.bf16.msra.mxu3 %v2220_v1  ;;  %v6030_v1 = vld [vmem:[%s8655_s18 + $0xf0] sm:$0xff] }
0x1e62   :  { %v2354_v9 = vpack.c.bf16 %v6031_v8, %v6030_v1  ;;  %v142_v1 = vld [vmem:[%s8689_s29 + $0x1] sm:$0x1] }
0x1e63   :  { %vm144_vm13 = vcmp.gt.f32.partialorder %v142_v1, 0.0 }
0x1e64   :  { %2367 = vmatpush.bf16.msra.mxu1 %v2354_v9 }
0x1e65   :  { %2236 = vmatpush.bf16.msra.mxu3 %v2219_v10 }
0x1eae   :  { %v2050_v56 = vpop.f32.mrf.mxu1 }
0x1ebc   :  { %v2001_v3 = vpop.f32.mrf.mxu3 }
0x1ebe   :  { %v2024_v2 = vpop.f32.mrf.mxu0 }
0x1ec6   :  { %v2128_v4 = vpop.f32.mrf.mxu0 }
0x1ec9   :  { %v2154_v34 = vpop.f32.mrf.mxu1 }
0x1ecc   :  { %v2076_v61 = vpop.f32.mrf.mxu2 }
0x1ecd   :  { %v6259_v27 = vpack.i.bf16 %v2076_v61, %v2050_v56 }
0x1ecf   :  { %6260 = vrot.lane.b32.xlu0 %v6259_v27, %s8667_s22  ;;  %v6021_v27 = vld [vmem:[%s8650_s13 + $0xf0] sm:$0xff] }
0x1ed4   :  { %v2180_v62 = vpop.f32.mrf.mxu2 }
0x1ed5   :  { %v6269_v63 = vpack.i.bf16 %v2180_v62, %v2154_v34  ;;  %v6022_v34 = vld [vmem:[%s8650_s13 + $0xf8] sm:$0xff] }
0x1ed6   :  { %v2316_v62 = vpack.c.bf16 %v6022_v34, %v6021_v27  ;;  %v6391_v27 = vld [vmem:[#allocation2 + $0x1a] ss:$0 sm:$0xff] }
0x1ed7   :  { %6270 = vrot.lane.b32.xlu1 %v6269_v63, %s8687_s9  ;;  %v6019_v63 = vld [vmem:[%s8650_s13 + $0xe0] sm:$0xff] }
0x1ed8   :  { %2331 = vmatpush.bf16.msrb.mxu0 %v2316_v62 }
0x1edc   :  { %v2466_v41 = vpop.f32.mrf.mxu2 }
0x1edd   :  { %v7634_v43 = vadd.f32 %v6388_v42, %v2466_v41 }
0x1ee3   :  { %v2102_v5 = vpop.f32.mrf.mxu3 }
0x1ee4   :  { %v6264_v60 = vpack.i.bf16 %v2128_v4, %v2102_v5  ;;  %v2468_v44 = vpop.f32.mrf.mxu2 }
0x1ee5   :  { %v7638_v45 = vadd.f32 %v6388_v42, %v2468_v44 }
0x1ee6   :  { %6265 = vrot.lane.b32.xlu2 %v6264_v60, %s8688_s10 }
0x1f40   :  { %v6266_v28 = vpop.permute.xlu2 %6265 }
0x1f41   :  { %v6261_v11 = vpop.permute.xlu0 %6260  ;;  %v6268_v48 = vunpack.i.h.bf16 %v6266_v28  ;;  %v6267_v14 = vunpack.i.l.bf16 %v6266_v28  ;;  %v6029_v28 = vld [vmem:[%s8655_s18 + $0xe8] sm:$0xff] }
0x1f42   :  { %v6263_v12 = vunpack.i.h.bf16 %v6261_v11  ;;  %v6262_v13 = vunpack.i.l.bf16 %v6261_v11 }
0x1f44   :  { %v2207_v15 = vsel %vm792_vm12, %v2001_v3, %v6262_v13  ;;  %v2208_v49 = vsel %vm792_vm12, %v2024_v2, %v6263_v12  ;;  %v6020_v2 = vld [vmem:[%s8650_s13 + $0xe8] sm:$0xff]  ;;  %v6028_v13 = vld [vmem:[%s8655_s18 + $0xe0] sm:$0xff] }
0x1f45   :  { %v2210_v19 = vsel %vm1352_vm4, %v2208_v49, %v6268_v48  ;;  %v2209_v21 = vsel %vm1352_vm4, %v2207_v15, %v6267_v14  ;;  %v2315_v3 = vpack.c.bf16 %v6020_v2, %v6019_v63  ;;  %v2353_v15 = vpack.c.bf16 %v6029_v28, %v6028_v13 }
0x1f47   :  { %2332 = vmatpush.bf16.msrb.mxu0 %v2315_v3  ;;  %2368 = vmatpush.bf16.msra.mxu1 %v2353_v15 }
0x1f49   :  { %v6271_v16 = vpop.permute.xlu1 %6270 }
0x1f4a   :  { %v6273_v17 = vunpack.i.h.bf16 %v6271_v16  ;;  %v6272_v18 = vunpack.i.l.bf16 %v6271_v16 }
0x1f4c   :  { %v2211_v39 = vsel %vm1355_vm5, %v2209_v21, %v6272_v18  ;;  %v2212_v22 = vsel %vm1355_vm5, %v2210_v19, %v6273_v17  ;;  %v6026_v17 = vld [vmem:[%s8655_s18 + $0xd0] sm:$0xff]  ;;  %v6027_v18 = vld [vmem:[%s8655_s18 + $0xd8] sm:$0xff] }
0x1f4d   :  { %v2218_v37 = vpack.c.bf16 %v2212_v22, %v2211_v39  ;;  %v2352_v21 = vpack.c.bf16 %v6027_v18, %v6026_v17 }
0x1f4f   :  { %6018 = vmatmul.msk.bf16.vlgmr.msra.gmra.mxu3 %vm198_vm0, %v2218_v37  ;;  %2369 = vmatpush.bf16.msra.mxu1 %v2352_v21 }
0x1fd2   :  { %v2238_v36 = vpop.f32.mrf.mxu3 }
0x1fd3   :  { %v2239_v25 = vadd.f32 %v6389_v23, %v2238_v36 }
0x1fd5   :  { %v2243_v29 = vadd.f32 %v2239_v25, %v7459_v30 }
0x1fd7   :  { %v2245_v32 = vsel %vm198_vm0, %v2243_v29, 0.0 }
0x1fd8   :  { %2246 = vadd.xlane.f32.xlu0 %v2245_v32  ;;  %v6025_v32 = vld [vmem:[%s8655_s18 + $0xc8] sm:$0xff] }
0x1fda   :  { %v2240_v20 = vpop.f32.mrf.mxu3 }
0x1fdb   :  { %v2241_v33 = vadd.f32 %v6389_v23, %v2240_v20 }
0x1fdd   :  { %v2244_v38 = vadd.f32 %v2241_v33, %v7461_v31 }
0x1fdf   :  { %v2248_v40 = vsel %vm198_vm0, %v2244_v38, 0.0 }
0x1fe0   :  { %2249 = vadd.xlane.f32.xlu2 %v2248_v40 }
0x1ff8   :  { %2474 = vrot.lane.b32.xlu2 %v7634_v43, %s6930_s30 }
0x2000   :  { %2559 = vrot.lane.b32.xlu2 %v7638_v45, %s6929_s8 }
0x2008   :  { %2643 = vrot.lane.b32.xlu2 %v7634_v43, %s6935_s15 }
0x2010   :  { %2641 = vrot.lane.b32.xlu2 %v7634_v43, %s8686_s16 }
0x2018   :  { %2587 = vrot.lane.b32.xlu2 %v7634_v43, %s6931_s21 }
0x2020   :  { %2613 = vrot.lane.b32.xlu2 %v7638_v45, %s8669_s20 }
0x204b   :  { %v2247_v30 = vpop.xlane.xlu0 %2246 }
0x204c   :  { %v2251_v31 = vmul.f32 0.03125, %v2247_v30 }
0x204e   :  { %v7650_v46 = vsub.f32 %v2243_v29, %v2251_v31  ;;  %v6024_v29 = vld [vmem:[%s8655_s18 + $0xc0] sm:$0xff] }
0x204f   :  { %v2351_v20 = vpack.c.bf16 %v6025_v32, %v6024_v29 }
0x2050   :  { %v2255_v47 = vmul.f32 %v7650_v46, %v7650_v46 }
0x2051   :  { %2370 = vmatpush.bf16.msra.mxu1 %v2351_v20 }
0x2052   :  { %v2257_v26 = vsel %vm198_vm0, %v2255_v47, 0.0 }
0x2053   :  { %v2250_v50 = vpop.xlane.xlu2 %2249  ;;  %2258 = vadd.xlane.f32.xlu1 %v2257_v26 }
0x2054   :  { %v2252_v51 = vmul.f32 0.03125, %v2250_v50 }
0x2056   :  { %v7655_v52 = vsub.f32 %v2244_v38, %v2252_v51 }
0x2058   :  { %v2256_v57 = vmul.f32 %v7655_v52, %v7655_v52 }
0x205a   :  { %v2260_v58 = vsel %vm198_vm0, %v2256_v57, 0.0  ;;  %v6390_v57 = vld [vmem:[#allocation2 + $0x1b] ss:$0 sm:$0xff] }
0x205b   :  { %v2475_v59 = vpop.permute.xlu2 %2474  ;;  %2261 = vadd.xlane.f32.xlu0 %v2260_v58 }
0x205c   :  { %6034 = vmatpush.xpose.msk.msrb.mxu3 %vm792_vm12, %v2475_v59 }
0x2063   :  { %v2560_v54 = vpop.permute.xlu2 %2559 }
0x2064   :  { %6040 = vmatpush.xpose.msk.msra.mxu3 %vm792_vm12, %v2560_v54 }
0x206b   :  { %v2644_v40 = vpop.permute.xlu2 %2643 }
0x206c   :  { %2472 = vrot.lane.b32.xlu1 %v7634_v43, %s6927_s23 }
0x206f   :  { %2531 = vrot.lane.b32.xlu0 %v7634_v43, %s6929_s8 }
0x2073   :  { %v2642_v58 = vpop.permute.xlu2 %2641 }
0x2074   :  { %2557 = vrot.lane.b32.xlu1 %v7638_v45, %s6933_s1 }
0x2077   :  { %2529 = vrot.lane.b32.xlu0 %v7634_v43, %s6933_s1 }
0x207b   :  { %v2588_v3 = vpop.permute.xlu2 %2587 }
0x207c   :  { %2503 = vrot.lane.b32.xlu1 %v7638_v45, %s6930_s30 }
0x207f   :  { %2671 = vrot.lane.b32.xlu0 %v7638_v45, %s6935_s15 }
0x2084   :  { %2501 = vrot.lane.b32.xlu1 %v7638_v45, %s6927_s23 }
0x2087   :  { %2669 = vrot.lane.b32.xlu0 %v7638_v45, %s8686_s16 }
0x208c   :  { %2585 = vrot.lane.b32.xlu1 %v7634_v43, %s8669_s20 }
0x208f   :  { %2615 = vrot.lane.b32.xlu0 %v7638_v45, %s6931_s21 }
0x20c6   :  { %v2259_v56 = vpop.xlane.xlu1 %2258 }
0x20c7   :  { %v2263_v61 = vmul.f32 0.032258064, %v2259_v56 }
0x20c9   :  { %6574 = vrsqrt.f32 %v2263_v61  ;;  %vm2272_vm6 = vcmp.eq.f32.partialorder %v2263_v61, inf  ;;  %v2275_v19 = vand.u32 2147483648, %v2263_v61  ;;  %vm2274_vm7 = vcmp.eq.f32.partialorder %v2263_v61, 0.0 }
0x20ce   :  { %v2262_v4 = vpop.xlane.xlu0 %2261 }
0x20cf   :  { %v6575_v5 = vpop.eup %6574  ;;  %v2264_v60 = vmul.f32 0.032258064, %v2262_v4 }
0x20d0   :  { %v2266_v6 = vmul.f32 %v6575_v5, %v2263_v61 }
0x20d1   :  { %6576 = vrsqrt.f32 %v2264_v60  ;;  %vm2284_vm8 = vcmp.eq.f32.partialorder %v2264_v60, inf  ;;  %v2287_v42 = vand.u32 2147483648, %v2264_v60  ;;  %vm2286_vm9 = vcmp.eq.f32.partialorder %v2264_v60, 0.0 }
0x20d2   :  { %v2267_v7 = vmul.f32 %v6575_v5, %v2266_v6  ;;  %v141_v6 = vld [vmem:[%s8689_s29] sm:$0x1]  ;;  %s8695_s29 = smov 48  }
0x20d3   :  { %vm143_vm11 = vcmp.gt.f32.partialorder %v141_v6, 0.0 }
0x20d4   :  { %v2268_v10 = vmul.f32 0.5, %v2267_v7  ;;  %v2705_v7 = vsel %vm143_vm11, 1, %v6926_v0 }
0x20d5   :  { %v2707_v8 = vperm.slane %v2705_v7, 0 }
0x20d6   :  { %v2269_v11 = vsub.f32 1.5, %v2268_v10 }
0x20d7   :  { %v6577_v12 = vpop.eup %6576  ;;  %vm7748_vm14 = vcmp.eq.s32.totalorder %v2707_v8, 1 }
0x20d8   :  { %v2270_v48 = vmul.f32 %v6575_v5, %v2269_v11  ;;  %v2278_v14 = vmul.f32 %v6577_v12, %v2264_v60 }
0x20da   :  { %v2271_v49 = vmul.f32 %v2270_v48, %v2263_v61  ;;  %v2279_v16 = vmul.f32 %v6577_v12, %v2278_v14 }
0x20dc   :  { %v2273_v39 = vsel %vm2272_vm6, %v2263_v61, %v2271_v49  ;;  %v2280_v22 = vmul.f32 0.5, %v2279_v16 }
0x20dd   :  { %v2276_v37 = vsel %vm2274_vm7, %v2275_v19, %v2273_v39 }
0x20de   :  { %v2281_v23 = vsub.f32 1.5, %v2280_v22  ;;  %v2473_v36 = vpop.permute.xlu1 %2472  ;;  %v2289_v25 = vadd.f32 1e-06, %v2276_v37 }
0x20df   :  { %6035 = vmatmul.msk.f32.vlgmr.msrb.gmra.mxu3 %vm792_vm12, %v2473_v36 }
0x20e0   :  { %v2282_v33 = vmul.f32 %v6577_v12, %v2281_v23  ;;  %6578 = vrcp.f32 %v2289_v25  ;;  %v2706_v12 = vsel %vm144_vm13, 1, %v6926_v0  ;;  %v6392_v23 = vld [vmem:[#allocation5 + $0x9] ss:$0 sm:$0xff] }
0x20e1   :  { %v2532_v38 = vpop.permute.xlu0 %2531  ;;  %v2708_v48 = vperm.slane %v2706_v12, 0 }
0x20e2   :  { %v2283_v41 = vmul.f32 %v2282_v33, %v2264_v60  ;;  %6038 = vmatpush.xpose.msk.msrb.mxu2 %vm792_vm12, %v2532_v38 }
0x20e3   :  { %vm7759_vm2 = vcmp.eq.s32.totalorder %v2708_v48, 1 }
0x20e4   :  { %v2285_v44 = vsel %vm2284_vm8, %v2264_v60, %v2283_v41 }
0x20e5   :  { %v2288_v30 = vsel %vm2286_vm9, %v2287_v42, %v2285_v44 }
0x20e6   :  { %6046 = vmatpush.xpose.msk.msra.mxu2 %vm792_vm12, %v2644_v40  ;;  %v2558_v31 = vpop.permute.xlu1 %2557  ;;  %v2290_v47 = vadd.f32 1e-06, %v2288_v30  ;;  %v6579_v26 = vpop.eup %6578 }
0x20e7   :  { %6041 = vmatmul.msk.f32.vlgmr.msra.gmra.mxu3 %vm792_vm12, %v2558_v31  ;;  %v2295_v51 = vmul.f32 %v6579_v26, %v7650_v46  ;;  %v2614_v31 = vpop.permute.xlu2 %2613 }
0x20e8   :  { %6580 = vrcp.f32 %v2290_v47 }
0x20e9   :  { %v2530_v50 = vpop.permute.xlu0 %2529  ;;  %v2300_v61 = vmul.f32 %v6390_v57, %v2295_v51 }
0x20ea   :  { %6039 = vmatmul.msk.f32.vlgmr.msrb.gmra.mxu2 %vm792_vm12, %v2530_v50 }
0x20eb   :  { %v7728_v63 = vadd.f32 %v6391_v27, %v2300_v61 }
0x20ee   :  { %v6581_v59 = vpop.eup %6580  ;;  %v2504_v54 = vpop.permute.xlu1 %2503 }
0x20ef   :  { %6036 = vmatpush.xpose.msk.msra.mxu0 %vm792_vm12, %v2504_v54  ;;  %v2296_v56 = vmul.f32 %v6581_v59, %v7655_v52 }
0x20f1   :  { %v2672_v34 = vpop.permute.xlu0 %2671  ;;  %v2301_v62 = vmul.f32 %v6390_v57, %v2296_v56 }
0x20f2   :  { %6047 = vmatmul.msk.f32.vlgmr.msra.gmra.mxu2 %vm792_vm12, %v2642_v58  ;;  %6048 = vmatpush.xpose.msk.msrb.mxu3 %vm792_vm12, %v2672_v34 }
0x20f3   :  { %v7730_v2 = vadd.f32 %v6391_v27, %v2301_v62 }
0x20f5   :  { %v2314_v46 = vpack.c.bf16 %v7730_v2, %v7728_v63 }
0x20f6   :  { %v2502_v5 = vpop.permute.xlu1 %2501 }
0x20f7   :  { %6023 = vmatmul.msk.bf16.vlgmr.msrb.gmra.mxu0 %vm198_vm0, %v2314_v46 }
0x20f8   :  { %6042 = vmatpush.xpose.msk.msrb.mxu0 %vm792_vm12, %v2588_v3 }
0x20f9   :  { %v2670_v52 = vpop.permute.xlu0 %2669 }
0x20fa   :  { %6049 = vmatmul.msk.f32.vlgmr.msrb.gmra.mxu3 %vm792_vm12, %v2670_v52 }
0x20fe   :  { %v2586_v60 = vpop.permute.xlu1 %2585 }
0x2101   :  { %v2616_v4 = vpop.permute.xlu0 %2615 }
0x2102   :  { %6044 = vmatpush.xpose.msk.msrb.mxu1 %vm792_vm12, %v2616_v4 }
0x2107   :  { %6037 = vmatmul.msk.f32.vlgmr.msra.gmra.mxu0 %vm792_vm12, %v2502_v5 }
0x2108   :  { %2825 = vmatpush.msra.mxu0 %v7634_v43 }
0x210f   :  { %6043 = vmatmul.msk.f32.vlgmr.msrb.gmra.mxu0 %vm792_vm12, %v2586_v60 }
0x2162   :  { %v2497_v9 = vpop.f32.mrf.mxu3 }
0x2163   :  { %v2697_v11 = vmul.f32 0.35355338, %v2497_v9 }
0x2165   :  { %v7755_v13 = vsel %vm7748_vm14, -1e+09, %v2697_v11 }
0x2166   :  { %v2719_v28 = vsel %vm792_vm12, %v7755_v13, -inf }
0x2167   :  { %2720 = vmax.xlane.f32.xlu2 %v2719_v28 }
0x216a   :  { %v2582_v14 = vpop.f32.mrf.mxu3 }
0x216b   :  { %v2702_v49 = vmul.f32 0.35355338, %v2582_v14 }
0x216d   :  { %v2554_v16 = vpop.f32.mrf.mxu2  ;;  %v2716_v17 = vsel %vm7759_vm2, -1e+09, %v2702_v49 }
0x216e   :  { %v2698_v0 = vmul.f32 0.35355338, %v2554_v16  ;;  %v2734_v18 = vsel %vm792_vm12, %v2716_v17, -inf }
0x216f   :  { %2735 = vmax.xlane.f32.xlu1 %v2734_v18 }
0x2170   :  { %v2712_v19 = vsel %vm7748_vm14, -1e+09, %v2698_v0 }
0x2171   :  { %v2722_v21 = vsel %vm792_vm12, %v2712_v19, -inf }
0x2172   :  { %2723 = vmax.xlane.f32.xlu0 %v2722_v21 }
0x2174   :  { %v2334_v39 = vpop.f32.mrf.mxu0 }
0x2175   :  { %v2666_v22 = vpop.f32.mrf.mxu2  ;;  %v2335_v29 = vadd.f32 %v6392_v23, %v2334_v39 }
0x2176   :  { %v2700_v37 = vmul.f32 0.35355338, %v2666_v22 }
0x2177   :  { %v2339_v40 = vmax.f32 %v2335_v29, 0.0 }
0x2178   :  { %v2714_v36 = vsel %vm7748_vm14, -1e+09, %v2700_v37 }
0x2179   :  { %v2728_v25 = vsel %vm792_vm12, %v2714_v36, -inf }
0x217a   :  { %2729 = vmax.xlane.f32.xlu1 %v2728_v25 }
0x217c   :  { %v2336_v32 = vpop.f32.mrf.mxu0 }
0x217d   :  { %v2337_v20 = vadd.f32 %v6392_v23, %v2336_v32  ;;  %v2694_v33 = vpop.f32.mrf.mxu3 }
0x217e   :  { %v2704_v38 = vmul.f32 0.35355338, %v2694_v33 }
0x217f   :  { %v2340_v41 = vmax.f32 %v2337_v20, 0.0 }
0x2180   :  { %v2718_v42 = vsel %vm7759_vm2, -1e+09, %v2704_v38 }
0x2181   :  { %v2350_v44 = vpack.c.bf16 %v2340_v41, %v2339_v40  ;;  %v2740_v30 = vsel %vm792_vm12, %v2718_v42, -inf }
0x2182   :  { %2741 = vmax.xlane.f32.xlu2 %v2740_v30 }
0x2183   :  { %6032 = vmatmul.msk.bf16.vlgmr.msra.gmra.mxu1 %vm1537_vm10, %v2350_v44 }
0x2184   :  { %2848 = vmatpush.msra.mxu1 %v7638_v45  ;;  %v2526_v59 = vpop.f32.mrf.mxu0 }
0x2185   :  { %v2701_v61 = vmul.f32 0.35355338, %v2526_v59 }
0x2187   :  { %v2715_v46 = vsel %vm7759_vm2, -1e+09, %v2701_v61 }
0x2188   :  { %v2731_v4 = vsel %vm792_vm12, %v2715_v46, -inf }
0x218c   :  { %v2610_v3 = vpop.f32.mrf.mxu0 }
0x218d   :  { %v2699_v5 = vmul.f32 0.35355338, %v2610_v3 }
0x218f   :  { %v2713_v6 = vsel %vm7748_vm14, -1e+09, %v2699_v5 }
0x2190   :  { %v2725_v7 = vsel %vm792_vm12, %v2713_v6, -inf }
0x2193   :  { %6045 = vmatmul.msk.f32.vlgmr.msrb.gmra.mxu1 %vm792_vm12, %v2614_v31  ;;  %v6274_v31 = vpack.i.bf16 %v7638_v45, %v7634_v43 }
0x21da   :  { %v2721_v11 = vpop.xlane.xlu2 %2720 }
0x21db   :  { %v2743_v28 = vsub.f32 %v7755_v13, %v2721_v11 }
0x21dd   :  { %v2751_v48 = vmul.f32 1.442695, %v2743_v28 }
0x21e2   :  { %v2736_v47 = vpop.xlane.xlu1 %2735 }
0x21e3   :  { %v2748_v26 = vsub.f32 %v2716_v17, %v2736_v47 }
0x21e5   :  { %v2761_v50 = vmul.f32 1.442695, %v2748_v26  ;;  %v2724_v51 = vpop.xlane.xlu0 %2723 }
0x21e6   :  { %v2744_v57 = vsub.f32 %v2712_v19, %v2724_v51 }
0x21e7   :  { %6582 = vpow2.f32 %v2761_v50 }
0x21e8   :  { %v2753_v58 = vmul.f32 1.442695, %v2744_v57 }
0x21ea   :  { %6584 = vpow2.f32 %v2753_v58  ;;  %v7819_v58 = vld [vmem:[#allocation2 + $0x18] ss:$0 sm:$0xff] }
0x21ed   :  { %v7778_v54 = vpop.eup %6582  ;;  %v2730_v62 = vpop.xlane.xlu1 %2729 }
0x21ee   :  { %v2782_v56 = vsel %vm792_vm12, %v7778_v54, 0.0  ;;  %v2746_v52 = vsub.f32 %v2714_v36, %v2730_v62 }
0x21ef   :  { %2783 = vadd.xlane.f32.xlu0 %v2782_v56 }
0x21f0   :  { %v7782_v27 = vpop.eup %6584  ;;  %v2757_v60 = vmul.f32 1.442695, %v2746_v52 }
0x21f1   :  { %v2770_v34 = vsel %vm792_vm12, %v7782_v27, 0.0 }
0x21f2   :  { %2771 = vadd.xlane.f32.xlu2 %v2770_v34  ;;  %6586 = vpow2.f32 %v2757_v60 }
0x21f3   :  { %6588 = vpow2.f32 %v2751_v48 }
0x21f5   :  { %v2742_v14 = vpop.xlane.xlu2 %2741 }
0x21f6   :  { %v2750_v17 = vsub.f32 %v2718_v42, %v2742_v14 }
0x21f7   :  { %2732 = vmax.xlane.f32.xlu0 %v2731_v4 }
0x21f8   :  { %v7792_v8 = vpop.eup %6586  ;;  %v2765_v19 = vmul.f32 1.442695, %v2750_v17 }
0x21f9   :  { %v2776_v9 = vsel %vm792_vm12, %v7792_v8, 0.0  ;;  %v6589_v21 = vpop.eup %6588 }
0x21fa   :  { %6590 = vpow2.f32 %v2765_v19  ;;  %v2767_v39 = vsel %vm792_vm12, %v6589_v21, 0.0 }
0x21ff   :  { %2726 = vmax.xlane.f32.xlu0 %v2725_v7 }
0x2200   :  { %v2372_v1 = vpop.f32.mrf.mxu1  ;;  %v7803_v22 = vpop.eup %6590 }
0x2201   :  { %v2788_v13 = vsel %vm792_vm12, %v7803_v22, 0.0  ;;  %v2373_v43 = vadd.f32 %v7819_v58, %v2372_v1 }
0x2203   :  { %v7823_v45 = vadd.f32 %v2373_v43, %v7728_v63 }
0x2205   :  { %v2379_v59 = vsel %vm198_vm0, %v7823_v45, 0.0 }
0x2207   :  { %2777 = vadd.xlane.f32.xlu0 %v2776_v9 }
0x2208   :  { %v7796_v12 = vpop.f32.mrf.mxu1 }
0x2210   :  { %v2638_v49 = vpop.f32.mrf.mxu1 }
0x2211   :  { %v2703_v16 = vmul.f32 0.35355338, %v2638_v49 }
0x2213   :  { %v2717_v0 = vsel %vm7759_vm2, -1e+09, %v2703_v16 }
0x2214   :  { %v2737_v18 = vsel %vm792_vm12, %v2717_v0, -inf }
0x2215   :  { %2738 = vmax.xlane.f32.xlu1 %v2737_v18 }
0x221d   :  { %2768 = vadd.xlane.f32.xlu1 %v2767_v39 }
0x2225   :  { %2789 = vadd.xlane.f32.xlu1 %v2788_v13 }
0x2262   :  { %v2784_v37 = vpop.xlane.xlu0 %2783 }
0x2265   :  { %v2772_v56 = vpop.xlane.xlu2 %2771 }
0x226a   :  { %v2733_v23 = vpop.xlane.xlu0 %2732 }
0x226b   :  { %v2747_v36 = vsub.f32 %v2715_v46, %v2733_v23 }
0x226d   :  { %v2759_v25 = vmul.f32 1.442695, %v2747_v36 }
0x226f   :  { %6592 = vpow2.f32 %v2759_v25 }
0x2272   :  { %v2727_v29 = vpop.xlane.xlu0 %2726 }
0x2273   :  { %v2745_v32 = vsub.f32 %v2713_v6, %v2727_v29 }
0x2275   :  { %v6593_v20 = vpop.eup %6592  ;;  %v2755_v33 = vmul.f32 1.442695, %v2745_v32 }
0x2276   :  { %v2779_v38 = vsel %vm792_vm12, %v6593_v20, 0.0 }
0x2277   :  { %6594 = vpow2.f32 %v2755_v33  ;;  %2780 = vadd.xlane.f32.xlu2 %v2779_v38  ;;  %v2375_v38 = vadd.f32 %v7819_v58, %v7796_v12 }
0x227a   :  { %v2778_v6 = vpop.xlane.xlu0 %2777 }
0x227d   :  { %v7808_v40 = vpop.eup %6594 }
0x227e   :  { %v2773_v41 = vsel %vm792_vm12, %v7808_v40, 0.0 }
0x227f   :  { %2774 = vadd.xlane.f32.xlu0 %v2773_v41 }
0x2288   :  { %v2739_v42 = vpop.xlane.xlu1 %2738 }
0x2289   :  { %v2749_v44 = vsub.f32 %v2717_v0, %v2739_v42  ;;  %v2378_v42 = vadd.f32 %v2375_v38, %v7730_v2 }
0x228b   :  { %v2763_v30 = vmul.f32 1.442695, %v2749_v44  ;;  %v3041_v44 = vld [vmem:[%s8649_s12 + $0x10] sm:$0xff] }
0x228d   :  { %6596 = vpow2.f32 %v2763_v30  ;;  %v3042_v30 = vld [vmem:[%s8649_s12 + $0x18] sm:$0xff] }
0x228f   :  { %6275 = vrot.lane.b32.xlu2 %v6274_v31, %s6936_s25 }
0x2290   :  { %v2769_v47 = vpop.xlane.xlu1 %2768 }
0x2291   :  { %6598 = vrcp.f32 %v2769_v47 }
0x2292   :  { %6600 = vrcp.f32 %v2784_v37 }
0x2293   :  { %v6597_v26 = vpop.eup %6596  ;;  %6280 = vrot.lane.b32.xlu0 %v6274_v31, %s8671_s3  ;;  %6602 = vrcp.f32 %v2772_v56 }
0x2294   :  { %v2785_v50 = vsel %vm792_vm12, %v6597_v26, 0.0 }
0x2295   :  { %2786 = vadd.xlane.f32.xlu1 %v2785_v50  ;;  %v3039_v50 = vld [vmem:[%s8649_s12] sm:$0xff] }
0x2297   :  { %v6599_v51 = vpop.eup %6598 }
0x2298   :  { %v2799_v57 = vmul.f32 %v6599_v51, %v6589_v21  ;;  %v6601_v34 = vpop.eup %6600  ;;  %v2790_v7 = vpop.xlane.xlu1 %2789  ;;  %v3040_v51 = vld [vmem:[%s8649_s12 + $0x8] sm:$0xff] }
0x2299   :  { %v6603_v62 = vpop.eup %6602  ;;  %v2804_v60 = vmul.f32 %v6601_v34, %v7778_v54 }
0x229a   :  { %6050 = vmatmul.msk.f32.vlgmr.msra.gmra.mxu0 %vm792_vm12, %v2799_v57  ;;  %v2800_v63 = vmul.f32 %v6603_v62, %v7782_v27  ;;  %v3044_v57 = vpack.c.bf16 %v3040_v51, %v3039_v50 }
0x22ae   :  { %6285 = vrot.lane.b32.xlu1 %v6274_v31, %s8673_s26  ;;  %v3045_v31 = vpack.c.bf16 %v3042_v30, %v3041_v44 }
0x22d8   :  { %2380 = vadd.xlane.f32.xlu1 %v2379_v59 }
0x22ea   :  { %v2781_v61 = vpop.xlane.xlu2 %2780 }
0x22eb   :  { %6604 = vrcp.f32 %v2781_v61 }
0x22ec   :  { %6606 = vrcp.f32 %v2778_v6 }
0x22ed   :  { %6608 = vrcp.f32 %v2790_v7  ;;  %v6394_v7 = vld [vmem:[#allocation2 + $0x1] ss:$0 sm:$0xff] }
0x22f1   :  { %v6605_v46 = vpop.eup %6604 }
0x22f2   :  { %v2803_v3 = vmul.f32 %v6605_v46, %v6593_v20  ;;  %v6276_v52 = vpop.permute.xlu2 %6275  ;;  %v2775_v1 = vpop.xlane.xlu0 %2774 }
0x22f3   :  { %v6278_v4 = vunpack.i.h.bf16 %v6276_v52  ;;  %v6277_v5 = vunpack.i.l.bf16 %v6276_v52  ;;  %v6607_v9 = vpop.eup %6606  ;;  %6610 = vrcp.f32 %v2775_v1 }
0x22f4   :  { %6051 = vmatmul.msk.f32.vlgmr.msra.gmra.mxu1 %vm792_vm12, %v2803_v3  ;;  %v6609_v11 = vpop.eup %6608  ;;  %v2802_v27 = vmul.f32 %v6607_v9, %v7792_v8 }
0x22f5   :  { %2874 = vmatpush.msrb.mxu2 %v6277_v5  ;;  %2900 = vmatpush.msra.mxu3 %v6278_v4  ;;  %v2806_v14 = vmul.f32 %v6609_v11, %v7803_v22 }
0x22f6   :  { %6052 = vmatmul.msk.f32.vlgmr.msrb.gmra.mxu2 %vm792_vm12, %v2800_v63  ;;  %6053 = vmatmul.msk.f32.vlgmr.msra.gmra.mxu3 %vm792_vm12, %v2804_v60 }
0x22f9   :  { %v6611_v16 = vpop.eup %6610 }
0x22fa   :  { %v2801_v21 = vmul.f32 %v6611_v16, %v7808_v40 }
0x2305   :  { %v6281_v28 = vpop.permute.xlu0 %6280 }
0x2306   :  { %v6283_v48 = vunpack.i.h.bf16 %v6281_v28  ;;  %v6282_v54 = vunpack.i.l.bf16 %v6281_v28 }
0x2308   :  { %2978 = vmatpush.msra.mxu2 %v6282_v54  ;;  %3004 = vmatpush.msrb.mxu3 %v6283_v48  ;;  %v2787_v49 = vpop.xlane.xlu1 %2786 }
0x2309   :  { %6056 = vmatmul.msk.f32.vlgmr.msra.gmra.mxu2 %vm792_vm12, %v2802_v27  ;;  %6057 = vmatmul.msk.f32.vlgmr.msrb.gmra.mxu3 %vm792_vm12, %v2806_v14  ;;  %6612 = vrcp.f32 %v2787_v49 }
0x230f   :  { %v6613_v17 = vpop.eup %6612 }
0x2310   :  { %v2805_v39 = vmul.f32 %v6613_v17, %v6597_v26  ;;  %v2382_v26 = vsel %vm198_vm0, %v2378_v42, 0.0 }
0x2317   :  { %v2827_v25 = vpop.f32.mrf.mxu0 }
0x2320   :  { %v6286_v0 = vpop.permute.xlu1 %6285 }
0x2321   :  { %v6288_v18 = vunpack.i.h.bf16 %v6286_v0  ;;  %v6287_v19 = vunpack.i.l.bf16 %v6286_v0 }
0x2323   :  { %2926 = vmatpush.msrb.mxu0 %v6287_v19  ;;  %2952 = vmatpush.msrb.mxu1 %v6288_v18 }
0x2324   :  { %6054 = vmatmul.msk.f32.vlgmr.msrb.gmra.mxu0 %vm792_vm12, %v2801_v21  ;;  %6055 = vmatmul.msk.f32.vlgmr.msrb.gmra.mxu1 %vm792_vm12, %v2805_v39 }
0x2325   :  { %3060 = vmatpush.bf16.msra.mxu0 %v3045_v31 }
0x2329   :  { %3061 = vmatpush.bf16.msra.mxu0 %v3044_v57 }
0x234b   :  { %v2381_v40 = vpop.xlane.xlu1 %2380 }
0x234c   :  { %v2385_v41 = vmul.f32 0.03125, %v2381_v40 }
0x234e   :  { %v7852_v47 = vsub.f32 %v7823_v45, %v2385_v41 }
0x2350   :  { %v2389_v12 = vmul.f32 %v7852_v47, %v7852_v47 }
0x2352   :  { %v2391_v2 = vsel %vm198_vm0, %v2389_v12, 0.0 }
0x2371   :  { %v2850_v29 = vpop.f32.mrf.mxu1 }
0x2379   :  { %v2876_v8 = vpop.f32.mrf.mxu2  ;;  %v2902_v22 = vpop.f32.mrf.mxu3 }
0x237a   :  { %v6289_v13 = vpack.i.bf16 %v2902_v22, %v2876_v8  ;;  %v6061_v22 = vld [vmem:[%s8651_s14 + $0x30] sm:$0xff] }
0x237c   :  { %6290 = vrot.lane.b32.xlu2 %v6289_v13, %s8694_s11  ;;  %v6059_v13 = vld [vmem:[%s8651_s14 + $0x20] sm:$0xff] }
0x238c   :  { %v2980_v37 = vpop.f32.mrf.mxu2  ;;  %v3006_v23 = vpop.f32.mrf.mxu3 }
0x238d   :  { %v6299_v36 = vpack.i.bf16 %v3006_v23, %v2980_v37  ;;  %v6060_v23 = vld [vmem:[%s8651_s14 + $0x28] sm:$0xff] }
0x238f   :  { %6300 = vrot.lane.b32.xlu2 %v6299_v36, %s8687_s9 }
0x23a1   :  { %v2928_v32 = vpop.f32.mrf.mxu0  ;;  %v2954_v20 = vpop.f32.mrf.mxu1 }
0x23a2   :  { %v6294_v33 = vpack.i.bf16 %v2954_v20, %v2928_v32 }
0x23a4   :  { %6295 = vrot.lane.b32.xlu0 %v6294_v33, %s8688_s10 }
0x23ce   :  { %2383 = vadd.xlane.f32.xlu0 %v2382_v26 }
0x23d6   :  { %2392 = vadd.xlane.f32.xlu0 %v2391_v2  ;;  %v6291_v58 = vpop.permute.xlu2 %6290 }
0x23d7   :  { %v6293_v43 = vunpack.i.h.bf16 %v6291_v58  ;;  %v6292_v45 = vunpack.i.l.bf16 %v6291_v58 }
0x23d9   :  { %v3034_v62 = vsel %vm792_vm12, %v2850_v29, %v6293_v43  ;;  %v3033_v46 = vsel %vm792_vm12, %v2827_v25, %v6292_v45  ;;  %v3142_v29 = vpack.c.bf16 %v6060_v23, %v6059_v13 }
0x23e9   :  { %v6301_v59 = vpop.permute.xlu2 %6300 }
0x23ea   :  { %v6303_v3 = vunpack.i.h.bf16 %v6301_v59  ;;  %v6302_v52 = vunpack.i.l.bf16 %v6301_v59 }
0x2416   :  { %v6296_v56 = vpop.permute.xlu0 %6295 }
0x2417   :  { %v6298_v61 = vunpack.i.h.bf16 %v6296_v56  ;;  %v6297_v34 = vunpack.i.l.bf16 %v6296_v56 }
0x2419   :  { %v3036_v4 = vsel %vm1352_vm4, %v3034_v62, %v6298_v61  ;;  %v3035_v5 = vsel %vm1352_vm4, %v3033_v46, %v6297_v34 }
0x241a   :  { %v3037_v60 = vsel %vm1355_vm5, %v3035_v5, %v6302_v52  ;;  %v3038_v63 = vsel %vm1355_vm5, %v3036_v4, %v6303_v3 }
0x241b   :  { %v3043_v6 = vpack.c.bf16 %v3038_v63, %v3037_v60 }
0x241d   :  { %6058 = vmatmul.msk.bf16.vlgmr.msra.gmra.mxu0 %vm198_vm0, %v3043_v6  ;;  %v6395_v6 = vld [vmem:[#allocation2 + $0x1d] ss:$0 sm:$0xff] }
0x2441   :  { %v2384_v1 = vpop.xlane.xlu0 %2383 }
0x2442   :  { %v2386_v11 = vmul.f32 0.03125, %v2384_v1 }
0x2444   :  { %v7872_v54 = vsub.f32 %v2378_v42, %v2386_v11  ;;  %v6396_v11 = vld [vmem:[#allocation2 + $0x1c] ss:$0 sm:$0xff] }
0x2446   :  { %v2390_v16 = vmul.f32 %v7872_v54, %v7872_v54 }
0x2448   :  { %v2394_v18 = vsel %vm198_vm0, %v2390_v16, 0.0 }
0x2449   :  { %v2393_v19 = vpop.xlane.xlu0 %2392 }
0x249a   :  { %v3063_v9 = vpop.f32.mrf.mxu0 }
0x249b   :  { %v3064_v28 = vadd.f32 %v6394_v7, %v3063_v9 }
0x249d   :  { %v3068_v48 = vadd.f32 %v3064_v28, %v7598_v53  ;;  %v2397_v53 = vmul.f32 0.032258064, %v2393_v19 }
0x249f   :  { %v3070_v27 = vsel %vm198_vm0, %v3068_v48, 0.0  ;;  %6614 = vrsqrt.f32 %v2397_v53  ;;  %vm2406_vm6 = vcmp.eq.f32.partialorder %v2397_v53, inf  ;;  %v2409_v43 = vand.u32 2147483648, %v2397_v53 }
0x24a0   :  { %3071 = vadd.xlane.f32.xlu2 %v3070_v27  ;;  %vm2408_vm7 = vcmp.eq.f32.partialorder %v2397_v53, 0.0 }
0x24a2   :  { %v3065_v14 = vpop.f32.mrf.mxu0 }
0x24a3   :  { %v3066_v49 = vadd.f32 %v6394_v7, %v3065_v14 }
0x24a5   :  { %v3069_v17 = vadd.f32 %v3066_v49, %v7601_v55  ;;  %v6615_v21 = vpop.eup %6614  ;;  %v6062_v55 = vld [vmem:[%s8651_s14 + $0x38] sm:$0xff] }
0x24a6   :  { %v2400_v39 = vmul.f32 %v6615_v21, %v2397_v53  ;;  %v3143_v37 = vpack.c.bf16 %v6062_v55, %v6061_v22 }
0x24a7   :  { %v3073_v0 = vsel %vm198_vm0, %v3069_v17, 0.0 }
0x24a8   :  { %3074 = vadd.xlane.f32.xlu1 %v3073_v0  ;;  %2395 = vadd.xlane.f32.xlu2 %v2394_v18  ;;  %v2401_v8 = vmul.f32 %v6615_v21, %v2400_v39 }
0x24a9   :  { %3156 = vmatpush.bf16.msra.mxu1 %v3143_v37 }
0x24aa   :  { %v2402_v32 = vmul.f32 0.5, %v2401_v8  ;;  %v6399_v8 = vld [vmem:[#allocation7 + $0x1] ss:$0 sm:$0xff] }
0x24ac   :  { %v2403_v38 = vsub.f32 1.5, %v2402_v32 }
0x24ad   :  { %3157 = vmatpush.bf16.msra.mxu1 %v3142_v29 }
0x24ae   :  { %v2404_v31 = vmul.f32 %v6615_v21, %v2403_v38 }
0x24b0   :  { %v2405_v2 = vmul.f32 %v2404_v31, %v2397_v53 }
0x24b2   :  { %v2407_v57 = vsel %vm2406_vm6, %v2397_v53, %v2405_v2 }
0x24b3   :  { %v2410_v59 = vsel %vm2408_vm7, %v2409_v43, %v2407_v57  ;;  %v6398_v43 = vld [vmem:[#allocation2 + $0x3] ss:$0 sm:$0xff] }
0x24b4   :  { %v2423_v34 = vadd.f32 1e-06, %v2410_v59 }
0x24c0   :  { %3169 = vrot.lane.b32.xlu2 %v3143_v37, %s6927_s23 }
0x2513   :  { %v3072_v36 = vpop.xlane.xlu2 %3071 }
0x2514   :  { %v3076_v25 = vmul.f32 0.03125, %v3072_v36 }
0x2516   :  { %v7893_v20 = vsub.f32 %v3068_v48, %v3076_v25 }
0x2518   :  { %v3080_v33 = vmul.f32 %v7893_v20, %v7893_v20 }
0x251a   :  { %v3082_v40 = vsel %vm198_vm0, %v3080_v33, 0.0 }
0x251b   :  { %v3075_v41 = vpop.xlane.xlu1 %3074  ;;  %3083 = vadd.xlane.f32.xlu1 %v3082_v40  ;;  %v2396_v42 = vpop.xlane.xlu2 %2395 }
0x251c   :  { %v3077_v44 = vmul.f32 0.03125, %v3075_v41  ;;  %v2398_v30 = vmul.f32 0.032258064, %v2396_v42 }
0x251e   :  { %v7898_v26 = vsub.f32 %v3069_v17, %v3077_v44  ;;  %6616 = vrsqrt.f32 %v2398_v30  ;;  %vm2418_vm8 = vcmp.eq.f32.partialorder %v2398_v30, inf  ;;  %v2421_v3 = vand.u32 2147483648, %v2398_v30 }
0x251f   :  { %6618 = vrcp.f32 %v2423_v34  ;;  %vm2420_vm9 = vcmp.eq.f32.partialorder %v2398_v30, 0.0 }
0x2520   :  { %v3081_v12 = vmul.f32 %v7898_v26, %v7898_v26 }
0x2522   :  { %v3085_v50 = vsel %vm198_vm0, %v3081_v12, 0.0 }
0x2523   :  { %3086 = vadd.xlane.f32.xlu0 %v3085_v50  ;;  %v3170_v49 = vpop.permute.xlu2 %3169  ;;  %v6397_v50 = vld [vmem:[#allocation2 + $0x4] ss:$0 sm:$0xff] }
0x2524   :  { %v6617_v51 = vpop.eup %6616  ;;  %3185 = vmatpush.bf16.msrb.mxu2 %v3170_v49 }
0x2525   :  { %v2412_v58 = vmul.f32 %v6617_v51, %v2398_v30  ;;  %v6619_v60 = vpop.eup %6618 }
0x2526   :  { %v2429_v63 = vmul.f32 %v6619_v60, %v7852_v47 }
0x2527   :  { %v2413_v45 = vmul.f32 %v6617_v51, %v2412_v58 }
0x2528   :  { %v2434_v9 = vmul.f32 %v6395_v6, %v2429_v63 }
0x2529   :  { %v2414_v56 = vmul.f32 0.5, %v2413_v45 }
0x252a   :  { %v7906_v48 = vadd.f32 %v6396_v11, %v2434_v9 }
0x252b   :  { %v2415_v61 = vsub.f32 1.5, %v2414_v56 }
0x252d   :  { %v2416_v62 = vmul.f32 %v6617_v51, %v2415_v61 }
0x252f   :  { %v2417_v46 = vmul.f32 %v2416_v62, %v2398_v30 }
0x2531   :  { %v2419_v52 = vsel %vm2418_vm8, %v2398_v30, %v2417_v46 }
0x2532   :  { %v2422_v4 = vsel %vm2420_vm9, %v2421_v3, %v2419_v52 }
0x2533   :  { %v2424_v5 = vadd.f32 1e-06, %v2422_v4 }
0x2534   :  { %3167 = vrot.lane.b32.xlu1 %v3142_v29, %s6927_s23 }
0x2535   :  { %6620 = vrcp.f32 %v2424_v5 }
0x2537   :  { %3173 = vrot.lane.b32.xlu0 %v6399_v8, %s6927_s23 }
0x253b   :  { %v6621_v7 = vpop.eup %6620 }
0x253c   :  { %v2430_v1 = vmul.f32 %v6621_v7, %v7872_v54 }
0x253e   :  { %v2435_v28 = vmul.f32 %v6395_v6, %v2430_v1 }
0x2540   :  { %v7908_v27 = vadd.f32 %v6396_v11, %v2435_v28 }
0x2542   :  { %v7912_v14 = vpack.c.bf16 %v7908_v27, %v7906_v48 }
0x2544   :  { %6063 = vmatmul.msk.bf16.vlgmr.msra.gmra.mxu1 %vm198_vm0, %v7912_v14 }
0x258e   :  { %v3084_v47 = vpop.xlane.xlu1 %3083 }
0x258f   :  { %v3088_v16 = vmul.f32 0.032258064, %v3084_v47 }
0x2591   :  { %6622 = vrsqrt.f32 %v3088_v16  ;;  %vm3097_vm11 = vcmp.eq.f32.partialorder %v3088_v16, inf  ;;  %v3100_v23 = vand.u32 2147483648, %v3088_v16  ;;  %vm3099_vm13 = vcmp.eq.f32.partialorder %v3088_v16, 0.0 }
0x2596   :  { %v3087_v54 = vpop.xlane.xlu0 %3086 }
0x2597   :  { %v6623_v17 = vpop.eup %6622  ;;  %v3089_v0 = vmul.f32 0.032258064, %v3087_v54 }
0x2598   :  { %v3091_v18 = vmul.f32 %v6623_v17, %v3088_v16 }
0x2599   :  { %6624 = vrsqrt.f32 %v3089_v0  ;;  %vm3109_vm6 = vcmp.eq.f32.partialorder %v3089_v0, inf  ;;  %v3112_v42 = vand.u32 2147483648, %v3089_v0  ;;  %vm3111_vm7 = vcmp.eq.f32.partialorder %v3089_v0, 0.0 }
0x259a   :  { %v3092_v19 = vmul.f32 %v6623_v17, %v3091_v18 }
0x259c   :  { %v3093_v53 = vmul.f32 0.5, %v3092_v19 }
0x259e   :  { %v3094_v21 = vsub.f32 1.5, %v3093_v53 }
0x259f   :  { %v6625_v39 = vpop.eup %6624 }
0x25a0   :  { %v3095_v22 = vmul.f32 %v6623_v17, %v3094_v21  ;;  %v3103_v55 = vmul.f32 %v6625_v39, %v3089_v0 }
0x25a2   :  { %v3096_v13 = vmul.f32 %v3095_v22, %v3088_v16  ;;  %v3104_v37 = vmul.f32 %v6625_v39, %v3103_v55 }
0x25a4   :  { %v3098_v36 = vsel %vm3097_vm11, %v3088_v16, %v3096_v13  ;;  %v3105_v25 = vmul.f32 0.5, %v3104_v37 }
0x25a5   :  { %v3101_v29 = vsel %vm3099_vm13, %v3100_v23, %v3098_v36 }
0x25a6   :  { %v3106_v32 = vsub.f32 1.5, %v3105_v25  ;;  %v3168_v33 = vpop.permute.xlu1 %3167  ;;  %v3114_v38 = vadd.f32 1e-06, %v3101_v29 }
0x25a7   :  { %3186 = vmatpush.bf16.msrb.mxu2 %v3168_v33 }
0x25a8   :  { %v3107_v40 = vmul.f32 %v6625_v39, %v3106_v32  ;;  %6626 = vrcp.f32 %v3114_v38 }
0x25a9   :  { %v3174_v4 = vpop.permute.xlu0 %3173 }
0x25aa   :  { %v3108_v41 = vmul.f32 %v3107_v40, %v3089_v0 }
0x25ac   :  { %v3110_v44 = vsel %vm3109_vm6, %v3089_v0, %v3108_v41 }
0x25ad   :  { %v3113_v30 = vsel %vm3111_vm7, %v3112_v42, %v3110_v44 }
0x25ae   :  { %v3115_v31 = vadd.f32 1e-06, %v3113_v30  ;;  %v6627_v12 = vpop.eup %6626 }
0x25af   :  { %v3120_v2 = vmul.f32 %v6627_v12, %v7893_v20 }
0x25b0   :  { %6628 = vrcp.f32 %v3115_v31 }
0x25b1   :  { %v3125_v58 = vmul.f32 %v6397_v50, %v3120_v2 }
0x25b3   :  { %v7919_v59 = vadd.f32 %v6398_v43, %v3125_v58 }
0x25b6   :  { %v6629_v51 = vpop.eup %6628 }
0x25b7   :  { %v3121_v57 = vmul.f32 %v6629_v51, %v7898_v26 }
0x25b9   :  { %v3126_v45 = vmul.f32 %v6397_v50, %v3121_v57 }
0x25bb   :  { %v7921_v56 = vadd.f32 %v6398_v43, %v3126_v45 }
0x25bd   :  { %v3164_v61 = vpack.c.bf16 %v7921_v56, %v7919_v59 }
0x25bf   :  { %6064 = vmatmul.msk.bf16.vlgmr.msrb.gmra.mxu2 %vm198_vm0, %v3164_v61 }
0x25c1   :  { %v3159_v34 = vpop.f32.mrf.mxu1 }
0x25c2   :  { %v7926_v62 = vadd.f32 %v6399_v8, %v3159_v34 }
0x25c4   :  { %3307 = vrot.lane.b32.xlu1 %v7926_v62, %s6931_s21  ;;  %3194 = vrot.lane.b32.xlu2 %v7926_v62, %s6930_s30 }
0x25c9   :  { %v3161_v20 = vpop.f32.mrf.mxu1 }
0x25ca   :  { %v7932_v26 = vadd.f32 %v6399_v8, %v3161_v20 }
0x25cc   :  { %3222 = vrot.lane.b32.xlu0 %v7932_v26, %s6930_s30  ;;  %3335 = vrot.lane.b32.xlu2 %v7932_v26, %s6931_s21 }
0x25d4   :  { %3279 = vrot.lane.b32.xlu0 %v7932_v26, %s6929_s8  ;;  %3251 = vrot.lane.b32.xlu2 %v7926_v62, %s6929_s8 }
0x261e   :  { %v3195_v46 = vpop.permute.xlu2 %3194 }
0x261f   :  { %6065 = vmatpush.xpose.msk.msra.mxu3 %vm792_vm12, %v3195_v46 }
0x2626   :  { %v3336_v3 = vpop.permute.xlu2 %3335 }
0x262e   :  { %v3252_v52 = vpop.permute.xlu2 %3251 }
0x262f   :  { %6069 = vmatpush.xpose.msk.msrb.mxu0 %vm792_vm12, %v3252_v52 }
0x2636   :  { %v3308_v5 = vpop.permute.xlu1 %3307 }
0x2637   :  { %6073 = vmatpush.xpose.msk.msra.mxu2 %vm792_vm12, %v3308_v5 }
0x263b   :  { %3539 = vmatpush.msrb.mxu2 %v7926_v62 }
0x263e   :  { %v3223_v60 = vpop.permute.xlu0 %3222 }
0x263f   :  { %6067 = vmatpush.xpose.msk.msrb.mxu3 %vm792_vm12, %v3223_v60 }
0x2642   :  { %v3188_v63 = vpop.f32.mrf.mxu2 }
0x2643   :  { %v3189_v6 = vadd.f32 %v3188_v63, %v3174_v4 }
0x2645   :  { %3305 = vrot.lane.b32.xlu0 %v3189_v6, %s8673_s26  ;;  %6066 = vmatmul.msk.f32.vlgmr.msra.gmra.mxu3 %vm792_vm12, %v3189_v6 }
0x2646   :  { %6075 = vmatpush.xpose.msk.msra.mxu3 %vm792_vm12, %v3336_v3  ;;  %v3280_v7 = vpop.permute.xlu0 %3279 }
0x2647   :  { %6071 = vmatpush.xpose.msk.msrb.mxu1 %vm792_vm12, %v3280_v7 }
0x264a   :  { %v3190_v1 = vpop.f32.mrf.mxu2 }
0x264b   :  { %v3191_v9 = vadd.f32 %v3190_v1, %v3174_v4 }
0x264d   :  { %3277 = vrot.lane.b32.xlu2 %v3191_v9, %s6936_s25  ;;  %3333 = vrot.lane.b32.xlu1 %v3191_v9, %s8673_s26 }
0x264e   :  { %3363 = vrot.lane.b32.xlu0 %v7926_v62, %s6935_s15  ;;  %6068 = vmatmul.msk.f32.vlgmr.msrb.gmra.mxu3 %vm792_vm12, %v3191_v9 }
0x264f   :  { %3562 = vmatpush.msrb.mxu3 %v7932_v26 }
0x2655   :  { %3361 = vrot.lane.b32.xlu2 %v3189_v6, %s8671_s3  ;;  %3249 = vrot.lane.b32.xlu1 %v3189_v6, %s6936_s25 }
0x2656   :  { %3389 = vrot.lane.b32.xlu0 %v3191_v9, %s8671_s3 }
0x265d   :  { %3391 = vrot.lane.b32.xlu1 %v7932_v26, %s6935_s15 }
0x26a7   :  { %v3278_v11 = vpop.permute.xlu2 %3277 }
0x26a8   :  { %6072 = vmatmul.msk.f32.vlgmr.msrb.gmra.mxu1 %vm792_vm12, %v3278_v11 }
0x26af   :  { %v3362_v19 = vpop.permute.xlu2 %3361 }
0x26b7   :  { %v3306_v28 = vpop.permute.xlu0 %3305 }
0x26b8   :  { %6074 = vmatmul.msk.f32.vlgmr.msra.gmra.mxu2 %vm792_vm12, %v3306_v28 }
0x26bf   :  { %v3334_v49 = vpop.permute.xlu1 %3333 }
0x26c0   :  { %v3364_v47 = vpop.permute.xlu0 %3363  ;;  %6076 = vmatmul.msk.f32.vlgmr.msra.gmra.mxu3 %vm792_vm12, %v3334_v49 }
0x26c1   :  { %6077 = vmatpush.xpose.msk.msra.mxu0 %vm792_vm12, %v3364_v47 }
0x26c7   :  { %v3250_v16 = vpop.permute.xlu1 %3249 }
0x26c8   :  { %v3218_v54 = vpop.f32.mrf.mxu3  ;;  %6070 = vmatmul.msk.f32.vlgmr.msrb.gmra.mxu0 %vm792_vm12, %v3250_v16  ;;  %v3390_v39 = vpop.permute.xlu0 %3389 }
0x26c9   :  { %v3417_v17 = vmul.f32 0.35355338, %v3218_v54 }
0x26cb   :  { %v3425_v0 = vsel %vm7303_vm15, -1e+09, %v3417_v17 }
0x26cc   :  { %v3433_v18 = vsel %vm792_vm12, %v3425_v0, -inf }
0x26cd   :  { %3434 = vmax.xlane.f32.xlu1 %v3433_v18 }
0x26cf   :  { %v3392_v53 = vpop.permute.xlu1 %3391 }
0x26d0   :  { %6078 = vmatmul.msk.f32.vlgmr.msra.gmra.mxu0 %vm792_vm12, %v3362_v19  ;;  %6079 = vmatpush.xpose.msk.msra.mxu1 %vm792_vm12, %v3392_v53 }
0x26d1   :  { %v3246_v21 = vpop.f32.mrf.mxu3 }
0x26d2   :  { %v3421_v8 = vmul.f32 0.35355338, %v3246_v21 }
0x26d3   :  { %6080 = vmatmul.msk.f32.vlgmr.msra.gmra.mxu1 %vm792_vm12, %v3390_v39 }
0x26d4   :  { %v3429_v22 = vsel %vm7315_vm3, -1e+09, %v3421_v8 }
0x26d5   :  { %v3445_v55 = vsel %vm792_vm12, %v3429_v22, -inf }
0x26d6   :  { %3446 = vmax.xlane.f32.xlu2 %v3445_v55 }
0x2725   :  { %v3302_v13 = vpop.f32.mrf.mxu1 }
0x2726   :  { %v3422_v37 = vmul.f32 0.35355338, %v3302_v13 }
0x2728   :  { %v3430_v23 = vsel %vm7315_vm3, -1e+09, %v3422_v37 }
0x2729   :  { %v3448_v36 = vsel %vm792_vm12, %v3430_v23, -inf }
0x272a   :  { %3449 = vmax.xlane.f32.xlu1 %v3448_v36 }
0x273b   :  { %v3330_v25 = vpop.f32.mrf.mxu2 }
0x273c   :  { %v3419_v29 = vmul.f32 0.35355338, %v3330_v25 }
0x273e   :  { %v3427_v32 = vsel %vm7303_vm15, -1e+09, %v3419_v29 }
0x273f   :  { %v3439_v33 = vsel %vm792_vm12, %v3427_v32, -inf }
0x2740   :  { %3440 = vmax.xlane.f32.xlu2 %v3439_v33  ;;  %v3435_v38 = vpop.xlane.xlu1 %3434 }
0x2741   :  { %v3457_v42 = vsub.f32 %v3425_v0, %v3435_v38 }
0x2743   :  { %v3358_v44 = vpop.f32.mrf.mxu3  ;;  %v3465_v51 = vmul.f32 1.442695, %v3457_v42 }
0x2744   :  { %v3423_v2 = vmul.f32 0.35355338, %v3358_v44 }
0x2745   :  { %v3274_v40 = vpop.f32.mrf.mxu0  ;;  %6630 = vpow2.f32 %v3465_v51 }
0x2746   :  { %v3418_v41 = vmul.f32 0.35355338, %v3274_v40  ;;  %v3431_v43 = vsel %vm7315_vm3, -1e+09, %v3423_v2 }
0x2747   :  { %v3451_v46 = vsel %vm792_vm12, %v3431_v43, -inf }
0x2748   :  { %v3426_v30 = vsel %vm7303_vm15, -1e+09, %v3418_v41 }
0x2749   :  { %v3447_v31 = vpop.xlane.xlu2 %3446  ;;  %v3436_v12 = vsel %vm792_vm12, %v3426_v30, -inf }
0x274a   :  { %v3461_v50 = vsub.f32 %v3429_v22, %v3447_v31  ;;  %3437 = vmax.xlane.f32.xlu0 %v3436_v12 }
0x274b   :  { %v6631_v5 = vpop.eup %6630 }
0x274c   :  { %v3473_v57 = vmul.f32 1.442695, %v3461_v50  ;;  %v3481_v63 = vsel %vm792_vm12, %v6631_v5, 0.0  ;;  %v6309_v50 = vpack.i.bf16 %v7932_v26, %v7926_v62 }
0x274d   :  { %v3386_v58 = vpop.f32.mrf.mxu0 }
0x274e   :  { %v3420_v45 = vmul.f32 0.35355338, %v3386_v58  ;;  %6632 = vpow2.f32 %v3473_v57 }
0x2750   :  { %v3428_v61 = vsel %vm7303_vm15, -1e+09, %v3420_v45  ;;  %v3414_v34 = vpop.f32.mrf.mxu1 }
0x2751   :  { %v3424_v20 = vmul.f32 0.35355338, %v3414_v34  ;;  %v3442_v3 = vsel %vm792_vm12, %v3428_v61, -inf }
0x2752   :  { %3452 = vmax.xlane.f32.xlu0 %v3451_v46  ;;  %3443 = vmax.xlane.f32.xlu1 %v3442_v3 }
0x2753   :  { %v3432_v52 = vsel %vm7315_vm3, -1e+09, %v3424_v20 }
0x2754   :  { %v3454_v4 = vsel %vm792_vm12, %v3432_v52, -inf  ;;  %v6633_v60 = vpop.eup %6632 }
0x2755   :  { %3455 = vmax.xlane.f32.xlu2 %v3454_v4  ;;  %v3493_v6 = vsel %vm792_vm12, %v6633_v60, 0.0 }
0x275a   :  { %3482 = vadd.xlane.f32.xlu0 %v3481_v63  ;;  %3494 = vadd.xlane.f32.xlu1 %v3493_v6 }
0x279d   :  { %v3450_v7 = vpop.xlane.xlu1 %3449 }
0x279e   :  { %v3462_v1 = vsub.f32 %v3430_v23, %v3450_v7 }
0x27a0   :  { %v3475_v9 = vmul.f32 1.442695, %v3462_v1 }
0x27a2   :  { %6634 = vpow2.f32 %v3475_v9 }
0x27a8   :  { %v7996_v11 = vpop.eup %6634 }
0x27a9   :  { %v3496_v28 = vsel %vm792_vm12, %v7996_v11, 0.0 }
0x27aa   :  { %3497 = vadd.xlane.f32.xlu0 %v3496_v28 }
0x27b3   :  { %v3441_v49 = vpop.xlane.xlu2 %3440 }
0x27b4   :  { %v3459_v47 = vsub.f32 %v3427_v32, %v3441_v49 }
0x27b6   :  { %v3469_v16 = vmul.f32 1.442695, %v3459_v47 }
0x27b8   :  { %6636 = vpow2.f32 %v3469_v16 }
0x27bd   :  { %v3438_v54 = vpop.xlane.xlu0 %3437 }
0x27be   :  { %v8000_v17 = vpop.eup %6636  ;;  %v3458_v0 = vsub.f32 %v3426_v30, %v3438_v54 }
0x27bf   :  { %v3487_v18 = vsel %vm792_vm12, %v8000_v17, 0.0 }
0x27c0   :  { %v3467_v19 = vmul.f32 1.442695, %v3458_v0  ;;  %3488 = vadd.xlane.f32.xlu1 %v3487_v18 }
0x27c2   :  { %6638 = vpow2.f32 %v3467_v19 }
0x27c5   :  { %v3453_v53 = vpop.xlane.xlu0 %3452  ;;  %v3444_v21 = vpop.xlane.xlu1 %3443 }
0x27c6   :  { %v3463_v39 = vsub.f32 %v3431_v43, %v3453_v53  ;;  %v3460_v8 = vsub.f32 %v3428_v61, %v3444_v21 }
0x27c8   :  { %v6639_v22 = vpop.eup %6638  ;;  %v3477_v55 = vmul.f32 1.442695, %v3463_v39  ;;  %v3471_v13 = vmul.f32 1.442695, %v3460_v8  ;;  %v3456_v37 = vpop.xlane.xlu2 %3455 }
0x27c9   :  { %v3464_v23 = vsub.f32 %v3432_v52, %v3456_v37  ;;  %v3484_v36 = vsel %vm792_vm12, %v6639_v22, 0.0  ;;  %v6091_v37 = vld [vmem:[%s8649_s12 + $0x30] sm:$0xff] }
0x27ca   :  { %6640 = vpow2.f32 %v3477_v55  ;;  %3485 = vadd.xlane.f32.xlu2 %v3484_v36 }
0x27cb   :  { %6642 = vpow2.f32 %v3471_v13  ;;  %v3479_v25 = vmul.f32 1.442695, %v3464_v23  ;;  %v6092_v23 = vld [vmem:[%s8649_s12 + $0x38] sm:$0xff] }
0x27cc   :  { %v3760_v36 = vpack.c.bf16 %v6092_v23, %v6091_v37 }
0x27cd   :  { %6644 = vpow2.f32 %v3479_v25  ;;  %v3483_v29 = vpop.xlane.xlu0 %3482  ;;  %v3495_v32 = vpop.xlane.xlu1 %3494  ;;  %v6089_v25 = vld [vmem:[%s8649_s12 + $0x20] sm:$0xff] }
0x27ce   :  { %6646 = vrcp.f32 %v3483_v29  ;;  %v6090_v29 = vld [vmem:[%s8649_s12 + $0x28] sm:$0xff] }
0x27cf   :  { %6648 = vrcp.f32 %v3495_v32  ;;  %v3759_v32 = vpack.c.bf16 %v6090_v29, %v6089_v25 }
0x27d0   :  { %v6641_v33 = vpop.eup %6640 }
0x27d1   :  { %v6643_v38 = vpop.eup %6642  ;;  %v3499_v40 = vsel %vm792_vm12, %v6641_v33, 0.0 }
0x27d2   :  { %3500 = vadd.xlane.f32.xlu2 %v3499_v40  ;;  %v3490_v41 = vsel %vm792_vm12, %v6643_v38, 0.0 }
0x27d3   :  { %v6645_v42 = vpop.eup %6644  ;;  %3491 = vadd.xlane.f32.xlu0 %v3490_v41 }
0x27d4   :  { %v6647_v44 = vpop.eup %6646  ;;  %v3502_v30 = vsel %vm792_vm12, %v6645_v42, 0.0 }
0x27d5   :  { %v6649_v31 = vpop.eup %6648  ;;  %v3513_v12 = vmul.f32 %v6647_v44, %v6631_v5  ;;  %3503 = vadd.xlane.f32.xlu1 %v3502_v30 }
0x27d6   :  { %v3517_v2 = vmul.f32 %v6649_v31, %v6633_v60 }
0x27d7   :  { %6081 = vmatmul.msk.f32.vlgmr.msrb.gmra.mxu2 %vm792_vm12, %v3513_v12 }
0x27d8   :  { %6082 = vmatmul.msk.f32.vlgmr.msrb.gmra.mxu3 %vm792_vm12, %v3517_v2 }
0x27e7   :  { %6310 = vrot.lane.b32.xlu0 %v6309_v50, %s8673_s26 }
0x27ea   :  { %6305 = vrot.lane.b32.xlu2 %v6309_v50, %s6936_s25 }
0x27ee   :  { %6315 = vrot.lane.b32.xlu1 %v6309_v50, %s8671_s3 }
0x281d   :  { %v3498_v57 = vpop.xlane.xlu0 %3497 }
0x281e   :  { %6650 = vrcp.f32 %v3498_v57 }
0x2824   :  { %v6651_v43 = vpop.eup %6650 }
0x2825   :  { %v3518_v3 = vmul.f32 %v6651_v43, %v7996_v11 }
0x2833   :  { %v3489_v34 = vpop.xlane.xlu1 %3488 }
0x283d   :  { %v3486_v51 = vpop.xlane.xlu2 %3485 }
0x283e   :  { %6652 = vrcp.f32 %v3486_v51 }
0x283f   :  { %6654 = vrcp.f32 %v3489_v34 }
0x2844   :  { %v6653_v45 = vpop.eup %6652 }
0x2845   :  { %v3501_v58 = vpop.xlane.xlu2 %3500  ;;  %v3514_v62 = vmul.f32 %v6653_v45, %v6639_v22  ;;  %v6655_v4 = vpop.eup %6654 }
0x2846   :  { %v3492_v26 = vpop.xlane.xlu0 %3491  ;;  %6656 = vrcp.f32 %v3501_v58  ;;  %v3515_v7 = vmul.f32 %v6655_v4, %v8000_v17 }
0x2847   :  { %6658 = vrcp.f32 %v3492_v26 }
0x2848   :  { %v3504_v52 = vpop.xlane.xlu1 %3503 }
0x2849   :  { %6660 = vrcp.f32 %v3504_v52 }
0x284c   :  { %v6657_v5 = vpop.eup %6656 }
0x284d   :  { %v6306_v61 = vpop.permute.xlu2 %6305  ;;  %v3519_v1 = vmul.f32 %v6657_v5, %v6641_v33  ;;  %v6659_v9 = vpop.eup %6658 }
0x284e   :  { %v6308_v20 = vunpack.i.h.bf16 %v6306_v61  ;;  %v6307_v46 = vunpack.i.l.bf16 %v6306_v61  ;;  %v3516_v16 = vmul.f32 %v6659_v9, %v6643_v38  ;;  %v6400_v61 = vld [vmem:[#allocation2 + $0x2] ss:$0 sm:$0xff] }
0x284f   :  { %v6661_v11 = vpop.eup %6660 }
0x2850   :  { %3588 = vmatpush.msrb.mxu0 %v6307_v46  ;;  %3614 = vmatpush.msrb.mxu1 %v6308_v20  ;;  %v3520_v54 = vmul.f32 %v6661_v11, %v6645_v42 }
0x2851   :  { %6083 = vmatmul.msk.f32.vlgmr.msrb.gmra.mxu0 %vm792_vm12, %v3514_v62  ;;  %6084 = vmatmul.msk.f32.vlgmr.msrb.gmra.mxu1 %vm792_vm12, %v3518_v3 }
0x2859   :  { %v6311_v60 = vpop.permute.xlu0 %6310 }
0x285a   :  { %v6313_v63 = vunpack.i.h.bf16 %v6311_v60  ;;  %v6312_v6 = vunpack.i.l.bf16 %v6311_v60  ;;  %v3541_v19 = vpop.f32.mrf.mxu2 }
0x285b   :  { %v3564_v53 = vpop.f32.mrf.mxu3 }
0x285c   :  { %3640 = vmatpush.msra.mxu2 %v6312_v6  ;;  %3666 = vmatpush.msra.mxu3 %v6313_v63 }
0x285d   :  { %6085 = vmatmul.msk.f32.vlgmr.msra.gmra.mxu2 %vm792_vm12, %v3515_v7  ;;  %6086 = vmatmul.msk.f32.vlgmr.msra.gmra.mxu3 %vm792_vm12, %v3519_v1 }
0x285e   :  { %3775 = vmatpush.bf16.msrb.mxu2 %v3760_v36 }
0x2860   :  { %v6316_v28 = vpop.permute.xlu1 %6315 }
0x2861   :  { %v6318_v49 = vunpack.i.h.bf16 %v6316_v28  ;;  %v6317_v47 = vunpack.i.l.bf16 %v6316_v28 }
0x2862   :  { %3776 = vmatpush.bf16.msrb.mxu2 %v3759_v32 }
0x2863   :  { %3692 = vmatpush.msra.mxu0 %v6317_v47  ;;  %3718 = vmatpush.msra.mxu1 %v6318_v49 }
0x2864   :  { %6087 = vmatmul.msk.f32.vlgmr.msra.gmra.mxu0 %vm792_vm12, %v3516_v16  ;;  %6088 = vmatmul.msk.f32.vlgmr.msra.gmra.mxu1 %vm792_vm12, %v3520_v54  ;;  %v6097_v16 = vld [vmem:[%s8650_s13 + $0x98] sm:$0xff]  ;;  %v6094_v54 = vld [vmem:[%s8650_s13 + $0x80] sm:$0xff] }
0x28ce   :  { %v3590_v17 = vpop.f32.mrf.mxu0  ;;  %v3616_v0 = vpop.f32.mrf.mxu1 }
0x28cf   :  { %v6319_v18 = vpack.i.bf16 %v3616_v0, %v3590_v17  ;;  %v6095_v17 = vld [vmem:[%s8650_s13 + $0x88] sm:$0xff] }
0x28d1   :  { %6320 = vrot.lane.b32.xlu2 %v6319_v18, %s8694_s11  ;;  %v3855_v18 = vpack.c.bf16 %v6095_v17, %v6094_v54 }
0x28e0   :  { %v3642_v21 = vpop.f32.mrf.mxu2  ;;  %v3668_v39 = vpop.f32.mrf.mxu3 }
0x28e1   :  { %v6324_v8 = vpack.i.bf16 %v3668_v39, %v3642_v21  ;;  %v3694_v22 = vpop.f32.mrf.mxu0  ;;  %v3720_v55 = vpop.f32.mrf.mxu1 }
0x28e2   :  { %v6329_v13 = vpack.i.bf16 %v3720_v55, %v3694_v22 }
0x28e3   :  { %6325 = vrot.lane.b32.xlu0 %v6324_v8, %s8688_s10 }
0x28e4   :  { %6330 = vrot.lane.b32.xlu2 %v6329_v13, %s8687_s9 }
0x292b   :  { %v6321_v33 = vpop.permute.xlu2 %6320 }
0x292c   :  { %v6323_v38 = vunpack.i.h.bf16 %v6321_v33  ;;  %v6322_v40 = vunpack.i.l.bf16 %v6321_v33 }
0x292e   :  { %v3748_v31 = vsel %vm792_vm12, %v3564_v53, %v6323_v38  ;;  %v3747_v12 = vsel %vm792_vm12, %v3541_v19, %v6322_v40 }
0x293e   :  { %v6331_v41 = vpop.permute.xlu2 %6330 }
0x293f   :  { %v6333_v2 = vunpack.i.h.bf16 %v6331_v41  ;;  %v6332_v50 = vunpack.i.l.bf16 %v6331_v41 }
0x2955   :  { %v6326_v42 = vpop.permute.xlu0 %6325 }
0x2956   :  { %v6328_v44 = vunpack.i.h.bf16 %v6326_v42  ;;  %v6327_v30 = vunpack.i.l.bf16 %v6326_v42 }
0x2958   :  { %v3749_v51 = vsel %vm1352_vm4, %v3747_v12, %v6327_v30  ;;  %v3750_v57 = vsel %vm1352_vm4, %v3748_v31, %v6328_v44 }
0x2959   :  { %v3751_v58 = vsel %vm1355_vm5, %v3749_v51, %v6332_v50  ;;  %v3752_v43 = vsel %vm1355_vm5, %v3750_v57, %v6333_v2  ;;  %v6401_v57 = vld [vmem:[#allocation2 + $0x6] ss:$0 sm:$0xff] }
0x295a   :  { %v3758_v45 = vpack.c.bf16 %v3752_v43, %v3751_v58 }
0x295c   :  { %6093 = vmatmul.msk.bf16.vlgmr.msrb.gmra.mxu2 %vm198_vm0, %v3758_v45 }
0x29df   :  { %v3778_v34 = vpop.f32.mrf.mxu2 }
0x29e0   :  { %v3779_v20 = vadd.f32 %v6400_v61, %v3778_v34 }
0x29e2   :  { %v3783_v46 = vadd.f32 %v3779_v20, %v7919_v59 }
0x29e4   :  { %v3785_v3 = vsel %vm198_vm0, %v3783_v46, 0.0 }
0x29e5   :  { %3786 = vadd.xlane.f32.xlu0 %v3785_v3 }
0x29e7   :  { %v3780_v62 = vpop.f32.mrf.mxu2 }
0x29e8   :  { %v3781_v26 = vadd.f32 %v6400_v61, %v3780_v62  ;;  %v6402_v61 = vld [vmem:[#allocation2 + $0x5] ss:$0 sm:$0xff]  ;;  %v3887_v62 = vld [vmem:[%s8655_s18 + $0x30] sm:$0xff] }
0x29ea   :  { %v3784_v52 = vadd.f32 %v3781_v26, %v7921_v56  ;;  %v6096_v56 = vld [vmem:[%s8650_s13 + $0x90] sm:$0xff]  ;;  %v3888_v26 = vld [vmem:[%s8655_s18 + $0x38] sm:$0xff] }
0x29eb   :  { %v3856_v0 = vpack.c.bf16 %v6097_v16, %v6096_v56 }
0x29ec   :  { %v3788_v4 = vsel %vm198_vm0, %v3784_v52, 0.0 }
0x29ed   :  { %3789 = vadd.xlane.f32.xlu1 %v3788_v4  ;;  %3871 = vmatpush.bf16.msrb.mxu3 %v3856_v0  ;;  %v3885_v4 = vld [vmem:[%s8655_s18 + $0x20] sm:$0xff]  ;;  %v6404_v0 = vld [vmem:[#allocation2] ss:$0 sm:$0xff] }
0x29f1   :  { %3872 = vmatpush.bf16.msrb.mxu3 %v3855_v18 }
0x2a58   :  { %v3787_v5 = vpop.xlane.xlu0 %3786 }
0x2a59   :  { %v3791_v60 = vmul.f32 0.03125, %v3787_v5  ;;  %v3886_v5 = vld [vmem:[%s8655_s18 + $0x28] sm:$0xff] }
0x2a5b   :  { %v3793_v63 = vsub.f32 %v3783_v46, %v3791_v60  ;;  %v3892_v60 = vpack.c.bf16 %v3886_v5, %v3885_v4 }
0x2a5d   :  { %v3795_v6 = vmul.f32 %v3793_v63, %v3793_v63 }
0x2a5f   :  { %v3797_v7 = vsel %vm198_vm0, %v3795_v6, 0.0  ;;  %v3884_v6 = vld [vmem:[%s8655_s18 + $0x18] sm:$0xff] }
0x2a60   :  { %v3790_v1 = vpop.xlane.xlu1 %3789  ;;  %3798 = vadd.xlane.f32.xlu2 %v3797_v7 }
0x2a61   :  { %v3792_v9 = vmul.f32 0.03125, %v3790_v1  ;;  %v3881_v1 = vld [vmem:[%s8655_s18] sm:$0xff] }
0x2a63   :  { %v3794_v59 = vsub.f32 %v3784_v52, %v3792_v9  ;;  %v3893_v52 = vpack.c.bf16 %v3888_v26, %v3887_v62  ;;  %v3882_v9 = vld [vmem:[%s8655_s18 + $0x8] sm:$0xff] }
0x2a65   :  { %v3796_v11 = vmul.f32 %v3794_v59, %v3794_v59  ;;  %3905 = vmatpush.bf16.msrb.mxu0 %v3893_v52 }
0x2a67   :  { %v3800_v28 = vsel %vm198_vm0, %v3796_v11, 0.0 }
0x2a68   :  { %3801 = vadd.xlane.f32.xlu0 %v3800_v28  ;;  %v6403_v28 = vld [vmem:[#allocation5 + $0x6] ss:$0 sm:$0xff] }
0x2a69   :  { %3906 = vmatpush.bf16.msrb.mxu0 %v3892_v60 }
0x2ad3   :  { %v3799_v49 = vpop.xlane.xlu2 %3798 }
0x2ad4   :  { %v3803_v47 = vmul.f32 0.032258064, %v3799_v49 }
0x2ad6   :  { %6662 = vrsqrt.f32 %v3803_v47  ;;  %vm3812_vm8 = vcmp.eq.f32.partialorder %v3803_v47, inf  ;;  %v3815_v29 = vand.u32 2147483648, %v3803_v47  ;;  %vm3814_vm9 = vcmp.eq.f32.partialorder %v3803_v47, 0.0 }
0x2adb   :  { %v3802_v19 = vpop.xlane.xlu0 %3801 }
0x2adc   :  { %v6663_v53 = vpop.eup %6662  ;;  %v3804_v21 = vmul.f32 0.032258064, %v3802_v19 }
0x2add   :  { %v3806_v39 = vmul.f32 %v6663_v53, %v3803_v47 }
0x2ade   :  { %6664 = vrsqrt.f32 %v3804_v21  ;;  %vm3824_vm11 = vcmp.eq.f32.partialorder %v3804_v21, inf  ;;  %v3827_v30 = vand.u32 2147483648, %v3804_v21  ;;  %vm3826_vm13 = vcmp.eq.f32.partialorder %v3804_v21, 0.0 }
0x2adf   :  { %v3807_v8 = vmul.f32 %v6663_v53, %v3806_v39 }
0x2ae1   :  { %v3808_v22 = vmul.f32 0.5, %v3807_v8 }
0x2ae3   :  { %v3809_v55 = vsub.f32 1.5, %v3808_v22 }
0x2ae4   :  { %v6665_v13 = vpop.eup %6664 }
0x2ae5   :  { %v3810_v37 = vmul.f32 %v6663_v53, %v3809_v55  ;;  %v3818_v23 = vmul.f32 %v6665_v13, %v3804_v21 }
0x2ae7   :  { %v3811_v36 = vmul.f32 %v3810_v37, %v3803_v47  ;;  %v3819_v25 = vmul.f32 %v6665_v13, %v3818_v23 }
0x2ae9   :  { %v3813_v32 = vsel %vm3812_vm8, %v3803_v47, %v3811_v36  ;;  %v3820_v33 = vmul.f32 0.5, %v3819_v25 }
0x2aea   :  { %v3816_v38 = vsel %vm3814_vm9, %v3815_v29, %v3813_v32 }
0x2aeb   :  { %v3829_v40 = vadd.f32 1e-06, %v3816_v38  ;;  %v3821_v41 = vsub.f32 1.5, %v3820_v33 }
0x2aed   :  { %v3822_v42 = vmul.f32 %v6665_v13, %v3821_v41  ;;  %6666 = vrcp.f32 %v3829_v40 }
0x2aef   :  { %v3823_v44 = vmul.f32 %v3822_v42, %v3804_v21 }
0x2af1   :  { %v3825_v31 = vsel %vm3824_vm11, %v3804_v21, %v3823_v44  ;;  %v6102_v44 = vld [vmem:[%s8651_s14 + $0x50] sm:$0xff] }
0x2af2   :  { %v3828_v12 = vsel %vm3826_vm13, %v3827_v30, %v3825_v31  ;;  %v6103_v30 = vld [vmem:[%s8651_s14 + $0x58] sm:$0xff]  ;;  %v6100_v31 = vld [vmem:[%s8651_s14 + $0x40] sm:$0xff] }
0x2af3   :  { %v3830_v2 = vadd.f32 1e-06, %v3828_v12  ;;  %v6667_v50 = vpop.eup %6666  ;;  %v6101_v12 = vld [vmem:[%s8651_s14 + $0x48] sm:$0xff] }
0x2af4   :  { %v3835_v51 = vmul.f32 %v6667_v50, %v3793_v63  ;;  %v3883_v63 = vld [vmem:[%s8655_s18 + $0x10] sm:$0xff]  ;;  %v3989_v50 = vpack.c.bf16 %v6101_v12, %v6100_v31 }
0x2af5   :  { %6668 = vrcp.f32 %v3830_v2  ;;  %v3891_v7 = vpack.c.bf16 %v3884_v6, %v3883_v63  ;;  %v3990_v2 = vpack.c.bf16 %v6103_v30, %v6102_v44 }
0x2af6   :  { %v3840_v45 = vmul.f32 %v6401_v57, %v3835_v51 }
0x2af7   :  { %3907 = vmatpush.bf16.msrb.mxu0 %v3891_v7  ;;  %4003 = vmatpush.bf16.msrb.mxu1 %v3990_v2 }
0x2af8   :  { %v3847_v20 = vadd.f32 %v6402_v61, %v3840_v45 }
0x2afb   :  { %v6669_v58 = vpop.eup %6668  ;;  %4004 = vmatpush.bf16.msrb.mxu1 %v3989_v50 }
0x2afc   :  { %v3836_v43 = vmul.f32 %v6669_v58, %v3794_v59  ;;  %v3890_v59 = vpack.c.bf16 %v3882_v9, %v3881_v1 }
0x2afe   :  { %v3841_v34 = vmul.f32 %v6401_v57, %v3836_v43  ;;  %3908 = vmatpush.bf16.msrb.mxu0 %v3890_v59 }
0x2b00   :  { %v3848_v46 = vadd.f32 %v6402_v61, %v3841_v34 }
0x2b02   :  { %v3854_v3 = vpack.c.bf16 %v3848_v46, %v3847_v20 }
0x2b04   :  { %6098 = vmatmul.msk.bf16.vlgmr.msrb.gmra.mxu3 %vm198_vm0, %v3854_v3 }
0x2b87   :  { %v3874_v11 = vpop.f32.mrf.mxu3 }
0x2b88   :  { %v3875_v49 = vadd.f32 %v6403_v28, %v3874_v11 }
0x2b8a   :  { %v3879_v16 = vmax.f32 %v3875_v49, 0.0 }
0x2b8f   :  { %v3876_v47 = vpop.f32.mrf.mxu3 }
0x2b90   :  { %v3877_v56 = vadd.f32 %v6403_v28, %v3876_v47 }
0x2b92   :  { %v3880_v54 = vmax.f32 %v3877_v56, 0.0  ;;  %v6405_v56 = vld [vmem:[#allocation2 + $0x8] ss:$0 sm:$0xff] }
0x2b94   :  { %v3889_v17 = vpack.c.bf16 %v3880_v54, %v3879_v16 }
0x2b96   :  { %6099 = vmatmul.msk.bf16.vlgmr.msrb.gmra.mxu0 %vm1537_vm10, %v3889_v17 }
0x2c13   :  { %v3910_v18 = vpop.f32.mrf.mxu0 }
0x2c14   :  { %v3911_v19 = vadd.f32 %v6404_v0, %v3910_v18 }
0x2c16   :  { %v3915_v53 = vadd.f32 %v3911_v19, %v3847_v20 }
0x2c18   :  { %v3917_v21 = vsel %vm198_vm0, %v3915_v53, 0.0 }
0x2c19   :  { %3918 = vadd.xlane.f32.xlu1 %v3917_v21 }
0x2c1b   :  { %v3912_v39 = vpop.f32.mrf.mxu0 }
0x2c1c   :  { %v3913_v8 = vadd.f32 %v6404_v0, %v3912_v39  ;;  %v6406_v0 = vld [vmem:[#allocation2 + $0x7] ss:$0 sm:$0xff]  ;;  %v6407_v39 = vld [vmem:[#allocation7 + $0x2] ss:$0 sm:$0xff] }
0x2c1e   :  { %v3916_v22 = vadd.f32 %v3913_v8, %v3848_v46 }
0x2c20   :  { %v3920_v55 = vsel %vm198_vm0, %v3916_v22, 0.0 }
0x2c21   :  { %3921 = vadd.xlane.f32.xlu2 %v3920_v55 }
0x2c8c   :  { %v3919_v13 = vpop.xlane.xlu1 %3918 }
0x2c8d   :  { %v3923_v37 = vmul.f32 0.03125, %v3919_v13 }
0x2c8f   :  { %v3925_v23 = vsub.f32 %v3915_v53, %v3923_v37 }
0x2c91   :  { %v3927_v36 = vmul.f32 %v3925_v23, %v3925_v23 }
0x2c93   :  { %v3929_v25 = vsel %vm198_vm0, %v3927_v36, 0.0 }
0x2c94   :  { %v3922_v29 = vpop.xlane.xlu2 %3921  ;;  %3930 = vadd.xlane.f32.xlu0 %v3929_v25 }
0x2c95   :  { %v3924_v32 = vmul.f32 0.03125, %v3922_v29 }
0x2c97   :  { %v3926_v33 = vsub.f32 %v3916_v22, %v3924_v32 }
0x2c99   :  { %v3928_v38 = vmul.f32 %v3926_v33, %v3926_v33 }
0x2c9b   :  { %v3932_v40 = vsel %vm198_vm0, %v3928_v38, 0.0 }
0x2c9c   :  { %3933 = vadd.xlane.f32.xlu1 %v3932_v40 }
0x2d07   :  { %v3931_v41 = vpop.xlane.xlu0 %3930 }
0x2d08   :  { %v3935_v42 = vmul.f32 0.032258064, %v3931_v41 }
0x2d0a   :  { %6670 = vrsqrt.f32 %v3935_v42  ;;  %vm3944_vm6 = vcmp.eq.f32.partialorder %v3935_v42, inf  ;;  %v3947_v52 = vand.u32 2147483648, %v3935_v42  ;;  %vm3946_vm7 = vcmp.eq.f32.partialorder %v3935_v42, 0.0 }
0x2d0f   :  { %v3934_v51 = vpop.xlane.xlu1 %3933 }
0x2d10   :  { %v6671_v57 = vpop.eup %6670  ;;  %v3936_v58 = vmul.f32 0.032258064, %v3934_v51 }
0x2d11   :  { %v3938_v43 = vmul.f32 %v6671_v57, %v3935_v42 }
0x2d12   :  { %6672 = vrsqrt.f32 %v3936_v58  ;;  %vm3956_vm8 = vcmp.eq.f32.partialorder %v3936_v58, inf  ;;  %v3959_v9 = vand.u32 2147483648, %v3936_v58  ;;  %vm3958_vm9 = vcmp.eq.f32.partialorder %v3936_v58, 0.0 }
0x2d13   :  { %v3939_v45 = vmul.f32 %v6671_v57, %v3938_v43 }
0x2d15   :  { %v3940_v61 = vmul.f32 0.5, %v3939_v45 }
0x2d17   :  { %v3941_v34 = vsub.f32 1.5, %v3940_v61 }
0x2d18   :  { %v6673_v20 = vpop.eup %6672 }
0x2d19   :  { %v3942_v46 = vmul.f32 %v6671_v57, %v3941_v34  ;;  %v3950_v3 = vmul.f32 %v6673_v20, %v3936_v58 }
0x2d1b   :  { %v3943_v62 = vmul.f32 %v3942_v46, %v3935_v42  ;;  %v3951_v26 = vmul.f32 %v6673_v20, %v3950_v3 }
0x2d1d   :  { %v3945_v4 = vsel %vm3944_vm6, %v3935_v42, %v3943_v62  ;;  %v3952_v5 = vmul.f32 0.5, %v3951_v26  ;;  %vm5564_vm6 = vcmask 7168  }
0x2d1e   :  { %v3948_v60 = vsel %vm3946_vm7, %v3947_v52, %v3945_v4 }
0x2d1f   :  { %v3961_v63 = vadd.f32 1e-06, %v3948_v60  ;;  %v3953_v6 = vsub.f32 1.5, %v3952_v5 }
0x2d21   :  { %v3954_v7 = vmul.f32 %v6673_v20, %v3953_v6  ;;  %6674 = vrcp.f32 %v3961_v63 }
0x2d23   :  { %v3955_v1 = vmul.f32 %v3954_v7, %v3936_v58 }
0x2d25   :  { %v3957_v59 = vsel %vm3956_vm8, %v3936_v58, %v3955_v1 }
0x2d26   :  { %v3960_v11 = vsel %vm3958_vm9, %v3959_v9, %v3957_v59 }
0x2d27   :  { %v3962_v28 = vadd.f32 1e-06, %v3960_v11  ;;  %v6675_v49 = vpop.eup %6674 }
0x2d28   :  { %v3967_v47 = vmul.f32 %v6675_v49, %v3925_v23 }
0x2d29   :  { %6676 = vrcp.f32 %v3962_v28 }
0x2d2a   :  { %v3972_v17 = vmul.f32 %v6405_v56, %v3967_v47 }
0x2d2c   :  { %v8105_v19 = vadd.f32 %v6406_v0, %v3972_v17 }
0x2d2f   :  { %v6677_v16 = vpop.eup %6676 }
0x2d30   :  { %v3968_v54 = vmul.f32 %v6677_v16, %v3926_v33 }
0x2d32   :  { %v3973_v18 = vmul.f32 %v6405_v56, %v3968_v54 }
0x2d34   :  { %v8107_v53 = vadd.f32 %v6406_v0, %v3973_v18 }
0x2d36   :  { %v3988_v21 = vpack.c.bf16 %v8107_v53, %v8105_v19 }
0x2d38   :  { %6104 = vmatmul.msk.bf16.vlgmr.msrb.gmra.mxu1 %vm198_vm0, %v3988_v21 }
0x2db5   :  { %v4006_v8 = vpop.f32.mrf.mxu1 }
0x2db6   :  { %v8112_v22 = vadd.f32 %v6407_v39, %v4006_v8 }
0x2db8   :  { %4012 = vrot.lane.b32.xlu0 %v8112_v22, %s6927_s23  ;;  %4014 = vrot.lane.b32.xlu2 %v8112_v22, %s6930_s30 }
0x2dbd   :  { %v4008_v55 = vpop.f32.mrf.mxu1 }
0x2dbe   :  { %v8118_v13 = vadd.f32 %v6407_v39, %v4008_v55 }
0x2dc0   :  { %4043 = vrot.lane.b32.xlu1 %v8118_v13, %s6930_s30  ;;  %4127 = vrot.lane.b32.xlu0 %v8112_v22, %s6931_s21  ;;  %v6334_v17 = vpack.i.bf16 %v8112_v22, %v8118_v13 }
0x2dc1   :  { %4041 = vrot.lane.b32.xlu2 %v8118_v13, %s6927_s23 }
0x2dc8   :  { %4097 = vrot.lane.b32.xlu1 %v8118_v13, %s6933_s1  ;;  %4099 = vrot.lane.b32.xlu0 %v8118_v13, %s6929_s8 }
0x2dc9   :  { %4211 = vrot.lane.b32.xlu2 %v8118_v13, %s6935_s15 }
0x2dd0   :  { %4125 = vrot.lane.b32.xlu1 %v8112_v22, %s8695_s29  ;;  %4209 = vrot.lane.b32.xlu0 %v8118_v13, %s8686_s16 }
0x2dd1   :  { %4071 = vrot.lane.b32.xlu2 %v8112_v22, %s6929_s8 }
0x2dd8   :  { %4069 = vrot.lane.b32.xlu1 %v8112_v22, %s6933_s1  ;;  %4155 = vrot.lane.b32.xlu0 %v8118_v13, %s6931_s21  ;;  %s8696_s1 = smov 112  }
0x2dd9   :  { %4183 = vrot.lane.b32.xlu2 %v8112_v22, %s6935_s15 }
0x2de0   :  { %4153 = vrot.lane.b32.xlu1 %v8118_v13, %s8695_s29  ;;  %4181 = vrot.lane.b32.xlu0 %v8112_v22, %s8686_s16  ;;  %s8697_s16 = smov 104   ;;  %s5916_s29 = sshll.u32 %s8656_s19, 4  ;;  %s5917_s29 = int_to_ptr.hbm [resolvable:$true] %s5916_s29 }
0x2e12   :  { %v4015_v37 = vpop.permute.xlu2 %4014 }
0x2e13   :  { %6105 = vmatpush.xpose.msk.msra.mxu2 %vm792_vm12, %v4015_v37 }
0x2e1b   :  { %v4042_v23 = vpop.permute.xlu2 %4041 }
0x2e23   :  { %v4212_v36 = vpop.permute.xlu2 %4211 }
0x2e2a   :  { %v4013_v25 = vpop.permute.xlu0 %4012 }
0x2e2b   :  { %v4072_v29 = vpop.permute.xlu2 %4071  ;;  %6106 = vmatmul.msk.f32.vlgmr.msra.gmra.mxu2 %vm792_vm12, %v4013_v25 }
0x2e2c   :  { %6109 = vmatpush.xpose.msk.msra.mxu1 %vm792_vm12, %v4072_v29 }
0x2e32   :  { %v4044_v32 = vpop.permute.xlu1 %4043  ;;  %v4128_v33 = vpop.permute.xlu0 %4127 }
0x2e33   :  { %v4184_v38 = vpop.permute.xlu2 %4183  ;;  %6107 = vmatpush.xpose.msk.msra.mxu3 %vm792_vm12, %v4044_v32 }
0x2e34   :  { %6117 = vmatpush.xpose.msk.msrb.mxu1 %vm792_vm12, %v4184_v38 }
0x2e36   :  { %6108 = vmatmul.msk.f32.vlgmr.msra.gmra.mxu3 %vm792_vm12, %v4042_v23 }
0x2e37   :  { %6113 = vmatpush.xpose.msk.msrb.mxu3 %vm792_vm12, %v4128_v33 }
0x2e3a   :  { %v4098_v40 = vpop.permute.xlu1 %4097  ;;  %v4100_v41 = vpop.permute.xlu0 %4099 }
0x2e3b   :  { %4359 = vmatpush.msra.mxu3 %v8112_v22  ;;  %6111 = vmatpush.xpose.msk.msrb.mxu2 %vm792_vm12, %v4100_v41 }
0x2e3e   :  { %6112 = vmatmul.msk.f32.vlgmr.msrb.gmra.mxu2 %vm792_vm12, %v4098_v40 }
0x2e3f   :  { %6119 = vmatpush.xpose.msk.msra.mxu2 %vm792_vm12, %v4212_v36 }
0x2e42   :  { %v4126_v42 = vpop.permute.xlu1 %4125  ;;  %v4210_v44 = vpop.permute.xlu0 %4209 }
0x2e43   :  { %6114 = vmatmul.msk.f32.vlgmr.msrb.gmra.mxu3 %vm792_vm12, %v4126_v42 }
0x2e46   :  { %6120 = vmatmul.msk.f32.vlgmr.msra.gmra.mxu2 %vm792_vm12, %v4210_v44 }
0x2e4a   :  { %v4070_v30 = vpop.permute.xlu1 %4069  ;;  %v4156_v31 = vpop.permute.xlu0 %4155 }
0x2e4b   :  { %6110 = vmatmul.msk.f32.vlgmr.msra.gmra.mxu1 %vm792_vm12, %v4070_v30  ;;  %6115 = vmatpush.xpose.msk.msra.mxu0 %vm792_vm12, %v4156_v31 }
0x2e4f   :  { %4382 = vmatpush.msrb.mxu0 %v8118_v13 }
0x2e52   :  { %v4154_v12 = vpop.permute.xlu1 %4153  ;;  %v4182_v2 = vpop.permute.xlu0 %4181 }
0x2e53   :  { %6116 = vmatmul.msk.f32.vlgmr.msra.gmra.mxu0 %vm792_vm12, %v4154_v12  ;;  %6118 = vmatmul.msk.f32.vlgmr.msrb.gmra.mxu1 %vm792_vm12, %v4182_v2 }
0x2eae   :  { %v4037_v50 = vpop.f32.mrf.mxu2 }
0x2eaf   :  { %v4237_v52 = vmul.f32 0.35355338, %v4037_v50 }
0x2eb1   :  { %v4245_v60 = vsel %vm7748_vm14, -1e+09, %v4237_v52 }
0x2eb2   :  { %v4253_v1 = vsel %vm792_vm12, %v4245_v60, -inf }
0x2eb9   :  { %v4066_v51 = vpop.f32.mrf.mxu3 }
0x2eba   :  { %v4241_v57 = vmul.f32 0.35355338, %v4066_v51 }
0x2ebc   :  { %v4249_v58 = vsel %vm7759_vm2, -1e+09, %v4241_v57 }
0x2ebd   :  { %v4265_v43 = vsel %vm792_vm12, %v4249_v58, -inf }
0x2ebe   :  { %4266 = vmax.xlane.f32.xlu0 %v4265_v43 }
0x2ec1   :  { %v4122_v45 = vpop.f32.mrf.mxu2 }
0x2ec2   :  { %v4242_v59 = vmul.f32 0.35355338, %v4122_v45 }
0x2ec4   :  { %v4250_v28 = vsel %vm7759_vm2, -1e+09, %v4242_v59 }
0x2ec5   :  { %v4268_v16 = vsel %vm792_vm12, %v4250_v28, -inf }
0x2ec6   :  { %v4150_v47 = vpop.f32.mrf.mxu3 }
0x2ec7   :  { %v4239_v54 = vmul.f32 0.35355338, %v4150_v47 }
0x2ec8   :  { %v4094_v61 = vpop.f32.mrf.mxu1 }
0x2ec9   :  { %v4238_v34 = vmul.f32 0.35355338, %v4094_v61  ;;  %v4234_v20 = vpop.f32.mrf.mxu2  ;;  %v4247_v0 = vsel %vm7748_vm14, -1e+09, %v4239_v54 }
0x2eca   :  { %v4244_v46 = vmul.f32 0.35355338, %v4234_v20  ;;  %v4259_v18 = vsel %vm792_vm12, %v4247_v0, -inf }
0x2ecb   :  { %v4246_v3 = vsel %vm7748_vm14, -1e+09, %v4238_v34 }
0x2ecc   :  { %v8173_v62 = vsel %vm7759_vm2, -1e+09, %v4244_v46  ;;  %v4256_v26 = vsel %vm792_vm12, %v4246_v3, -inf }
0x2ecd   :  { %4257 = vmax.xlane.f32.xlu2 %v4256_v26  ;;  %v4274_v4 = vsel %vm792_vm12, %v8173_v62, -inf }
0x2ece   :  { %4275 = vmax.xlane.f32.xlu0 %v4274_v4 }
0x2ed0   :  { %v4206_v5 = vpop.f32.mrf.mxu1  ;;  %v4178_v6 = vpop.f32.mrf.mxu0 }
0x2ed1   :  { %v4240_v63 = vmul.f32 0.35355338, %v4206_v5  ;;  %v4243_v11 = vmul.f32 0.35355338, %v4178_v6 }
0x2ed3   :  { %v4248_v7 = vsel %vm7748_vm14, -1e+09, %v4240_v63  ;;  %v4251_v49 = vsel %vm7759_vm2, -1e+09, %v4243_v11 }
0x2ed4   :  { %v4262_v9 = vsel %vm792_vm12, %v4248_v7, -inf  ;;  %v4271_v56 = vsel %vm792_vm12, %v4251_v49, -inf }
0x2ed5   :  { %4254 = vmax.xlane.f32.xlu2 %v4253_v1  ;;  %4263 = vmax.xlane.f32.xlu1 %v4262_v9 }
0x2edd   :  { %4272 = vmax.xlane.f32.xlu2 %v4271_v56  ;;  %4269 = vmax.xlane.f32.xlu1 %v4268_v16 }
0x2ee2   :  { %6335 = vrot.lane.b32.xlu0 %v6334_v17, %s6936_s25  ;;  %v6137_v17 = vld [vmem:[%s8651_s14 + $0x78] sm:$0xff] }
0x2ee5   :  { %4260 = vmax.xlane.f32.xlu1 %v4259_v18 }
0x2f31   :  { %v4267_v8 = vpop.xlane.xlu0 %4266 }
0x2f32   :  { %v4281_v29 = vsub.f32 %v4249_v58, %v4267_v8  ;;  %v6135_v8 = vld [vmem:[%s8651_s14 + $0x68] sm:$0xff] }
0x2f34   :  { %v4293_v40 = vmul.f32 1.442695, %v4281_v29 }
0x2f40   :  { %v4258_v15 = vpop.xlane.xlu2 %4257 }
0x2f41   :  { %v4278_v21 = vsub.f32 %v4246_v3, %v4258_v15  ;;  %v4276_v10 = vpop.xlane.xlu0 %4275 }
0x2f42   :  { %v4284_v31 = vsub.f32 %v8173_v62, %v4276_v10 }
0x2f43   :  { %v4287_v39 = vmul.f32 1.442695, %v4278_v21 }
0x2f44   :  { %v4299_v61 = vmul.f32 1.442695, %v4284_v31 }
0x2f45   :  { %6678 = vpow2.f32 %v4287_v39  ;;  %v6134_v39 = vld [vmem:[%s8651_s14 + $0x60] sm:$0xff] }
0x2f48   :  { %v4264_v55 = vpop.xlane.xlu1 %4263  ;;  %v4255_v37 = vpop.xlane.xlu2 %4254 }
0x2f49   :  { %v4280_v23 = vsub.f32 %v4248_v7, %v4264_v55  ;;  %v4277_v36 = vsub.f32 %v4245_v60, %v4255_v37  ;;  %v8237_v37 = vpack.c.bf16 %v6135_v8, %v6134_v39 }
0x2f4b   :  { %v6679_v25 = vpop.eup %6678  ;;  %v4291_v32 = vmul.f32 1.442695, %v4280_v23  ;;  %v4285_v33 = vmul.f32 1.442695, %v4277_v36 }
0x2f4c   :  { %v4304_v38 = vsel %vm792_vm12, %v6679_v25, 0.0 }
0x2f4d   :  { %6680 = vpow2.f32 %v4291_v32  ;;  %4305 = vadd.xlane.f32.xlu0 %v4304_v38 }
0x2f4e   :  { %6682 = vpow2.f32 %v4285_v33 }
0x2f4f   :  { %6684 = vpow2.f32 %v4293_v40 }
0x2f50   :  { %v4270_v41 = vpop.xlane.xlu1 %4269  ;;  %v4273_v42 = vpop.xlane.xlu2 %4272 }
0x2f51   :  { %v4283_v44 = vsub.f32 %v4251_v49, %v4273_v42  ;;  %v4282_v50 = vsub.f32 %v4250_v28, %v4270_v41 }
0x2f53   :  { %v8197_v30 = vpop.eup %6680  ;;  %v4297_v12 = vmul.f32 1.442695, %v4283_v44  ;;  %v4295_v34 = vmul.f32 1.442695, %v4282_v50 }
0x2f54   :  { %v6683_v2 = vpop.eup %6682  ;;  %v6336_v51 = vpop.permute.xlu0 %6335  ;;  %v4310_v57 = vsel %vm792_vm12, %v8197_v30, 0.0 }
0x2f55   :  { %v6338_v58 = vunpack.i.h.bf16 %v6336_v51  ;;  %v6337_v43 = vunpack.i.l.bf16 %v6336_v51  ;;  %4311 = vadd.xlane.f32.xlu1 %v4310_v57  ;;  %v4301_v45 = vsel %vm792_vm12, %v6683_v2, 0.0  ;;  %6686 = vpow2.f32 %v4297_v12  ;;  %v6685_v20 = vpop.eup %6684 }
0x2f56   :  { %4302 = vadd.xlane.f32.xlu0 %v4301_v45  ;;  %6688 = vpow2.f32 %v4299_v61  ;;  %v4313_v26 = vsel %vm792_vm12, %v6685_v20, 0.0 }
0x2f57   :  { %4408 = vmatpush.msra.mxu1 %v6338_v58  ;;  %4434 = vmatpush.msrb.mxu2 %v6337_v43  ;;  %6690 = vpow2.f32 %v4295_v34 }
0x2f58   :  { %v4261_v46 = vpop.xlane.xlu1 %4260 }
0x2f59   :  { %v4279_v62 = vsub.f32 %v4247_v0, %v4261_v46  ;;  %v6131_v46 = vld [vmem:[%s8649_s12 + $0x50] sm:$0xff] }
0x2f5b   :  { %v6687_v3 = vpop.eup %6686  ;;  %v4289_v4 = vmul.f32 1.442695, %v4279_v62 }
0x2f5c   :  { %v4319_v52 = vsel %vm792_vm12, %v6687_v3, 0.0  ;;  %v8205_v5 = vpop.eup %6688 }
0x2f5d   :  { %4314 = vadd.xlane.f32.xlu1 %v4313_v26  ;;  %4320 = vadd.xlane.f32.xlu2 %v4319_v52  ;;  %v6691_v60 = vpop.eup %6690  ;;  %6692 = vpow2.f32 %v4289_v4  ;;  %v4322_v63 = vsel %vm792_vm12, %v8205_v5, 0.0  ;;  %v6129_v26 = vld [vmem:[%s8649_s12 + $0x40] sm:$0xff]  ;;  %v6130_v52 = vld [vmem:[%s8649_s12 + $0x48] sm:$0xff] }
0x2f5e   :  { %v4316_v6 = vsel %vm792_vm12, %v6691_v60, 0.0  ;;  %v4579_v4 = vpack.c.bf16 %v6130_v52, %v6129_v26 }
0x2f63   :  { %v6693_v7 = vpop.eup %6692 }
0x2f64   :  { %v4307_v1 = vsel %vm792_vm12, %v6693_v7, 0.0 }
0x2f65   :  { %4323 = vadd.xlane.f32.xlu1 %v4322_v63  ;;  %4317 = vadd.xlane.f32.xlu2 %v4316_v6 }
0x2f6a   :  { %4465 = vrot.lane.b32.xlu0 %v8118_v13, %s8696_s1 }
0x2f6d   :  { %4308 = vadd.xlane.f32.xlu2 %v4307_v1 }
0x2f72   :  { %4491 = vrot.lane.b32.xlu0 %v8112_v22, %s8697_s16 }
0x2f7e   :  { %4517 = vrot.lane.b32.xlu1 %v8118_v13, %s8697_s16 }
0x2f85   :  { %4439 = vrot.lane.b32.xlu2 %v8112_v22, %s8696_s1  ;;  %v6136_v22 = vld [vmem:[%s8651_s14 + $0x70] sm:$0xff] }
0x2f86   :  { %v8228_v15 = vpack.c.bf16 %v6137_v17, %v6136_v22  ;;  %v6409_v22 = vld [vmem:[#allocation2 + $0xa] ss:$0 sm:$0xff] }
0x2fc0   :  { %v4306_v9 = vpop.xlane.xlu0 %4305 }
0x2fc1   :  { %6694 = vrcp.f32 %v4306_v9 }
0x2fc7   :  { %v6695_v59 = vpop.eup %6694 }
0x2fc8   :  { %v4334_v11 = vmul.f32 %v6695_v59, %v6679_v25  ;;  %v4312_v28 = vpop.xlane.xlu1 %4311 }
0x2fc9   :  { %v4303_v49 = vpop.xlane.xlu0 %4302 }
0x2fca   :  { %6696 = vrcp.f32 %v4303_v49  ;;  %6123 = vmatmul.msk.f32.vlgmr.msra.gmra.mxu1 %vm792_vm12, %v4334_v11 }
0x2fd0   :  { %v6697_v47 = vpop.eup %6696  ;;  %v4315_v56 = vpop.xlane.xlu1 %4314 }
0x2fd1   :  { %v4333_v16 = vmul.f32 %v6697_v47, %v6683_v2  ;;  %6698 = vrcp.f32 %v4315_v56  ;;  %v4321_v54 = vpop.xlane.xlu2 %4320 }
0x2fd2   :  { %6700 = vrcp.f32 %v4321_v54 }
0x2fd3   :  { %6121 = vmatmul.msk.f32.vlgmr.msra.gmra.mxu3 %vm792_vm12, %v4333_v16 }
0x2fd7   :  { %v6699_v13 = vpop.eup %6698 }
0x2fd8   :  { %v4337_v0 = vmul.f32 %v6699_v13, %v6685_v20  ;;  %v6701_v55 = vpop.eup %6700  ;;  %v4324_v10 = vpop.xlane.xlu1 %4323 }
0x2fd9   :  { %v4318_v18 = vpop.xlane.xlu2 %4317  ;;  %v4339_v36 = vmul.f32 %v6701_v55, %v6687_v3  ;;  %v6132_v3 = vld [vmem:[%s8649_s12 + $0x58] sm:$0xff] }
0x2fda   :  { %6702 = vrcp.f32 %v4318_v18  ;;  %6122 = vmatmul.msk.f32.vlgmr.msrb.gmra.mxu0 %vm792_vm12, %v4337_v0  ;;  %v4580_v62 = vpack.c.bf16 %v6132_v3, %v6131_v46 }
0x2fdb   :  { %6704 = vrcp.f32 %v4312_v28 }
0x2fdc   :  { %v4466_v21 = vpop.permute.xlu0 %4465 }
0x2fdd   :  { %4486 = vmatpush.msra.mxu0 %v4466_v21 }
0x2fdf   :  { %4687 = vmatpush.bf16.msrb.mxu0 %v8228_v15 }
0x2fe0   :  { %v6703_v23 = vpop.eup %6702 }
0x2fe1   :  { %v6705_v25 = vpop.eup %6704  ;;  %v4338_v29 = vmul.f32 %v6703_v23, %v6691_v60  ;;  %v4309_v32 = vpop.xlane.xlu2 %4308 }
0x2fe2   :  { %6706 = vrcp.f32 %v4309_v32  ;;  %6126 = vmatmul.msk.f32.vlgmr.msra.gmra.mxu0 %vm792_vm12, %v4339_v36  ;;  %v4336_v33 = vmul.f32 %v6705_v25, %v8197_v30  ;;  %v6408_v36 = vld [vmem:[#allocation7 + $0x3] ss:$0 sm:$0xff] }
0x2fe3   :  { %6124 = vmatmul.msk.f32.vlgmr.msrb.gmra.mxu2 %vm792_vm12, %v4338_v29  ;;  %4688 = vmatpush.bf16.msrb.mxu0 %v8237_v37  ;;  %6708 = vrcp.f32 %v4324_v10 }
0x2fe4   :  { %v4492_v38 = vpop.permute.xlu0 %4491 }
0x2fe5   :  { %4512 = vmatpush.msrb.mxu1 %v4492_v38 }
0x2fe6   :  { %6127 = vmatmul.msk.f32.vlgmr.msrb.gmra.mxu1 %vm792_vm12, %v4336_v33 }
0x2fe8   :  { %v6707_v40 = vpop.eup %6706 }
0x2fe9   :  { %v4335_v41 = vmul.f32 %v6707_v40, %v6693_v7  ;;  %v4440_v42 = vpop.permute.xlu2 %4439  ;;  %v6709_v44 = vpop.eup %6708 }
0x2fea   :  { %4460 = vmatpush.msrb.mxu3 %v4440_v42  ;;  %6138 = vmatmul.msk.bf16.vlgmr.msrb.gmra.mxu0 %vm198_vm0, %v7912_v14  ;;  %v4340_v31 = vmul.f32 %v6709_v44, %v8205_v5 }
0x2feb   :  { %6125 = vmatmul.msk.f32.vlgmr.msrb.gmra.mxu3 %vm792_vm12, %v4335_v41 }
0x2fec   :  { %4595 = vmatpush.bf16.msra.mxu3 %v4580_v62 }
0x2ff0   :  { %v4518_v12 = vpop.permute.xlu1 %4517  ;;  %4596 = vmatpush.bf16.msra.mxu3 %v4579_v4 }
0x2ff1   :  { %4538 = vmatpush.msra.mxu2 %v4518_v12 }
0x2ff2   :  { %6128 = vmatmul.msk.f32.vlgmr.msra.gmra.mxu2 %vm792_vm12, %v4340_v31 }
0x3047   :  { %v4410_v2 = vpop.f32.mrf.mxu1 }
0x3056   :  { %v4361_v50 = vpop.f32.mrf.mxu3 }
0x3057   :  { %v4384_v30 = vpop.f32.mrf.mxu0 }
0x305f   :  { %v4488_v58 = vpop.f32.mrf.mxu0 }
0x3063   :  { %v4514_v61 = vpop.f32.mrf.mxu1 }
0x3066   :  { %v4436_v51 = vpop.f32.mrf.mxu2 }
0x3067   :  { %v6339_v57 = vpack.i.bf16 %v4436_v51, %v4410_v2  ;;  %v4690_v25 = vpop.f32.mrf.mxu0 }
0x3068   :  { %v8277_v29 = vadd.f32 %v6408_v36, %v4690_v25 }
0x3069   :  { %6340 = vrot.lane.b32.xlu2 %v6339_v57, %s8694_s11 }
0x306e   :  { %v4462_v43 = vpop.f32.mrf.mxu3 }
0x306f   :  { %v6344_v45 = vpack.i.bf16 %v4488_v58, %v4462_v43 }
0x3071   :  { %6345 = vrot.lane.b32.xlu0 %v6344_v45, %s8688_s10 }
0x3075   :  { %v4540_v34 = vpop.f32.mrf.mxu2 }
0x3076   :  { %v6349_v20 = vpack.i.bf16 %v4540_v34, %v4514_v61 }
0x3078   :  { %6350 = vrot.lane.b32.xlu1 %v6349_v20, %s8687_s9 }
0x30c3   :  { %v6341_v5 = vpop.permute.xlu2 %6340 }
0x30c4   :  { %v6343_v63 = vunpack.i.h.bf16 %v6341_v5  ;;  %v6342_v6 = vunpack.i.l.bf16 %v6341_v5 }
0x30c6   :  { %v4568_v59 = vsel %vm792_vm12, %v4384_v30, %v6343_v63  ;;  %v4567_v11 = vsel %vm792_vm12, %v4361_v50, %v6342_v6 }
0x30e3   :  { %v6346_v60 = vpop.permute.xlu0 %6345 }
0x30e4   :  { %v6348_v7 = vunpack.i.h.bf16 %v6346_v60  ;;  %v6347_v1 = vunpack.i.l.bf16 %v6346_v60 }
0x30e6   :  { %v4569_v47 = vsel %vm1352_vm4, %v4567_v11, %v6347_v1  ;;  %v4570_v56 = vsel %vm1352_vm4, %v4568_v59, %v6348_v7 }
0x30ea   :  { %v6351_v9 = vpop.permute.xlu1 %6350 }
0x30eb   :  { %v6353_v28 = vunpack.i.h.bf16 %v6351_v9  ;;  %v6352_v49 = vunpack.i.l.bf16 %v6351_v9 }
0x30ed   :  { %v4571_v16 = vsel %vm1355_vm5, %v4569_v47, %v6352_v49  ;;  %v4572_v54 = vsel %vm1355_vm5, %v4570_v56, %v6353_v28 }
0x30ee   :  { %v4578_v13 = vpack.c.bf16 %v4572_v54, %v4571_v16 }
0x30f0   :  { %6133 = vmatmul.msk.bf16.vlgmr.msra.gmra.mxu3 %vm198_vm0, %v4578_v13 }
0x3173   :  { %v4598_v17 = vpop.f32.mrf.mxu3 }
0x3174   :  { %v4599_v0 = vadd.f32 %v6409_v22, %v4598_v17  ;;  %v6410_v17 = vld [vmem:[#allocation2 + $0xd] ss:$0 sm:$0xff] }
0x3176   :  { %v4603_v18 = vadd.f32 %v4599_v0, %v8105_v19  ;;  %v4692_v19 = vpop.f32.mrf.mxu0 }
0x3178   :  { %v4605_v21 = vsel %vm198_vm0, %v4603_v18, 0.0 }
0x3179   :  { %4606 = vadd.xlane.f32.xlu2 %v4605_v21 }
0x317b   :  { %v4600_v39 = vpop.f32.mrf.mxu3 }
0x317c   :  { %v4601_v8 = vadd.f32 %v6409_v22, %v4600_v39  ;;  %v6411_v39 = vld [vmem:[#allocation2 + $0xc] ss:$0 sm:$0xff] }
0x317e   :  { %v4604_v55 = vadd.f32 %v4601_v8, %v8107_v53  ;;  %v8285_v53 = vadd.f32 %v6408_v36, %v4692_v19 }
0x3180   :  { %v4608_v23 = vsel %vm198_vm0, %v4604_v55, 0.0  ;;  %v6354_v24 = vpack.i.bf16 %v8285_v53, %v8277_v29 }
0x3181   :  { %4609 = vadd.xlane.f32.xlu0 %v4608_v23 }
0x3195   :  { %4700 = vrot.lane.b32.xlu0 %v8228_v15, %s6927_s23 }
0x319d   :  { %4725 = vrot.lane.b32.xlu0 %v8277_v29, %s6930_s30 }
0x31a5   :  { %4782 = vrot.lane.b32.xlu0 %v8277_v29, %s6929_s8 }
0x31ad   :  { %4894 = vrot.lane.b32.xlu0 %v8277_v29, %s6935_s15 }
0x31b5   :  { %4810 = vrot.lane.b32.xlu0 %v8285_v53, %s6929_s8 }
0x31bd   :  { %4922 = vrot.lane.b32.xlu0 %v8285_v53, %s6935_s15 }
0x31ec   :  { %v4607_v15 = vpop.xlane.xlu2 %4606 }
0x31ed   :  { %v4611_v32 = vmul.f32 0.03125, %v4607_v15 }
0x31ef   :  { %v8291_v33 = vsub.f32 %v4603_v18, %v4611_v32 }
0x31f1   :  { %v4615_v10 = vmul.f32 %v8291_v33, %v8291_v33 }
0x31f3   :  { %v4617_v38 = vsel %vm198_vm0, %v4615_v10, 0.0 }
0x31f4   :  { %v4610_v40 = vpop.xlane.xlu0 %4609  ;;  %4618 = vadd.xlane.f32.xlu1 %v4617_v38 }
0x31f5   :  { %v4612_v41 = vmul.f32 0.03125, %v4610_v40 }
0x31f7   :  { %v4614_v42 = vsub.f32 %v4604_v55, %v4612_v41 }
0x31f9   :  { %v4616_v44 = vmul.f32 %v4614_v42, %v4614_v42 }
0x31fb   :  { %v4620_v31 = vsel %vm198_vm0, %v4616_v44, 0.0 }
0x31fc   :  { %4621 = vadd.xlane.f32.xlu2 %v4620_v31 }
0x3207   :  { %v4701_v12 = vpop.permute.xlu0 %4700 }
0x3208   :  { %4716 = vmatpush.bf16.msra.mxu1 %v4701_v12 }
0x320d   :  { %4698 = vrot.lane.b32.xlu1 %v8237_v37, %s6927_s23 }
0x320f   :  { %v4726_v30 = vpop.permute.xlu0 %4725 }
0x3210   :  { %6140 = vmatpush.xpose.msk.msrb.mxu2 %vm792_vm12, %v4726_v30 }
0x3214   :  { %4704 = vrot.lane.b32.xlu2 %v6408_v36, %s6927_s23 }
0x3215   :  { %4753 = vrot.lane.b32.xlu1 %v8285_v53, %s6930_s30 }
0x3217   :  { %v4783_v2 = vpop.permute.xlu0 %4782 }
0x3218   :  { %6144 = vmatpush.xpose.msk.msrb.mxu3 %vm792_vm12, %v4783_v2 }
0x321d   :  { %4866 = vrot.lane.b32.xlu1 %v8285_v53, %s6931_s21 }
0x321f   :  { %v4895_v50 = vpop.permute.xlu0 %4894 }
0x3220   :  { %6152 = vmatpush.xpose.msk.msra.mxu3 %vm792_vm12, %v4895_v50 }
0x3227   :  { %v4811_v51 = vpop.permute.xlu0 %4810 }
0x3228   :  { %6146 = vmatpush.xpose.msk.msra.mxu0 %vm792_vm12, %v4811_v51 }
0x322f   :  { %v4923_v37 = vpop.permute.xlu0 %4922 }
0x3230   :  { %6154 = vmatpush.xpose.msk.msrb.mxu0 %vm792_vm12, %v4923_v37 }
0x3267   :  { %v4619_v57 = vpop.xlane.xlu1 %4618 }
0x3268   :  { %v4623_v58 = vmul.f32 0.032258064, %v4619_v57 }
0x326a   :  { %6710 = vrsqrt.f32 %v4623_v58  ;;  %vm4632_vm14 = vcmp.eq.f32.partialorder %v4623_v58, inf  ;;  %v4635_v60 = vand.u32 2147483648, %v4623_v58  ;;  %vm4634_vm2 = vcmp.eq.f32.partialorder %v4623_v58, 0.0 }
0x326f   :  { %v4622_v43 = vpop.xlane.xlu2 %4621 }
0x3270   :  { %v6711_v45 = vpop.eup %6710  ;;  %v4624_v61 = vmul.f32 0.032258064, %v4622_v43 }
0x3271   :  { %v4626_v34 = vmul.f32 %v6711_v45, %v4623_v58 }
0x3272   :  { %6712 = vrsqrt.f32 %v4624_v61  ;;  %vm4644_vm11 = vcmp.eq.f32.partialorder %v4624_v61, inf  ;;  %v4647_v49 = vand.u32 2147483648, %v4624_v61  ;;  %vm4646_vm13 = vcmp.eq.f32.partialorder %v4624_v61, 0.0 }
0x3273   :  { %v4627_v20 = vmul.f32 %v6711_v45, %v4626_v34 }
0x3275   :  { %v4628_v46 = vmul.f32 0.5, %v4627_v20 }
0x3277   :  { %v4629_v3 = vsub.f32 1.5, %v4628_v46  ;;  %v4705_v25 = vpop.permute.xlu2 %4704 }
0x3278   :  { %v6713_v62 = vpop.eup %6712 }
0x3279   :  { %v4630_v26 = vmul.f32 %v6711_v45, %v4629_v3  ;;  %v4638_v52 = vmul.f32 %v6713_v62, %v4624_v61 }
0x327b   :  { %v4631_v4 = vmul.f32 %v4630_v26, %v4623_v58  ;;  %v4639_v5 = vmul.f32 %v6713_v62, %v4638_v52 }
0x327d   :  { %v4633_v63 = vsel %vm4632_vm14, %v4623_v58, %v4631_v4  ;;  %v4640_v6 = vmul.f32 0.5, %v4639_v5 }
0x327e   :  { %v4636_v7 = vsel %vm4634_vm2, %v4635_v60, %v4633_v63 }
0x327f   :  { %v4649_v1 = vadd.f32 1e-06, %v4636_v7  ;;  %v4641_v9 = vsub.f32 1.5, %v4640_v6  ;;  %v4699_v59 = vpop.permute.xlu1 %4698 }
0x3280   :  { %4717 = vmatpush.bf16.msra.mxu1 %v4699_v59 }
0x3281   :  { %v4642_v11 = vmul.f32 %v6713_v62, %v4641_v9  ;;  %6714 = vrcp.f32 %v4649_v1 }
0x3283   :  { %v4643_v28 = vmul.f32 %v4642_v11, %v4624_v61 }
0x3285   :  { %v4645_v47 = vsel %vm4644_vm11, %v4624_v61, %v4643_v28 }
0x3286   :  { %v4648_v56 = vsel %vm4646_vm13, %v4647_v49, %v4645_v47 }
0x3287   :  { %v4650_v16 = vadd.f32 1e-06, %v4648_v56  ;;  %v4754_v54 = vpop.permute.xlu1 %4753  ;;  %v6715_v13 = vpop.eup %6714 }
0x3288   :  { %6142 = vmatpush.xpose.msk.msra.mxu2 %vm792_vm12, %v4754_v54  ;;  %v4655_v22 = vmul.f32 %v6715_v13, %v8291_v33 }
0x3289   :  { %6716 = vrcp.f32 %v4650_v16 }
0x328a   :  { %v4660_v21 = vmul.f32 %v6410_v17, %v4655_v22 }
0x328c   :  { %v8311_v55 = vadd.f32 %v6411_v39, %v4660_v21 }
0x328f   :  { %v6717_v0 = vpop.eup %6716  ;;  %v4867_v32 = vpop.permute.xlu1 %4866 }
0x3290   :  { %v4656_v18 = vmul.f32 %v6717_v0, %v4614_v42 }
0x3292   :  { %v4661_v8 = vmul.f32 %v6410_v17, %v4656_v18 }
0x3294   :  { %v8313_v23 = vadd.f32 %v6411_v39, %v4661_v8 }
0x3296   :  { %v4695_v36 = vpack.c.bf16 %v8313_v23, %v8311_v55 }
0x3298   :  { %6139 = vmatmul.msk.bf16.vlgmr.msra.gmra.mxu1 %vm198_vm0, %v4695_v36 }
0x3315   :  { %v4719_v19 = vpop.f32.mrf.mxu1 }
0x3316   :  { %v4720_v15 = vadd.f32 %v4719_v19, %v4705_v25 }
0x3318   :  { %4892 = vrot.lane.b32.xlu1 %v4720_v15, %s8697_s16  ;;  %4780 = vrot.lane.b32.xlu2 %v4720_v15, %s6936_s25 }
0x3319   :  { %6141 = vmatmul.msk.f32.vlgmr.msrb.gmra.mxu2 %vm792_vm12, %v4720_v15 }
0x331a   :  { %6150 = vmatpush.xpose.msk.msrb.mxu2 %vm792_vm12, %v4867_v32 }
0x331d   :  { %v4721_v33 = vpop.f32.mrf.mxu1 }
0x331e   :  { %v4722_v10 = vadd.f32 %v4721_v33, %v4705_v25 }
0x3320   :  { %4838 = vrot.lane.b32.xlu1 %v8277_v29, %s6931_s21  ;;  %4864 = vrot.lane.b32.xlu2 %v4722_v10, %s8696_s1 }
0x3321   :  { %6143 = vmatmul.msk.f32.vlgmr.msra.gmra.mxu2 %vm792_vm12, %v4722_v10 }
0x3322   :  { %5093 = vmatpush.msra.mxu2 %v8285_v53 }
0x3328   :  { %4920 = vrot.lane.b32.xlu1 %v4722_v10, %s8697_s16  ;;  %4808 = vrot.lane.b32.xlu2 %v4722_v10, %s6936_s25 }
0x3330   :  { %4836 = vrot.lane.b32.xlu2 %v4720_v15, %s8696_s1 }
0x3372   :  { %v4781_v38 = vpop.permute.xlu2 %4780 }
0x3373   :  { %6145 = vmatmul.msk.f32.vlgmr.msrb.gmra.mxu3 %vm792_vm12, %v4781_v38 }
0x337a   :  { %v4865_v40 = vpop.permute.xlu2 %4864 }
0x337b   :  { %6151 = vmatmul.msk.f32.vlgmr.msrb.gmra.mxu2 %vm792_vm12, %v4865_v40 }
0x3382   :  { %v4809_v41 = vpop.permute.xlu2 %4808 }
0x3383   :  { %6147 = vmatmul.msk.f32.vlgmr.msra.gmra.mxu0 %vm792_vm12, %v4809_v41 }
0x338a   :  { %v4893_v42 = vpop.permute.xlu1 %4892  ;;  %v4837_v31 = vpop.permute.xlu2 %4836 }
0x338b   :  { %6153 = vmatmul.msk.f32.vlgmr.msra.gmra.mxu3 %vm792_vm12, %v4893_v42 }
0x3392   :  { %v4839_v44 = vpop.permute.xlu1 %4838 }
0x3393   :  { %6148 = vmatpush.xpose.msk.msrb.mxu1 %vm792_vm12, %v4839_v44 }
0x3396   :  { %6149 = vmatmul.msk.f32.vlgmr.msrb.gmra.mxu1 %vm792_vm12, %v4837_v31 }
0x3397   :  { %5070 = vmatpush.msra.mxu1 %v8277_v29 }
0x339a   :  { %v4921_v12 = vpop.permute.xlu1 %4920 }
0x339b   :  { %6155 = vmatmul.msk.f32.vlgmr.msrb.gmra.mxu0 %vm792_vm12, %v4921_v12 }
0x339c   :  { %v4749_v30 = vpop.f32.mrf.mxu2 }
0x339d   :  { %v4948_v2 = vmul.f32 0.35355338, %v4749_v30 }
0x339f   :  { %v4956_v50 = vsel %vm7303_vm15, -1e+09, %v4948_v2 }
0x33a0   :  { %v4964_v51 = vsel %vm792_vm12, %v4956_v50, -inf }
0x33a1   :  { %4965 = vmax.xlane.f32.xlu1 %v4964_v51 }
0x33a4   :  { %v4777_v37 = vpop.f32.mrf.mxu2 }
0x33a5   :  { %v4952_v57 = vmul.f32 0.35355338, %v4777_v37 }
0x33a7   :  { %v4960_v58 = vsel %vm7315_vm3, -1e+09, %v4952_v57 }
0x33a8   :  { %v4976_v43 = vsel %vm792_vm12, %v4960_v58, -inf }
0x33a9   :  { %4977 = vmax.xlane.f32.xlu0 %v4976_v43 }
0x33f6   :  { %v4805_v46 = vpop.f32.mrf.mxu3 }
0x33f7   :  { %v4949_v59 = vmul.f32 0.35355338, %v4805_v46 }
0x33f9   :  { %v4957_v47 = vsel %vm7303_vm15, -1e+09, %v4949_v59 }
0x33fa   :  { %v4967_v16 = vsel %vm792_vm12, %v4957_v47, -inf }
0x33fe   :  { %v4889_v45 = vpop.f32.mrf.mxu2 }
0x33ff   :  { %v4954_v61 = vmul.f32 0.35355338, %v4889_v45 }
0x3400   :  { %v4833_v26 = vpop.f32.mrf.mxu0 }
0x3401   :  { %v8346_v34 = vsel %vm7315_vm3, -1e+09, %v4954_v61  ;;  %v4953_v54 = vmul.f32 0.35355338, %v4833_v26 }
0x3402   :  { %v4982_v20 = vsel %vm792_vm12, %v8346_v34, -inf }
0x3403   :  { %4983 = vmax.xlane.f32.xlu0 %v4982_v20  ;;  %v4961_v22 = vsel %vm7315_vm3, -1e+09, %v4953_v54 }
0x3404   :  { %v4979_v0 = vsel %vm792_vm12, %v4961_v22, -inf }
0x340e   :  { %v4917_v3 = vpop.f32.mrf.mxu3 }
0x340f   :  { %v4951_v62 = vmul.f32 0.35355338, %v4917_v3 }
0x3411   :  { %v4959_v52 = vsel %vm7303_vm15, -1e+09, %v4951_v62 }
0x3412   :  { %v4973_v4 = vsel %vm792_vm12, %v4959_v52, -inf }
0x3413   :  { %v4861_v5 = vpop.f32.mrf.mxu1  ;;  %4974 = vmax.xlane.f32.xlu1 %v4973_v4 }
0x3414   :  { %v4950_v60 = vmul.f32 0.35355338, %v4861_v5  ;;  %v4966_v63 = vpop.xlane.xlu1 %4965 }
0x3415   :  { %v4988_v6 = vsub.f32 %v4956_v50, %v4966_v63 }
0x3416   :  { %v4958_v7 = vsel %vm7303_vm15, -1e+09, %v4950_v60 }
0x3417   :  { %v4996_v1 = vmul.f32 1.442695, %v4988_v6  ;;  %v4970_v9 = vsel %vm792_vm12, %v4958_v7, -inf }
0x3418   :  { %v4945_v11 = vpop.f32.mrf.mxu0  ;;  %4971 = vmax.xlane.f32.xlu2 %v4970_v9 }
0x3419   :  { %v4955_v28 = vmul.f32 0.35355338, %v4945_v11  ;;  %6718 = vpow2.f32 %v4996_v1 }
0x341b   :  { %v4963_v49 = vsel %vm7315_vm3, -1e+09, %v4955_v28 }
0x341c   :  { %v4985_v56 = vsel %vm792_vm12, %v4963_v49, -inf  ;;  %v4978_v18 = vpop.xlane.xlu0 %4977 }
0x341d   :  { %4986 = vmax.xlane.f32.xlu0 %v4985_v56  ;;  %v4992_v21 = vsub.f32 %v4960_v58, %v4978_v18 }
0x341f   :  { %v6719_v13 = vpop.eup %6718  ;;  %v5004_v39 = vmul.f32 1.442695, %v4992_v21 }
0x3420   :  { %4968 = vmax.xlane.f32.xlu2 %v4967_v16  ;;  %v5012_v17 = vsel %vm792_vm12, %v6719_v13, 0.0 }
0x3421   :  { %6720 = vpow2.f32 %v5004_v39 }
0x3425   :  { %5013 = vadd.xlane.f32.xlu0 %v5012_v17 }
0x3427   :  { %v8371_v35 = vpop.eup %6720 }
0x3428   :  { %4980 = vmax.xlane.f32.xlu2 %v4979_v0  ;;  %v5024_v8 = vsel %vm792_vm12, %v8371_v35, 0.0 }
0x342c   :  { %6355 = vrot.lane.b32.xlu1 %v6354_v24, %s6936_s25 }
0x3439   :  { %5202 = vrot.lane.b32.xlu0 %v8277_v29, %s8697_s16 }
0x3456   :  { %5025 = vadd.xlane.f32.xlu1 %v5024_v8  ;;  %v6183_v8 = vld [vmem:[%s8650_s13 + $0x60] sm:$0xff] }
0x3476   :  { %v4984_v19 = vpop.xlane.xlu0 %4983 }
0x3477   :  { %v4994_v2 = vsub.f32 %v8346_v34, %v4984_v19 }
0x3479   :  { %v5008_v57 = vmul.f32 1.442695, %v4994_v2 }
0x3486   :  { %v4975_v36 = vpop.xlane.xlu1 %4974 }
0x3487   :  { %v4991_v25 = vsub.f32 %v4959_v52, %v4975_v36  ;;  %v6184_v36 = vld [vmem:[%s8650_s13 + $0x68] sm:$0xff] }
0x3488   :  { %v5519_v19 = vpack.c.bf16 %v6184_v36, %v6183_v8 }
0x3489   :  { %v5002_v15 = vmul.f32 1.442695, %v4991_v25 }
0x348b   :  { %6722 = vpow2.f32 %v5002_v15  ;;  %v4972_v32 = vpop.xlane.xlu2 %4971 }
0x348c   :  { %v4990_v33 = vsub.f32 %v4958_v7, %v4972_v32 }
0x348e   :  { %v5000_v10 = vmul.f32 1.442695, %v4990_v33 }
0x3490   :  { %6724 = vpow2.f32 %v5000_v10  ;;  %v4987_v38 = vpop.xlane.xlu0 %4986 }
0x3491   :  { %v8375_v40 = vpop.eup %6722  ;;  %v4995_v41 = vsub.f32 %v4963_v49, %v4987_v38 }
0x3492   :  { %v5021_v42 = vsel %vm792_vm12, %v8375_v40, 0.0 }
0x3493   :  { %v5010_v44 = vmul.f32 1.442695, %v4995_v41  ;;  %v4969_v31 = vpop.xlane.xlu2 %4968  ;;  %5022 = vadd.xlane.f32.xlu0 %v5021_v42 }
0x3494   :  { %v4989_v12 = vsub.f32 %v4957_v47, %v4969_v31 }
0x3495   :  { %6726 = vpow2.f32 %v5010_v44 }
0x3496   :  { %v8379_v30 = vpop.eup %6724  ;;  %v4998_v50 = vmul.f32 1.442695, %v4989_v12 }
0x3497   :  { %v5018_v51 = vsel %vm792_vm12, %v8379_v30, 0.0 }
0x3498   :  { %6728 = vpow2.f32 %v4998_v50  ;;  %5019 = vadd.xlane.f32.xlu2 %v5018_v51  ;;  %v5014_v37 = vpop.xlane.xlu0 %5013 }
0x3499   :  { %6730 = vrcp.f32 %v5014_v37 }
0x349a   :  { %6732 = vpow2.f32 %v5008_v57 }
0x349b   :  { %v8384_v58 = vpop.eup %6726  ;;  %v4981_v43 = vpop.xlane.xlu2 %4980 }
0x349c   :  { %v4993_v45 = vsub.f32 %v4961_v22, %v4981_v43  ;;  %v5033_v61 = vsel %vm792_vm12, %v8384_v58, 0.0 }
0x349d   :  { %5034 = vadd.xlane.f32.xlu0 %v5033_v61 }
0x349e   :  { %v6729_v20 = vpop.eup %6728  ;;  %v5006_v34 = vmul.f32 1.442695, %v4993_v45  ;;  %v6356_v46 = vpop.permute.xlu1 %6355  ;;  %v8431_v45 = vld [vmem:[#allocation5 + $0x5] ss:$0 sm:$0xff] }
0x349f   :  { %v6731_v3 = vpop.eup %6730  ;;  %v6358_v62 = vunpack.i.h.bf16 %v6356_v46  ;;  %v6357_v26 = vunpack.i.l.bf16 %v6356_v46  ;;  %v5015_v52 = vsel %vm792_vm12, %v6729_v20, 0.0  ;;  %v6167_v46 = vld [vmem:[%s8649_s12 + $0x78] sm:$0xff] }
0x34a0   :  { %v5044_v4 = vmul.f32 %v6731_v3, %v6719_v13  ;;  %6734 = vpow2.f32 %v5006_v34  ;;  %5016 = vadd.xlane.f32.xlu2 %v5015_v52  ;;  %v6733_v5 = vpop.eup %6732  ;;  %v6186_v13 = vld [vmem:[%s8650_s13 + $0x78] sm:$0xff]  ;;  %v6166_v34 = vld [vmem:[%s8649_s12 + $0x70] sm:$0xff] }
0x34a1   :  { %5119 = vmatpush.msrb.mxu3 %v6357_v26  ;;  %5145 = vmatpush.msra.mxu0 %v6358_v62  ;;  %v5030_v6 = vsel %vm792_vm12, %v6733_v5, 0.0  ;;  %v5291_v3 = vpack.c.bf16 %v6167_v46, %v6166_v34  ;;  %v6164_v62 = vld [vmem:[%s8649_s12 + $0x60] sm:$0xff]  ;;  %v6165_v26 = vld [vmem:[%s8649_s12 + $0x68] sm:$0xff]  ;;  %s5914_s12 = sshll.u32 %s6940_s24, 4  ;;  %s5915_s12 = int_to_ptr.vmem [resolvable:$true] %s5914_s12 }
0x34a2   :  { %6156 = vmatmul.msk.f32.vlgmr.msra.gmra.mxu1 %vm792_vm12, %v5044_v4  ;;  %v5290_v52 = vpack.c.bf16 %v6165_v26, %v6164_v62 }
0x34a6   :  { %v6735_v60 = vpop.eup %6734 }
0x34a7   :  { %v5027_v63 = vsel %vm792_vm12, %v6735_v60, 0.0 }
0x34a8   :  { %5028 = vadd.xlane.f32.xlu1 %v5027_v63  ;;  %5031 = vadd.xlane.f32.xlu2 %v5030_v6 }
0x34ab   :  { %v5203_v7 = vpop.permute.xlu0 %5202 }
0x34ac   :  { %5223 = vmatpush.msra.mxu3 %v5203_v7 }
0x34b1   :  { %5228 = vrot.lane.b32.xlu0 %v8285_v53, %s8697_s16 }
0x34c0   :  { %5176 = vrot.lane.b32.xlu2 %v8285_v53, %s8696_s1 }
0x34c1   :  { %5150 = vrot.lane.b32.xlu1 %v8277_v29, %s8696_s1  ;;  %v6185_v29 = vld [vmem:[%s8650_s13 + $0x70] sm:$0xff] }
0x34c2   :  { %v5520_v0 = vpack.c.bf16 %v6186_v13, %v6185_v29 }
0x34c9   :  { %v5026_v1 = vpop.xlane.xlu1 %5025 }
0x34ca   :  { %6736 = vrcp.f32 %v5026_v1 }
0x34d0   :  { %v6737_v9 = vpop.eup %6736 }
0x34d1   :  { %v5048_v59 = vmul.f32 %v6737_v9, %v8371_v35 }
0x34d3   :  { %6157 = vmatmul.msk.f32.vlgmr.msra.gmra.mxu2 %vm792_vm12, %v5048_v59 }
0x3506   :  { %v5023_v28 = vpop.xlane.xlu0 %5022 }
0x350b   :  { %v5020_v11 = vpop.xlane.xlu2 %5019 }
0x3510   :  { %v5035_v56 = vpop.xlane.xlu0 %5034 }
0x3513   :  { %v5017_v49 = vpop.xlane.xlu2 %5016 }
0x3514   :  { %6738 = vrcp.f32 %v5017_v49 }
0x3515   :  { %6740 = vrcp.f32 %v5023_v28 }
0x351a   :  { %v6739_v47 = vpop.eup %6738 }
0x351b   :  { %v5045_v16 = vmul.f32 %v6739_v47, %v6729_v20  ;;  %v5029_v54 = vpop.xlane.xlu1 %5028  ;;  %v5032_v53 = vpop.xlane.xlu2 %5031 }
0x351c   :  { %6742 = vrcp.f32 %v5029_v54  ;;  %v6741_v22 = vpop.eup %6740 }
0x351d   :  { %6744 = vrcp.f32 %v5032_v53  ;;  %6158 = vmatmul.msk.f32.vlgmr.msrb.gmra.mxu3 %vm792_vm12, %v5045_v16  ;;  %v5047_v18 = vmul.f32 %v6741_v22, %v8375_v40  ;;  %v6414_v53 = vld [vmem:[#allocation2 + $0xb] ss:$0 sm:$0xff] }
0x351e   :  { %6746 = vrcp.f32 %v5035_v56 }
0x351f   :  { %6748 = vrcp.f32 %v5020_v11  ;;  %v5072_v44 = vpop.f32.mrf.mxu1 }
0x3522   :  { %v6743_v17 = vpop.eup %6742 }
0x3523   :  { %v6745_v24 = vpop.eup %6744  ;;  %v5049_v21 = vmul.f32 %v6743_v17, %v6735_v60  ;;  %v5177_v39 = vpop.permute.xlu2 %5176 }
0x3524   :  { %v5229_v35 = vpop.permute.xlu0 %5228  ;;  %v5050_v25 = vmul.f32 %v6745_v24, %v6733_v5  ;;  %5197 = vmatpush.msrb.mxu2 %v5177_v39  ;;  %v6747_v15 = vpop.eup %6746 }
0x3525   :  { %5249 = vmatpush.msrb.mxu0 %v5229_v35  ;;  %6162 = vmatmul.msk.f32.vlgmr.msra.gmra.mxu3 %vm792_vm12, %v5047_v18  ;;  %v5051_v32 = vmul.f32 %v6747_v15, %v8384_v58  ;;  %v6749_v33 = vpop.eup %6748 }
0x3526   :  { %6159 = vmatmul.msk.f32.vlgmr.msra.gmra.mxu0 %vm792_vm12, %v5049_v21  ;;  %6161 = vmatmul.msk.f32.vlgmr.msrb.gmra.mxu2 %vm792_vm12, %v5050_v25  ;;  %v5046_v10 = vmul.f32 %v6749_v33, %v8379_v30 }
0x3527   :  { %5532 = vmatpush.bf16.msra.mxu0 %v5520_v0 }
0x352b   :  { %5533 = vmatpush.bf16.msra.mxu0 %v5519_v19 }
0x352e   :  { %6163 = vmatmul.msk.f32.vlgmr.msrb.gmra.mxu0 %vm792_vm12, %v5051_v32 }
0x3533   :  { %v5151_v38 = vpop.permute.xlu1 %5150 }
0x3534   :  { %5171 = vmatpush.msrb.mxu1 %v5151_v38 }
0x3535   :  { %6160 = vmatmul.msk.f32.vlgmr.msrb.gmra.mxu1 %vm792_vm12, %v5046_v10 }
0x3536   :  { %6187 = vmatmul.msk.bf16.vlgmr.msra.gmra.mxu0 %vm198_vm0, %v7912_v14  ;;  %v8428_v14 = vld [vmem:[#allocation5 + $0x4] ss:$0 sm:$0xff]  ;;  %5306 = vmatpush.bf16.msra.mxu1 %v5291_v3 }
0x353a   :  { %5307 = vmatpush.bf16.msra.mxu1 %v5290_v52 }
0x3556   :  { %v5095_v31 = vpop.f32.mrf.mxu2 }
0x35a0   :  { %v5121_v40 = vpop.f32.mrf.mxu3 }
0x35a3   :  { %v5147_v41 = vpop.f32.mrf.mxu0 }
0x35a4   :  { %v6359_v42 = vpack.i.bf16 %v5147_v41, %v5121_v40  ;;  %v6172_v40 = vld [vmem:[%s8650_s13 + $0xb8] sm:$0xff]  ;;  %v6169_v41 = vld [vmem:[%s8650_s13 + $0xa0] sm:$0xff] }
0x35a6   :  { %6360 = vrot.lane.b32.xlu2 %v6359_v42, %s8694_s11  ;;  %v6170_v42 = vld [vmem:[%s8650_s13 + $0xa8] sm:$0xff] }
0x35a8   :  { %v5225_v12 = vpop.f32.mrf.mxu3 }
0x35a9   :  { %v5199_v30 = vpop.f32.mrf.mxu2 }
0x35ab   :  { %v5251_v2 = vpop.f32.mrf.mxu0 }
0x35ac   :  { %v6369_v50 = vpack.i.bf16 %v5251_v2, %v5225_v12 }
0x35ae   :  { %6370 = vrot.lane.b32.xlu0 %v6369_v50, %s8687_s9 }
0x35b2   :  { %v5173_v51 = vpop.f32.mrf.mxu1 }
0x35b3   :  { %v8425_v37 = vpop.f32.mrf.mxu0  ;;  %v6364_v57 = vpack.i.bf16 %v5199_v30, %v5173_v51 }
0x35b5   :  { %6365 = vrot.lane.b32.xlu1 %v6364_v57, %s8688_s10 }
0x35bb   :  { %v5537_v58 = vpop.f32.mrf.mxu0 }
0x35bc   :  { %v5538_v43 = vadd.f32 %v8428_v14, %v5537_v58 }
0x35be   :  { %v5541_v61 = vmax.f32 %v5538_v43, 0.0 }
0x35c0   :  { %v8434_v20 = vmul.f32 %v8431_v45, %v5541_v61 }
0x3600   :  { %v6361_v4 = vpop.permute.xlu2 %6360 }
0x3601   :  { %v6363_v5 = vunpack.i.h.bf16 %v6361_v4  ;;  %v6362_v60 = vunpack.i.l.bf16 %v6361_v4 }
0x3603   :  { %v5279_v9 = vsel %vm792_vm12, %v5095_v31, %v6363_v5  ;;  %v5278_v59 = vsel %vm792_vm12, %v5072_v44, %v6362_v60  ;;  %v5386_v31 = vpack.c.bf16 %v6170_v42, %v6169_v41  ;;  %v6418_v42 = vld [vmem:[#allocation2 + $0x9] ss:$0 sm:$0xff] }
0x3620   :  { %v6371_v63 = vpop.permute.xlu0 %6370 }
0x3621   :  { %v6373_v11 = vunpack.i.h.bf16 %v6371_v63  ;;  %v6372_v28 = vunpack.i.l.bf16 %v6371_v63 }
0x3627   :  { %v6366_v6 = vpop.permute.xlu1 %6365 }
0x3628   :  { %v6368_v7 = vunpack.i.h.bf16 %v6366_v6  ;;  %v6367_v1 = vunpack.i.l.bf16 %v6366_v6 }
0x362a   :  { %v5281_v49 = vsel %vm1352_vm4, %v5279_v9, %v6368_v7  ;;  %v5280_v47 = vsel %vm1352_vm4, %v5278_v59, %v6367_v1 }
0x362b   :  { %v5282_v56 = vsel %vm1355_vm5, %v5280_v47, %v6372_v28  ;;  %v5283_v16 = vsel %vm1355_vm5, %v5281_v49, %v6373_v11  ;;  %v6415_v49 = vld [vmem:[#allocation2 + $0xf] ss:$0 sm:$0xff] }
0x362c   :  { %v5289_v54 = vpack.c.bf16 %v5283_v16, %v5282_v56 }
0x362e   :  { %6168 = vmatmul.msk.bf16.vlgmr.msra.gmra.mxu1 %vm198_vm0, %v5289_v54  ;;  %v6416_v54 = vld [vmem:[#allocation2 + $0xe] ss:$0 sm:$0xff] }
0x36ab   :  { %v5309_v29 = vpop.f32.mrf.mxu1 }
0x36ac   :  { %v5310_v13 = vadd.f32 %v6414_v53, %v5309_v29 }
0x36ae   :  { %v5314_v22 = vadd.f32 %v5310_v13, %v8311_v55 }
0x36b0   :  { %v5316_v17 = vsel %vm198_vm0, %v5314_v22, 0.0 }
0x36b1   :  { %5317 = vadd.xlane.f32.xlu2 %v5316_v17  ;;  %v6180_v17 = vld [vmem:[%s8655_s18 + $0x70] sm:$0xff] }
0x36b3   :  { %v5311_v0 = vpop.f32.mrf.mxu1 }
0x36b4   :  { %v5312_v24 = vadd.f32 %v6414_v53, %v5311_v0  ;;  %v6181_v0 = vld [vmem:[%s8655_s18 + $0x78] sm:$0xff] }
0x36b6   :  { %v5315_v18 = vadd.f32 %v5312_v24, %v8313_v23  ;;  %v6171_v23 = vld [vmem:[%s8650_s13 + $0xb0] sm:$0xff]  ;;  %v5425_v24 = vpack.c.bf16 %v6181_v0, %v6180_v17 }
0x36b7   :  { %v5387_v44 = vpack.c.bf16 %v6172_v40, %v6171_v23 }
0x36b8   :  { %v5319_v21 = vsel %vm198_vm0, %v5315_v18, 0.0  ;;  %5438 = vmatpush.bf16.msrb.mxu3 %v5425_v24 }
0x36b9   :  { %5320 = vadd.xlane.f32.xlu1 %v5319_v21  ;;  %5402 = vmatpush.bf16.msra.mxu2 %v5387_v44  ;;  %v6179_v21 = vld [vmem:[%s8655_s18 + $0x68] sm:$0xff] }
0x36bd   :  { %5403 = vmatpush.bf16.msra.mxu2 %v5386_v31 }
0x3724   :  { %v5318_v39 = vpop.xlane.xlu2 %5317 }
0x3725   :  { %v5322_v35 = vmul.f32 0.03125, %v5318_v39 }
0x3727   :  { %v5324_v8 = vsub.f32 %v5314_v22, %v5322_v35  ;;  %v6176_v35 = vld [vmem:[%s8655_s18 + $0x50] sm:$0xff] }
0x3729   :  { %v5326_v36 = vmul.f32 %v5324_v8, %v5324_v8 }
0x372b   :  { %v5328_v25 = vsel %vm198_vm0, %v5326_v36, 0.0 }
0x372c   :  { %v5321_v19 = vpop.xlane.xlu1 %5320  ;;  %5329 = vadd.xlane.f32.xlu0 %v5328_v25  ;;  %v6174_v25 = vld [vmem:[%s8655_s18 + $0x40] sm:$0xff] }
0x372d   :  { %v5323_v15 = vmul.f32 0.03125, %v5321_v19  ;;  %v6175_v19 = vld [vmem:[%s8655_s18 + $0x48] sm:$0xff] }
0x372f   :  { %v5325_v55 = vsub.f32 %v5315_v18, %v5323_v15  ;;  %v6178_v18 = vld [vmem:[%s8655_s18 + $0x60] sm:$0xff]  ;;  %v5422_v15 = vpack.c.bf16 %v6175_v19, %v6174_v25 }
0x3730   :  { %v5424_v39 = vpack.c.bf16 %v6179_v21, %v6178_v18 }
0x3731   :  { %v5327_v32 = vmul.f32 %v5325_v55, %v5325_v55 }
0x3732   :  { %5439 = vmatpush.bf16.msrb.mxu3 %v5424_v39 }
0x3733   :  { %v5331_v33 = vsel %vm198_vm0, %v5327_v32, 0.0  ;;  %v6417_v32 = vld [vmem:[#allocation5 + $0x7] ss:$0 sm:$0xff] }
0x3734   :  { %5332 = vadd.xlane.f32.xlu2 %v5331_v33 }
0x379f   :  { %v5330_v10 = vpop.xlane.xlu0 %5329 }
0x37a0   :  { %v5334_v38 = vmul.f32 0.032258064, %v5330_v10 }
0x37a2   :  { %6750 = vrsqrt.f32 %v5334_v38  ;;  %vm5343_vm12 = vcmp.eq.f32.partialorder %v5334_v38, inf  ;;  %v5346_v62 = vand.u32 2147483648, %v5334_v38  ;;  %vm5345_vm15 = vcmp.eq.f32.partialorder %v5334_v38, 0.0 }
0x37a7   :  { %v5333_v12 = vpop.xlane.xlu2 %5332 }
0x37a8   :  { %v6751_v2 = vpop.eup %6750  ;;  %v5335_v50 = vmul.f32 0.032258064, %v5333_v12 }
0x37a9   :  { %v5337_v30 = vmul.f32 %v6751_v2, %v5334_v38 }
0x37aa   :  { %6752 = vrsqrt.f32 %v5335_v50  ;;  %vm5355_vm3 = vcmp.eq.f32.partialorder %v5335_v50, inf  ;;  %v5358_v7 = vand.u32 2147483648, %v5335_v50  ;;  %vm5357_vm4 = vcmp.eq.f32.partialorder %v5335_v50, 0.0 }
0x37ab   :  { %v5338_v51 = vmul.f32 %v6751_v2, %v5337_v30  ;;  %v5536_v30 = vadd.f32 %v8428_v14, %v8425_v37 }
0x37ad   :  { %v5339_v57 = vmul.f32 0.5, %v5338_v51 }
0x37af   :  { %v5340_v58 = vsub.f32 1.5, %v5339_v57 }
0x37b0   :  { %v6753_v43 = vpop.eup %6752 }
0x37b1   :  { %v5341_v61 = vmul.f32 %v6751_v2, %v5340_v58  ;;  %v5349_v34 = vmul.f32 %v6753_v43, %v5335_v50  ;;  %v5540_v58 = vmax.f32 %v5536_v30, 0.0 }
0x37b3   :  { %v5342_v46 = vmul.f32 %v5341_v61, %v5334_v38  ;;  %v5350_v3 = vmul.f32 %v6753_v43, %v5349_v34  ;;  %v5547_v61 = vmul.f32 %v8431_v45, %v5540_v58 }
0x37b5   :  { %v5344_v26 = vsel %vm5343_vm12, %v5334_v38, %v5342_v46  ;;  %v5351_v52 = vmul.f32 0.5, %v5350_v3  ;;  %v5549_v34 = vsel %vm1537_vm10, %v5547_v61, 0.0  ;;  %vm5817_vm12 = vcmask 517120  }
0x37b6   :  { %v5347_v4 = vsel %vm5345_vm15, %v5346_v62, %v5344_v26 }
0x37b7   :  { %v5360_v5 = vadd.f32 1e-06, %v5347_v4  ;;  %v5352_v60 = vsub.f32 1.5, %v5351_v52 }
0x37b9   :  { %v5353_v63 = vmul.f32 %v6753_v43, %v5352_v60  ;;  %6754 = vrcp.f32 %v5360_v5  ;;  %v145_v5 = vld [vmem:[%s8641_s4] sm:$0xff] }
0x37ba   :  { %v8520_v60 = vld [vmem:[%s8643_s6 + $0x1] ss:$0 sm:$0xff]  ;;  %vm147_vm5 = vcmp.gt.f32.partialorder %v145_v5, 0.0  ;;  %v6420_v5 = vld [vmem:[#allocation2 + $0x11] ss:$0 sm:$0xff] }
0x37bb   :  { %v5354_v6 = vmul.f32 %v5353_v63, %v5335_v50 }
0x37bd   :  { %v5356_v1 = vsel %vm5355_vm3, %v5335_v50, %v5354_v6  ;;  %v5552_v6 = vsel %vm1537_vm10, %v8434_v20, 0.0 }
0x37be   :  { %v5359_v9 = vsel %vm5357_vm4, %v5358_v7, %v5356_v1  ;;  %vm5907_vm4 = vcmask 74752  }
0x37bf   :  { %v5361_v59 = vadd.f32 1e-06, %v5359_v9  ;;  %v6755_v11 = vpop.eup %6754 }
0x37c0   :  { %v5366_v28 = vmul.f32 %v6755_v11, %v5324_v8  ;;  %v6177_v8 = vld [vmem:[%s8655_s18 + $0x58] sm:$0xff] }
0x37c1   :  { %6756 = vrcp.f32 %v5361_v59  ;;  %v5423_v36 = vpack.c.bf16 %v6177_v8, %v6176_v35 }
0x37c2   :  { %v5371_v16 = vmul.f32 %v6415_v49, %v5366_v28 }
0x37c3   :  { %5440 = vmatpush.bf16.msrb.mxu3 %v5423_v36 }
0x37c4   :  { %v5378_v29 = vadd.f32 %v6416_v54, %v5371_v16 }
0x37c7   :  { %v6757_v47 = vpop.eup %6756  ;;  %5441 = vmatpush.bf16.msrb.mxu3 %v5422_v15  ;;  %v6196_v15 = vld [vmem:[%s8650_s13 + $0x30] sm:$0xff] }
0x37c8   :  { %v5367_v56 = vmul.f32 %v6757_v47, %v5325_v55 }
0x37ca   :  { %v5372_v53 = vmul.f32 %v6415_v49, %v5367_v56 }
0x37cc   :  { %v5379_v13 = vadd.f32 %v6416_v54, %v5372_v53 }
0x37ce   :  { %v5385_v22 = vpack.c.bf16 %v5379_v13, %v5378_v29 }
0x37d0   :  { %6173 = vmatmul.msk.bf16.vlgmr.msra.gmra.mxu2 %vm198_vm0, %v5385_v22 }
0x3853   :  { %v5405_v55 = vpop.f32.mrf.mxu2 }
0x3854   :  { %v5406_v33 = vadd.f32 %v6417_v32, %v5405_v55  ;;  %v6197_v55 = vld [vmem:[%s8650_s13 + $0x38] sm:$0xff] }
0x3856   :  { %v5410_v23 = vmax.f32 %v5406_v33, 0.0  ;;  %v5672_v33 = vpack.c.bf16 %v6197_v55, %v6196_v15 }
0x3858   :  { %5687 = vmatpush.bf16.msrb.mxu2 %v5672_v33 }
0x385b   :  { %v5407_v10 = vpop.f32.mrf.mxu2 }
0x385c   :  { %v5408_v38 = vadd.f32 %v6417_v32, %v5407_v10 }
0x385e   :  { %v5411_v40 = vmax.f32 %v5408_v38, 0.0  ;;  %v6194_v38 = vld [vmem:[%s8650_s13 + $0x20] sm:$0xff] }
0x3860   :  { %v5421_v41 = vpack.c.bf16 %v5411_v40, %v5410_v23  ;;  %v6195_v23 = vld [vmem:[%s8650_s13 + $0x28] sm:$0xff] }
0x3862   :  { %6182 = vmatmul.msk.bf16.vlgmr.msrb.gmra.mxu3 %vm1537_vm10, %v5421_v41  ;;  %v5671_v41 = vpack.c.bf16 %v6195_v23, %v6194_v38 }
0x3864   :  { %5688 = vmatpush.bf16.msrb.mxu2 %v5671_v41 }
0x38e5   :  { %v5443_v44 = vpop.f32.mrf.mxu3 }
0x38e6   :  { %v5444_v31 = vadd.f32 %v6418_v42, %v5443_v44 }
0x38e8   :  { %v5448_v12 = vadd.f32 %v5444_v31, %v5378_v29 }
0x38ea   :  { %v5450_v2 = vsel %vm198_vm0, %v5448_v12, 0.0 }
0x38eb   :  { %5451 = vadd.xlane.f32.xlu1 %v5450_v2 }
0x38ed   :  { %v5445_v50 = vpop.f32.mrf.mxu3 }
0x38ee   :  { %v5446_v51 = vadd.f32 %v6418_v42, %v5445_v50 }
0x38f0   :  { %v5449_v57 = vadd.f32 %v5446_v51, %v5379_v13 }
0x38f2   :  { %v5453_v43 = vsel %vm198_vm0, %v5449_v57, 0.0 }
0x38f3   :  { %5454 = vadd.xlane.f32.xlu0 %v5453_v43 }
0x38fb   :  { %5550 = vadd.xlane.f32.xlu0 %v5549_v34 }
0x395e   :  { %v5452_v46 = vpop.xlane.xlu1 %5451 }
0x395f   :  { %v5456_v3 = vmul.f32 0.03125, %v5452_v46 }
0x3961   :  { %v8505_v62 = vsub.f32 %v5448_v12, %v5456_v3 }
0x3963   :  { %v5460_v26 = vmul.f32 %v8505_v62, %v8505_v62 }
0x3965   :  { %v5462_v37 = vsel %vm198_vm0, %v5460_v26, 0.0 }
0x3966   :  { %v5455_v14 = vpop.xlane.xlu0 %5454  ;;  %5463 = vadd.xlane.f32.xlu2 %v5462_v37 }
0x3967   :  { %v5457_v52 = vmul.f32 0.03125, %v5455_v14 }
0x3969   :  { %v8510_v4 = vsub.f32 %v5449_v57, %v5457_v52 }
0x396b   :  { %v5461_v45 = vmul.f32 %v8510_v4, %v8510_v4 }
0x396d   :  { %v5465_v63 = vsel %vm198_vm0, %v5461_v45, 0.0 }
0x396e   :  { %5466 = vadd.xlane.f32.xlu1 %v5465_v63  ;;  %5553 = vadd.xlane.f32.xlu2 %v5552_v6  ;;  %v5551_v7 = vpop.xlane.xlu0 %5550 }
0x396f   :  { %v5560_v1 = vadd.f32 %v8520_v60, %v5551_v7 }
0x3971   :  { %v5562_v9 = vsel %vm147_vm5, -1e+09, %v5560_v1  ;;  %v6421_v1 = vld [vmem:[#allocation2 + $0x10] ss:$0 sm:$0xff] }
0x3972   :  { %v5565_v59 = vsel %vm5564_vm6, %v5562_v9, -inf }
0x3973   :  { %v5566_v11 = vrot.slane %v5565_v59, 4 }
0x3975   :  { %v5567_v28 = vmax.f32 %v5565_v59, %v5566_v11 }
0x3977   :  { %v5568_v49 = vrot.slane %v5567_v28, 2 }
0x3979   :  { %v5569_v47 = vmax.f32 %v5567_v28, %v5568_v49 }
0x397b   :  { %v5570_v56 = vrot.slane %v5569_v47, 1 }
0x397d   :  { %v5571_v16 = vmax.f32 %v5569_v47, %v5570_v56 }
0x397f   :  { %v5579_v54 = vsub.f32 %v5562_v9, %v5571_v16 }
0x3981   :  { %v5581_v53 = vmul.f32 1.442695, %v5579_v54 }
0x3983   :  { %6758 = vpow2.f32 %v5581_v53 }
0x3989   :  { %v6759_v20 = vpop.eup %6758 }
0x398a   :  { %v5585_v29 = vsel %vm5564_vm6, %v6759_v20, 0.0 }
0x398b   :  { %v5586_v13 = vrot.slane %v5585_v29, 4 }
0x398d   :  { %v5587_v22 = vadd.f32 %v5586_v13, %v5585_v29 }
0x398f   :  { %v5588_v17 = vrot.slane %v5587_v22, 2 }
0x3991   :  { %v5589_v0 = vadd.f32 %v5588_v17, %v5587_v22 }
0x3993   :  { %v5590_v24 = vrot.slane %v5589_v0, 1 }
0x3995   :  { %v5591_v18 = vadd.f32 %v5590_v24, %v5589_v0 }
0x3997   :  { %6760 = vrcp.f32 %v5591_v18  ;;  %v6422_v18 = vld [vmem:[#allocation5 + $0x1] ss:$0 sm:$0xff] }
0x399d   :  { %v6761_v21 = vpop.eup %6760 }
0x399e   :  { %v5601_v39 = vmul.f32 %v6761_v21, %v6759_v20 }
0x39a0   :  { %5605 = vperm.xlu2 %6374, %v5601_v39  }
0x39d9   :  { %v5464_v35 = vpop.xlane.xlu2 %5463 }
0x39da   :  { %v5468_v8 = vmul.f32 0.032258064, %v5464_v35  ;;  %v6423_v35 = vld [vmem:[#allocation5 + $0x2] ss:$0 sm:$0xff] }
0x39dc   :  { %6762 = vrsqrt.f32 %v5468_v8  ;;  %vm5477_vm7 = vcmp.eq.f32.partialorder %v5468_v8, inf  ;;  %v5480_v30 = vand.u32 2147483648, %v5468_v8  ;;  %vm5479_vm8 = vcmp.eq.f32.partialorder %v5468_v8, 0.0 }
0x39e1   :  { %v5467_v36 = vpop.xlane.xlu1 %5466  ;;  %v5554_v49 = vpop.xlane.xlu2 %5553 }
0x39e2   :  { %v6763_v25 = vpop.eup %6762  ;;  %v5469_v19 = vmul.f32 0.032258064, %v5467_v36  ;;  %v5561_v47 = vadd.f32 %v8520_v60, %v5554_v49 }
0x39e3   :  { %v5471_v32 = vmul.f32 %v6763_v25, %v5468_v8 }
0x39e4   :  { %6764 = vrsqrt.f32 %v5469_v19  ;;  %vm5489_vm9 = vcmp.eq.f32.partialorder %v5469_v19, inf  ;;  %v5492_v3 = vand.u32 2147483648, %v5469_v19  ;;  %vm5491_vm14 = vcmp.eq.f32.partialorder %v5469_v19, 0.0 }
0x39e5   :  { %v5472_v10 = vmul.f32 %v6763_v25, %v5471_v32 }
0x39e7   :  { %v5473_v40 = vmul.f32 0.5, %v5472_v10 }
0x39e9   :  { %v5474_v42 = vsub.f32 1.5, %v5473_v40 }
0x39ea   :  { %v6765_v44 = vpop.eup %6764 }
0x39eb   :  { %v5475_v31 = vmul.f32 %v6763_v25, %v5474_v42  ;;  %v5483_v12 = vmul.f32 %v6765_v44, %v5469_v19 }
0x39ed   :  { %v5476_v2 = vmul.f32 %v5475_v31, %v5468_v8  ;;  %v5484_v50 = vmul.f32 %v6765_v44, %v5483_v12  ;;  %v149_v31 = vld [vmem:[%s8642_s5] sm:$0xff] }
0x39ee   :  { %v6424_v12 = vld [vmem:[%s8643_s6] ss:$0 sm:$0xff]  ;;  %vm151_vm11 = vcmp.gt.f32.partialorder %v149_v31, 0.0 }
0x39ef   :  { %v5478_v51 = vsel %vm5477_vm7, %v5468_v8, %v5476_v2  ;;  %v5485_v57 = vmul.f32 0.5, %v5484_v50 }
0x39f0   :  { %v5481_v58 = vsel %vm5479_vm8, %v5480_v30, %v5478_v51 }
0x39f1   :  { %v5494_v43 = vadd.f32 1e-06, %v5481_v58  ;;  %v5486_v61 = vsub.f32 1.5, %v5485_v57 }
0x39f3   :  { %v5487_v34 = vmul.f32 %v6765_v44, %v5486_v61  ;;  %6766 = vrcp.f32 %v5494_v43  ;;  %v150_v43 = vld [vmem:[%s8642_s5 + $0x8] sm:$0xff] }
0x39f4   :  { %vm152_vm13 = vcmp.gt.f32.partialorder %v150_v43, 0.0 }
0x39f5   :  { %v5488_v46 = vmul.f32 %v5487_v34, %v5469_v19 }
0x39f7   :  { %v5490_v26 = vsel %vm5489_vm9, %v5469_v19, %v5488_v46  ;;  %v6191_v46 = vld [vmem:[%s8650_s13 + $0x50] sm:$0xff] }
0x39f8   :  { %v5493_v37 = vsel %vm5491_vm14, %v5492_v3, %v5490_v26  ;;  %v6192_v3 = vld [vmem:[%s8650_s13 + $0x58] sm:$0xff] }
0x39f9   :  { %v5495_v14 = vadd.f32 1e-06, %v5493_v37  ;;  %v6767_v52 = vpop.eup %6766  ;;  %v5637_v37 = vpack.c.bf16 %v6192_v3, %v6191_v46 }
0x39fa   :  { %v5500_v45 = vmul.f32 %v6767_v52, %v8505_v62  ;;  %v146_v62 = vld [vmem:[%s8641_s4 + $0x8] sm:$0xff]  ;;  %v5606_v51 = vpop.permute.xlu2 %5605 }
0x39fb   :  { %6768 = vrcp.f32 %v5495_v14  ;;  %vm148_vm2 = vcmp.gt.f32.partialorder %v146_v62, 0.0  ;;  %v5613_v61 = vmul.f32 %v5606_v51, %v7906_v48  ;;  %5658 = vmatpush.bf16.msrb.mxu1 %v5637_v37  ;;  %v6189_v48 = vld [vmem:[%s8650_s13 + $0x40] sm:$0xff] }
0x39fc   :  { %v5505_v7 = vmul.f32 %v6420_v5, %v5500_v45 }
0x39fd   :  { %v5615_v45 = vsel %vm198_vm0, %v5613_v61, 0.0 }
0x39fe   :  { %v8542_v59 = vadd.f32 %v6421_v1, %v5505_v7  ;;  %v5616_v49 = vrot.slane %v5615_v45, 4 }
0x3a01   :  { %v6769_v63 = vpop.eup %6768 }
0x3a02   :  { %v5501_v6 = vmul.f32 %v6769_v63, %v8510_v4  ;;  %v5563_v4 = vsel %vm148_vm2, -1e+09, %v5561_v47 }
0x3a03   :  { %v5572_v56 = vsel %vm5564_vm6, %v5563_v4, -inf }
0x3a04   :  { %v5506_v9 = vmul.f32 %v6420_v5, %v5501_v6  ;;  %v5573_v16 = vrot.slane %v5572_v56, 4  ;;  %v6190_v6 = vld [vmem:[%s8650_s13 + $0x48] sm:$0xff] }
0x3a06   :  { %v8544_v11 = vadd.f32 %v6421_v1, %v5506_v9  ;;  %v5574_v54 = vmax.f32 %v5572_v56, %v5573_v16  ;;  %v5636_v1 = vpack.c.bf16 %v6190_v6, %v6189_v48  ;;  %v5617_v16 = vadd.f32 %v5616_v49, %v5615_v45  ;;  %v5782_v6 = vld [vmem:[%s8650_s13] sm:$0xff] }
0x3a08   :  { %v5670_v28 = vpack.c.bf16 %v8544_v11, %v8542_v59  ;;  %v5575_v53 = vrot.slane %v5574_v54, 2  ;;  %5659 = vmatpush.bf16.msrb.mxu1 %v5636_v1 }
0x3a0a   :  { %6198 = vmatmul.msk.bf16.vlgmr.msrb.gmra.mxu2 %vm198_vm0, %v5670_v28  ;;  %v5576_v20 = vmax.f32 %v5574_v54, %v5575_v53 }
0x3a0c   :  { %v5577_v29 = vrot.slane %v5576_v20, 1 }
0x3a0e   :  { %v5578_v13 = vmax.f32 %v5576_v20, %v5577_v29  ;;  %v5618_v29 = vrot.slane %v5617_v16, 2 }
0x3a10   :  { %v5580_v22 = vsub.f32 %v5563_v4, %v5578_v13 }
0x3a12   :  { %v5583_v17 = vmul.f32 1.442695, %v5580_v22 }
0x3a14   :  { %6770 = vpow2.f32 %v5583_v17 }
0x3a1a   :  { %v6771_v0 = vpop.eup %6770 }
0x3a1b   :  { %v5592_v24 = vsel %vm5564_vm6, %v6771_v0, 0.0 }
0x3a1c   :  { %v5593_v21 = vrot.slane %v5592_v24, 4 }
0x3a1e   :  { %v5594_v8 = vadd.f32 %v5593_v21, %v5592_v24  ;;  %v5619_v24 = vadd.f32 %v5618_v29, %v5617_v16 }
0x3a20   :  { %v5595_v19 = vrot.slane %v5594_v8, 2 }
0x3a22   :  { %v5596_v33 = vadd.f32 %v5595_v19, %v5594_v8 }
0x3a24   :  { %v5597_v23 = vrot.slane %v5596_v33, 1 }
0x3a26   :  { %v5598_v41 = vadd.f32 %v5597_v23, %v5596_v33 }
0x3a28   :  { %6772 = vrcp.f32 %v5598_v41 }
0x3a2e   :  { %v6773_v42 = vpop.eup %6772 }
0x3a2f   :  { %v5602_v44 = vmul.f32 %v6773_v42, %v6771_v0 }
0x3a8d   :  { %v5690_v39 = vpop.f32.mrf.mxu2 }
0x3a8e   :  { %v5691_v60 = vadd.f32 %v6422_v18, %v5690_v39 }
0x3a90   :  { %v5695_v36 = vmax.f32 %v5691_v60, 0.0 }
0x3a92   :  { %v5702_v25 = vmul.f32 %v6423_v35, %v5695_v36  ;;  %v5620_v36 = vrot.slane %v5619_v24, 1 }
0x3a94   :  { %v5704_v15 = vsel %vm1537_vm10, %v5702_v25, 0.0 }
0x3a95   :  { %v5692_v55 = vpop.f32.mrf.mxu2  ;;  %5705 = vadd.xlane.f32.xlu1 %v5704_v15 }
0x3a96   :  { %v5693_v32 = vadd.f32 %v6422_v18, %v5692_v55 }
0x3a98   :  { %v5696_v10 = vmax.f32 %v5693_v32, 0.0  ;;  %v5621_v32 = vadd.f32 %v5620_v36, %v5619_v24 }
0x3a9a   :  { %v5703_v38 = vmul.f32 %v6423_v35, %v5696_v10  ;;  %v5634_v42 = vpack.c.bf16 %v5621_v32, %v5621_v32 }
0x3a9c   :  { %v5707_v40 = vsel %vm1537_vm10, %v5703_v38, 0.0 }
0x3a9d   :  { %5708 = vadd.xlane.f32.xlu0 %v5707_v40 }
0x3aae   :  { %5610 = vperm.xlu1 %6375, %v5602_v44  }
0x3b08   :  { %v5706_v2 = vpop.xlane.xlu1 %5705 }
0x3b09   :  { %v5714_v50 = vadd.f32 %v6424_v12, %v5706_v2 }
0x3b0b   :  { %v5716_v30 = vsel %vm151_vm11, -1e+09, %v5714_v50 }
0x3b0c   :  { %v5718_v57 = vsel %vm5564_vm6, %v5716_v30, -inf }
0x3b0d   :  { %v5719_v58 = vrot.slane %v5718_v57, 4 }
0x3b0f   :  { %v5720_v34 = vmax.f32 %v5718_v57, %v5719_v58 }
0x3b10   :  { %v5709_v26 = vpop.xlane.xlu0 %5708 }
0x3b11   :  { %v5721_v14 = vrot.slane %v5720_v34, 2  ;;  %v5715_v52 = vadd.f32 %v6424_v12, %v5709_v26 }
0x3b13   :  { %v5722_v5 = vmax.f32 %v5720_v34, %v5721_v14  ;;  %v5717_v63 = vsel %vm152_vm13, -1e+09, %v5715_v52  ;;  %v5784_v14 = vld [vmem:[%s8650_s13 + $0x10] sm:$0xff]  ;;  %v5785_v52 = vld [vmem:[%s8650_s13 + $0x18] sm:$0xff] }
0x3b14   :  { %v5725_v7 = vsel %vm5564_vm6, %v5717_v63, -inf }
0x3b15   :  { %v5723_v9 = vrot.slane %v5722_v5, 1  ;;  %v5726_v28 = vrot.slane %v5725_v7, 4 }
0x3b17   :  { %v5724_v62 = vmax.f32 %v5722_v5, %v5723_v9  ;;  %v5727_v47 = vmax.f32 %v5725_v7, %v5726_v28  ;;  %v5789_v5 = vpack.c.bf16 %v5785_v52, %v5784_v14  ;;  %v5783_v7 = vld [vmem:[%s8650_s13 + $0x8] sm:$0xff] }
0x3b18   :  { %v5788_v1 = vpack.c.bf16 %v5783_v7, %v5782_v6  ;;  %v6427_v6 = vld [vmem:[#allocation5 + $0xb] ss:$0 sm:$0xff] }
0x3b19   :  { %v5732_v4 = vsub.f32 %v5716_v30, %v5724_v62  ;;  %v5728_v56 = vrot.slane %v5727_v47, 2  ;;  %v5645_v30 = vunpack.c.l.b16 %v5634_v42  ;;  %5809 = vmatpush.bf16.msrb.mxu0 %v5789_v5 }
0x3b1b   :  { %v5734_v54 = vmul.f32 1.442695, %v5732_v4  ;;  %v5729_v53 = vmax.f32 %v5727_v47, %v5728_v56 }
0x3b1d   :  { %6774 = vpow2.f32 %v5734_v54  ;;  %v5730_v20 = vrot.slane %v5729_v53, 1  ;;  %5810 = vmatpush.bf16.msrb.mxu0 %v5788_v1 }
0x3b1f   :  { %v5731_v13 = vmax.f32 %v5729_v53, %v5730_v20 }
0x3b20   :  { %v5611_v22 = vpop.permute.xlu1 %5610 }
0x3b21   :  { %v5733_v17 = vsub.f32 %v5717_v63, %v5731_v13  ;;  %v5614_v0 = vmul.f32 %v5611_v22, %v7908_v27 }
0x3b23   :  { %v6775_v18 = vpop.eup %6774  ;;  %v5736_v21 = vmul.f32 1.442695, %v5733_v17  ;;  %v5622_v39 = vsel %vm198_vm0, %v5614_v0, 0.0 }
0x3b24   :  { %v5738_v60 = vsel %vm5564_vm6, %v6775_v18, 0.0  ;;  %v5623_v35 = vrot.slane %v5622_v39, 4 }
0x3b25   :  { %v5739_v8 = vrot.slane %v5738_v60, 4  ;;  %6776 = vpow2.f32 %v5736_v21 }
0x3b26   :  { %v5624_v25 = vadd.f32 %v5623_v35, %v5622_v39  ;;  %v6425_v35 = vld [vmem:[#allocation5 + $0x3] ss:$0 sm:$0xff] }
0x3b27   :  { %v5740_v19 = vadd.f32 %v5739_v8, %v5738_v60  ;;  %v6426_v8 = vld [vmem:[#allocation5] ss:$0 sm:$0xff] }
0x3b28   :  { %v5625_v15 = vrot.slane %v5624_v25, 2 }
0x3b29   :  { %v5741_v55 = vrot.slane %v5740_v19, 2 }
0x3b2a   :  { %v5626_v33 = vadd.f32 %v5625_v15, %v5624_v25 }
0x3b2b   :  { %v6777_v10 = vpop.eup %6776  ;;  %v5742_v38 = vadd.f32 %v5741_v55, %v5740_v19 }
0x3b2c   :  { %v5745_v27 = vsel %vm5564_vm6, %v6777_v10, 0.0  ;;  %v5627_v23 = vrot.slane %v5626_v33, 1 }
0x3b2d   :  { %v5743_v40 = vrot.slane %v5742_v38, 1  ;;  %v5746_v41 = vrot.slane %v5745_v27, 4 }
0x3b2e   :  { %v5628_v44 = vadd.f32 %v5627_v23, %v5626_v33 }
0x3b2f   :  { %v5747_v31 = vadd.f32 %v5746_v41, %v5745_v27  ;;  %v5744_v12 = vadd.f32 %v5743_v40, %v5742_v38  ;;  %v5861_v40 = vld [vmem:[%s8654_s17 + $0x30] sm:$0xff]  ;;  %v5862_v41 = vld [vmem:[%s8654_s17 + $0x38] sm:$0xff] }
0x3b30   :  { %v5635_v2 = vpack.c.bf16 %v5628_v44, %v5628_v44  ;;  %v5867_v42 = vpack.c.bf16 %v5862_v41, %v5861_v40  ;;  %v5859_v44 = vld [vmem:[%s8654_s17 + $0x20] sm:$0xff] }
0x3b31   :  { %v5748_v50 = vrot.slane %v5747_v31, 2  ;;  %6778 = vrcp.f32 %v5744_v12 }
0x3b32   :  { %v5646_v51 = vunpack.c.l.b16 %v5635_v2  ;;  %5879 = vmatpush.bf16.msra.mxu3 %v5867_v42  ;;  %v5857_v2 = vld [vmem:[%s8654_s17 + $0x10] sm:$0xff] }
0x3b33   :  { %v5749_v57 = vadd.f32 %v5748_v50, %v5747_v31  ;;  %v5860_v31 = vld [vmem:[%s8654_s17 + $0x28] sm:$0xff]  ;;  %v5858_v50 = vld [vmem:[%s8654_s17 + $0x18] sm:$0xff] }
0x3b34   :  { %v5647_v58 = vsel %vm588_vm1, %v5646_v51, %v5645_v30  ;;  %v5866_v12 = vpack.c.bf16 %v5860_v31, %v5859_v44  ;;  %v5865_v51 = vpack.c.bf16 %v5858_v50, %v5857_v2 }
0x3b35   :  { %v5750_v43 = vrot.slane %v5749_v57, 1  ;;  %v5648_v61 = vpack.c.b16 %v5647_v58, %v5647_v58  ;;  %v5855_v58 = vld [vmem:[%s8654_s17] sm:$0xff] }
0x3b36   :  { %5880 = vmatpush.bf16.msra.mxu3 %v5866_v12 }
0x3b37   :  { %v6779_v34 = vpop.eup %6778  ;;  %6193 = vmatmul.msk.bf16.vlgmr.msrb.gmra.mxu1 %vm198_vm0, %v5648_v61  ;;  %v5751_v46 = vadd.f32 %v5750_v43, %v5749_v57  ;;  %v5856_v43 = vld [vmem:[%s8654_s17 + $0x8] sm:$0xff] }
0x3b38   :  { %v5754_v3 = vmul.f32 %v6779_v34, %v6775_v18  ;;  %v5864_v61 = vpack.c.bf16 %v5856_v43, %v5855_v58 }
0x3b39   :  { %6780 = vrcp.f32 %v5751_v46 }
0x3b3a   :  { %5758 = vperm.xlu0 %6376, %v5754_v3   ;;  %5881 = vmatpush.bf16.msra.mxu3 %v5865_v51 }
0x3b3e   :  { %5882 = vmatpush.bf16.msra.mxu3 %v5864_v61 }
0x3b3f   :  { %v6781_v26 = vpop.eup %6780 }
0x3b40   :  { %v5755_v37 = vmul.f32 %v6781_v26, %v6777_v10 }
0x3b42   :  { %5763 = vperm.xlu2 %6374, %v5755_v37  }
0x3b9c   :  { %v5764_v45 = vpop.permute.xlu2 %5763 }
0x3b9d   :  { %v5767_v63 = vmul.f32 %v5764_v45, %v8544_v11 }
0x3b9f   :  { %v5775_v48 = vsel %vm198_vm0, %v5767_v63, 0.0 }
0x3ba0   :  { %v5776_v9 = vrot.slane %v5775_v48, 4 }
0x3ba2   :  { %v5777_v28 = vadd.f32 %v5776_v9, %v5775_v48  ;;  %v6428_v9 = vld [vmem:[#allocation5 + $0xa] ss:$0 sm:$0xff] }
0x3ba4   :  { %v5778_v49 = vrot.slane %v5777_v28, 2 }
0x3ba6   :  { %v5779_v11 = vadd.f32 %v5778_v49, %v5777_v28 }
0x3ba8   :  { %v5780_v16 = vrot.slane %v5779_v11, 1 }
0x3baa   :  { %v5781_v29 = vadd.f32 %v5780_v16, %v5779_v11 }
0x3bac   :  { %v5759_v62 = vpop.permute.xlu0 %5758  ;;  %v5787_v17 = vpack.c.bf16 %v5781_v29, %v5781_v29 }
0x3bad   :  { %v5766_v47 = vmul.f32 %v5759_v62, %v8542_v59 }
0x3bae   :  { %v5797_v21 = vunpack.c.l.b16 %v5787_v17 }
0x3baf   :  { %v5768_v4 = vsel %vm198_vm0, %v5766_v47, 0.0  ;;  %v6429_v47 = vld [vmem:[%s8644_s7] ss:$0 sm:$0xff] }
0x3bb0   :  { %v5769_v56 = vrot.slane %v5768_v4, 4 }
0x3bb2   :  { %v5770_v54 = vadd.f32 %v5769_v56, %v5768_v4 }
0x3bb4   :  { %v5771_v53 = vrot.slane %v5770_v54, 2  ;;  %v5661_v20 = vpop.f32.mrf.mxu1 }
0x3bb5   :  { %v5662_v25 = vadd.f32 %v6425_v35, %v5661_v20 }
0x3bb6   :  { %v5772_v13 = vadd.f32 %v5771_v53, %v5770_v54 }
0x3bb8   :  { %v5773_v22 = vrot.slane %v5772_v13, 1 }
0x3bba   :  { %v5774_v0 = vadd.f32 %v5773_v22, %v5772_v13 }
0x3bbc   :  { %v5786_v24 = vpack.c.bf16 %v5774_v0, %v5774_v0  ;;  %v5663_v18 = vpop.f32.mrf.mxu1 }
0x3bbe   :  { %v5796_v39 = vunpack.c.l.b16 %v5786_v24 }
0x3bc0   :  { %v5798_v60 = vsel %vm588_vm1, %v5797_v21, %v5796_v39 }
0x3bc1   :  { %v5799_v59 = vpack.c.b16 %v5798_v60, %v5798_v60 }
0x3bc3   :  { %6199 = vmatmul.msk.bf16.vlgmr.msrb.gmra.mxu0 %vm198_vm0, %v5799_v59 }
0x3c40   :  { %v5812_v36 = vpop.f32.mrf.mxu0 }
0x3c41   :  { %v5813_v19 = vadd.f32 %v6426_v8, %v5812_v36 }
0x3c43   :  { %v5816_v15 = vadd.f32 %v5813_v19, %v5662_v25 }
0x3c45   :  { %v5818_v55 = vsel %vm5817_vm12, %v5816_v15, 0.0 }
0x3c46   :  { %5819 = vadd.xlane.f32.xlu1 %v5818_v55 }
0x3c48   :  { %v5814_v32 = vpop.f32.mrf.mxu0 }
0x3cb9   :  { %v5820_v33 = vpop.xlane.xlu1 %5819 }
0x3cba   :  { %v5821_v10 = vmul.f32 0.015625, %v5820_v33 }
0x3cbc   :  { %v5822_v38 = vsub.f32 %v5816_v15, %v5821_v10 }
0x3cbe   :  { %v5823_v27 = vmul.f32 %v5822_v38, %v5822_v38 }
0x3cc0   :  { %v5824_v23 = vsel %vm5817_vm12, %v5823_v27, 0.0 }
0x3cc1   :  { %5825 = vadd.xlane.f32.xlu2 %v5824_v23 }
0x3d34   :  { %v5826_v30 = vpop.xlane.xlu2 %5825 }
0x3d35   :  { %v5827_v57 = vmul.f32 0.015873017, %v5826_v30 }
0x3d37   :  { %6782 = vrsqrt.f32 %v5827_v57  ;;  %vm5835_vm0 = vcmp.eq.f32.partialorder %v5827_v57, inf  ;;  %v5838_v45 = vand.u32 2147483648, %v5827_v57  ;;  %vm5837_vm1 = vcmp.eq.f32.partialorder %v5827_v57, 0.0 }
0x3d3d   :  { %v6783_v34 = vpop.eup %6782 }
0x3d3e   :  { %v5829_v46 = vmul.f32 %v6783_v34, %v5827_v57 }
0x3d40   :  { %v5830_v3 = vmul.f32 %v6783_v34, %v5829_v46 }
0x3d42   :  { %v5831_v26 = vmul.f32 0.5, %v5830_v3 }
0x3d44   :  { %v5832_v37 = vsub.f32 1.5, %v5831_v26 }
0x3d46   :  { %v5833_v14 = vmul.f32 %v6783_v34, %v5832_v37 }
0x3d48   :  { %v5834_v52 = vmul.f32 %v5833_v14, %v5827_v57 }
0x3d4a   :  { %v5836_v5 = vsel %vm5835_vm0, %v5827_v57, %v5834_v52 }
0x3d4b   :  { %v5839_v63 = vsel %vm5837_vm1, %v5838_v45, %v5836_v5 }
0x3d4c   :  { %v5840_v48 = vadd.f32 1e-06, %v5839_v63 }
0x3d4e   :  { %6784 = vrcp.f32 %v5840_v48 }
0x3d54   :  { %v6785_v7 = vpop.eup %6784 }
0x3d55   :  { %v5844_v1 = vmul.f32 %v6785_v7, %v5822_v38 }
0x3d57   :  { %v5848_v28 = vmul.f32 %v6427_v6, %v5844_v1 }
0x3d59   :  { %v5854_v49 = vadd.f32 %v6428_v9, %v5848_v28 }
0x3d5b   :  { %v5863_v62 = vpack.c.bf16 %v5854_v49, %v5854_v49 }
0x3d5d   :  { %6200 = vmatmul.msk.bf16.vlgmr.msra.gmra.mxu3 %vm1537_vm10, %v5863_v62 }
0x3de0   :  { %v5884_v11 = vpop.f32.mrf.mxu3 }
0x3de1   :  { %v5885_v4 = vadd.f32 %v6429_v47, %v5884_v11 }
0x3de3   :  { %v5888_v56 = vsub.f32 0.0, %v5885_v4 }
0x3de5   :  { %v5889_v16 = vmul.f32 1.442695, %v5888_v56 }
0x3de7   :  { %6786 = vpow2.f32 %v5889_v16 }
0x3de8   :  { %v5886_v54 = vpop.f32.mrf.mxu3 }
0x3ded   :  { %v6787_v53 = vpop.eup %6786 }
0x3dee   :  { %v5891_v20 = vadd.f32 1.0, %v6787_v53 }
0x3df0   :  { %6788 = vrcp.f32 %v5891_v20  ;;  %v5903_v17 = vand.u32 2147483648, %v5891_v20  ;;  %v5901_v24 = vand.u32 2147483647, %v5891_v20  ;;  %vm5897_vm10 = vweird.f32 %v5891_v20 }
0x3df2   :  { %v5904_v21 = vor.u32 1.1754944e-38, %v5903_v17  ;;  %vm5902_vm5 = vcmp.eq.f32.partialorder %v5901_v24, 8.507059e+37 }
0x3df6   :  { %v6789_v29 = vpop.eup %6788 }
0x3df7   :  { %v5893_v13 = vmul.f32 %v6789_v29, %v5891_v20  ;;  %vm5898_vm15 = vweird.f32 %v6789_v29 }
0x3df8   :  { %vm5899_vm3 = vmor %vm5897_vm10, %vm5898_vm15 }
0x3df9   :  { %v5894_v22 = vsub.f32 1.0, %v5893_v13 }
0x3dfb   :  { %v5895_v0 = vmul.f32 %v6789_v29, %v5894_v22 }
0x3dfd   :  { %v5896_v18 = vadd.f32 %v6789_v29, %v5895_v0 }
0x3dff   :  { %v5900_v39 = vsel %vm5899_vm3, %v6789_v29, %v5896_v18 }
0x3e00   :  { %v5905_v60 = vsel %vm5902_vm5, %v5904_v21, %v5900_v39 }
0x3e01   :  { %5908 = vst.msk [vmem:[#allocation10] sm:$0x3] %vm5907_vm4, %v5905_v60 }
0x3e02   :  { %5919 = dma.vmem_to_hbm [thread:$0]  %s5915_s12, 32, %s5917_s29, [#allocation4]  }
0x3e03   :  { %6916 = dma.done.wait [#allocation4], 32  }
0x3e04   :  { %6917 = vsyncadd [#allocation4], 4294967264 }
0x3e05   :  { %5924 = vsyncpa [#allocation3], 1 }
0x3e06   :  { %5925 = vsyncpa [#allocation6], 1 }
0x3e07   :  { %5926 = vsyncpa [#allocation9], 1 }
0x3e08   :  { %5927 = vsyncpa [#allocation4], 1 }

</bundles_post_ra>
